<compile_context>
chip_gen: v5e
topology: v5e:2x2
jax: 0.10.0
libtpu: 0.0.40
codegen_flags: <defaults>
</compile_context>

<pallas_src>
import math

import jax
import jax.numpy as jnp
import numpy as np
from jax.experimental import pallas as pl
from jax.experimental.pallas import tpu as pltpu

EPS = 1e-5


def _gelu_exact(x):
    # PyTorch nn.GELU() default: exact erf-based GELU (f32 math).
    return 0.5 * x * (1.0 + jax.lax.erf(x * (1.0 / math.sqrt(2.0))))


def _layernorm(x, gamma, beta):
    # LayerNorm over the last dim, biased variance, eps=1e-5 (PyTorch default).
    mu = jnp.mean(x, axis=-1, keepdims=True)
    xc = x - mu
    var = jnp.mean(xc * xc, axis=-1, keepdims=True)
    return xc * jax.lax.rsqrt(var + EPS) * gamma + beta


def mixer_block_kernel(
    x_ref,                      # (Bt, N, D) f32
    ln1_g_ref, ln1_b_ref,       # (1, D) f32
    tw1_ref, tb1_ref,           # (T, N) bf16, (T, 1) f32   [PyTorch (out, in) layout]
    tw2_ref, tb2_ref,           # (N, T) bf16, (N, 1) f32   [PyTorch (out, in) layout]
    ln2_g_ref, ln2_b_ref,       # (1, D) f32
    cw1_ref, cb1_ref,           # (D, C) bf16, (1, C) f32   [(in, out) layout]
    cw2_ref, cb2_ref,           # (C, D) bf16, (1, D) f32   [(in, out) layout]
    o_ref,                      # (Bt, N, D) f32
):
    x = x_ref[...]                                   # (Bt, N, D) f32
    Bt, N, D = x.shape

    # Hoist all parameter reads (JAX does not CSE broadcasts).
    ln1_g = ln1_g_ref[...]
    ln1_b = ln1_b_ref[...]
    ln2_g = ln2_g_ref[...]
    ln2_b = ln2_b_ref[...]
    tw1 = tw1_ref[...]
    tb1 = tb1_ref[...]
    tw2 = tw2_ref[...]
    tb2 = tb2_ref[...]
    cw1 = cw1_ref[...]
    cb1 = cb1_ref[...]
    cw2 = cw2_ref[...]
    cb2 = cb2_ref[...]

    # ---- token mixing: LayerNorm(D) -> MLP over N (no transposes) ----
    xn = _layernorm(x, ln1_g, ln1_b)                 # (Bt, N, D) f32
    xn_b16 = xn.astype(jnp.bfloat16)

    for b in range(Bt):                              # static unroll over batch tile
        # h[t, d] = sum_n tw1[t, n] * xn[b, n, d]   -> (T, D)
        h = jnp.dot(tw1, xn_b16[b], preferred_element_type=jnp.float32) + tb1
        h = _gelu_exact(h)
        # t[n, d] = sum_t tw2[n, t] * h[t, d]       -> (N, D)   (already 'b n d')
        t = jnp.dot(tw2, h.astype(jnp.bfloat16),
                    preferred_element_type=jnp.float32) + tb2
        # Stash x1 = x + token_mix(x) in the output buffer (reused below).
        o_ref[b] = x[b] + t

    # ---- channel mixing: LayerNorm(D) -> MLP over D, flattened to (Bt*N, D) ----
    x1f = o_ref[...].reshape(Bt * N, D)              # (Bt*N, D) f32
    yn = _layernorm(x1f, ln2_g, ln2_b)
    h2 = jnp.dot(yn.astype(jnp.bfloat16), cw1,
                 preferred_element_type=jnp.float32) + cb1     # (Bt*N, C)
    h2 = _gelu_exact(h2)
    c = jnp.dot(h2.astype(jnp.bfloat16), cw2,
                preferred_element_type=jnp.float32) + cb2      # (Bt*N, D)

    o_ref[...] = (x1f + c).reshape(Bt, N, D)


def mixer_block(x, params, *, batch_tile=None):
    """x: (B, N, D) float32.  params: dict of weights (see init_params)."""
    B, N, D = x.shape
    T = params["tw1"].shape[0]          # tw1: (T, N)
    C = params["cw1"].shape[1]          # cw1: (D, C)

    if batch_tile is None:
        batch_tile = 2 if B % 2 == 0 else 1
    assert B % batch_tile == 0, "batch must be divisible by batch_tile"
    Bt = batch_tile

    def full(shape):
        # Whole-array block, resident across the grid (constant index map).
        return pl.BlockSpec(shape, lambda g: (0,) * len(shape))

    return pl.pallas_call(
        mixer_block_kernel,
        out_shape=jax.ShapeDtypeStruct((B, N, D), jnp.float32),
        grid_spec=pltpu.PrefetchScalarGridSpec(
            num_scalar_prefetch=0,
            grid=(B // Bt,),
            in_specs=[
                pl.BlockSpec((Bt, N, D), lambda g: (g, 0, 0)),   # x
                full((1, D)), full((1, D)),                      # ln1 gamma/beta
                full((T, N)), full((T, 1)),                      # token fc1 (W, b)
                full((N, T)), full((N, 1)),                      # token fc2 (W, b)
                full((1, D)), full((1, D)),                      # ln2 gamma/beta
                full((D, C)), full((1, C)),                      # channel fc1 (W^T, b)
                full((C, D)), full((1, D)),                      # channel fc2 (W^T, b)
            ],
            out_specs=pl.BlockSpec((Bt, N, D), lambda g: (g, 0, 0)),
        ),
        compiler_params=pltpu.CompilerParams(
            dimension_semantics=("parallel",),
            vmem_limit_bytes=48 * 1024 * 1024,
        ),
    )(
        x,
        params["ln1_g"], params["ln1_b"],
        params["tw1"], params["tb1"], params["tw2"], params["tb2"],
        params["ln2_g"], params["ln2_b"],
        params["cw1"], params["cb1"], params["cw2"], params["cb2"],
    )


def init_params(key, dim, num_patches, tokens_mlp_dim, channels_mlp_dim):
    """Deterministic synthetic parameters.

    Token-MLP weights are stored in PyTorch (out, in) layout so the kernel's
    W @ x matmuls need no transposes; channel-MLP weights are stored (in, out)
    so the kernel computes x @ W.  Matmul weights are bf16, everything else f32."""
    ks = jax.random.split(key, 8)
    scale = 0.02
    nrm = lambda k, shape: (scale * jax.random.normal(k, shape, jnp.float32))
    params = {
        # token_mix LayerNorm(dim)
        "ln1_g": jnp.ones((1, dim), jnp.float32),
        "ln1_b": jnp.zeros((1, dim), jnp.float32),
        # token MlpBlock(num_patches, tokens_mlp_dim): fc1.weight (T, N), fc2.weight (N, T)
        "tw1": nrm(ks[0], (tokens_mlp_dim, num_patches)).astype(jnp.bfloat16),
        "tb1": nrm(ks[1], (tokens_mlp_dim, 1)),
        "tw2": nrm(ks[2], (num_patches, tokens_mlp_dim)).astype(jnp.bfloat16),
        "tb2": nrm(ks[3], (num_patches, 1)),
        # channel_mix LayerNorm(dim)
        "ln2_g": jnp.ones((1, dim), jnp.float32),
        "ln2_b": jnp.zeros((1, dim), jnp.float32),
        # channel MlpBlock(dim, channels_mlp_dim): stored transposed -> (in, out)
        "cw1": nrm(ks[4], (dim, channels_mlp_dim)).astype(jnp.bfloat16),
        "cb1": nrm(ks[5], (1, channels_mlp_dim)),
        "cw2": nrm(ks[6], (channels_mlp_dim, dim)).astype(jnp.bfloat16),
        "cb2": nrm(ks[7], (1, dim)),
    }
    return params


def mixer_block_ref(x, p):
    """Pure-JAX f32 reference mirroring the PyTorch forward, for verification."""
    f32 = lambda a: a.astype(jnp.float32)

    def ln(v, g, b):
        mu = jnp.mean(v, axis=-1, keepdims=True)
        var = jnp.mean((v - mu) ** 2, axis=-1, keepdims=True)
        return (v - mu) / jnp.sqrt(var + EPS) * g + b

    # token mix: 'b n d -> b d n', MlpBlock(num_patches, tokens_mlp_dim), back
    xn = ln(x, p["ln1_g"], p["ln1_b"])                                  # (B, N, D)
    h = jnp.einsum("bnd,tn->bdt", xn, f32(p["tw1"])) + p["tb1"][:, 0]   # (B, D, T)
    h = _gelu_exact(h)
    t = jnp.einsum("bdt,nt->bdn", h, f32(p["tw2"])) + p["tb2"][:, 0]    # (B, D, N)
    x1 = x + jnp.swapaxes(t, 1, 2)
    # channel mix
    yn = ln(x1, p["ln2_g"], p["ln2_b"])
    h2 = _gelu_exact(yn @ f32(p["cw1"]) + p["cb1"])
    c = h2 @ f32(p["cw2"]) + p["cb2"]
    return x1 + c


if __name__ == "__main__":
    # Small but lane-friendly shapes: x is (B, num_patches, dim)
    B, N, D = 4, 64, 128        # batch, num_patches, dim
    T, C = 128, 256             # tokens_mlp_dim, channels_mlp_dim

    key = jax.random.PRNGKey(0)
    kx, kp = jax.random.split(key)
    x = jax.random.normal(kx, (B, N, D), jnp.float32)
    params = init_params(kp, dim=D, num_patches=N,
                         tokens_mlp_dim=T, channels_mlp_dim=C)

    out = mixer_block(x, params, batch_tile=2)
    out = jax.block_until_ready(out)

    ref = mixer_block_ref(x, params)
    # bf16 matmul operands (f32 accumulate) -> looser tolerance than pure f32.
    np.testing.assert_allclose(np.asarray(out), np.asarray(ref),
                               rtol=1e-2, atol=1e-2)

    print("KERNEL_OK")
</pallas_src>

<mosaic_0001>
module attributes {stable_mosaic.version = 11 : i64} {
  func.func @mixer_block_kernel(%arg0: i32, %arg1: memref<2x64x128xf32, #tpu.memory_space<vmem>>, %arg2: memref<1x128xf32, #tpu.memory_space<vmem>>, %arg3: memref<1x128xf32, #tpu.memory_space<vmem>>, %arg4: memref<128x64xbf16, #tpu.memory_space<vmem>>, %arg5: memref<128x1xf32, #tpu.memory_space<vmem>>, %arg6: memref<64x128xbf16, #tpu.memory_space<vmem>>, %arg7: memref<64x1xf32, #tpu.memory_space<vmem>>, %arg8: memref<1x128xf32, #tpu.memory_space<vmem>>, %arg9: memref<1x128xf32, #tpu.memory_space<vmem>>, %arg10: memref<128x256xbf16, #tpu.memory_space<vmem>>, %arg11: memref<1x256xf32, #tpu.memory_space<vmem>>, %arg12: memref<256x128xbf16, #tpu.memory_space<vmem>>, %arg13: memref<1x128xf32, #tpu.memory_space<vmem>>, %arg14: memref<2x64x128xf32, #tpu.memory_space<vmem>>) attributes {dimension_semantics = [#tpu.dimension_semantics<parallel>], iteration_bounds = array<i64: 2>, scalar_prefetch = 0 : i64, scratch_operands = 0 : i64, tpu.core_type = #tpu.core_type<tc>, window_params = [{transform_indices = @transform_0, window_bounds = array<i64: 2, 64, 128>}, {pipeline_mode = #tpu.pipeline_mode<synchronous>, transform_indices = @transform_1, window_bounds = array<i64: 1, 128>}, {pipeline_mode = #tpu.pipeline_mode<synchronous>, transform_indices = @transform_2, window_bounds = array<i64: 1, 128>}, {pipeline_mode = #tpu.pipeline_mode<synchronous>, transform_indices = @transform_3, window_bounds = array<i64: 128, 64>}, {pipeline_mode = #tpu.pipeline_mode<synchronous>, transform_indices = @transform_4, window_bounds = array<i64: 128, 1>}, {pipeline_mode = #tpu.pipeline_mode<synchronous>, transform_indices = @transform_5, window_bounds = array<i64: 64, 128>}, {pipeline_mode = #tpu.pipeline_mode<synchronous>, transform_indices = @transform_6, window_bounds = array<i64: 64, 1>}, {pipeline_mode = #tpu.pipeline_mode<synchronous>, transform_indices = @transform_7, window_bounds = array<i64: 1, 128>}, {pipeline_mode = #tpu.pipeline_mode<synchronous>, transform_indices = @transform_8, window_bounds = array<i64: 1, 128>}, {pipeline_mode = #tpu.pipeline_mode<synchronous>, transform_indices = @transform_9, window_bounds = array<i64: 128, 256>}, {pipeline_mode = #tpu.pipeline_mode<synchronous>, transform_indices = @transform_10, window_bounds = array<i64: 1, 256>}, {pipeline_mode = #tpu.pipeline_mode<synchronous>, transform_indices = @transform_11, window_bounds = array<i64: 256, 128>}, {pipeline_mode = #tpu.pipeline_mode<synchronous>, transform_indices = @transform_12, window_bounds = array<i64: 1, 128>}, {transform_indices = @transform_13, window_bounds = array<i64: 2, 64, 128>}]} {
    %c0 = arith.constant 0 : index
    %c0_0 = arith.constant 0 : index
    %c0_1 = arith.constant 0 : index
    %0 = vector.load %arg1[%c0, %c0_0, %c0_1] : memref<2x64x128xf32, #tpu.memory_space<vmem>>, vector<2x64x128xf32>
    %c0_2 = arith.constant 0 : index
    %c0_3 = arith.constant 0 : index
    %1 = vector.load %arg2[%c0_2, %c0_3] : memref<1x128xf32, #tpu.memory_space<vmem>>, vector<1x128xf32>
    %c0_4 = arith.constant 0 : index
    %c0_5 = arith.constant 0 : index
    %2 = vector.load %arg3[%c0_4, %c0_5] : memref<1x128xf32, #tpu.memory_space<vmem>>, vector<1x128xf32>
    %c0_6 = arith.constant 0 : index
    %c0_7 = arith.constant 0 : index
    %3 = vector.load %arg8[%c0_6, %c0_7] : memref<1x128xf32, #tpu.memory_space<vmem>>, vector<1x128xf32>
    %c0_8 = arith.constant 0 : index
    %c0_9 = arith.constant 0 : index
    %4 = vector.load %arg9[%c0_8, %c0_9] : memref<1x128xf32, #tpu.memory_space<vmem>>, vector<1x128xf32>
    %c0_10 = arith.constant 0 : index
    %c0_11 = arith.constant 0 : index
    %5 = vector.load %arg4[%c0_10, %c0_11] : memref<128x64xbf16, #tpu.memory_space<vmem>>, vector<128x64xbf16>
    %c0_12 = arith.constant 0 : index
    %c0_13 = arith.constant 0 : index
    %6 = vector.load %arg5[%c0_12, %c0_13] : memref<128x1xf32, #tpu.memory_space<vmem>>, vector<128x1xf32>
    %c0_14 = arith.constant 0 : index
    %c0_15 = arith.constant 0 : index
    %7 = vector.load %arg6[%c0_14, %c0_15] : memref<64x128xbf16, #tpu.memory_space<vmem>>, vector<64x128xbf16>
    %c0_16 = arith.constant 0 : index
    %c0_17 = arith.constant 0 : index
    %8 = vector.load %arg7[%c0_16, %c0_17] : memref<64x1xf32, #tpu.memory_space<vmem>>, vector<64x1xf32>
    %c0_18 = arith.constant 0 : index
    %c0_19 = arith.constant 0 : index
    %9 = vector.load %arg10[%c0_18, %c0_19] : memref<128x256xbf16, #tpu.memory_space<vmem>>, vector<128x256xbf16>
    %c0_20 = arith.constant 0 : index
    %c0_21 = arith.constant 0 : index
    %10 = vector.load %arg11[%c0_20, %c0_21] : memref<1x256xf32, #tpu.memory_space<vmem>>, vector<1x256xf32>
    %c0_22 = arith.constant 0 : index
    %c0_23 = arith.constant 0 : index
    %11 = vector.load %arg12[%c0_22, %c0_23] : memref<256x128xbf16, #tpu.memory_space<vmem>>, vector<256x128xbf16>
    %c0_24 = arith.constant 0 : index
    %c0_25 = arith.constant 0 : index
    %12 = vector.load %arg13[%c0_24, %c0_25] : memref<1x128xf32, #tpu.memory_space<vmem>>, vector<1x128xf32>
    %cst = arith.constant dense<0.000000e+00> : vector<2x64xf32>
    %13 = vector.multi_reduction <add>, %0, %cst [2] : vector<2x64x128xf32> to vector<2x64xf32>
    %14 = vector.shape_cast %13 : vector<2x64xf32> to vector<2x64x1xf32>
    %cst_26 = arith.constant 1.280000e+02 : f32
    %15 = vector.broadcast %cst_26 : f32 to vector<2x64x1xf32>
    %16 = arith.divf %14, %15 : vector<2x64x1xf32>
    %17 = vector.broadcast %16 : vector<2x64x1xf32> to vector<2x64x128xf32>
    %18 = arith.subf %0, %17 : vector<2x64x128xf32>
    %19 = arith.mulf %18, %18 : vector<2x64x128xf32>
    %cst_27 = arith.constant dense<0.000000e+00> : vector<2x64xf32>
    %20 = vector.multi_reduction <add>, %19, %cst_27 [2] : vector<2x64x128xf32> to vector<2x64xf32>
    %21 = vector.shape_cast %20 : vector<2x64xf32> to vector<2x64x1xf32>
    %cst_28 = arith.constant 1.280000e+02 : f32
    %22 = vector.broadcast %cst_28 : f32 to vector<2x64x1xf32>
    %23 = arith.divf %21, %22 : vector<2x64x1xf32>
    %cst_29 = arith.constant 9.99999974E-6 : f32
    %24 = vector.broadcast %cst_29 : f32 to vector<2x64x1xf32>
    %25 = arith.addf %23, %24 : vector<2x64x1xf32>
    %26 = math.rsqrt %25 : vector<2x64x1xf32>
    %27 = vector.broadcast %26 : vector<2x64x1xf32> to vector<2x64x128xf32>
    %28 = arith.mulf %18, %27 : vector<2x64x128xf32>
    %29 = vector.shape_cast %1 : vector<1x128xf32> to vector<1x1x128xf32>
    %30 = vector.broadcast %29 : vector<1x1x128xf32> to vector<2x64x128xf32>
    %31 = arith.mulf %28, %30 : vector<2x64x128xf32>
    %32 = vector.shape_cast %2 : vector<1x128xf32> to vector<1x1x128xf32>
    %33 = vector.broadcast %32 : vector<1x1x128xf32> to vector<2x64x128xf32>
    %34 = arith.addf %31, %33 : vector<2x64x128xf32>
    %35 = arith.truncf %34 : vector<2x64x128xf32> to vector<2x64x128xbf16>
    %36 = vector.extract_strided_slice %35 {offsets = [0, 0, 0], sizes = [1, 64, 128], strides = [1, 1, 1]} : vector<2x64x128xbf16> to vector<1x64x128xbf16>
    %37 = vector.shape_cast %36 : vector<1x64x128xbf16> to vector<64x128xbf16>
    %cst_30 = arith.constant dense<0.000000e+00> : vector<128x128xf32>
    %38 = tpu.matmul %5, %37, %cst_30 {dimension_numbers = #tpu.dot_dimension_numbers<[1], [0], [0], [1], [0, 0, 1, 1], [], []>} : vector<128x64xbf16>, vector<64x128xbf16>, vector<128x128xf32> -> vector<128x128xf32>
    %39 = vector.broadcast %6 : vector<128x1xf32> to vector<128x128xf32>
    %40 = arith.addf %38, %39 : vector<128x128xf32>
    %cst_31 = arith.constant 5.000000e-01 : f32
    %41 = vector.broadcast %cst_31 : f32 to vector<128x128xf32>
    %42 = arith.mulf %41, %40 : vector<128x128xf32>
    %cst_32 = arith.constant 0.707106769 : f32
    %43 = vector.broadcast %cst_32 : f32 to vector<128x128xf32>
    %44 = arith.mulf %40, %43 : vector<128x128xf32>
    %45 = math.erf %44 : vector<128x128xf32>
    %cst_33 = arith.constant 1.000000e+00 : f32
    %46 = vector.broadcast %cst_33 : f32 to vector<128x128xf32>
    %47 = arith.addf %46, %45 : vector<128x128xf32>
    %48 = arith.mulf %42, %47 : vector<128x128xf32>
    %49 = arith.truncf %48 : vector<128x128xf32> to vector<128x128xbf16>
    %cst_34 = arith.constant dense<0.000000e+00> : vector<64x128xf32>
    %50 = tpu.matmul %7, %49, %cst_34 {dimension_numbers = #tpu.dot_dimension_numbers<[1], [0], [0], [1], [0, 0, 1, 1], [], []>} : vector<64x128xbf16>, vector<128x128xbf16>, vector<64x128xf32> -> vector<64x128xf32>
    %51 = vector.broadcast %8 : vector<64x1xf32> to vector<64x128xf32>
    %52 = arith.addf %50, %51 : vector<64x128xf32>
    %53 = vector.extract_strided_slice %0 {offsets = [0, 0, 0], sizes = [1, 64, 128], strides = [1, 1, 1]} : vector<2x64x128xf32> to vector<1x64x128xf32>
    %54 = vector.shape_cast %53 : vector<1x64x128xf32> to vector<64x128xf32>
    %55 = arith.addf %54, %52 : vector<64x128xf32>
    %c0_35 = arith.constant 0 : index
    %c0_36 = arith.constant 0 : index
    %c0_37 = arith.constant 0 : index
    %56 = vector.load %arg14[%c0_35, %c0_36, %c0_37] : memref<2x64x128xf32, #tpu.memory_space<vmem>>, vector<1x64x128xf32>
    %57 = vector.shape_cast %56 : vector<1x64x128xf32> to vector<64x128xf32>
    %58 = vector.shape_cast %55 : vector<64x128xf32> to vector<1x64x128xf32>
    tpu.vector_store %arg14[%c0_35, %c0_36, %c0_37], %58 {strides = array<i32>} : memref<2x64x128xf32, #tpu.memory_space<vmem>>, vector<1x64x128xf32>,
    %59 = vector.extract_strided_slice %35 {offsets = [1, 0, 0], sizes = [1, 64, 128], strides = [1, 1, 1]} : vector<2x64x128xbf16> to vector<1x64x128xbf16>
    %60 = vector.shape_cast %59 : vector<1x64x128xbf16> to vector<64x128xbf16>
    %cst_38 = arith.constant dense<0.000000e+00> : vector<128x128xf32>
    %61 = tpu.matmul %5, %60, %cst_38 {dimension_numbers = #tpu.dot_dimension_numbers<[1], [0], [0], [1], [0, 0, 1, 1], [], []>} : vector<128x64xbf16>, vector<64x128xbf16>, vector<128x128xf32> -> vector<128x128xf32>
    %62 = vector.broadcast %6 : vector<128x1xf32> to vector<128x128xf32>
    %63 = arith.addf %61, %62 : vector<128x128xf32>
    %cst_39 = arith.constant 5.000000e-01 : f32
    %64 = vector.broadcast %cst_39 : f32 to vector<128x128xf32>
    %65 = arith.mulf %64, %63 : vector<128x128xf32>
    %cst_40 = arith.constant 0.707106769 : f32
    %66 = vector.broadcast %cst_40 : f32 to vector<128x128xf32>
    %67 = arith.mulf %63, %66 : vector<128x128xf32>
    %68 = math.erf %67 : vector<128x128xf32>
    %cst_41 = arith.constant 1.000000e+00 : f32
    %69 = vector.broadcast %cst_41 : f32 to vector<128x128xf32>
    %70 = arith.addf %69, %68 : vector<128x128xf32>
    %71 = arith.mulf %65, %70 : vector<128x128xf32>
    %72 = arith.truncf %71 : vector<128x128xf32> to vector<128x128xbf16>
    %cst_42 = arith.constant dense<0.000000e+00> : vector<64x128xf32>
    %73 = tpu.matmul %7, %72, %cst_42 {dimension_numbers = #tpu.dot_dimension_numbers<[1], [0], [0], [1], [0, 0, 1, 1], [], []>} : vector<64x128xbf16>, vector<128x128xbf16>, vector<64x128xf32> -> vector<64x128xf32>
    %74 = vector.broadcast %8 : vector<64x1xf32> to vector<64x128xf32>
    %75 = arith.addf %73, %74 : vector<64x128xf32>
    %76 = vector.extract_strided_slice %0 {offsets = [1, 0, 0], sizes = [1, 64, 128], strides = [1, 1, 1]} : vector<2x64x128xf32> to vector<1x64x128xf32>
    %77 = vector.shape_cast %76 : vector<1x64x128xf32> to vector<64x128xf32>
    %78 = arith.addf %77, %75 : vector<64x128xf32>
    %c1 = arith.constant 1 : index
    %c0_43 = arith.constant 0 : index
    %c0_44 = arith.constant 0 : index
    %79 = vector.load %arg14[%c1, %c0_43, %c0_44] : memref<2x64x128xf32, #tpu.memory_space<vmem>>, vector<1x64x128xf32>
    %80 = vector.shape_cast %79 : vector<1x64x128xf32> to vector<64x128xf32>
    %81 = vector.shape_cast %78 : vector<64x128xf32> to vector<1x64x128xf32>
    tpu.vector_store %arg14[%c1, %c0_43, %c0_44], %81 {strides = array<i32>} : memref<2x64x128xf32, #tpu.memory_space<vmem>>, vector<1x64x128xf32>,
    %c0_45 = arith.constant 0 : index
    %c0_46 = arith.constant 0 : index
    %c0_47 = arith.constant 0 : index
    %82 = vector.load %arg14[%c0_45, %c0_46, %c0_47] : memref<2x64x128xf32, #tpu.memory_space<vmem>>, vector<2x64x128xf32>
    %83 = vector.shape_cast %82 : vector<2x64x128xf32> to vector<128x128xf32>
    %cst_48 = arith.constant dense<0.000000e+00> : vector<128xf32>
    %84 = vector.multi_reduction <add>, %83, %cst_48 [1] : vector<128x128xf32> to vector<128xf32>
    %85 = vector.shape_cast %84 : vector<128xf32> to vector<128x1xf32>
    %cst_49 = arith.constant 1.280000e+02 : f32
    %86 = vector.broadcast %cst_49 : f32 to vector<128x1xf32>
    %87 = arith.divf %85, %86 : vector<128x1xf32>
    %88 = vector.broadcast %87 : vector<128x1xf32> to vector<128x128xf32>
    %89 = arith.subf %83, %88 : vector<128x128xf32>
    %90 = arith.mulf %89, %89 : vector<128x128xf32>
    %cst_50 = arith.constant dense<0.000000e+00> : vector<128xf32>
    %91 = vector.multi_reduction <add>, %90, %cst_50 [1] : vector<128x128xf32> to vector<128xf32>
    %92 = vector.shape_cast %91 : vector<128xf32> to vector<128x1xf32>
    %cst_51 = arith.constant 1.280000e+02 : f32
    %93 = vector.broadcast %cst_51 : f32 to vector<128x1xf32>
    %94 = arith.divf %92, %93 : vector<128x1xf32>
    %cst_52 = arith.constant 9.99999974E-6 : f32
    %95 = vector.broadcast %cst_52 : f32 to vector<128x1xf32>
    %96 = arith.addf %94, %95 : vector<128x1xf32>
    %97 = math.rsqrt %96 : vector<128x1xf32>
    %98 = vector.broadcast %97 : vector<128x1xf32> to vector<128x128xf32>
    %99 = arith.mulf %89, %98 : vector<128x128xf32>
    %100 = vector.broadcast %3 : vector<1x128xf32> to vector<128x128xf32>
    %101 = arith.mulf %99, %100 : vector<128x128xf32>
    %102 = vector.broadcast %4 : vector<1x128xf32> to vector<128x128xf32>
    %103 = arith.addf %101, %102 : vector<128x128xf32>
    %104 = arith.truncf %103 : vector<128x128xf32> to vector<128x128xbf16>
    %cst_53 = arith.constant dense<0.000000e+00> : vector<128x256xf32>
    %105 = tpu.matmul %104, %9, %cst_53 {dimension_numbers = #tpu.dot_dimension_numbers<[1], [0], [0], [1], [0, 0, 1, 1], [], []>} : vector<128x128xbf16>, vector<128x256xbf16>, vector<128x256xf32> -> vector<128x256xf32>
    %106 = vector.broadcast %10 : vector<1x256xf32> to vector<128x256xf32>
    %107 = arith.addf %105, %106 : vector<128x256xf32>
    %cst_54 = arith.constant 5.000000e-01 : f32
    %108 = vector.broadcast %cst_54 : f32 to vector<128x256xf32>
    %109 = arith.mulf %108, %107 : vector<128x256xf32>
    %cst_55 = arith.constant 0.707106769 : f32
    %110 = vector.broadcast %cst_55 : f32 to vector<128x256xf32>
    %111 = arith.mulf %107, %110 : vector<128x256xf32>
    %112 = math.erf %111 : vector<128x256xf32>
    %cst_56 = arith.constant 1.000000e+00 : f32
    %113 = vector.broadcast %cst_56 : f32 to vector<128x256xf32>
    %114 = arith.addf %113, %112 : vector<128x256xf32>
    %115 = arith.mulf %109, %114 : vector<128x256xf32>
    %116 = arith.truncf %115 : vector<128x256xf32> to vector<128x256xbf16>
    %cst_57 = arith.constant dense<0.000000e+00> : vector<128x128xf32>
    %117 = tpu.matmul %116, %11, %cst_57 {dimension_numbers = #tpu.dot_dimension_numbers<[1], [0], [0], [1], [0, 0, 1, 1], [], []>} : vector<128x256xbf16>, vector<256x128xbf16>, vector<128x128xf32> -> vector<128x128xf32>
    %118 = vector.broadcast %12 : vector<1x128xf32> to vector<128x128xf32>
    %119 = arith.addf %117, %118 : vector<128x128xf32>
    %120 = arith.addf %83, %119 : vector<128x128xf32>
    %121 = vector.shape_cast %120 : vector<128x128xf32> to vector<2x64x128xf32>
    %c0_58 = arith.constant 0 : index
    %c0_59 = arith.constant 0 : index
    %c0_60 = arith.constant 0 : index
    %122 = vector.load %arg14[%c0_58, %c0_59, %c0_60] : memref<2x64x128xf32, #tpu.memory_space<vmem>>, vector<2x64x128xf32>
    tpu.vector_store %arg14[%c0_58, %c0_59, %c0_60], %121 {strides = array<i32>} : memref<2x64x128xf32, #tpu.memory_space<vmem>>, vector<2x64x128xf32>,
    return
  }
  func.func @transform_0(%arg0: i32) -> (i32, i32, i32) {
    %c0_i32 = arith.constant 0 : i32
    %c0_i32_0 = arith.constant 0 : i32
    %c0_i32_1 = arith.constant 0 : i32
    return %arg0, %c0_i32, %c0_i32_0 : i32, i32, i32
  }
  func.func @transform_1(%arg0: i32) -> (i32, i32) {
    %c0_i32 = arith.constant 0 : i32
    %c0_i32_0 = arith.constant 0 : i32
    %c0_i32_1 = arith.constant 0 : i32
    return %c0_i32, %c0_i32_0 : i32, i32
  }
  func.func @transform_2(%arg0: i32) -> (i32, i32) {
    %c0_i32 = arith.constant 0 : i32
    %c0_i32_0 = arith.constant 0 : i32
    %c0_i32_1 = arith.constant 0 : i32
    return %c0_i32, %c0_i32_0 : i32, i32
  }
  func.func @transform_3(%arg0: i32) -> (i32, i32) {
    %c0_i32 = arith.constant 0 : i32
    %c0_i32_0 = arith.constant 0 : i32
    %c0_i32_1 = arith.constant 0 : i32
    return %c0_i32, %c0_i32_0 : i32, i32
  }
  func.func @transform_4(%arg0: i32) -> (i32, i32) {
    %c0_i32 = arith.constant 0 : i32
    %c0_i32_0 = arith.constant 0 : i32
    %c0_i32_1 = arith.constant 0 : i32
    return %c0_i32, %c0_i32_0 : i32, i32
  }
  func.func @transform_5(%arg0: i32) -> (i32, i32) {
    %c0_i32 = arith.constant 0 : i32
    %c0_i32_0 = arith.constant 0 : i32
    %c0_i32_1 = arith.constant 0 : i32
    return %c0_i32, %c0_i32_0 : i32, i32
  }
  func.func @transform_6(%arg0: i32) -> (i32, i32) {
    %c0_i32 = arith.constant 0 : i32
    %c0_i32_0 = arith.constant 0 : i32
    %c0_i32_1 = arith.constant 0 : i32
    return %c0_i32, %c0_i32_0 : i32, i32
  }
  func.func @transform_7(%arg0: i32) -> (i32, i32) {
    %c0_i32 = arith.constant 0 : i32
    %c0_i32_0 = arith.constant 0 : i32
    %c0_i32_1 = arith.constant 0 : i32
    return %c0_i32, %c0_i32_0 : i32, i32
  }
  func.func @transform_8(%arg0: i32) -> (i32, i32) {
    %c0_i32 = arith.constant 0 : i32
    %c0_i32_0 = arith.constant 0 : i32
    %c0_i32_1 = arith.constant 0 : i32
    return %c0_i32, %c0_i32_0 : i32, i32
  }
  func.func @transform_9(%arg0: i32) -> (i32, i32) {
    %c0_i32 = arith.constant 0 : i32
    %c0_i32_0 = arith.constant 0 : i32
    %c0_i32_1 = arith.constant 0 : i32
    return %c0_i32, %c0_i32_0 : i32, i32
  }
  func.func @transform_10(%arg0: i32) -> (i32, i32) {
    %c0_i32 = arith.constant 0 : i32
    %c0_i32_0 = arith.constant 0 : i32
    %c0_i32_1 = arith.constant 0 : i32
    return %c0_i32, %c0_i32_0 : i32, i32
  }
  func.func @transform_11(%arg0: i32) -> (i32, i32) {
    %c0_i32 = arith.constant 0 : i32
    %c0_i32_0 = arith.constant 0 : i32
    %c0_i32_1 = arith.constant 0 : i32
    return %c0_i32, %c0_i32_0 : i32, i32
  }
  func.func @transform_12(%arg0: i32) -> (i32, i32) {
    %c0_i32 = arith.constant 0 : i32
    %c0_i32_0 = arith.constant 0 : i32
    %c0_i32_1 = arith.constant 0 : i32
    return %c0_i32, %c0_i32_0 : i32, i32
  }
  func.func @transform_13(%arg0: i32) -> (i32, i32, i32) {
    %c0_i32 = arith.constant 0 : i32
    %c0_i32_0 = arith.constant 0 : i32
    %c0_i32_1 = arith.constant 0 : i32
    return %arg0, %c0_i32, %c0_i32_0 : i32, i32, i32
  }
}

</mosaic_0001>

<bundles_post_ra>
// kernel: tpu_custom_call.1
= control target key start
LH: loop header
LB: loop body
LE: loop exit
PB: predicated region body
PF: predicated region fallthrough
CT: control target
= control target key end

     0   :  { %s10115_s0 = inlined_call_operand.hbm [shape: f32[4,64,128], index: 0, kind: input, shape index: {}]   ;;  %s10116_s1 = inlined_call_operand.hbm [shape: f32[1,128], index: 1, kind: input, shape index: {}]   ;;  %s10117_s2 = inlined_call_operand.hbm [shape: f32[1,128], index: 2, kind: input, shape index: {}]   ;;  %s10118_s3 = inlined_call_operand.vmem [shape: bf16[128,64], index: 3, kind: input, shape index: {}]   ;;  %s10119_s4 = inlined_call_operand.vmem [shape: f32[128,1], index: 4, kind: input, shape index: {}]   ;;  %s10120_s5 = inlined_call_operand.vmem [shape: bf16[64,128], index: 5, kind: input, shape index: {}]   ;;  %s10121_s6 = inlined_call_operand.vmem [shape: f32[64,1], index: 6, kind: input, shape index: {}]   ;;  %s10122_s7 = inlined_call_operand.vmem [shape: f32[1,128], index: 7, kind: input, shape index: {}]   ;;  %s10123_s8 = inlined_call_operand.vmem [shape: f32[1,128], index: 8, kind: input, shape index: {}]   ;;  %s10124_s9 = inlined_call_operand.vmem [shape: bf16[128,256], index: 9, kind: input, shape index: {}]   ;;  %s10125_s10 = inlined_call_operand.vmem [shape: f32[1,256], index: 10, kind: input, shape index: {}]   ;;  %s10126_s11 = inlined_call_operand.vmem [shape: bf16[256,128], index: 11, kind: input, shape index: {}]   ;;  %s10127_s12 = inlined_call_operand.vmem [shape: f32[1,128], index: 12, kind: input, shape index: {}]   ;;  %s10128_s13 = inlined_call_operand.hbm [shape: f32[4,64,128], index: 13, kind: output, shape index: {}]  }
   0x1   :  { %10217 = sst [smem:[#allocation61_spill]] %s10116_s1 }
   0x2   :  { %10218 = sst [smem:[#allocation62_spill]] %s10117_s2 }
   0x3   :  { %10219 = sst [smem:[#allocation63_spill]] %s10126_s11 }
   0x4   :  { %10220 = sst [smem:[#allocation64_spill]] %s10127_s12 }
   0x5   :  { %10221 = sst [smem:[#allocation65_spill]] %s10128_s13 }
   0x6   :  { %18 = vsyncpa [#allocation3], 0 }
   0x7   :  { %20 = vsyncpa [#allocation3 + $0x1], 0 }
   0x8   :  { %21 = vsyncpa [#allocation6], 0 }
   0x9   :  { %22 = vsyncpa [#allocation4], 0 }
   0xa   :  { %24 = vsyncpa [#allocation4 + $0x1], 0  ;;  %s6076_s25 = smov 0   ;;  %s6078_s26 = smov 0  }
   0xb   :  { %s6080_s27 = smov 0   ;;  %s6082_s28 = smov 0  }
   0xc LB: > { %10222 = sst [smem:[#allocation12_spill]] %s5984_s25  ;;  %s6097_s29 = sadd.s32 4294967295, %s5996_s28   ;;  %s5996_s28 = sphi %s6082_s28, %s10530_s28   ;;  %s5992_s27 = sphi %s6080_s27, %s10534_s27   ;;  %s5988_s26 = sphi %s6078_s26, %s10533_s26   ;;  %s5984_s25 = sphi %s6076_s25, %s10532_s25  }
   0xd   : > { %s5190_s30 = sadd.s32 4294967294, %s5996_s28   ;;  %s6101_s14 = sadd.s32 1, %s5996_s28  }
   0xe   : > { %10223 = sst [smem:[#allocation13_spill]] %s6101_s14  ;;  %s37_s15 = sadd.s32 1, %s5992_s27 }
   0xf   : > { %s34_s16 = ssub.s32 %s5996_s28, %s6101_s14  ;;  %p44_p0 = scmp.ne.s32.totalorder %s5992_s27, %s5988_s26 }
  0x10   : > { %p35_p1 = scmp.eq.s32.totalorder %s34_s16, 0  ;;  %p45_p2 = scmp.eq.s32.totalorder %s5996_s28, 0 }
  0x11   : > { %p50_p3 = scmp.ne.s32.totalorder %s5988_s26, %s5984_s25  ;;  %p51_p4 = scmp.eq.s32.totalorder %s6097_s29, 0 }
  0x12   : > { %s6113_s17 = scalar_select %p35_p1, %s5992_s27, %s37_s15  }
  0x13   : > { %p6115_p5 = por %p45_p2, %p44_p0  ;;  %p6121_p6 = por %p51_p4, %p50_p3 }
  0x14   : > { %10224 = sst [smem:[#allocation14_spill]] %s6113_s17  ;;  %p326_p7 = scmp.eq.s32.totalorder %s6097_s29, 1 }
  0x15   : > { %p332_p8 = scmp.eq.s32.totalorder %s5190_s30, 1  ;;  %p5191_p9 = scmp.ge.s32.totalorder %s5996_s28, 1 }
  0x16   : > { %p339_p10 = scmp.lt.s32.totalorder %s5996_s28, 3  ;;  %p6128_p11 = por %p326_p7, %p44_p0 }
  0x17   : > { %p6132_p12 = por %p332_p8, %p50_p3  ;;  %s10232_s1 = sld [smem:[#allocation61_spill]] }
  0x18   : > { %s10227_s20 = scalar_select %p6128_p11, 1, 0 }
  0x19   : > { %s10229_s21 = scalar_select %p6132_p12, 1, 0 }
  0x1a   : > { %10228 = sst [smem:[#allocation15_spill]] %s10227_s20  ;;  %p6136_p13 = pnand %p5191_p9, %p339_p10 }
  0x1b   : > { %10230 = sst [smem:[#allocation16_spill]] %s10229_s21  ;;  %s5998_s15 = smov [#allocation5]  }
  0x1c   : > { %p5550_p1 = pneg %p6136_p13  ;;  %s353_s16 = sshll.u32 %s5998_s15, 4  ;;  %s354_s16 = int_to_ptr.vmem [resolvable:$true] %s353_s16 }
  0x1d   : > { %s351_s30 = sshll.u32 %s10232_s1, 4  ;;  %p5567_p3 = scmp.lt.s32.totalorder %s5996_s28, 2  ;;  %s352_s30 = int_to_ptr.hbm [resolvable:$true] %s351_s30 }
  0x1e   : > { %p5551_p2 = pnand %p5550_p1, %p51_p4  ;;  %s10233_s2 = sld [smem:[#allocation62_spill]] }
  0x1f   : > { %p6154_p7 = pnand %p5567_p3, %p6115_p5  ;;  %s5999_s24 = smov [#allocation7]  }
  0x20   : > { %5553 = dma.hbm_to_vmem [thread:$0]  (!%p5551_p2), %s352_s30, 16, %s354_s16, [#allocation6]  }
  0x21   : > { %s365_s1 = sshll.u32 %s5999_s24, 4  ;;  %s406_s25 = sand.u32 1, %s5992_s27   ;;  %s366_s1 = int_to_ptr.vmem [resolvable:$true] %s365_s1 }
  0x22   : > { %s5195_s15 = sshll.u32 %s406_s25, 7  ;;  %s5475_s20 = sshll.u32 %s5996_s28, 7 }
  0x23   : > { %s416_s14 = scalar_lea.hbm %s10115_s0, %s5475_s20  ;;  %s410_s17 = scalar_lea.vmem [#allocation2], %s5195_s15 }
  0x24   : > { %s363_s21 = sshll.u32 %s10233_s2, 4  ;;  %s419_s2 = sshll.u32 %s410_s17, 4  ;;  %s364_s21 = int_to_ptr.hbm [resolvable:$true] %s363_s21  ;;  %s420_s2 = int_to_ptr.vmem [resolvable:$true] %s419_s2 }
  0x25   : > { %5556 = dma.hbm_to_vmem [thread:$0]  (!%p5551_p2), %s364_s21, 16, %s366_s1, [#allocation6]  }
  0x26   : > { %s417_s30 = sshll.u32 %s416_s14, 4  ;;  %s407_s18 = scalar_lea.sflag [#allocation3], %s406_s25  ;;  %s418_s30 = int_to_ptr.hbm [resolvable:$true] %s417_s30 }
  0x27   : > { %s5896_s16 = sshra.s32 %s418_s30, 4  ;;  %p5900_p8 = pneg %p6154_p7  ;;  %s5897_s16 = int_to_ptr.hbm [resolvable:$true] %s5896_s16 }
  0x28   : > { %s5898_s11 = scalar_lea.hbm %s5897_s16, 128  ;;  %s5903_s24 = scalar_lea.hbm %s10115_s0, 256 }
  0x29   : > { %p5899_p5 = scmp.ne.s32.totalorder %s5897_s16, %s5898_s11  ;;  %p5904_p1 = scmp.lt.s32.totalorder %s5897_s16, %s10115_s0 }
  0x2a   : > { %p5905_p2 = scmp.lt.s32.totalorder %s5903_s24, %s5898_s11 }
  0x2b   : > { %p5901_p9 = pnand %p5900_p8, %p5899_p5 }
  0x2c   : > { %p5906_p3 = por %p5905_p2, %p5904_p1 }
  0x2d   : > { %p5902_p10 = pneg %p5901_p9 }
  0x2f   : > { %p5907_p0 = pnand %p5906_p3, %p5902_p10 }
  0x31   : > { %5910 = shalt.err (!%p5907_p0)
}
  0x32   : > { %s6000_s25 = smov 128   ;;  %s6001_s20 = smov 8  }
  0x33   : > { %5560 = dma.hbm_to_vmem [thread:$0]  (!%p6154_p7), %s418_s30, 2048, %s420_s2, %s407_s18, %s6000_s25, %s6000_s25, %s6001_s20  }
  0x34   : > { %431 = sbr.rel (%p6136_p13) target bundleno = 1891 (0x763), region = 72 }
  0x39   : > { %s6176_s15 = sand.u32 1, %s5988_s26  }
  0x3a   : > { %s5200_s14 = sshll.u32 %s6176_s15, 7  ;;  %s434_s11 = scalar_lea.sflag [#allocation3], %s6176_s15 }
  0x3b   : > { %s6182_s17 = scalar_lea.vmem [#allocation2], %s5200_s14 }
  0x3c   : > { %5971 = dma.done.wait (%p6121_p6), %s434_s11, 2048  }
  0x3d   : > { %5973 = vsyncadd (%p6121_p6), %s434_s11, 4294965248 }
  0x3e   : > { %5975 = dma.done.wait (%p51_p4), [#allocation6], 32  }
  0x3f   : > { %5977 = vsyncadd (%p51_p4), [#allocation6], 4294967264  ;;  %v500_v0 = vld [vmem:[%s6182_s17 + $0x30] sm:$0xff]  ;;  %v498_v1 = vld [vmem:[%s6182_s17 + $0x20] sm:$0xff]  ;;  %v6002_v12 = vmov 128.0   ;;  %s10429_s19 = sld [smem:[#allocation63_spill]] }
  0x40   : > { %624 = vadd.xlane.f32.xlu0 %v500_v0  ;;  %620 = vadd.xlane.f32.xlu1 %v498_v1  ;;  %v496_v2 = vld [vmem:[%s6182_s17 + $0x10] sm:$0xff]  ;;  %v501_v3 = vld [vmem:[%s6182_s17 + $0x38] sm:$0xff]  ;;  %v499_v4 = vld [vmem:[%s6182_s17 + $0x28] sm:$0xff]  ;;  %5619 = vrcp.f32 %v6002_v12  ;;  %s10478_s21 = sld [smem:[#allocation64_spill]]  ;;  %s9726_s24 = scalar_lea.vmem [#allocation8], %s5200_s14 }
  0x41   : > { %616 = vadd.xlane.f32.xlu2 %v496_v2  ;;  %v497_v5 = vld [vmem:[%s6182_s17 + $0x18] sm:$0xff]  ;;  %v495_v6 = vld [vmem:[%s6182_s17 + $0x8] sm:$0xff]  ;;  %v494_v7 = vld [vmem:[%s6182_s17] sm:$0xff]  ;;  %s5521_s14 = sshll.u32 %s6097_s29, 7  ;;  %s10523_s25 = sld [smem:[#allocation65_spill]] }
  0x42   : > { %v6201_v8 = vld [vmem:[%s6182_s17 + $0x68] sm:$0xff]  ;;  %v509_v9 = vld [vmem:[%s6182_s17 + $0x78] sm:$0xff]  ;;  %v6206_v10 = vld [vmem:[%s6182_s17 + $0x70] sm:$0xff]  ;;  %s5095_s23 = sshll.u32 %s9726_s24, 4  ;;  %s5082_s29 = scalar_lea.sflag [#allocation4], %s6176_s15  ;;  %s5096_s23 = int_to_ptr.vmem [resolvable:$true] %s5095_s23 }
  0x43   : > { %v6210_v11 = vld [vmem:[%s6182_s17 + $0x60] sm:$0xff]  ;;  %v6255_v52 = vld [vmem:[%s6182_s17 + $0x50] sm:$0xff]  ;;  %v6270_v60 = vld [vmem:[%s6182_s17 + $0x48] sm:$0xff] }
  0x44   : > { %v6258_v53 = vld [vmem:[%s6182_s17 + $0x40] sm:$0xff]  ;;  %v6274_v62 = vld [vmem:[%s6182_s17 + $0x58] sm:$0xff] }
  0x46   : > { %v5620_v13 = vpop.eup %5619 }
  0x47   : > { %v645_v14 = vmul.f32 128.0, %v5620_v13  ;;  %vm649_vm0 = vweird.f32 %v5620_v13  ;;  %s5094_s20 = scalar_lea.hbm %s10523_s25, %s5521_s14 }
  0x48   : > { %626 = vadd.xlane.f32.xlu0 %v501_v3  ;;  %622 = vadd.xlane.f32.xlu1 %v499_v4  ;;  %s5097_s30 = sshll.u32 %s5094_s20, 4  ;;  %s5098_s30 = int_to_ptr.hbm [resolvable:$true] %s5097_s30 }
  0x49   : > { %618 = vadd.xlane.f32.xlu2 %v497_v5  ;;  %v646_v15 = vsub.f32 1.0, %v645_v14  ;;  %s5940_s18 = sshra.s32 %s5098_s30, 4  ;;  %s5941_s18 = int_to_ptr.hbm [resolvable:$true] %s5940_s18 }
  0x4a   : > { %s5942_s16 = scalar_lea.hbm %s5941_s18, 128 }
  0x4b   : > { %v647_v16 = vmul.f32 %v5620_v13, %v646_v15  ;;  %p5943_p4 = scmp.ne.s32.totalorder %s5941_s18, %s5942_s16 }
  0x4d   : > { %v648_v17 = vadd.f32 %v5620_v13, %v647_v16  ;;  %p5944_p6 = pnand %p5943_p4, %p6128_p11 }
  0x4f   : > { %v6213_v18 = vsel %vm649_vm0, %v5620_v13, %v648_v17  ;;  %p5945_p13 = pneg %p5944_p6 }
  0x50   : > { %614 = vadd.xlane.f32.xlu1 %v495_v6  ;;  %612 = vadd.xlane.f32.xlu0 %v494_v7  ;;  %10235 = vst [vmem:[#allocation17_spill] sm:$0xff] %v6213_v18 }
  0x51   : > { %638 = vadd.xlane.f32.xlu2 %v6201_v8 }
  0x58   : > { %642 = vadd.xlane.f32.xlu1 %v509_v9  ;;  %640 = vadd.xlane.f32.xlu0 %v6206_v10 }
  0x60   : > { %636 = vadd.xlane.f32.xlu1 %v6210_v11 }
  0xb3   : > { %v625_v19 = vpop.xlane.xlu0 %624  ;;  %v621_v20 = vpop.xlane.xlu1 %620 }
  0xb4   : > { %v657_v21 = vmul.f32 %v6213_v18, %v625_v19  ;;  %v655_v22 = vmul.f32 %v6213_v18, %v621_v20  ;;  %v617_v23 = vpop.xlane.xlu2 %616 }
  0xb5   : > { %v653_v36 = vmul.f32 %v6213_v18, %v617_v23 }
  0xb6   : > { %v6217_v24 = vsub.f32 %v500_v0, %v657_v21  ;;  %v6219_v25 = vsub.f32 %v498_v1, %v655_v22 }
  0xb7   : > { %v6239_v41 = vsub.f32 %v496_v2, %v653_v36 }
  0xb8   : > { %v689_v26 = vmul.f32 %v6217_v24, %v6217_v24  ;;  %v687_v27 = vmul.f32 %v6219_v25, %v6219_v25 }
  0xb9   : > { %v685_v47 = vmul.f32 %v6239_v41, %v6239_v41 }
  0xba   : > { %711 = vadd.xlane.f32.xlu2 %v689_v26  ;;  %707 = vadd.xlane.f32.xlu1 %v687_v27 }
  0xbb   : > { %v627_v28 = vpop.xlane.xlu0 %626  ;;  %v623_v29 = vpop.xlane.xlu1 %622 }
  0xbc   : > { %v658_v30 = vmul.f32 %v6213_v18, %v627_v28  ;;  %v656_v31 = vmul.f32 %v6213_v18, %v623_v29  ;;  %v619_v32 = vpop.xlane.xlu2 %618 }
  0xbd   : > { %v654_v35 = vmul.f32 %v6213_v18, %v619_v32 }
  0xbe   : > { %v6227_v33 = vsub.f32 %v501_v3, %v658_v30  ;;  %v6229_v34 = vsub.f32 %v499_v4, %v656_v31 }
  0xbf   : > { %v6237_v39 = vsub.f32 %v497_v5, %v654_v35 }
  0xc0   : > { %v688_v37 = vmul.f32 %v6229_v34, %v6229_v34  ;;  %v690_v38 = vmul.f32 %v6227_v33, %v6227_v33 }
  0xc1   : > { %v686_v45 = vmul.f32 %v6237_v39, %v6237_v39 }
  0xc2   : > { %709 = vadd.xlane.f32.xlu2 %v688_v37  ;;  %713 = vadd.xlane.f32.xlu0 %v690_v38 }
  0xc3   : > { %v615_v40 = vpop.xlane.xlu1 %614  ;;  %v613_v43 = vpop.xlane.xlu0 %612 }
  0xc4   : > { %v652_v42 = vmul.f32 %v6213_v18, %v615_v40  ;;  %v651_v46 = vmul.f32 %v6213_v18, %v613_v43  ;;  %v639_v1 = vpop.xlane.xlu2 %638 }
  0xc5   : > { %v664_v4 = vmul.f32 %v6213_v18, %v639_v1 }
  0xc6   : > { %v6242_v44 = vsub.f32 %v495_v6, %v652_v42  ;;  %v6251_v49 = vsub.f32 %v494_v7, %v651_v46 }
  0xc7   : > { %v6290_v5 = vsub.f32 %v6201_v8, %v664_v4  ;;  %v6333_v4 = vld [vmem:[#allocation5] ss:$0 sm:$0xff] }
  0xc8   : > { %v684_v48 = vmul.f32 %v6242_v44, %v6242_v44  ;;  %v683_v54 = vmul.f32 %v6251_v49, %v6251_v49 }
  0xc9   : > { %v696_v6 = vmul.f32 %v6290_v5, %v6290_v5 }
  0xca   : > { %703 = vadd.xlane.f32.xlu2 %v685_v47  ;;  %701 = vadd.xlane.f32.xlu1 %v684_v48 }
  0xcb   : > { %705 = vadd.xlane.f32.xlu0 %v686_v45  ;;  %v643_v50 = vpop.xlane.xlu1 %642  ;;  %v641_v57 = vpop.xlane.xlu0 %640 }
  0xcc   : > { %v666_v51 = vmul.f32 %v6213_v18, %v643_v50  ;;  %v665_v61 = vmul.f32 %v6213_v18, %v641_v57 }
  0xce   : > { %v6264_v55 = vsub.f32 %v509_v9, %v666_v51  ;;  %v6282_v0 = vsub.f32 %v6206_v10, %v665_v61 }
  0xd0   : > { %v698_v58 = vmul.f32 %v6264_v55, %v6264_v55  ;;  %v697_v3 = vmul.f32 %v6282_v0, %v6282_v0 }
  0xd2   : > { %632 = vadd.xlane.f32.xlu2 %v6255_v52  ;;  %628 = vadd.xlane.f32.xlu1 %v6258_v53 }
  0xd3   : > { %699 = vadd.xlane.f32.xlu0 %v683_v54  ;;  %v637_v56 = vpop.xlane.xlu1 %636 }
  0xd4   : > { %v663_v59 = vmul.f32 %v6213_v18, %v637_v56 }
  0xd6   : > { %v6278_v63 = vsub.f32 %v6210_v11, %v663_v59 }
  0xd8   : > { %v695_v2 = vmul.f32 %v6278_v63, %v6278_v63 }
  0xda   : > { %630 = vadd.xlane.f32.xlu2 %v6270_v60  ;;  %729 = vadd.xlane.f32.xlu1 %v698_v58 }
  0xdb   : > { %634 = vadd.xlane.f32.xlu0 %v6274_v62 }
  0xe2   : > { %723 = vadd.xlane.f32.xlu2 %v695_v2 }
  0xe3   : > { %727 = vadd.xlane.f32.xlu0 %v697_v3 }
  0xeb   : > { %725 = vadd.xlane.f32.xlu0 %v696_v6 }
 0x12d   : > { %v712_v7 = vpop.xlane.xlu2 %711  ;;  %v708_v9 = vpop.xlane.xlu1 %707 }
 0x12e   : > { %v737_v10 = vmul.f32 %v712_v7, %v6213_v18  ;;  %v735_v11 = vmul.f32 %v708_v9, %v6213_v18 }
 0x130   : > { %v753_v12 = vadd.f32 1e-05, %v737_v10  ;;  %v751_v13 = vadd.f32 1e-05, %v735_v11 }
 0x132   : > { %5621 = vrsqrt.f32 %v753_v12  ;;  %vm809_vm3 = vweird.f32 %v751_v13  ;;  %vm829_vm4 = vweird.f32 %v753_v12 }
 0x133   : > { %5623 = vrsqrt.f32 %v751_v13 }
 0x135   : > { %v710_v14 = vpop.xlane.xlu2 %709  ;;  %v714_v15 = vpop.xlane.xlu0 %713 }
 0x136   : > { %v736_v16 = vmul.f32 %v710_v14, %v6213_v18  ;;  %v738_v8 = vmul.f32 %v714_v15, %v6213_v18 }
 0x138   : > { %v5622_v17 = vpop.eup %5621  ;;  %v6298_v19 = vadd.f32 1e-05, %v736_v16  ;;  %v6300_v20 = vadd.f32 1e-05, %v738_v8 }
 0x139   : > { %v5624_v21 = vpop.eup %5623  ;;  %v824_v22 = vmul.f32 %v5622_v17, %v753_v12  ;;  %vm830_vm2 = vweird.f32 %v5622_v17 }
 0x13a   : > { %v804_v23 = vmul.f32 %v5624_v21, %v751_v13  ;;  %5625 = vrsqrt.f32 %v6298_v19  ;;  %vm810_vm1 = vweird.f32 %v5624_v21  ;;  %vm831_vm6 = vmor %vm829_vm4, %vm830_vm2  ;;  %vm819_vm7 = vweird.f32 %v6298_v19 }
 0x13b   : > { %v825_v26 = vmul.f32 %v5622_v17, %v824_v22  ;;  %5627 = vrsqrt.f32 %v6300_v20  ;;  %vm6322_vm5 = vmor %vm809_vm3, %vm810_vm1  ;;  %vm839_vm8 = vweird.f32 %v6300_v20 }
 0x13c   : > { %v805_v27 = vmul.f32 %v5624_v21, %v804_v23  ;;  %v6358_v23 = vld [vmem:[#allocation7] ss:$0 sm:$0xff] }
 0x13d   : > { %v826_v28 = vmul.f32 0.5, %v825_v26  ;;  %v704_v29 = vpop.xlane.xlu2 %703  ;;  %v702_v30 = vpop.xlane.xlu1 %701 }
 0x13e   : > { %v806_v31 = vmul.f32 0.5, %v805_v27  ;;  %v733_v32 = vmul.f32 %v704_v29, %v6213_v18  ;;  %v732_v35 = vmul.f32 %v702_v30, %v6213_v18  ;;  %v706_v36 = vpop.xlane.xlu0 %705 }
 0x13f   : > { %v827_v37 = vsub.f32 1.5, %v826_v28  ;;  %v734_v38 = vmul.f32 %v706_v36, %v6213_v18 }
 0x140   : > { %v6307_v40 = vpop.eup %5625  ;;  %v807_v42 = vsub.f32 1.5, %v806_v31  ;;  %v6309_v43 = vadd.f32 1e-05, %v733_v32  ;;  %v6311_v45 = vadd.f32 1e-05, %v732_v35 }
 0x141   : > { %v6313_v46 = vpop.eup %5627  ;;  %v828_v47 = vmul.f32 %v5622_v17, %v827_v37  ;;  %v814_v48 = vmul.f32 %v6307_v40, %v6298_v19  ;;  %v6317_v50 = vadd.f32 1e-05, %v734_v38  ;;  %vm820_vm9 = vweird.f32 %v6307_v40 }
 0x142   : > { %v808_v51 = vmul.f32 %v5624_v21, %v807_v42  ;;  %v834_v54 = vmul.f32 %v6313_v46, %v6300_v20  ;;  %5629 = vrsqrt.f32 %v6309_v43  ;;  %vm840_vm10 = vweird.f32 %v6313_v46  ;;  %vm6396_vm15 = vmor %vm819_vm7, %vm820_vm9 }
 0x143   : > { %v815_v57 = vmul.f32 %v6307_v40, %v814_v48  ;;  %5631 = vrsqrt.f32 %v6311_v45  ;;  %v832_v3 = vsel %vm831_vm6, %v5622_v17, %v828_v47  ;;  %vm789_vm11 = vweird.f32 %v6309_v43  ;;  %vm6378_vm13 = vmor %vm839_vm8, %vm840_vm10 }
 0x144   : > { %v812_v58 = vsel %vm6322_vm5, %v5624_v21, %v808_v51  ;;  %v835_v59 = vmul.f32 %v6313_v46, %v834_v54  ;;  %5633 = vrsqrt.f32 %v6317_v50  ;;  %v929_v11 = vmul.f32 %v832_v3, %v6217_v24 }
 0x145   : > { %v816_v61 = vmul.f32 0.5, %v815_v57  ;;  %v633_v1 = vpop.xlane.xlu2 %632  ;;  %v629_v2 = vpop.xlane.xlu1 %628  ;;  %v927_v14 = vmul.f32 %v812_v58, %v6219_v25  ;;  %vm799_vm12 = vweird.f32 %v6317_v50  ;;  %vm779_vm0 = vweird.f32 %v6311_v45 }
 0x146   : > { %v836_v6 = vmul.f32 0.5, %v835_v59  ;;  %v661_v7 = vmul.f32 %v6213_v18, %v633_v1  ;;  %v659_v9 = vmul.f32 %v6213_v18, %v629_v2  ;;  %v700_v10 = vpop.xlane.xlu0 %699  ;;  %v948_v25 = vmul.f32 %v6333_v4, %v929_v11 }
 0x147   : > { %v817_v12 = vsub.f32 1.5, %v816_v61  ;;  %v731_v13 = vmul.f32 %v700_v10, %v6213_v18  ;;  %v946_v31 = vmul.f32 %v6333_v4, %v927_v14 }
 0x148   : > { %v6341_v15 = vpop.eup %5629  ;;  %v837_v16 = vsub.f32 1.5, %v836_v6  ;;  %v6345_v8 = vsub.f32 %v6255_v52, %v661_v7  ;;  %v6348_v17 = vsub.f32 %v6258_v53, %v659_v9  ;;  %v967_v48 = vadd.f32 %v6358_v23, %v948_v25 }
 0x149   : > { %v6350_v21 = vpop.eup %5631  ;;  %v784_v24 = vmul.f32 %v6341_v15, %v6309_v43  ;;  %v6355_v22 = vadd.f32 1e-05, %v731_v13  ;;  %v818_v28 = vmul.f32 %v6307_v40, %v817_v12  ;;  %vm790_vm14 = vweird.f32 %v6341_v15 }
 0x14a   : > { %v6360_v26 = vpop.eup %5633  ;;  %v838_v52 = vmul.f32 %v6313_v46, %v837_v16  ;;  %v774_v53 = vmul.f32 %v6350_v21, %v6311_v45  ;;  %v693_v27 = vmul.f32 %v6345_v8, %v6345_v8  ;;  %v691_v36 = vmul.f32 %v6348_v17, %v6348_v17  ;;  %vm6429_vm3 = vmor %vm789_vm11, %vm790_vm14 }
 0x14b   : > { %v785_v29 = vmul.f32 %v6341_v15, %v784_v24  ;;  %v794_v30 = vmul.f32 %v6360_v26, %v6317_v50  ;;  %5635 = vrsqrt.f32 %v6355_v22  ;;  %v822_v59 = vsel %vm6396_vm15, %v6307_v40, %v818_v28 }
 0x14c   : > { %v775_v35 = vmul.f32 %v6350_v21, %v774_v53  ;;  %719 = vadd.xlane.f32.xlu1 %v693_v27  ;;  %v842_v20 = vsel %vm6378_vm13, %v6313_v46, %v838_v52  ;;  %715 = vadd.xlane.f32.xlu0 %v691_v36  ;;  %vm800_vm1 = vweird.f32 %v6360_v26  ;;  %vm780_vm2 = vweird.f32 %v6350_v21 }
 0x14d   : > { %v786_v37 = vmul.f32 0.5, %v785_v29  ;;  %v795_v38 = vmul.f32 %v6360_v26, %v794_v30  ;;  %v631_v42 = vpop.xlane.xlu2 %630  ;;  %v730_v47 = vpop.xlane.xlu1 %729  ;;  %v930_v46 = vmul.f32 %v842_v20, %v6227_v33  ;;  %v983_v11 = vpack.c.bf16 %v967_v48, %v967_v48  ;;  %vm6443_vm5 = vmor %vm799_vm12, %vm800_vm1 }
 0x14e   : > { %v776_v54 = vmul.f32 0.5, %v775_v35  ;;  %v660_v56 = vmul.f32 %v6213_v18, %v631_v42  ;;  %v746_v57 = vmul.f32 %v730_v47, %v6213_v18  ;;  %v635_v58 = vpop.xlane.xlu0 %634  ;;  %vm769_vm4 = vweird.f32 %v6355_v22  ;;  %vm6470_vm6 = vmor %vm779_vm0, %vm780_vm2 }
 0x14f   : > { %v787_v19 = vsub.f32 1.5, %v786_v37  ;;  %v796_v61 = vmul.f32 0.5, %v795_v38  ;;  %v662_v1 = vmul.f32 %v6213_v18, %v635_v58  ;;  %v949_v7 = vmul.f32 %v6333_v4, %v930_v46 }
 0x150   : > { %v777_v2 = vsub.f32 1.5, %v776_v54  ;;  %v6409_v3 = vsub.f32 %v6270_v60, %v660_v56  ;;  %v6411_v6 = vadd.f32 1e-05, %v746_v57  ;;  %v928_v52 = vmul.f32 %v822_v59, %v6229_v34 }
 0x151   : > { %v788_v9 = vmul.f32 %v6341_v15, %v787_v19  ;;  %v797_v10 = vsub.f32 1.5, %v796_v61  ;;  %v6417_v33 = vsub.f32 %v6274_v62, %v662_v1  ;;  %v6419_v40 = vpop.eup %5635  ;;  %v968_v25 = vadd.f32 %v6358_v23, %v949_v7 }
 0x152   : > { %5637 = vrsqrt.f32 %v6411_v6  ;;  %v692_v60 = vmul.f32 %v6409_v3, %v6409_v3  ;;  %v778_v62 = vmul.f32 %v6350_v21, %v777_v2  ;;  %v764_v14 = vmul.f32 %v6419_v40, %v6355_v22 }
 0x153   : > { %v798_v13 = vmul.f32 %v6360_v26, %v797_v10  ;;  %v792_v16 = vsel %vm6429_vm3, %v6341_v15, %v788_v9  ;;  %v694_v24 = vmul.f32 %v6417_v33, %v6417_v33  ;;  %v965_v50 = vadd.f32 %v6358_v23, %v946_v31 }
 0x154   : > { %717 = vadd.xlane.f32.xlu1 %v692_v60  ;;  %v765_v15 = vmul.f32 %v6419_v40, %v764_v14  ;;  %v984_v30 = vpack.c.bf16 %v968_v25, %v968_v25  ;;  %v1127_v32 = vunpack.c.l.b16 %v983_v11  ;;  %v947_v35 = vmul.f32 %v6333_v4, %v928_v52 }
 0x155   : > { %v802_v53 = vsel %vm6443_vm5, %v6360_v26, %v798_v13  ;;  %v724_v27 = vpop.xlane.xlu2 %723  ;;  %721 = vadd.xlane.f32.xlu2 %v694_v24  ;;  %v6003_v36 = vmov 0   ;;  %v981_v38 = vpack.c.bf16 %v965_v50, %v965_v50  ;;  %v925_v26 = vmul.f32 %v792_v16, %v6239_v41 }
 0x156   : > { %v743_v28 = vmul.f32 %v724_v27, %v6213_v18  ;;  %v728_v29 = vpop.xlane.xlu0 %727  ;;  %5612 = vset.pattern.permute.xlu0 %v6003_v36  ;;  %v766_v34 = vmul.f32 0.5, %v765_v15  ;;  %5613 = vset.pattern.permute.xlu1 %v6003_v36  ;;  %v1128_v47 = vunpack.c.l.b16 %v984_v30  ;;  %v966_v20 = vadd.f32 %v6358_v23, %v947_v35 }
 0x157   : > { %v745_v37 = vmul.f32 %v728_v29, %v6213_v18  ;;  %5611 = vset.pattern.permute.xlu2 %v6003_v36  ;;  %v926_v48 = vmul.f32 %v802_v53, %v6237_v39  ;;  %vm770_vm7 = vweird.f32 %v6419_v40  ;;  %v782_v39 = vsel %vm6470_vm6, %v6350_v21, %v778_v62 }
 0x158   : > { %v6460_v42 = vpop.eup %5637  ;;  %v6462_v31 = vadd.f32 1e-05, %v743_v28  ;;  %v767_v41 = vsub.f32 1.5, %v766_v34  ;;  %v1132_v57 = vpack.c.b16 %v1128_v47, %v1127_v32  ;;  %v982_v45 = vpack.c.bf16 %v966_v20, %v966_v20  ;;  %vm771_vm9 = vmor %vm769_vm4, %vm770_vm7  ;;  %v536_v20 = vld [vmem:[%s10119_s4 + $0x30] sm:$0xff] }
 0x159   : > { %v914_v54 = vmul.f32 %v6460_v42, %v6411_v6  ;;  %v6477_v56 = vadd.f32 1e-05, %v745_v37  ;;  %vm919_vm8 = vweird.f32 %v6411_v6  ;;  %v1125_v59 = vunpack.c.l.b16 %v981_v38 }
 0x15a   : > { %5639 = vrsqrt.f32 %v6462_v31  ;;  %v768_v58 = vmul.f32 %v6419_v40, %v767_v41  ;;  %1166 = vmatpush.bf16.msra.mxu0 %v1132_v57  ;;  %v1126_v19 = vunpack.c.l.b16 %v982_v45  ;;  %v944_v21 = vmul.f32 %v6333_v4, %v925_v26 }
 0x15b   : > { %v915_v46 = vmul.f32 %v6460_v42, %v914_v54  ;;  %5641 = vrsqrt.f32 %v6477_v56  ;;  %v945_v61 = vmul.f32 %v6333_v4, %v926_v48  ;;  %vm920_vm10 = vweird.f32 %v6460_v42 }
 0x15c   : > { %v772_v1 = vsel %vm771_vm9, %v6419_v40, %v768_v58  ;;  %v924_v7 = vmul.f32 %v782_v39, %v6242_v44  ;;  %v1131_v9 = vpack.c.b16 %v1126_v19, %v1125_v59  ;;  %v963_v60 = vadd.f32 %v6358_v23, %v944_v21  ;;  %v545_v40 = vld [vmem:[%s10119_s4 + $0x78] sm:$0xff]  ;;  %vm6508_vm11 = vmor %vm919_vm8, %vm920_vm10  ;;  %v542_v58 = vld [vmem:[%s10119_s4 + $0x60] sm:$0xff] }
 0x15d   : > { %v916_v2 = vmul.f32 0.5, %v915_v46  ;;  %v964_v22 = vadd.f32 %v6358_v23, %v945_v61  ;;  %v923_v11 = vmul.f32 %v772_v1, %v6251_v49  ;;  %vm889_vm12 = vweird.f32 %v6462_v31  ;;  %v6540_v46 = vld [vmem:[%s10118_s3] sm:$0xff]  ;;  %v544_v59 = vld [vmem:[%s10119_s4 + $0x70] sm:$0xff] }
 0x15e   : > { %v726_v10 = vpop.xlane.xlu0 %725  ;;  %1167 = vmatpush.bf16.msra.mxu0 %v1131_v9  ;;  %v979_v14 = vpack.c.bf16 %v963_v60, %v963_v60  ;;  %v943_v43 = vmul.f32 %v6333_v4, %v924_v7  ;;  %vm909_vm14 = vweird.f32 %v6477_v56  ;;  %vm1137_vm2 = vcmask 523264   ;;  %v535_v9 = vld [vmem:[%s10119_s4 + $0x28] sm:$0xff] }
 0x15f   : > { %v917_v12 = vsub.f32 1.5, %v916_v2  ;;  %v744_v62 = vmul.f32 %v726_v10, %v6213_v18  ;;  %v980_v16 = vpack.c.bf16 %v964_v22, %v964_v22  ;;  %v942_v44 = vmul.f32 %v6333_v4, %v923_v11 }
 0x160   : > { %v5640_v13 = vpop.eup %5639  ;;  %1070 = vperm.xlu0 %5612, %v545_v40   ;;  %v1123_v27 = vunpack.c.l.b16 %v979_v14  ;;  %v962_v32 = vadd.f32 %v6358_v23, %v943_v43  ;;  %v543_v40 = vld [vmem:[%s10119_s4 + $0x68] sm:$0xff] }
 0x161   : > { %v5642_v24 = vpop.eup %5641  ;;  %v918_v25 = vmul.f32 %v6460_v42, %v917_v12  ;;  %v884_v52 = vmul.f32 %v5640_v13, %v6462_v31  ;;  %v760_v53 = vadd.f32 1e-05, %v744_v62  ;;  %v1124_v50 = vunpack.c.l.b16 %v980_v16  ;;  %v541_v12 = vld [vmem:[%s10119_s4 + $0x58] sm:$0xff] }
 0x162   : > { %v904_v15 = vmul.f32 %v5642_v24, %v6477_v56  ;;  %v961_v29 = vadd.f32 %v6358_v23, %v942_v44  ;;  %vm890_vm13 = vweird.f32 %v5640_v13  ;;  %vm910_vm15 = vweird.f32 %v5642_v24 }
 0x163   : > { %v885_v28 = vmul.f32 %v5640_v13, %v884_v52  ;;  %5643 = vrsqrt.f32 %v760_v53  ;;  %v1130_v6 = vpack.c.b16 %v1124_v50, %v1123_v27  ;;  %v922_v35 = vsel %vm6508_vm11, %v6460_v42, %v918_v25  ;;  %vm6527_vm0 = vmor %vm889_vm12, %vm890_vm13  ;;  %v540_v50 = vld [vmem:[%s10119_s4 + $0x50] sm:$0xff]  ;;  %v554_v42 = vld [vmem:[%s10121_s6] sm:$0xff] }
 0x164   : > { %v905_v30 = vmul.f32 %v5642_v24, %v904_v15  ;;  %v977_v34 = vpack.c.bf16 %v961_v29, %v961_v29  ;;  %v938_v37 = vmul.f32 %v922_v35, %v6264_v55  ;;  %v978_v26 = vpack.c.bf16 %v962_v32, %v962_v32  ;;  %vm911_vm1 = vmor %vm909_vm14, %vm910_vm15  ;;  %v539_v15 = vld [vmem:[%s10119_s4 + $0x48] sm:$0xff]  ;;  %v538_v32 = vld [vmem:[%s10119_s4 + $0x40] sm:$0xff] }
 0x165   : > { %v886_v36 = vmul.f32 0.5, %v885_v28  ;;  %1168 = vmatpush.bf16.msra.mxu0 %v1130_v6  ;;  %vm899_vm3 = vweird.f32 %v760_v53  ;;  %v534_v6 = vld [vmem:[%s10119_s4 + $0x20] sm:$0xff]  ;;  %v533_v35 = vld [vmem:[%s10119_s4 + $0x18] sm:$0xff] }
 0x166   : > { %v906_v38 = vmul.f32 0.5, %v905_v30  ;;  %v1121_v48 = vunpack.c.l.b16 %v977_v34  ;;  %v1122_v55 = vunpack.c.l.b16 %v978_v26  ;;  %v957_v56 = vmul.f32 %v6333_v4, %v938_v37  ;;  %v537_v34 = vld [vmem:[%s10119_s4 + $0x38] sm:$0xff]  ;;  %v532_v37 = vld [vmem:[%s10119_s4 + $0x10] sm:$0xff]  ;;  %v531_v26 = vld [vmem:[%s10119_s4 + $0x8] sm:$0xff] }
 0x167   : > { %v887_v47 = vsub.f32 1.5, %v886_v36  ;;  %v6594_v36 = vld [vmem:[%s10118_s3 + $0x10] sm:$0xff] }
 0x168   : > { %v907_v51 = vsub.f32 1.5, %v906_v38  ;;  %1025 = vperm.xlu0 %5612, %v536_v20   ;;  %v1129_v45 = vpack.c.b16 %v1122_v55, %v1121_v48  ;;  %v976_v1 = vadd.f32 %v6358_v23, %v957_v56  ;;  %v6607_v38 = vld [vmem:[%s10118_s3 + $0x18] sm:$0xff]  ;;  %v6624_v20 = vld [vmem:[%s10118_s3 + $0x28] sm:$0xff] }
 0x169   : > { %v5644_v41 = vpop.eup %5643  ;;  %v888_v54 = vmul.f32 %v5640_v13, %v887_v47  ;;  %v6617_v47 = vld [vmem:[%s10118_s3 + $0x20] sm:$0xff] }
 0x16a   : > { %v908_v39 = vmul.f32 %v5642_v24, %v907_v51  ;;  %v894_v57 = vmul.f32 %v5644_v41, %v760_v53  ;;  %1169 = vmatpush.bf16.msra.mxu0 %v1129_v45  ;;  %vm900_vm4 = vweird.f32 %v5644_v41  ;;  %v992_v22 = vpack.c.bf16 %v976_v1, %v976_v1  ;;  %v6644_v1 = vld [vmem:[%s10118_s3 + $0x30] sm:$0xff] }
 0x16b   : > { %v892_v31 = vsel %vm6527_vm0, %v5640_v13, %v888_v54  ;;  %vm901_vm5 = vmor %vm899_vm3, %vm900_vm4 }
 0x16c   : > { %v895_v19 = vmul.f32 %v5644_v41, %v894_v57  ;;  %v912_v21 = vsel %vm911_vm1, %v5642_v24, %v908_v39  ;;  %v935_v2 = vmul.f32 %v892_v31, %v6278_v63  ;;  %v2047_v16 = vunpack.c.l.b16 %v992_v22  ;;  %v530_v24 = vld [vmem:[%s10119_s4] sm:$0xff]  ;;  %v555_v39 = vld [vmem:[%s10121_s6 + $0x8] sm:$0xff]  ;;  %v557_v57 = vld [vmem:[%s10121_s6 + $0x18] sm:$0xff] }
 0x16d   : > { %1055 = vperm.xlu1 %5613, %v542_v58   ;;  %v937_v61 = vmul.f32 %v912_v21, %v6282_v0  ;;  %1065 = vperm.xlu2 %5611, %v544_v59  }
 0x16e   : > { %v896_v7 = vmul.f32 0.5, %v895_v19  ;;  %5236 = vmatmul.msk.bf16.vlgmr.msra.gmra.mxu0 %vm1137_vm2, %v6540_v46  ;;  %v954_v63 = vmul.f32 %v6333_v4, %v935_v2 }
 0x16f   : > { %v956_v10 = vmul.f32 %v6333_v4, %v937_v61 }
 0x170   : > { %v897_v60 = vsub.f32 1.5, %v896_v7  ;;  %1020 = vperm.xlu0 %5612, %v535_v9   ;;  %v973_v43 = vadd.f32 %v6358_v23, %v954_v63 }
 0x171   : > { %v975_v0 = vadd.f32 %v6358_v23, %v956_v10 }
 0x172   : > { %v898_v11 = vmul.f32 %v5644_v41, %v897_v60  ;;  %v989_v53 = vpack.c.bf16 %v973_v43, %v973_v43 }
 0x173   : > { %v991_v62 = vpack.c.bf16 %v975_v0, %v975_v0 }
 0x174   : > { %v902_v13 = vsel %vm901_vm5, %v5644_v41, %v898_v11  ;;  %v2044_v28 = vunpack.c.l.b16 %v989_v53 }
 0x175   : > { %1050 = vperm.xlu1 %5613, %v541_v12   ;;  %v2046_v14 = vunpack.c.l.b16 %v991_v62  ;;  %v936_v44 = vmul.f32 %v902_v13, %v6290_v5  ;;  %1060 = vperm.xlu2 %5611, %v543_v40   ;;  %v6575_v5 = vld [vmem:[%s10118_s3 + $0x8] sm:$0xff] }
 0x177   : > { %v2051_v25 = vpack.c.b16 %v2047_v16, %v2046_v14  ;;  %v955_v49 = vmul.f32 %v6333_v4, %v936_v44 }
 0x178   : > { %995 = vperm.xlu0 %5612, %v530_v24  }
 0x179   : > { %2060 = vmatpush.bf16.msra.mxu2 %v2051_v25  ;;  %v974_v52 = vadd.f32 %v6358_v23, %v955_v49 }
 0x17b   : > { %v990_v27 = vpack.c.bf16 %v974_v52, %v974_v52 }
 0x17d   : > { %1040 = vperm.xlu1 %5613, %v539_v15   ;;  %v2045_v29 = vunpack.c.l.b16 %v990_v27  ;;  %1045 = vperm.xlu2 %5611, %v540_v50  }
 0x17e   : > { %5237 = vmatmul.msk.bf16.gmra.mxu0 %vm1137_vm2, %v6575_v5 }
 0x17f   : > { %v2050_v30 = vpack.c.b16 %v2045_v29, %v2044_v28  ;;  %v6652_v28 = vld [vmem:[%s10118_s3 + $0x38] sm:$0xff] }
 0x180   : > { %1930 = vperm.xlu0 %5612, %v555_v39  }
 0x181   : > { %2061 = vmatpush.bf16.msra.mxu2 %v2050_v30 }
 0x185   : > { %1015 = vperm.xlu1 %5613, %v534_v6   ;;  %1035 = vperm.xlu2 %5611, %v538_v32   ;;  %v560_v32 = vld [vmem:[%s10121_s6 + $0x30] sm:$0xff] }
 0x18d   : > { %1010 = vperm.xlu1 %5613, %v533_v35   ;;  %1030 = vperm.xlu2 %5611, %v537_v34   ;;  %v558_v35 = vld [vmem:[%s10121_s6 + $0x20] sm:$0xff] }
 0x18e   : > { %5238 = vmatmul.msk.bf16.gmra.mxu0 %vm1137_vm2, %v6594_v36  ;;  %1945 = vperm.xlu0 %5612, %v558_v35  }
 0x195   : > { %1005 = vperm.xlu2 %5611, %v532_v37   ;;  %1925 = vperm.xlu1 %5613, %v554_v42  }
 0x19d   : > { %1000 = vperm.xlu2 %5611, %v531_v26   ;;  %1940 = vperm.xlu1 %5613, %v557_v57  }
 0x19e   : > { %5239 = vmatmul.msk.bf16.gmra.mxu0 %vm1137_vm2, %v6607_v38 }
 0x1a5   : > { %1955 = vperm.xlu1 %5613, %v560_v32  }
 0x1ae   : > { %5240 = vmatmul.msk.bf16.gmra.mxu0 %vm1137_vm2, %v6617_v47 }
 0x1be   : > { %5241 = vmatmul.msk.bf16.gmra.mxu0 %vm1137_vm2, %v6624_v20 }
 0x1bf   : > { %v720_v48 = vpop.xlane.xlu1 %719  ;;  %v716_v55 = vpop.xlane.xlu0 %715 }
 0x1c0   : > { %v741_v51 = vmul.f32 %v720_v48, %v6213_v18  ;;  %v739_v54 = vmul.f32 %v716_v55, %v6213_v18 }
 0x1c2   : > { %v757_v41 = vadd.f32 1e-05, %v741_v51  ;;  %v755_v56 = vadd.f32 1e-05, %v739_v54  ;;  %v556_v51 = vld [vmem:[%s10121_s6 + $0x10] sm:$0xff] }
 0x1c3   : > { %1935 = vperm.xlu2 %5611, %v556_v51  }
 0x1c4   : > { %5645 = vrsqrt.f32 %v757_v41  ;;  %vm869_vm7 = vweird.f32 %v757_v41  ;;  %vm849_vm9 = vweird.f32 %v755_v56 }
 0x1c5   : > { %5647 = vrsqrt.f32 %v755_v56 }
 0x1c7   : > { %v718_v45 = vpop.xlane.xlu1 %717 }
 0x1c8   : > { %v740_v58 = vmul.f32 %v718_v45, %v6213_v18  ;;  %v722_v31 = vpop.xlane.xlu2 %721 }
 0x1c9   : > { %v742_v21 = vmul.f32 %v722_v31, %v6213_v18 }
 0x1ca   : > { %v5646_v59 = vpop.eup %5645  ;;  %v756_v19 = vadd.f32 1e-05, %v740_v58 }
 0x1cb   : > { %v864_v61 = vmul.f32 %v5646_v59, %v757_v41  ;;  %v5648_v2 = vpop.eup %5647  ;;  %v758_v7 = vadd.f32 1e-05, %v742_v21  ;;  %vm870_vm6 = vweird.f32 %v5646_v59 }
 0x1cc   : > { %5649 = vrsqrt.f32 %v756_v19  ;;  %v844_v10 = vmul.f32 %v5648_v2, %v755_v56  ;;  %vm871_vm8 = vmor %vm869_vm7, %vm870_vm6  ;;  %vm850_vm10 = vweird.f32 %v5648_v2  ;;  %vm859_vm13 = vweird.f32 %v756_v19  ;;  %v561_v56 = vld [vmem:[%s10121_s6 + $0x38] sm:$0xff] }
 0x1cd   : > { %v865_v9 = vmul.f32 %v5646_v59, %v864_v61  ;;  %5651 = vrsqrt.f32 %v758_v7  ;;  %vm851_vm11 = vmor %vm849_vm9, %vm850_vm10  ;;  %vm879_vm0 = vweird.f32 %v758_v7  ;;  %1960 = vperm.xlu0 %5612, %v561_v56  }
 0x1ce   : > { %v845_v0 = vmul.f32 %v5648_v2, %v844_v10  ;;  %5242 = vmatmul.msk.bf16.gmra.mxu0 %vm1137_vm2, %v6644_v1 }
 0x1cf   : > { %v866_v60 = vmul.f32 0.5, %v865_v9 }
 0x1d0   : > { %v846_v63 = vmul.f32 0.5, %v845_v0  ;;  %v6686_v10 = vpop.permute.xlu2 %1065 }
 0x1d1   : > { %v867_v22 = vsub.f32 1.5, %v866_v60  ;;  %10252 = vst [vmem:[#allocation18_spill] sm:$0xff] %v6686_v10 }
 0x1d2   : > { %v5650_v11 = vpop.eup %5649  ;;  %v847_v62 = vsub.f32 1.5, %v846_v63 }
 0x1d3   : > { %v868_v12 = vmul.f32 %v5646_v59, %v867_v22  ;;  %v854_v40 = vmul.f32 %v5650_v11, %v756_v19  ;;  %v5652_v13 = vpop.eup %5651  ;;  %vm860_vm12 = vweird.f32 %v5650_v11 }
 0x1d4   : > { %v848_v16 = vmul.f32 %v5648_v2, %v847_v62  ;;  %v874_v43 = vmul.f32 %v5652_v13, %v758_v7  ;;  %vm880_vm14 = vweird.f32 %v5652_v13  ;;  %vm861_vm15 = vmor %vm859_vm13, %vm860_vm12 }
 0x1d5   : > { %v872_v14 = vsel %vm871_vm8, %v5646_v59, %v868_v12  ;;  %v855_v44 = vmul.f32 %v5650_v11, %v854_v40  ;;  %vm881_vm1 = vmor %vm879_vm0, %vm880_vm14 }
 0x1d6   : > { %v875_v25 = vmul.f32 %v5652_v13, %v874_v43  ;;  %v933_v49 = vmul.f32 %v872_v14, %v6345_v8  ;;  %v852_v52 = vsel %vm851_vm11, %v5648_v2, %v848_v16 }
 0x1d7   : > { %v856_v24 = vmul.f32 0.5, %v855_v44  ;;  %v931_v30 = vmul.f32 %v852_v52, %v6348_v17 }
 0x1d8   : > { %v876_v15 = vmul.f32 0.5, %v875_v25  ;;  %v952_v29 = vmul.f32 %v6333_v4, %v933_v49  ;;  %v6688_v0 = vpop.permute.xlu2 %1060 }
 0x1d9   : > { %v857_v53 = vsub.f32 1.5, %v856_v24  ;;  %v950_v48 = vmul.f32 %v6333_v4, %v931_v30  ;;  %10253 = vst [vmem:[#allocation19_spill] sm:$0xff] %v6688_v0 }
 0x1da   : > { %v877_v50 = vsub.f32 1.5, %v876_v15  ;;  %v971_v26 = vadd.f32 %v6358_v23, %v952_v29 }
 0x1db   : > { %v858_v27 = vmul.f32 %v5650_v11, %v857_v53 }
 0x1dc   : > { %v878_v8 = vmul.f32 %v5652_v13, %v877_v50  ;;  %v987_v54 = vpack.c.bf16 %v971_v26, %v971_v26 }
 0x1dd   : > { %v862_v6 = vsel %vm861_vm15, %v5650_v11, %v858_v27 }
 0x1de   : > { %v932_v34 = vmul.f32 %v862_v6, %v6409_v3  ;;  %v882_v37 = vsel %vm881_vm1, %v5652_v13, %v878_v8  ;;  %5243 = vmatmul.msk.bf16.gmra.mxu0 %vm1137_vm2, %v6652_v28  ;;  %v2042_v45 = vunpack.c.l.b16 %v987_v54 }
 0x1df   : > { %v934_v17 = vmul.f32 %v882_v37, %v6417_v33  ;;  %v969_v33 = vadd.f32 %v6358_v23, %v950_v48  ;;  %v6698_v12 = vpop.permute.xlu1 %1055 }
 0x1e0   : > { %v951_v42 = vmul.f32 %v6333_v4, %v932_v34  ;;  %v6694_v63 = vpop.permute.xlu2 %1045  ;;  %10256 = vst [vmem:[#allocation22_spill] sm:$0xff] %v6698_v12 }
 0x1e1   : > { %v953_v55 = vmul.f32 %v6333_v4, %v934_v17  ;;  %v985_v31 = vpack.c.bf16 %v969_v33, %v969_v33  ;;  %v559_v4 = vld [vmem:[%s10121_s6 + $0x28] sm:$0xff]  ;;  %10254 = vst [vmem:[#allocation20_spill] sm:$0xff] %v6694_v63 }
 0x1e2   : > { %v970_v3 = vadd.f32 %v6358_v23, %v951_v42  ;;  %1950 = vperm.xlu2 %5611, %v559_v4  }
 0x1e3   : > { %v972_v41 = vadd.f32 %v6358_v23, %v953_v55  ;;  %v2040_v23 = vunpack.c.l.b16 %v985_v31 }
 0x1e4   : > { %v986_v57 = vpack.c.bf16 %v970_v3, %v970_v3 }
 0x1e5   : > { %v988_v39 = vpack.c.bf16 %v972_v41, %v972_v41 }
 0x1e6   : > { %v2041_v19 = vunpack.c.l.b16 %v986_v57 }
 0x1e7   : > { %v2043_v58 = vunpack.c.l.b16 %v988_v39 }
 0x1e8   : > { %v2048_v61 = vpack.c.b16 %v2041_v19, %v2040_v23  ;;  %v6704_v62 = vpop.permute.xlu2 %1035 }
 0x1e9   : > { %v2049_v59 = vpack.c.b16 %v2043_v58, %v2042_v45  ;;  %10257 = vst [vmem:[#allocation23_spill] sm:$0xff] %v6704_v62 }
 0x1eb   : > { %v1171_v21 = vpop.f32.mrf.mxu0  ;;  %2062 = vmatpush.bf16.msra.mxu2 %v2049_v59 }
 0x1ef   : > { %2063 = vmatpush.bf16.msra.mxu2 %v2048_v61 }
 0x1f0   : > { %v6710_v14 = vpop.permute.xlu2 %1030 }
 0x1f1   : > { %10260 = vst [vmem:[#allocation26_spill] sm:$0xff] %v6710_v14 }
 0x1f2   : > { %5276 = vmatmul.msk.bf16.vlgmr.msra.gmra.mxu2 %vm1137_vm2, %v6540_v46  ;;  %v6696_v46 = vpop.permute.xlu0 %1070 }
 0x1f3   : > { %v1173_v2 = vpop.f32.mrf.mxu0  ;;  %10255 = vst [vmem:[#allocation21_spill] sm:$0xff] %v6696_v46 }
 0x1fa   : > { %v6706_v40 = vpop.permute.xlu0 %1025 }
 0x1fb   : > { %v1176_v7 = vpop.f32.mrf.mxu0  ;;  %10258 = vst [vmem:[#allocation24_spill] sm:$0xff] %v6706_v40 }
 0x202   : > { %5277 = vmatmul.msk.bf16.gmra.mxu2 %vm1137_vm2, %v6575_v5  ;;  %v6712_v16 = vpop.permute.xlu0 %1020 }
 0x203   : > { %v1178_v9 = vpop.f32.mrf.mxu0  ;;  %10261 = vst [vmem:[#allocation27_spill] sm:$0xff] %v6712_v16 }
 0x20a   : > { %v6722_v25 = vpop.permute.xlu0 %995 }
 0x20b   : > { %v1181_v60 = vpop.f32.mrf.mxu0  ;;  %10264 = vst [vmem:[#allocation30_spill] sm:$0xff] %v6722_v25 }
 0x212   : > { %5278 = vmatmul.msk.bf16.gmra.mxu2 %vm1137_vm2, %v6594_v36  ;;  %v6708_v36 = vpop.permute.xlu1 %1050 }
 0x213   : > { %v6692_v22 = vpop.f32.mrf.mxu0  ;;  %10259 = vst [vmem:[#allocation25_spill] sm:$0xff] %v6708_v36 }
 0x21a   : > { %v6718_v43 = vpop.permute.xlu1 %1040 }
 0x21b   : > { %v1186_v11 = vpop.f32.mrf.mxu0  ;;  %10262 = vst [vmem:[#allocation28_spill] sm:$0xff] %v6718_v43 }
 0x21c   : > { %v6792_v58 = vadd.f32 %v1186_v11, %v6706_v40 }
 0x21e   : > { %10279 = vst [vmem:[#allocation45_spill] sm:$0xff] %v6792_v58 }
 0x222   : > { %5279 = vmatmul.msk.bf16.gmra.mxu2 %vm1137_vm2, %v6607_v38  ;;  %v6720_v38 = vpop.permute.xlu2 %1005  ;;  %v6736_v15 = vpop.permute.xlu1 %1015 }
 0x223   : > { %v6702_v5 = vpop.f32.mrf.mxu0  ;;  %10263 = vst [vmem:[#allocation29_spill] sm:$0xff] %v6720_v38  ;;  %v6725_v49 = vadd.f32 %v1176_v7, %v6720_v38  ;;  %v6780_v56 = vadd.f32 %v1181_v60, %v6736_v15  ;;  %v6814_v60 = vmul.f32 0.70710677, %v6792_v58 }
 0x224   : > { %10267 = vst [vmem:[#allocation33_spill] sm:$0xff] %v6736_v15 }
 0x225   : > { %10265 = vst [vmem:[#allocation31_spill] sm:$0xff] %v6725_v49  ;;  %v6739_v27 = vmul.f32 0.70710677, %v6725_v49  ;;  %v6803_v61 = vmul.f32 0.70710677, %v6780_v56 }
 0x226   : > { %10276 = vst [vmem:[#allocation42_spill] sm:$0xff] %v6780_v56 }
 0x227   : > { %10268 = vst [vmem:[#allocation34_spill] sm:$0xff] %v6739_v27  ;;  %v1323_v8 = vmul.f32 %v6739_v27, %v6739_v27 }
 0x228   : > { %10280 = vst [vmem:[#allocation46_spill] sm:$0xff] %v6803_v61 }
 0x229   : > { %v6766_v48 = vmin.f32 %v1323_v8, 16.0  ;;  %10283 = vst [vmem:[#allocation49_spill] sm:$0xff] %v6814_v60 }
 0x22a   : > { %v6752_v32 = vpop.permute.xlu2 %1000  ;;  %v6768_v42 = vpop.permute.xlu1 %1010 }
 0x22b   : > { %v1191_v13 = vpop.f32.mrf.mxu0  ;;  %10270 = vst [vmem:[#allocation36_spill] sm:$0xff] %v6752_v32  ;;  %v6761_v17 = vadd.f32 %v1173_v2, %v6752_v32  ;;  %v1325_v33 = vmul.f32 2.1237322e-06, %v6766_v48  ;;  %v6786_v57 = vadd.f32 %v1178_v9, %v6768_v42 }
 0x22c   : > { %10272 = vst [vmem:[#allocation38_spill] sm:$0xff] %v6766_v48  ;;  %v6789_v45 = vadd.f32 %v1191_v13, %v6704_v62 }
 0x22d   : > { %10271 = vst [vmem:[#allocation37_spill] sm:$0xff] %v6761_v17  ;;  %v6775_v3 = vmul.f32 0.70710677, %v6761_v17  ;;  %v1326_v23 = vadd.f32 0.00028619796, %v1325_v33  ;;  %v1483_v33 = vmul.f32 %v6814_v60, %v6814_v60 }
 0x22e   : > { %10273 = vst [vmem:[#allocation39_spill] sm:$0xff] %v6768_v42  ;;  %v6808_v7 = vmul.f32 0.70710677, %v6786_v57  ;;  %v6811_v9 = vmul.f32 0.70710677, %v6789_v45 }
 0x22f   : > { %10275 = vst [vmem:[#allocation41_spill] sm:$0xff] %v6775_v3  ;;  %v1283_v19 = vmul.f32 %v6775_v3, %v6775_v3 }
 0x230   : > { %10277 = vst [vmem:[#allocation43_spill] sm:$0xff] %v6786_v57 }
 0x231   : > { %10278 = vst [vmem:[#allocation44_spill] sm:$0xff] %v6789_v45 }
 0x232   : > { %5280 = vmatmul.msk.bf16.gmra.mxu2 %vm1137_vm2, %v6617_v47  ;;  %v6734_v47 = vadd.f32 %v1171_v21, %v6722_v25  ;;  %10281 = vst [vmem:[#allocation47_spill] sm:$0xff] %v6808_v7 }
 0x233   : > { %v6716_v44 = vpop.f32.mrf.mxu0  ;;  %10282 = vst [vmem:[#allocation48_spill] sm:$0xff] %v6811_v9 }
 0x234   : > { %10266 = vst [vmem:[#allocation32_spill] sm:$0xff] %v6734_v47  ;;  %v6748_v30 = vmul.f32 0.70710677, %v6734_v47 }
 0x236   : > { %10269 = vst [vmem:[#allocation35_spill] sm:$0xff] %v6748_v30  ;;  %v1243_v37 = vmul.f32 %v6748_v30, %v6748_v30 }
 0x238   : > { %v6772_v55 = vmin.f32 %v1243_v37, 16.0  ;;  %v1403_v37 = vmul.f32 %v6803_v61, %v6803_v61 }
 0x23a   : > { %10274 = vst [vmem:[#allocation40_spill] sm:$0xff] %v6772_v55  ;;  %v1245_v59 = vmul.f32 2.1237322e-06, %v6772_v55 }
 0x23b   : > { %v1196_v24 = vpop.f32.mrf.mxu0 }
 0x23c   : > { %v6728_v52 = vadd.f32 %v1196_v24, %v6694_v63  ;;  %v1246_v24 = vadd.f32 0.00028619796, %v1245_v59 }
 0x23e   : > { %v6731_v53 = vmul.f32 0.70710677, %v6728_v52 }
 0x240   : > { %v1643_v50 = vmul.f32 %v6731_v53, %v6731_v53 }
 0x242   : > { %v6743_v29 = vmin.f32 %v1643_v50, 16.0  ;;  %5281 = vmatmul.msk.bf16.gmra.mxu2 %vm1137_vm2, %v6624_v20  ;;  %v6821_v50 = vmin.f32 %v1283_v19, 16.0 }
 0x243   : > { %v1198_v6 = vpop.f32.mrf.mxu0 }
 0x244   : > { %v6755_v35 = vadd.f32 %v1198_v6, %v6708_v36  ;;  %v1656_v34 = vmul.f32 3.8918573e-05, %v6743_v29  ;;  %10284 = vst [vmem:[#allocation50_spill] sm:$0xff] %v6821_v50  ;;  %v1645_v59 = vmul.f32 2.1237322e-06, %v6743_v29  ;;  %v6851_v36 = vmin.f32 %v1403_v37, 16.0 }
 0x245   : > { %v6849_v18 = vmul.f32 2.1237322e-06, %v6821_v50 }
 0x246   : > { %v6764_v20 = vmul.f32 0.70710677, %v6755_v35  ;;  %v1657_v26 = vadd.f32 0.001143296, %v1656_v34  ;;  %v1327_v34 = vmul.f32 %v1326_v23, %v6766_v48  ;;  %v1646_v37 = vadd.f32 0.00028619796, %v1645_v59 }
 0x247   : > { %10287 = vst [vmem:[#allocation53_spill] sm:$0xff] %v6849_v18  ;;  %v6871_v17 = vmul.f32 2.1237322e-06, %v6851_v36 }
 0x248   : > { %v1683_v51 = vmul.f32 %v6764_v20, %v6764_v20  ;;  %v1658_v54 = vmul.f32 %v1657_v26, %v6743_v29 }
 0x24a   : > { %v6794_v31 = vmin.f32 %v1683_v51, 16.0  ;;  %v1659_v21 = vadd.f32 0.014752088, %v1658_v54  ;;  %v1363_v54 = vmul.f32 %v6808_v7, %v6808_v7 }
 0x24b   : > { %v1201_v41 = vpop.f32.mrf.mxu0 }
 0x24c   : > { %v6783_v39 = vadd.f32 %v1201_v41, %v6698_v12  ;;  %v1696_v13 = vmul.f32 3.8918573e-05, %v6794_v31  ;;  %v1660_v8 = vmul.f32 %v1659_v21, %v6743_v29  ;;  %v1563_v41 = vmul.f32 %v6811_v9, %v6811_v9 }
 0x24e   : > { %v6797_v4 = vmul.f32 0.70710677, %v6783_v39  ;;  %v1697_v19 = vadd.f32 0.001143296, %v1696_v13  ;;  %v6856_v12 = vmin.f32 %v1563_v41, 16.0 }
 0x250   : > { %v1723_v2 = vmul.f32 %v6797_v4, %v6797_v4  ;;  %v1698_v63 = vmul.f32 %v1697_v19, %v6794_v31 }
 0x252   : > { %v6816_v11 = vmin.f32 %v1723_v2, 16.0  ;;  %5282 = vmatmul.msk.bf16.gmra.mxu2 %vm1137_vm2, %v6644_v1  ;;  %v6833_v1 = vadd.f32 %v6702_v5, %v6710_v14  ;;  %v1661_v2 = vadd.f32 0.112945676, %v1660_v8  ;;  %v6846_v5 = vmul.f32 %v1246_v24, %v6772_v55 }
 0x253   : > { %v1203_v6 = vpop.f32.mrf.mxu0  ;;  %v6861_v8 = vmin.f32 %v1363_v54, 16.0  ;;  %v6863_v24 = vmin.f32 %v1483_v33, 16.0  ;;  %v6875_v54 = vadd.f32 %v6692_v22, %v6712_v16  ;;  %v1699_v40 = vadd.f32 0.014752088, %v1698_v63 }
 0x254   : > { %v6828_v26 = vadd.f32 %v1203_v6, %v6688_v0  ;;  %v1736_v51 = vmul.f32 3.8918573e-05, %v6816_v11  ;;  %10285 = vst [vmem:[#allocation51_spill] sm:$0xff] %v6833_v1  ;;  %v1328_v6 = vadd.f32 0.0036580483, %v1327_v34  ;;  %v1662_v41 = vmul.f32 %v1661_v2, %v6743_v29 }
 0x255   : > { %10286 = vst [vmem:[#allocation52_spill] sm:$0xff] %v6846_v5  ;;  %v6854_v0 = vmul.f32 0.70710677, %v6833_v1  ;;  %v1685_v34 = vmul.f32 2.1237322e-06, %v6794_v31 }
 0x256   : > { %v6843_v21 = vmul.f32 0.70710677, %v6828_v26  ;;  %v1737_v23 = vadd.f32 0.001143296, %v1736_v51  ;;  %10289 = vst [vmem:[#allocation55_spill] sm:$0xff] %v6861_v8 }
 0x257   : > { %10288 = vst [vmem:[#allocation54_spill] sm:$0xff] %v6854_v0  ;;  %v1725_v33 = vmul.f32 2.1237322e-06, %v6816_v11  ;;  %v1523_v59 = vmul.f32 %v6854_v0, %v6854_v0  ;;  %v1576_v2 = vmul.f32 3.8918573e-05, %v6856_v12 }
 0x258   : > { %v1763_v13 = vmul.f32 %v6843_v21, %v6843_v21  ;;  %v1738_v51 = vmul.f32 %v1737_v23, %v6816_v11  ;;  %10290 = vst [vmem:[#allocation56_spill] sm:$0xff] %v6875_v54  ;;  %v1686_v47 = vadd.f32 0.00028619796, %v1685_v34  ;;  %v1663_v3 = vadd.f32 0.4994258, %v1662_v41 }
 0x259   : > { %v1726_v15 = vadd.f32 0.00028619796, %v1725_v33  ;;  %v6899_v25 = vmin.f32 %v1523_v59, 16.0  ;;  %v1577_v30 = vadd.f32 0.001143296, %v1576_v2  ;;  %v1700_v33 = vmul.f32 %v1699_v40, %v6794_v31 }
 0x25a   : > { %v6867_v62 = vmin.f32 %v1763_v13, 16.0  ;;  %v1739_v14 = vadd.f32 0.014752088, %v1738_v51  ;;  %v6887_v51 = vmul.f32 %v1328_v6, %v6766_v48  ;;  %v1687_v38 = vmul.f32 %v1686_v47, %v6794_v31 }
 0x25b   : > { %v1206_v32 = vpop.f32.mrf.mxu0  ;;  %v1664_v49 = vmul.f32 %v1663_v3, %v6743_v29  ;;  %v6924_v40 = vmul.f32 2.1237322e-06, %v6899_v25 }
 0x25c   : > { %v6879_v23 = vadd.f32 %v1206_v32, %v6686_v10  ;;  %v1740_v19 = vmul.f32 %v1739_v14, %v6816_v11  ;;  %v1776_v13 = vmul.f32 3.8918573e-05, %v6867_v62  ;;  %10291 = vst [vmem:[#allocation57_spill] sm:$0xff] %v6887_v51  ;;  %v1485_v32 = vmul.f32 2.1237322e-06, %v6863_v24 }
 0x25d   : > { %v1647_v10 = vmul.f32 %v1646_v37, %v6743_v29  ;;  %v6895_v14 = vmul.f32 0.70710677, %v6875_v54  ;;  %v1765_v34 = vmul.f32 2.1237322e-06, %v6867_v62  ;;  %v1565_v54 = vmul.f32 2.1237322e-06, %v6856_v12 }
 0x25e   : > { %v6890_v22 = vmul.f32 0.70710677, %v6879_v23  ;;  %v1741_v16 = vadd.f32 0.112945676, %v1740_v19  ;;  %v1777_v6 = vadd.f32 0.001143296, %v1776_v13 }
 0x25f   : > { %10292 = vst [vmem:[#allocation58_spill] sm:$0xff] %v6895_v14  ;;  %v6910_v19 = vadd.f32 0.00028619796, %v1485_v32  ;;  %v1648_v59 = vadd.f32 0.0036580483, %v1647_v10  ;;  %v6921_v2 = vmul.f32 %v6895_v14, %v6895_v14 }
 0x260   : > { %v1803_v42 = vmul.f32 %v6890_v22, %v6890_v22  ;;  %v1742_v63 = vmul.f32 %v1741_v16, %v6816_v11  ;;  %v1778_v41 = vmul.f32 %v1777_v6, %v6867_v62  ;;  %v1727_v16 = vmul.f32 %v1726_v15, %v6816_v11 }
 0x261   : > { %v1766_v10 = vadd.f32 0.00028619796, %v1765_v34  ;;  %v1688_v6 = vadd.f32 0.0036580483, %v1687_v38  ;;  %v1701_v15 = vadd.f32 0.112945676, %v1700_v33  ;;  %v1649_v56 = vmul.f32 %v1648_v59, %v6743_v29 }
 0x262   : > { %v6904_v37 = vmin.f32 %v1803_v42, 16.0  ;;  %5283 = vmatmul.msk.bf16.gmra.mxu2 %vm1137_vm2, %v6652_v28  ;;  %v1743_v57 = vadd.f32 0.4994258, %v1742_v63  ;;  %v1779_v32 = vadd.f32 0.014752088, %v1778_v41  ;;  %v1578_v63 = vmul.f32 %v1577_v30, %v6856_v12 }
 0x263   : > { %v1208_v13 = vpop.f32.mrf.mxu0  ;;  %v1728_v14 = vadd.f32 0.0036580483, %v1727_v16  ;;  %v6934_v34 = vadd.f32 1.0, %v1664_v49  ;;  %v1767_v38 = vmul.f32 %v1766_v10, %v6867_v62  ;;  %v6942_v33 = vadd.f32 %v6716_v44, %v6718_v43 }
 0x264   : > { %v1805_v47 = vmul.f32 2.1237322e-06, %v6904_v37  ;;  %v6916_v42 = vadd.f32 %v1208_v13, %v6696_v46  ;;  %v1816_v28 = vmul.f32 3.8918573e-05, %v6904_v37  ;;  %v1744_v3 = vmul.f32 %v1743_v57, %v6816_v11 }
 0x265   : > { %v1780_v27 = vmul.f32 %v1779_v32, %v6867_v62  ;;  %10293 = vst [vmem:[#allocation59_spill] sm:$0xff] %v6942_v33  ;;  %v1579_v59 = vadd.f32 0.014752088, %v1578_v63  ;;  %v1650_v61 = vadd.f32 0.05243302, %v1649_v56  ;;  %5653 = vrcp.f32 %v6934_v34 }
 0x266   : > { %v1806_v7 = vadd.f32 0.00028619796, %v1805_v47  ;;  %v6929_v13 = vmul.f32 0.70710677, %v6916_v42  ;;  %v1817_v46 = vadd.f32 0.001143296, %v1816_v28  ;;  %v1689_v47 = vmul.f32 %v1688_v6, %v6794_v31 }
 0x267   : > { %v1781_v41 = vadd.f32 0.112945676, %v1780_v27  ;;  %v1702_v28 = vmul.f32 %v1701_v15, %v6794_v31  ;;  %v6949_v32 = vadd.f32 1.0, %v1744_v3  ;;  %v1768_v44 = vadd.f32 0.0036580483, %v1767_v38 }
 0x268   : > { %v1843_v57 = vmul.f32 %v6929_v13, %v6929_v13  ;;  %v1818_v30 = vmul.f32 %v1817_v46, %v6904_v37  ;;  %v1807_v49 = vmul.f32 %v1806_v7, %v6904_v37  ;;  %v1729_v46 = vmul.f32 %v1728_v14, %v6816_v11 }
 0x269   : > { %v1782_v27 = vmul.f32 %v1781_v41, %v6867_v62  ;;  %v1690_v7 = vadd.f32 0.05243302, %v1689_v47  ;;  %v1703_v43 = vadd.f32 0.4994258, %v1702_v28  ;;  %v1580_v3 = vmul.f32 %v1579_v59, %v6856_v12 }
 0x26a   : > { %v6947_v16 = vmin.f32 %v1843_v57, 16.0  ;;  %v1819_v10 = vadd.f32 0.014752088, %v1818_v30  ;;  %v1808_v30 = vadd.f32 0.0036580483, %v1807_v49  ;;  %5655 = vrcp.f32 %v6949_v32 }
 0x26b   : > { %v1783_v57 = vadd.f32 0.4994258, %v1782_v27  ;;  %v6960_v14 = vmul.f32 0.70710677, %v6942_v33  ;;  %v1730_v38 = vadd.f32 0.05243302, %v1729_v46  ;;  %v1769_v47 = vmul.f32 %v1768_v44, %v6867_v62  ;;  %v6967_v49 = vpop.eup %5653 }
 0x26c   : > { %v1845_v6 = vmul.f32 2.1237322e-06, %v6947_v16  ;;  %v1820_v15 = vmul.f32 %v1819_v10, %v6904_v37  ;;  %v1856_v63 = vmul.f32 3.8918573e-05, %v6947_v16  ;;  %v1651_v10 = vmul.f32 %v1650_v61, %v6743_v29 }
 0x26d   : > { %10294 = vst [vmem:[#allocation60_spill] sm:$0xff] %v6960_v14  ;;  %v1784_v1 = vmul.f32 %v1783_v57, %v6867_v62  ;;  %v1581_v46 = vadd.f32 0.112945676, %v1580_v3  ;;  %v1691_v57 = vmul.f32 %v1690_v7, %v6794_v31  ;;  %v1809_v61 = vmul.f32 %v1808_v30, %v6904_v37 }
 0x26e   : > { %v1846_v56 = vadd.f32 0.00028619796, %v1845_v6  ;;  %v1821_v50 = vadd.f32 0.112945676, %v1820_v15  ;;  %v1857_v41 = vadd.f32 0.001143296, %v1856_v63  ;;  %v1704_v15 = vmul.f32 %v1703_v43, %v6794_v31 }
 0x26f   : > { %v6970_v6 = vadd.f32 1.0, %v1784_v1  ;;  %v1566_v63 = vadd.f32 0.00028619796, %v1565_v54  ;;  %v1731_v44 = vmul.f32 %v1730_v38, %v6816_v11  ;;  %v1603_v1 = vmul.f32 %v6960_v14, %v6960_v14 }
 0x270   : > { %v1847_v28 = vmul.f32 %v1846_v56, %v6947_v16  ;;  %v1822_v59 = vmul.f32 %v1821_v50, %v6904_v37  ;;  %v1858_v27 = vmul.f32 %v1857_v41, %v6947_v16  ;;  %v6977_v50 = vpop.eup %5655  ;;  %v1770_v41 = vadd.f32 0.05243302, %v1769_v47 }
 0x271   : > { %5657 = vrcp.f32 %v6970_v6  ;;  %v1667_v54 = vmul.f32 %v6967_v49, %v6934_v34  ;;  %v1652_v7 = vadd.f32 0.18741608, %v1651_v10  ;;  %v6985_v30 = vadd.f32 1.0, %v1704_v15 }
 0x272   : > { %v1823_v58 = vadd.f32 0.4994258, %v1822_v59  ;;  %v1848_v56 = vadd.f32 0.0036580483, %v1847_v28  ;;  %v1859_v55 = vadd.f32 0.014752088, %v1858_v27  ;;  %v1582_v38 = vmul.f32 %v1581_v46, %v6856_v12 }
 0x273   : > { %v1567_v28 = vmul.f32 %v1566_v63, %v6856_v12  ;;  %v1692_v59 = vadd.f32 0.18741608, %v1691_v57  ;;  %v1810_v27 = vadd.f32 0.05243302, %v1809_v61  ;;  %v1732_v33 = vadd.f32 0.18741608, %v1731_v44 }
 0x274   : > { %v1824_v43 = vmul.f32 %v1823_v58, %v6904_v37  ;;  %v1860_v3 = vmul.f32 %v1859_v55, %v6947_v16  ;;  %v1849_v47 = vmul.f32 %v1848_v56, %v6947_v16  ;;  %v1747_v14 = vmul.f32 %v6977_v50, %v6949_v32 }
 0x275   : > { %v6994_v10 = vmin.f32 %v1603_v1, 16.0  ;;  %v1771_v55 = vmul.f32 %v1770_v41, %v6867_v62  ;;  %v1668_v15 = vsub.f32 1.0, %v1667_v54  ;;  %v1653_v63 = vmul.f32 %v1652_v7, %v6743_v29 }
 0x276   : > { %v6989_v0 = vadd.f32 1.0, %v1824_v43  ;;  %v1861_v58 = vadd.f32 0.112945676, %v1860_v3  ;;  %v1583_v61 = vadd.f32 0.4994258, %v1582_v38  ;;  %v1693_v44 = vmul.f32 %v1692_v59, %v6794_v31 }
 0x277   : > { %v6998_v46 = vpop.eup %5657  ;;  %v1811_v56 = vmul.f32 %v1810_v27, %v6904_v37  ;;  %v1677_v41 = vand.u32 2147483648, %v6934_v34  ;;  %v1733_v43 = vmul.f32 %v1732_v33, %v6816_v11  ;;  %v1850_v54 = vadd.f32 0.05243302, %v1849_v47 }
 0x278   : > { %5659 = vrcp.f32 %v6989_v0  ;;  %v1862_v57 = vmul.f32 %v1861_v58, %v6947_v16  ;;  %v1787_v1 = vmul.f32 %v6998_v46, %v6970_v6  ;;  %v1748_v60 = vsub.f32 1.0, %v1747_v14 }
 0x279   : > { %5661 = vrcp.f32 %v6985_v30  ;;  %v7009_v29 = vadd.f32 0.0036580483, %v1567_v28  ;;  %v7012_v7 = vmul.f32 2.1237322e-06, %v6994_v10  ;;  %v1772_v38 = vadd.f32 0.18741608, %v1771_v55 }
 0x27a   : > { %v1863_v3 = vadd.f32 0.4994258, %v1862_v57  ;;  %v1669_v31 = vmul.f32 %v6967_v49, %v1668_v15  ;;  %v7015_v59 = vadd.f32 1.1283791, %v1653_v63  ;;  %v1788_v58 = vsub.f32 1.0, %v1787_v1 }
 0x27b   : > { %v1675_v45 = vand.u32 2147483647, %v6934_v34  ;;  %v7019_v11 = vadd.f32 1.1283791, %v1693_v44  ;;  %v1812_v33 = vadd.f32 0.18741608, %v1811_v56  ;;  %v7024_v28 = vmul.f32 %v1583_v61, %v6856_v12 }
 0x27c   : > { %v1864_v27 = vmul.f32 %v1863_v3, %v6947_v16  ;;  %v7021_v14 = vor.u32 1.1754944e-38, %v1677_v41  ;;  %v7028_v55 = vadd.f32 1.1283791, %v1733_v43  ;;  %v1851_v15 = vmul.f32 %v1850_v54, %v6947_v16 }
 0x27d   : > { %v1749_v57 = vmul.f32 %v6977_v50, %v1748_v60  ;;  %v1773_v1 = vmul.f32 %v1772_v38, %v6867_v62  ;;  %vm1751_vm2 = vweird.f32 %v6949_v32  ;;  %v7038_v56 = vadd.f32 %v6967_v49, %v1669_v31 }
 0x27e   : > { %v5660_v18 = vpop.eup %5659  ;;  %v7034_v44 = vadd.f32 1.0, %v1864_v27  ;;  %v1755_v41 = vand.u32 2147483647, %v6949_v32  ;;  %v1757_v43 = vand.u32 2147483648, %v6949_v32  ;;  %v1789_v54 = vmul.f32 %v6998_v46, %v1788_v58 }
 0x27f   : > { %v7026_v47 = vpop.eup %5661  ;;  %v1827_v63 = vmul.f32 %v5660_v18, %v6989_v0  ;;  %v1813_v3 = vmul.f32 %v1812_v33, %v6904_v37  ;;  %vm1752_vm3 = vweird.f32 %v6977_v50  ;;  %vm1672_vm4 = vweird.f32 %v6967_v49 }
 0x280   : > { %5663 = vrcp.f32 %v7034_v44  ;;  %v1707_v62 = vmul.f32 %v7026_v47, %v6985_v30  ;;  %v1852_v60 = vadd.f32 0.18741608, %v1851_v15  ;;  %vm1832_vm5 = vweird.f32 %v5660_v18  ;;  %vm7057_vm8 = vmor %vm1751_vm2, %vm1752_vm3 }
 0x281   : > { %v1828_v61 = vsub.f32 1.0, %v1827_v63  ;;  %v1750_v31 = vadd.f32 %v6977_v50, %v1749_v57  ;;  %v1774_v27 = vadd.f32 1.1283791, %v1773_v1  ;;  %vm1831_vm6 = vweird.f32 %v6989_v0 }
 0x282   : > { %v1837_v58 = vand.u32 2147483648, %v6989_v0  ;;  %v1795_v37 = vand.u32 2147483647, %v6970_v6  ;;  %vm1671_vm7 = vweird.f32 %v6934_v34  ;;  %v1835_v63 = vand.u32 2147483647, %v6989_v0  ;;  %vm7063_vm10 = vmor %vm1831_vm6, %vm1832_vm5 }
 0x283   : > { %v1829_v38 = vmul.f32 %v5660_v18, %v1828_v61  ;;  %v1790_v57 = vadd.f32 %v6998_v46, %v1789_v54  ;;  %vm1792_vm9 = vweird.f32 %v6998_v46  ;;  %v1814_v1 = vadd.f32 1.1283791, %v1813_v3  ;;  %vm7105_vm5 = vmor %vm1671_vm7, %vm1672_vm4 }
 0x284   : > { %vm7067_vm11 = vcmp.eq.f32.partialorder %v1755_v41, 8.507059e+37  ;;  %v1797_v0 = vand.u32 2147483648, %v6970_v6  ;;  %v1708_v32 = vsub.f32 1.0, %v1707_v62  ;;  %v1754_v54 = vsel %vm7057_vm8, %v6977_v50, %v1750_v31 }
 0x285   : > { %v1830_v33 = vadd.f32 %v5660_v18, %v1829_v38  ;;  %v1853_v38 = vmul.f32 %v1852_v60, %v6947_v16  ;;  %vm1791_vm12 = vweird.f32 %v6970_v6  ;;  %v1775_v41 = vmul.f32 %v1774_v27, %v6843_v21 }
 0x286   : > { %v5664_v3 = vpop.eup %5663  ;;  %v1838_v9 = vor.u32 1.1754944e-38, %v1837_v58  ;;  %v1758_v51 = vor.u32 1.1754944e-38, %v1757_v43  ;;  %vm7080_vm13 = vmor %vm1791_vm12, %vm1792_vm9  ;;  %v1709_v16 = vmul.f32 %v7026_v47, %v1708_v32  ;;  %vm1836_vm14 = vcmp.eq.f32.partialorder %v1835_v63, 8.507059e+37 }
 0x287   : > { %v1834_v5 = vsel %vm7063_vm10, %v5660_v18, %v1830_v33  ;;  %v1867_v18 = vmul.f32 %v5664_v3, %v7034_v44  ;;  %v1794_v50 = vsel %vm7080_vm13, %v6998_v46, %v1790_v57  ;;  %vm1796_vm15 = vcmp.eq.f32.partialorder %v1795_v37, 8.507059e+37 }
 0x288   : > { %vm7089_vm0 = vcmp.eq.f32.partialorder %v1675_v45, 8.507059e+37  ;;  %v1815_v21 = vmul.f32 %v1814_v1, %v6890_v22  ;;  %v1839_v43 = vsel %vm1836_vm14, %v1838_v9, %v1834_v5  ;;  %v1759_v62 = vsel %vm7067_vm11, %v1758_v51, %v1754_v54 }
 0x289   : > { %v1798_v60 = vor.u32 1.1754944e-38, %v1797_v0  ;;  %v1854_v31 = vadd.f32 1.1283791, %v1853_v38  ;;  %v1868_v27 = vsub.f32 1.0, %v1867_v18  ;;  %v1710_v58 = vadd.f32 %v7026_v47, %v1709_v16 }
 0x28a   : > { %vm1712_vm1 = vweird.f32 %v7026_v47  ;;  %v1875_v8 = vand.u32 2147483647, %v7034_v44  ;;  %v1877_v45 = vand.u32 2147483648, %v7034_v44  ;;  %vm1711_vm2 = vweird.f32 %v6985_v30 }
 0x28b   : > { %v1799_v46 = vsel %vm1796_vm15, %v1798_v60, %v1794_v50  ;;  %v1840_v37 = vmul.f32 %v1839_v43, %v1815_v21  ;;  %v1869_v22 = vmul.f32 %v5664_v3, %v1868_v27  ;;  %vm1872_vm3 = vweird.f32 %v5664_v3  ;;  %vm7118_vm6 = vmor %vm1711_vm2, %vm1712_vm1 }
 0x28c   : > { %v1715_v9 = vand.u32 2147483647, %v6985_v30  ;;  %v1695_v5 = vmul.f32 %v7019_v11, %v6764_v20  ;;  %v1735_v51 = vmul.f32 %v7028_v55, %v6797_v4  ;;  %v1674_v33 = vsel %vm7105_vm5, %v6967_v49, %v7038_v56 }
 0x28d   : > { %v1717_v34 = vand.u32 2147483648, %v6985_v30  ;;  %v1870_v15 = vadd.f32 %v5664_v3, %v1869_v22  ;;  %vm1871_vm4 = vweird.f32 %v7034_v44  ;;  %v1800_v57 = vmul.f32 %v1799_v46, %v1775_v41 }
 0x28e   : > { %v1714_v20 = vsel %vm7118_vm6, %v7026_v47, %v1710_v58  ;;  %v1855_v4 = vmul.f32 %v1854_v31, %v6929_v13  ;;  %vm1873_vm7 = vmor %vm1871_vm4, %vm1872_vm3  ;;  %v1878_v11 = vor.u32 1.1754944e-38, %v1877_v45  ;;  %v1760_v55 = vmul.f32 %v1759_v62, %v1735_v51 }
 0x28f   : > { %v1718_v49 = vor.u32 1.1754944e-38, %v1717_v34  ;;  %v5258_v56 = vclamps-f32 %v1840_v37, 1.0  ;;  %v1874_v1 = vsel %vm1873_vm7, %v5664_v3, %v1870_v15  ;;  %vm1876_vm8 = vcmp.eq.f32.partialorder %v1875_v8, 8.507059e+37 }
 0x290   : > { %vm1716_vm9 = vcmp.eq.f32.partialorder %v1715_v9, 8.507059e+37  ;;  %v1606_v30 = vadd.f32 0.00028619796, %v7012_v7  ;;  %v1879_v61 = vsel %vm1876_vm8, %v1878_v11, %v1874_v1  ;;  %v1679_v44 = vsel %vm7089_vm0, %v7021_v14, %v1674_v33 }
 0x291   : > { %v1719_v0 = vsel %vm1716_vm9, %v1718_v49, %v1714_v20  ;;  %v1655_v47 = vmul.f32 %v7015_v59, %v6731_v53  ;;  %v1880_v13 = vmul.f32 %v1879_v61, %v1855_v4  ;;  %v5257_v32 = vclamps-f32 %v1800_v57, 1.0 }
 0x292   : > { %v1720_v38 = vmul.f32 %v1719_v0, %v1695_v5  ;;  %v1487_v54 = vmul.f32 %v6910_v19, %v6863_v24  ;;  %v1526_v3 = vadd.f32 0.00028619796, %v6924_v40  ;;  %v1569_v7 = vmul.f32 %v7009_v29, %v6856_v12  ;;  %v7146_v19 = vpop.f32.mrf.mxu2 }
 0x293   : > { %v7140_v41 = vadd.f32 1.0, %v7024_v28  ;;  %v5259_v16 = vclamps-f32 %v1880_v13, 1.0  ;;  %v1897_v14 = vadd.f32 1.0, %v5258_v56  ;;  %v5256_v18 = vclamps-f32 %v1760_v55, 1.0 }
 0x294   : > { %v1680_v50 = vmul.f32 %v1679_v44, %v1655_v47  ;;  %v1607_v53 = vmul.f32 %v1606_v30, %v6994_v10  ;;  %v1225_v59 = vmul.f32 0.5, %v6879_v23  ;;  %v1226_v6 = vmul.f32 0.5, %v6916_v42 }
 0x295   : > { %5665 = vrcp.f32 %v7140_v41  ;;  %v1898_v40 = vadd.f32 1.0, %v5259_v16  ;;  %v1896_v21 = vadd.f32 1.0, %v5257_v32  ;;  %v5255_v29 = vclamps-f32 %v1720_v38, 1.0  ;;  %v10309_v38 = vld [vmem:[#allocation55_spill] sm:$0xff] }
 0x296   : > { %v1616_v28 = vmul.f32 3.8918573e-05, %v6994_v10  ;;  %v1488_v43 = vadd.f32 0.0036580483, %v1487_v54  ;;  %v1527_v62 = vmul.f32 %v1526_v3, %v6899_v25  ;;  %v1570_v60 = vadd.f32 0.05243302, %v1569_v7 }
 0x297   : > { %v1224_v31 = vmul.f32 0.5, %v6828_v26  ;;  %v1913_v27 = vmul.f32 %v1897_v14, %v1225_v59  ;;  %v1914_v58 = vmul.f32 %v1898_v40, %v1226_v6  ;;  %v1895_v23 = vadd.f32 1.0, %v5256_v18 }
 0x298   : > { %v5254_v8 = vclamps-f32 %v1680_v50, 1.0  ;;  %v1406_v42 = vadd.f32 0.00028619796, %v6871_v17  ;;  %v7153_v45 = vmin.f32 %v6921_v2, 16.0  ;;  %v1608_v46 = vadd.f32 0.0036580483, %v1607_v53 }
 0x299   : > { %v1223_v37 = vmul.f32 0.5, %v6783_v39  ;;  %v1922_v22 = vpack.c.bf16 %v1914_v58, %v1913_v27  ;;  %v1912_v48 = vmul.f32 %v1896_v21, %v1224_v31  ;;  %v1894_v9 = vadd.f32 1.0, %v5255_v29 }
 0x29a   : > { %v1617_v5 = vadd.f32 0.001143296, %v1616_v28  ;;  %v1489_v26 = vmul.f32 %v1488_v43, %v6863_v24  ;;  %v1528_v33 = vadd.f32 0.0036580483, %v1527_v62  ;;  %v1571_v63 = vmul.f32 %v1570_v60, %v6856_v12  ;;  %v7171_v13 = vpop.f32.mrf.mxu2 }
 0x29b   : > { %v7156_v51 = vpop.eup %5665  ;;  %v1496_v34 = vmul.f32 3.8918573e-05, %v6863_v24  ;;  %v1222_v17 = vmul.f32 0.5, %v6755_v35  ;;  %1987 = vmatpush.bf16.msra.mxu1 %v1922_v22  ;;  %v1911_v2 = vmul.f32 %v1895_v23, %v1223_v37  ;;  %v1893_v15 = vadd.f32 1.0, %v5254_v8 }
 0x29c   : > { %v1587_v39 = vmul.f32 %v7156_v51, %v7140_v41  ;;  %v1407_v57 = vmul.f32 %v1406_v42, %v6851_v36  ;;  %v1221_v20 = vmul.f32 0.5, %v6728_v52  ;;  %v1618_v4 = vmul.f32 %v1617_v5, %v6994_v10 }
 0x29d   : > { %v1497_v11 = vadd.f32 0.001143296, %v1496_v34  ;;  %v1609_v55 = vmul.f32 %v1608_v46, %v6994_v10  ;;  %v1921_v49 = vpack.c.bf16 %v1912_v48, %v1911_v2  ;;  %v1910_v56 = vmul.f32 %v1894_v9, %v1222_v17 }
 0x29e   : > { %v1588_v1 = vsub.f32 1.0, %v1587_v39  ;;  %v1445_v35 = vmul.f32 2.1237322e-06, %v7153_v45  ;;  %v1490_v30 = vadd.f32 0.05243302, %v1489_v26  ;;  %v1529_v0 = vmul.f32 %v1528_v33, %v6899_v25 }
 0x29f   : > { %v1619_v61 = vadd.f32 0.014752088, %v1618_v4  ;;  %v1498_v44 = vmul.f32 %v1497_v11, %v6863_v24  ;;  %v1572_v47 = vadd.f32 0.18741608, %v1571_v63  ;;  %1988 = vmatpush.bf16.msra.mxu1 %v1921_v49  ;;  %v1909_v52 = vmul.f32 %v1893_v15, %v1221_v20 }
 0x2a0   : > { %v1536_v32 = vmul.f32 3.8918573e-05, %v6899_v25  ;;  %v1365_v54 = vmul.f32 2.1237322e-06, %v10309_v38  ;;  %v1589_v3 = vmul.f32 %v7156_v51, %v1588_v1  ;;  %v1408_v14 = vadd.f32 0.0036580483, %v1407_v57 }
 0x2a1   : > { %v1620_v7 = vmul.f32 %v1619_v61, %v6994_v10  ;;  %v1499_v16 = vadd.f32 0.014752088, %v1498_v44  ;;  %v1610_v18 = vadd.f32 0.05243302, %v1609_v55  ;;  %v1920_v50 = vpack.c.bf16 %v1910_v56, %v1909_v52  ;;  %v10312_v1 = vld [vmem:[#allocation57_spill] sm:$0xff]  ;;  %v10313_v61 = vld [vmem:[#allocation48_spill] sm:$0xff] }
 0x2a2   : > { %v1537_v53 = vadd.f32 0.001143296, %v1536_v32  ;;  %v1446_v59 = vadd.f32 0.00028619796, %v1445_v35  ;;  %v1416_v21 = vmul.f32 3.8918573e-05, %v6851_v36  ;;  %v1491_v29 = vmul.f32 %v1490_v30, %v6863_v24  ;;  %v7202_v39 = vpop.f32.mrf.mxu2 }
 0x2a3   : > { %v1621_v6 = vadd.f32 0.112945676, %v1620_v7  ;;  %v1500_v40 = vmul.f32 %v1499_v16, %v6863_v24  ;;  %v1530_v28 = vadd.f32 0.05243302, %v1529_v0  ;;  %v1573_v43 = vmul.f32 %v1572_v47, %v6856_v12  ;;  %1989 = vmatpush.bf16.msra.mxu1 %v1920_v50  ;;  %v10314_v16 = vld [vmem:[#allocation52_spill] sm:$0xff] }
 0x2a4   : > { %v1538_v62 = vmul.f32 %v1537_v53, %v6899_v25  ;;  %v1590_v60 = vadd.f32 %v7156_v51, %v1589_v3  ;;  %vm1592_vm10 = vweird.f32 %v7156_v51  ;;  %v1611_v58 = vmul.f32 %v1610_v18, %v6994_v10  ;;  %v10315_v53 = vld [vmem:[#allocation38_spill] sm:$0xff] }
 0x2a5   : > { %v1622_v31 = vmul.f32 %v1621_v6, %v6994_v10  ;;  %v1501_v27 = vadd.f32 0.112945676, %v1500_v40  ;;  %vm1591_vm11 = vweird.f32 %v7140_v41  ;;  %v1597_v23 = vand.u32 2147483648, %v7140_v41 }
 0x2a6   : > { %v1539_v8 = vadd.f32 0.014752088, %v1538_v62  ;;  %v1595_v42 = vand.u32 2147483647, %v7140_v41  ;;  %v1417_v37 = vadd.f32 0.001143296, %v1416_v21  ;;  %v1409_v48 = vmul.f32 %v1408_v14, %v6851_v36  ;;  %vm7192_vm12 = vmor %vm1591_vm11, %vm1592_vm10 }
 0x2a7   : > { %v1623_v12 = vadd.f32 0.4994258, %v1622_v31  ;;  %v1502_v46 = vmul.f32 %v1501_v27, %v6863_v24  ;;  %v1366_v22 = vadd.f32 0.00028619796, %v1365_v54  ;;  %v1447_v9 = vmul.f32 %v1446_v59, %v7153_v45  ;;  %v10316_v59 = vld [vmem:[#allocation53_spill] sm:$0xff] }
 0x2a8   : > { %v1540_v26 = vmul.f32 %v1539_v8, %v6899_v25  ;;  %v1574_v33 = vadd.f32 1.1283791, %v1573_v43  ;;  %v1594_v41 = vsel %vm7192_vm12, %v7156_v51, %v1590_v60  ;;  %v1492_v17 = vadd.f32 0.18741608, %v1491_v29 }
 0x2a9   : > { %v1624_v63 = vmul.f32 %v1623_v12, %v6994_v10  ;;  %v1503_v34 = vadd.f32 0.4994258, %v1502_v46  ;;  %v1531_v2 = vmul.f32 %v1530_v28, %v6899_v25  ;;  %v1612_v15 = vadd.f32 0.18741608, %v1611_v58 }
 0x2aa   : > { %v1598_v57 = vor.u32 1.1754944e-38, %v1597_v23  ;;  %vm1596_vm13 = vcmp.eq.f32.partialorder %v1595_v42, 8.507059e+37  ;;  %v1418_v11 = vmul.f32 %v1417_v37, %v6851_v36  ;;  %v1410_v55 = vadd.f32 0.05243302, %v1409_v48  ;;  %v10317_v42 = vld [vmem:[#allocation44_spill] sm:$0xff]  ;;  %v7243_v46 = vpop.f32.mrf.mxu2 }
 0x2ab   : > { %v7204_v20 = vadd.f32 1.0, %v1624_v63  ;;  %v1504_v4 = vmul.f32 %v1503_v34, %v6863_v24  ;;  %v1448_v49 = vadd.f32 0.0036580483, %v1447_v9  ;;  %v1541_v56 = vadd.f32 0.112945676, %v1540_v26  ;;  %v10318_v26 = vld [vmem:[#allocation49_spill] sm:$0xff] }
 0x2ac   : > { %v1599_v51 = vsel %vm1596_vm13, %v1598_v57, %v1594_v41  ;;  %v1330_v35 = vadd.f32 0.05243302, %v10312_v1  ;;  %v1367_v30 = vmul.f32 %v1366_v22, %v10309_v38  ;;  %v1575_v44 = vmul.f32 %v1574_v33, %v10313_v61 }
 0x2ad   : > { %5667 = vrcp.f32 %v7204_v20  ;;  %v1493_v0 = vmul.f32 %v1492_v17, %v6863_v24  ;;  %v1532_v47 = vadd.f32 0.18741608, %v1531_v2  ;;  %v7213_v52 = vadd.f32 1.0, %v1504_v4  ;;  %v10319_v17 = vld [vmem:[#allocation60_spill] sm:$0xff] }
 0x2ae   : > { %v1613_v32 = vmul.f32 %v1612_v15, %v6994_v10  ;;  %v1600_v54 = vmul.f32 %v1599_v51, %v1575_v44  ;;  %v1542_v3 = vmul.f32 %v1541_v56, %v6899_v25  ;;  %v1419_v7 = vadd.f32 0.014752088, %v1418_v11 }
 0x2af   : > { %v7218_v14 = vadd.f32 0.0036580483, %v10314_v16  ;;  %v1411_v18 = vmul.f32 %v1410_v55, %v6851_v36  ;;  %v1449_v50 = vmul.f32 %v1448_v49, %v7153_v45  ;;  %5669 = vrcp.f32 %v7213_v52 }
 0x2b0   : > { %v7224_v24 = vmul.f32 %v1330_v35, %v10315_v53  ;;  %v7227_v6 = vadd.f32 0.00028619796, %v10316_v59  ;;  %v7229_v10 = vadd.f32 0.0036580483, %v1367_v30  ;;  %v1543_v40 = vadd.f32 0.4994258, %v1542_v3 }
 0x2b1   : > { %v1494_v21 = vadd.f32 1.1283791, %v1493_v0  ;;  %v1533_v29 = vmul.f32 %v1532_v47, %v6899_v25  ;;  %v1420_v28 = vmul.f32 %v1419_v7, %v6851_v36  ;;  %v1456_v43 = vmul.f32 3.8918573e-05, %v7153_v45 }
 0x2b2   : > { %v1614_v60 = vadd.f32 1.1283791, %v1613_v32  ;;  %v5252_v31 = vclamps-f32 %v1600_v54, 1.0  ;;  %v1544_v27 = vmul.f32 %v1543_v40, %v6899_v25  ;;  %v1336_v58 = vmul.f32 3.8918573e-05, %v10315_v53 }
 0x2b3   : > { %v5668_v62 = vpop.eup %5667  ;;  %v7236_v23 = vadd.f32 0.18741608, %v1411_v18  ;;  %v7238_v8 = vadd.f32 0.05243302, %v1449_v50  ;;  %v7241_v12 = vmul.f32 0.5, %v10317_v42  ;;  %v1637_v22 = vand.u32 2147483648, %v7204_v20  ;;  %v7263_v50 = vpop.f32.mrf.mxu2 }
 0x2b4   : > { %v1627_v37 = vmul.f32 %v5668_v62, %v7204_v20  ;;  %v7247_v48 = vadd.f32 1.0, %v1544_v27  ;;  %v1421_v9 = vadd.f32 0.112945676, %v1420_v28  ;;  %v1457_v5 = vadd.f32 0.001143296, %v1456_v43 }
 0x2b5   : > { %v5670_v25 = vpop.eup %5669  ;;  %v1495_v33 = vmul.f32 %v1494_v21, %v10318_v26  ;;  %v1534_v41 = vadd.f32 1.1283791, %v1533_v29  ;;  %v1337_v34 = vadd.f32 0.001143296, %v1336_v58  ;;  %v1615_v2 = vmul.f32 %v1614_v60, %v10319_v17  ;;  %v10320_v58 = vld [vmem:[#allocation59_spill] sm:$0xff]  ;;  %v10321_v26 = vld [vmem:[#allocation54_spill] sm:$0xff] }
 0x2b6   : > { %v1628_v63 = vsub.f32 1.0, %v1627_v37  ;;  %v1891_v15 = vadd.f32 1.0, %v5252_v31  ;;  %v1507_v57 = vmul.f32 %v5670_v25, %v7213_v52  ;;  %5671 = vrcp.f32 %v7247_v48 }
 0x2b7   : > { %vm1631_vm14 = vweird.f32 %v7204_v20  ;;  %vm1632_vm15 = vweird.f32 %v5668_v62  ;;  %v1635_v11 = vand.u32 2147483647, %v7204_v20  ;;  %v1638_v55 = vor.u32 1.1754944e-38, %v1637_v22 }
 0x2b8   : > { %v1629_v4 = vmul.f32 %v5668_v62, %v1628_v63  ;;  %v1508_v49 = vsub.f32 1.0, %v1507_v57  ;;  %v1422_v51 = vmul.f32 %v1421_v9, %v6851_v36  ;;  %v1458_v56 = vmul.f32 %v1457_v5, %v7153_v45  ;;  %vm1633_vm0 = vmor %vm1631_vm14, %vm1632_vm15 }
 0x2b9   : > { %v1515_v35 = vand.u32 2147483647, %v7213_v52  ;;  %v1517_v30 = vand.u32 2147483648, %v7213_v52  ;;  %v1338_v61 = vmul.f32 %v1337_v34, %v10315_v53  ;;  %vm1512_vm1 = vweird.f32 %v5670_v25 }
 0x2ba   : > { %v1630_v1 = vadd.f32 %v5668_v62, %v1629_v4  ;;  %v1509_v44 = vmul.f32 %v5670_v25, %v1508_v49  ;;  %v1423_v0 = vadd.f32 0.4994258, %v1422_v51  ;;  %v1459_v47 = vadd.f32 0.014752088, %v1458_v56 }
 0x2bb   : > { %vm1636_vm2 = vcmp.eq.f32.partialorder %v1635_v11, 8.507059e+37  ;;  %vm1511_vm3 = vweird.f32 %v7213_v52  ;;  %v1339_v20 = vadd.f32 0.014752088, %v1338_v61  ;;  %vm1516_vm6 = vcmp.eq.f32.partialorder %v1515_v35, 8.507059e+37 }
 0x2bc   : > { %v1634_v32 = vsel %vm1633_vm0, %v5668_v62, %v1630_v1  ;;  %v5672_v54 = vpop.eup %5671  ;;  %v1510_v7 = vadd.f32 %v5670_v25, %v1509_v44  ;;  %v1424_v16 = vmul.f32 %v1423_v0, %v6851_v36  ;;  %v1460_v18 = vmul.f32 %v1459_v47, %v7153_v45  ;;  %vm1513_vm5 = vmor %vm1511_vm3, %vm1512_vm1  ;;  %v10323_v44 = vld [vmem:[#allocation45_spill] sm:$0xff]  ;;  %v7286_v47 = vpop.f32.mrf.mxu2 }
 0x2bd   : > { %v1639_v3 = vsel %vm1636_vm2, %v1638_v55, %v1634_v32  ;;  %v1518_v40 = vor.u32 1.1754944e-38, %v1517_v30  ;;  %v1547_v21 = vmul.f32 %v5672_v54, %v7247_v48  ;;  %v1340_v43 = vmul.f32 %v1339_v20, %v10315_v53 }
 0x2be   : > { %v1640_v59 = vmul.f32 %v1639_v3, %v1615_v2  ;;  %v1514_v29 = vsel %vm1513_vm5, %v5670_v25, %v1510_v7  ;;  %v7266_v28 = vadd.f32 1.0, %v1424_v16  ;;  %v1461_v52 = vadd.f32 0.112945676, %v1460_v18 }
 0x2bf   : > { %v1519_v60 = vsel %vm1516_vm6, %v1518_v40, %v1514_v29  ;;  %v1548_v31 = vsub.f32 1.0, %v1547_v21  ;;  %v1557_v27 = vand.u32 2147483648, %v7247_v48  ;;  %v1220_v42 = vmul.f32 0.5, %v10320_v58  ;;  %v10324_v29 = vld [vmem:[#allocation51_spill] sm:$0xff] }
 0x2c0   : > { %v5253_v62 = vclamps-f32 %v1640_v59, 1.0  ;;  %v1520_v37 = vmul.f32 %v1519_v60, %v1495_v33  ;;  %5673 = vrcp.f32 %v7266_v28  ;;  %v1376_v22 = vmul.f32 3.8918573e-05, %v10309_v38 }
 0x2c1   : > { %v1549_v5 = vmul.f32 %v5672_v54, %v1548_v31  ;;  %vm1552_vm4 = vweird.f32 %v5672_v54  ;;  %v1555_v25 = vand.u32 2147483647, %v7247_v48  ;;  %v1535_v63 = vmul.f32 %v1534_v41, %v10321_v26  ;;  %v10322_v41 = vld [vmem:[#allocation40_spill] sm:$0xff] }
 0x2c2   : > { %v1892_v9 = vadd.f32 1.0, %v5253_v62  ;;  %v1907_v34 = vmul.f32 %v1891_v15, %v7241_v12  ;;  %v1462_v17 = vmul.f32 %v1461_v52, %v7153_v45  ;;  %v1341_v2 = vadd.f32 0.112945676, %v1340_v43 }
 0x2c3   : > { %v1550_v4 = vadd.f32 %v5672_v54, %v1549_v5  ;;  %vm1551_vm7 = vweird.f32 %v7247_v48  ;;  %v1558_v33 = vor.u32 1.1754944e-38, %v1557_v27  ;;  %v5250_v11 = vclamps-f32 %v1520_v37, 1.0 }
 0x2c4   : > { %v1908_v57 = vmul.f32 %v1892_v9, %v1220_v42  ;;  %vm1553_vm8 = vmor %vm1551_vm7, %vm1552_vm4  ;;  %v1463_v55 = vadd.f32 0.4994258, %v1462_v17  ;;  %v1342_v49 = vmul.f32 %v1341_v2, %v10315_v53  ;;  %v1377_v51 = vadd.f32 0.001143296, %v1376_v22 }
 0x2c5   : > { %v1554_v1 = vsel %vm1553_vm8, %v5672_v54, %v1550_v4  ;;  %vm1556_vm9 = vcmp.eq.f32.partialorder %v1555_v25, 8.507059e+37  ;;  %v1256_v35 = vmul.f32 3.8918573e-05, %v10322_v41  ;;  %v1369_v15 = vmul.f32 %v7229_v10, %v10309_v38 }
 0x2c6   : > { %v1919_v56 = vpack.c.bf16 %v1908_v57, %v1907_v34  ;;  %v5674_v12 = vpop.eup %5673  ;;  %v1451_v30 = vmul.f32 %v7238_v8, %v7153_v45  ;;  %v1559_v48 = vsel %vm1556_vm9, %v1558_v33, %v1554_v1  ;;  %v1464_v61 = vmul.f32 %v1463_v55, %v7153_v45  ;;  %v10327_v57 = vld [vmem:[#allocation50_spill] sm:$0xff] }
 0x2c7   : > { %v1217_v0 = vmul.f32 0.5, %v10323_v44  ;;  %v1560_v32 = vmul.f32 %v1559_v48, %v1535_v63  ;;  %v1427_v20 = vmul.f32 %v5674_v12, %v7266_v28  ;;  %v1343_v54 = vadd.f32 0.4994258, %v1342_v49  ;;  %v7319_v49 = vpop.f32.mrf.mxu2 }
 0x2c8   : > { %1990 = vmatpush.bf16.msra.mxu1 %v1919_v56  ;;  %v1413_v3 = vmul.f32 %v7236_v23, %v6851_v36  ;;  %v1889_v7 = vadd.f32 1.0, %v5250_v11  ;;  %v7291_v10 = vadd.f32 1.0, %v1464_v61  ;;  %v1378_v8 = vmul.f32 %v1377_v51, %v10309_v38 }
 0x2c9   : > { %v5251_v16 = vclamps-f32 %v1560_v32, 1.0  ;;  %v1428_v18 = vsub.f32 1.0, %v1427_v20  ;;  %v1344_v59 = vmul.f32 %v1343_v54, %v10315_v53  ;;  %v1257_v40 = vadd.f32 0.001143296, %v1256_v35 }
 0x2ca   : > { %v1452_v21 = vadd.f32 0.18741608, %v1451_v30  ;;  %v1218_v52 = vmul.f32 0.5, %v10324_v29  ;;  %vm1431_vm10 = vweird.f32 %v7266_v28  ;;  %5675 = vrcp.f32 %v7291_v10 }
 0x2cb   : > { %v1890_v43 = vadd.f32 1.0, %v5251_v16  ;;  %v1429_v62 = vmul.f32 %v5674_v12, %v1428_v18  ;;  %vm1432_vm11 = vweird.f32 %v5674_v12  ;;  %v7298_v36 = vadd.f32 1.0, %v1344_v59  ;;  %v10329_v18 = vld [vmem:[#allocation58_spill] sm:$0xff] }
 0x2cc   : > { %v1435_v23 = vand.u32 2147483647, %v7266_v28  ;;  %v1437_v60 = vand.u32 2147483648, %v7266_v28  ;;  %v1379_v31 = vadd.f32 0.014752088, %v1378_v8  ;;  %v1258_v27 = vmul.f32 %v1257_v40, %v10322_v41  ;;  %vm7306_vm12 = vmor %vm1431_vm10, %vm1432_vm11 }
 0x2cd   : > { %v1905_v58 = vmul.f32 %v1889_v7, %v1217_v0  ;;  %v1906_v42 = vmul.f32 %v1890_v43, %v1218_v52  ;;  %v1430_v37 = vadd.f32 %v5674_v12, %v1429_v62  ;;  %5677 = vrcp.f32 %v7298_v36 }
 0x2ce   : > { %v1414_v22 = vadd.f32 1.1283791, %v1413_v3  ;;  %v1380_v5 = vmul.f32 %v1379_v31, %v10309_v38  ;;  %v1453_v25 = vmul.f32 %v1452_v21, %v7153_v45  ;;  %v1259_v34 = vadd.f32 0.014752088, %v1258_v27 }
 0x2cf   : > { %v1918_v26 = vpack.c.bf16 %v1906_v42, %v1905_v58  ;;  %v1434_v63 = vsel %vm7306_vm12, %v5674_v12, %v1430_v37  ;;  %v1249_v2 = vmul.f32 %v7218_v14, %v10322_v41  ;;  %v1287_v28 = vmul.f32 %v7227_v6, %v10327_v57  ;;  %v10328_v6 = vld [vmem:[#allocation46_spill] sm:$0xff] }
 0x2d0   : > { %v5676_v17 = vpop.eup %5675  ;;  %v1438_v4 = vor.u32 1.1754944e-38, %v1437_v60  ;;  %v1381_v33 = vadd.f32 0.112945676, %v1380_v5  ;;  %v1332_v11 = vadd.f32 0.18741608, %v7224_v24  ;;  %vm1436_vm13 = vcmp.eq.f32.partialorder %v1435_v23, 8.507059e+37 }
 0x2d1   : > { %v1370_v55 = vadd.f32 0.05243302, %v1369_v15  ;;  %1991 = vmatpush.bf16.msra.mxu1 %v1918_v26  ;;  %v1467_v45 = vmul.f32 %v5676_v17, %v7291_v10  ;;  %v1260_v1 = vmul.f32 %v1259_v34, %v10322_v41  ;;  %v1296_v14 = vmul.f32 3.8918573e-05, %v10327_v57 }
 0x2d2   : > { %v1439_v51 = vsel %vm1436_vm13, %v1438_v4, %v1434_v63  ;;  %v1382_v56 = vmul.f32 %v1381_v33, %v10309_v38  ;;  %v1415_v12 = vmul.f32 %v1414_v22, %v10328_v6  ;;  %v1454_v30 = vadd.f32 1.1283791, %v1453_v25  ;;  %v7343_v22 = vpop.f32.mrf.mxu2  ;;  %v10336_v33 = vld [vmem:[#allocation31_spill] sm:$0xff] }
 0x2d3   : > { %v7325_v35 = vpop.eup %5677  ;;  %v1468_v24 = vsub.f32 1.0, %v1467_v45  ;;  %v1475_v15 = vand.u32 2147483647, %v7291_v10  ;;  %v1477_v48 = vand.u32 2147483648, %v7291_v10  ;;  %v1261_v0 = vadd.f32 0.112945676, %v1260_v1 }
 0x2d4   : > { %v1347_v61 = vmul.f32 %v7325_v35, %v7298_v36  ;;  %v1383_v44 = vadd.f32 0.4994258, %v1382_v56  ;;  %v1440_v32 = vmul.f32 %v1439_v51, %v1415_v12  ;;  %vm1472_vm14 = vweird.f32 %v5676_v17  ;;  %v10333_v51 = vld [vmem:[#allocation56_spill] sm:$0xff] }
 0x2d5   : > { %v1469_v20 = vmul.f32 %v5676_v17, %v1468_v24  ;;  %v1297_v54 = vadd.f32 0.001143296, %v1296_v14  ;;  %v1371_v3 = vmul.f32 %v1370_v55, %v10309_v38  ;;  %v1262_v16 = vmul.f32 %v1261_v0, %v10322_v41  ;;  %v10334_v0 = vld [vmem:[#allocation34_spill] sm:$0xff] }
 0x2d6   : > { %v1348_v7 = vsub.f32 1.0, %v1347_v61  ;;  %v1384_v8 = vmul.f32 %v1383_v44, %v10309_v38  ;;  %v1455_v59 = vmul.f32 %v1454_v30, %v10329_v18  ;;  %vm1471_vm15 = vweird.f32 %v7291_v10 }
 0x2d7   : > { %v1470_v40 = vadd.f32 %v5676_v17, %v1469_v20  ;;  %v1298_v21 = vmul.f32 %v1297_v54, %v10327_v57  ;;  %vm1473_vm0 = vmor %vm1471_vm15, %vm1472_vm14  ;;  %v1478_v29 = vor.u32 1.1754944e-38, %v1477_v48  ;;  %v1263_v62 = vadd.f32 0.4994258, %v1262_v16 }
 0x2d8   : > { %v1349_v52 = vmul.f32 %v7325_v35, %v1348_v7  ;;  %v7339_v43 = vadd.f32 1.0, %v1384_v8  ;;  %v5248_v23 = vclamps-f32 %v1440_v32, 1.0  ;;  %vm1476_vm1 = vcmp.eq.f32.partialorder %v1475_v15, 8.507059e+37 }
 0x2d9   : > { %v1474_v60 = vsel %vm1473_vm0, %v5676_v17, %v1470_v40  ;;  %v1299_v31 = vadd.f32 0.014752088, %v1298_v21  ;;  %v1250_v27 = vadd.f32 0.05243302, %v1249_v2  ;;  %v1288_v58 = vadd.f32 0.0036580483, %v1287_v28 }
 0x2da   : > { %v1479_v42 = vsel %vm1476_vm1, %v1478_v29, %v1474_v60  ;;  %5679 = vrcp.f32 %v7339_v43  ;;  %v1333_v10 = vmul.f32 %v1332_v11, %v10315_v53  ;;  %v1350_v9 = vadd.f32 %v7325_v35, %v1349_v52  ;;  %v10330_v28 = vld [vmem:[#allocation42_spill] sm:$0xff]  ;;  %v10335_v60 = vld [vmem:[#allocation47_spill] sm:$0xff] }
 0x2db   : > { %v1480_v37 = vmul.f32 %v1479_v42, %v1455_v59  ;;  %vm1352_vm2 = vweird.f32 %v7325_v35  ;;  %v1372_v5 = vadd.f32 0.18741608, %v1371_v3  ;;  %v1357_v25 = vand.u32 2147483648, %v7298_v36  ;;  %v7372_v59 = vpop.f32.mrf.mxu2 }
 0x2dc   : > { %v1264_v26 = vmul.f32 %v1263_v62, %v10322_v41  ;;  %v1300_v63 = vmul.f32 %v1299_v31, %v10327_v57  ;;  %v1887_v17 = vadd.f32 1.0, %v5248_v23  ;;  %vm1351_vm3 = vweird.f32 %v7298_v36 }
 0x2dd   : > { %v5249_v34 = vclamps-f32 %v1480_v37, 1.0  ;;  %v1355_v53 = vand.u32 2147483647, %v7298_v36  ;;  %v1289_v2 = vmul.f32 %v1288_v58, %v10327_v57  ;;  %v1215_v4 = vmul.f32 0.5, %v10330_v28  ;;  %vm7354_vm5 = vmor %vm1351_vm3, %vm1352_vm2 }
 0x2de   : > { %v7358_v11 = vadd.f32 1.0, %v1264_v26  ;;  %v1301_v55 = vadd.f32 0.112945676, %v1300_v63  ;;  %v1334_v45 = vadd.f32 1.1283791, %v1333_v10  ;;  %v1216_v56 = vmul.f32 0.5, %v10333_v51 }
 0x2df   : > { %v1888_v1 = vadd.f32 1.0, %v5249_v34  ;;  %v1354_v14 = vsel %vm7354_vm5, %v7325_v35, %v1350_v9  ;;  %v1373_v6 = vmul.f32 %v1372_v5, %v10309_v38  ;;  %v1358_v12 = vor.u32 1.1754944e-38, %v1357_v25  ;;  %v10338_v51 = vld [vmem:[#allocation29_spill] sm:$0xff] }
 0x2e0   : > { %v5680_v36 = vpop.eup %5679  ;;  %5681 = vrcp.f32 %v7358_v11  ;;  %v1903_v30 = vmul.f32 %v1887_v17, %v1215_v4  ;;  %vm1356_vm6 = vcmp.eq.f32.partialorder %v1355_v53, 8.507059e+37  ;;  %v1251_v48 = vmul.f32 %v1250_v27, %v10322_v41 }
 0x2e1   : > { %v1904_v24 = vmul.f32 %v1888_v1, %v1216_v56  ;;  %v1387_v15 = vmul.f32 %v5680_v36, %v7339_v43  ;;  %v1359_v61 = vsel %vm1356_vm6, %v1358_v12, %v1354_v14  ;;  %v1302_v44 = vmul.f32 %v1301_v55, %v10327_v57  ;;  %v10337_v55 = vld [vmem:[#allocation43_spill] sm:$0xff] }
 0x2e2   : > { %v1335_v32 = vmul.f32 %v1334_v45, %v10334_v0  ;;  %v1290_v20 = vadd.f32 0.05243302, %v1289_v2  ;;  %v1374_v3 = vadd.f32 1.1283791, %v1373_v6  ;;  %v1397_v38 = vand.u32 2147483648, %v7339_v43 }
 0x2e3   : > { %v1917_v35 = vpack.c.bf16 %v1904_v24, %v1903_v30  ;;  %v1388_v54 = vsub.f32 1.0, %v1387_v15  ;;  %v1303_v7 = vadd.f32 0.4994258, %v1302_v44  ;;  %vm1392_vm4 = vweird.f32 %v5680_v36  ;;  %v7383_v28 = vpop.f32.mrf.mxu2 }
 0x2e4   : > { %v1360_v8 = vmul.f32 %v1359_v61, %v1335_v32  ;;  %v1395_v18 = vand.u32 2147483647, %v7339_v43  ;;  %v1252_v21 = vadd.f32 0.18741608, %v1251_v48  ;;  %vm1391_vm7 = vweird.f32 %v7339_v43  ;;  %v10340_v48 = vld [vmem:[#allocation35_spill] sm:$0xff] }
 0x2e5   : > { %1992 = vmatpush.bf16.msra.mxu1 %v1917_v35  ;;  %v1389_v16 = vmul.f32 %v5680_v36, %v1388_v54  ;;  %v1304_v29 = vmul.f32 %v1303_v7, %v10327_v57  ;;  %v1291_v23 = vmul.f32 %v1290_v20, %v10327_v57  ;;  %v1375_v31 = vmul.f32 %v1374_v3, %v10335_v60  ;;  %vm1393_vm8 = vmor %vm1391_vm7, %vm1392_vm4 }
 0x2e6   : > { %v5682_v40 = vpop.eup %5681  ;;  %v1398_v27 = vor.u32 1.1754944e-38, %v1397_v38  ;;  %v5246_v42 = vclamps-f32 %v1360_v8, 1.0  ;;  %vm1396_vm9 = vcmp.eq.f32.partialorder %v1395_v18, 8.507059e+37  ;;  %v1253_v9 = vmul.f32 %v1252_v21, %v10322_v41  ;;  %v10342_v38 = vld [vmem:[#allocation30_spill] sm:$0xff]  ;;  %v10346_v21 = vld [vmem:[#allocation33_spill] sm:$0xff] }
 0x2e7   : > { %v1390_v52 = vadd.f32 %v5680_v36, %v1389_v16  ;;  %v1267_v62 = vmul.f32 %v5682_v40, %v7358_v11  ;;  %v1305_v58 = vadd.f32 1.0, %v1304_v29  ;;  %vm1272_vm10 = vweird.f32 %v5682_v40  ;;  %v10344_v16 = vld [vmem:[#allocation39_spill] sm:$0xff] }
 0x2e8   : > { %v1292_v43 = vadd.f32 0.18741608, %v1291_v23  ;;  %vm1271_vm11 = vweird.f32 %v7358_v11  ;;  %v1277_v63 = vand.u32 2147483648, %v7358_v11  ;;  %v1885_v17 = vadd.f32 1.0, %v5246_v42 }
 0x2e9   : > { %v1394_v10 = vsel %vm1393_vm8, %v5680_v36, %v1390_v52  ;;  %v1268_v37 = vsub.f32 1.0, %v1267_v62  ;;  %5683 = vrcp.f32 %v1305_v58  ;;  %v1275_v2 = vand.u32 2147483647, %v7358_v11  ;;  %vm1273_vm12 = vmor %vm1271_vm11, %vm1272_vm10  ;;  %v10348_v62 = vld [vmem:[#allocation41_spill] sm:$0xff] }
 0x2ea   : > { %v1399_v5 = vsel %vm1396_vm9, %v1398_v27, %v1394_v10  ;;  %v1254_v4 = vadd.f32 1.1283791, %v1253_v9  ;;  %v1213_v41 = vmul.f32 0.5, %v10336_v33  ;;  %v1214_v45 = vmul.f32 0.5, %v10337_v55  ;;  %v10351_v10 = vld [vmem:[#allocation27_spill] sm:$0xff]  ;;  %v10353_v9 = vld [vmem:[#allocation24_spill] sm:$0xff] }
 0x2eb   : > { %v1400_v25 = vmul.f32 %v1399_v5, %v1375_v31  ;;  %v1269_v26 = vmul.f32 %v5682_v40, %v1268_v37  ;;  %v7389_v56 = vadd.f32 %v7202_v39, %v10338_v51  ;;  %v1293_v6 = vmul.f32 %v1292_v43, %v10327_v57  ;;  %v7396_v3 = vpop.f32.mrf.mxu2  ;;  %v10356_v55 = vld [vmem:[#allocation26_spill] sm:$0xff] }
 0x2ec   : > { %v1278_v12 = vor.u32 1.1754944e-38, %v1277_v63  ;;  %v1901_v30 = vmul.f32 %v1885_v17, %v1213_v41  ;;  %vm1276_vm13 = vcmp.eq.f32.partialorder %v1275_v2, 8.507059e+37  ;;  %v1255_v61 = vmul.f32 %v1254_v4, %v10340_v48  ;;  %v10354_v63 = vld [vmem:[#allocation32_spill] sm:$0xff] }
 0x2ed   : > { %v5247_v34 = vclamps-f32 %v1400_v25, 1.0  ;;  %v1270_v53 = vadd.f32 %v5682_v40, %v1269_v26  ;;  %10339 = vst [vmem:[#allocation55_spill] sm:$0xff] %v7389_v56  ;;  %v7394_v44 = vmul.f32 0.70710677, %v7389_v56  ;;  %v1294_v39 = vadd.f32 1.1283791, %v1293_v6 }
 0x2ee   : > { %v1317_v20 = vand.u32 2147483648, %v1305_v58  ;;  %v1315_v57 = vand.u32 2147483647, %v1305_v58  ;;  %v7400_v7 = vadd.f32 %v7146_v19, %v10342_v38  ;;  %v7406_v18 = vadd.f32 %v7243_v46, %v10344_v16  ;;  %v10357_v6 = vld [vmem:[#allocation36_spill] sm:$0xff]  ;;  %v10360_v16 = vld [vmem:[#allocation23_spill] sm:$0xff] }
 0x2ef   : > { %v1886_v1 = vadd.f32 1.0, %v5247_v34  ;;  %v1274_v14 = vsel %vm1273_vm12, %v5682_v40, %v1270_v53  ;;  %v5684_v36 = vpop.eup %5683  ;;  %10341 = vst [vmem:[#allocation57_spill] sm:$0xff] %v7394_v44  ;;  %v2217_v8 = vmul.f32 %v7394_v44, %v7394_v44  ;;  %vm1311_vm15 = vweird.f32 %v1305_v58  ;;  %v10355_v53 = vld [vmem:[#allocation37_spill] sm:$0xff] }
 0x2f0   : > { %v1307_v24 = vmul.f32 %v5684_v36, %v1305_v58  ;;  %v1279_v15 = vsel %vm1276_vm13, %v1278_v12, %v1274_v14  ;;  %vm1312_vm14 = vweird.f32 %v5684_v36  ;;  %10343 = vst [vmem:[#allocation48_spill] sm:$0xff] %v7400_v7  ;;  %v7410_v29 = vadd.f32 %v7263_v50, %v10346_v21 }
 0x2f1   : > { %v1902_v11 = vmul.f32 %v1886_v1, %v1214_v45  ;;  %v1280_v35 = vmul.f32 %v1279_v15, %v1255_v61  ;;  %10345 = vst [vmem:[#allocation52_spill] sm:$0xff] %v7406_v18  ;;  %vm1313_vm0 = vmor %vm1311_vm15, %vm1312_vm14  ;;  %v1318_v52 = vor.u32 1.1754944e-38, %v1317_v20  ;;  %v1295_v23 = vmul.f32 %v1294_v39, %v10348_v62  ;;  %v5484_v61 = vld [vmem:[%s10120_s5] sm:$0xff] }
 0x2f2   : > { %v1308_v32 = vsub.f32 1.0, %v1307_v24  ;;  %10347 = vst [vmem:[#allocation38_spill] sm:$0xff] %v7410_v29  ;;  %vm1316_vm1 = vcmp.eq.f32.partialorder %v1315_v57, 8.507059e+37  ;;  %v7414_v31 = vmul.f32 0.70710677, %v7400_v7  ;;  %v7416_v42 = vmin.f32 %v2217_v8, 16.0 }
 0x2f3   : > { %v1916_v0 = vpack.c.bf16 %v1902_v11, %v1901_v30  ;;  %v5244_v60 = vclamps-f32 %v1280_v35, 1.0  ;;  %v7419_v46 = vmul.f32 0.70710677, %v7406_v18  ;;  %v7422_v50 = vmul.f32 0.70710677, %v7410_v29  ;;  %v7432_v43 = vpop.f32.mrf.mxu2 }
 0x2f4   : > { %v1309_v54 = vmul.f32 %v5684_v36, %v1308_v32  ;;  %10349 = vst [vmem:[#allocation53_spill] sm:$0xff] %v7414_v31  ;;  %v7426_v37 = vadd.f32 %v7286_v47, %v10351_v10  ;;  %v7430_v5 = vadd.f32 %v7319_v49, %v10353_v9  ;;  %v1211_v34 = vmul.f32 0.5, %v10354_v63 }
 0x2f5   : > { %1993 = vmatpush.bf16.msra.mxu1 %v1916_v0  ;;  %10350 = vst [vmem:[#allocation44_spill] sm:$0xff] %v7419_v46  ;;  %v1883_v26 = vadd.f32 1.0, %v5244_v60  ;;  %v2137_v17 = vmul.f32 %v7414_v31, %v7414_v31  ;;  %v1212_v2 = vmul.f32 0.5, %v10355_v53  ;;  %v2219_v4 = vmul.f32 2.1237322e-06, %v7416_v42  ;;  %v10370_v31 = vld [vmem:[#allocation25_spill] sm:$0xff] }
 0x2f6   : > { %v1310_v40 = vadd.f32 %v5684_v36, %v1309_v54  ;;  %10352 = vst [vmem:[#allocation49_spill] sm:$0xff] %v7426_v37  ;;  %v2257_v47 = vmul.f32 %v7419_v46, %v7419_v46  ;;  %v2297_v49 = vmul.f32 %v7422_v50, %v7422_v50  ;;  %v7444_v41 = vmul.f32 0.70710677, %v7426_v37 }
 0x2f7   : > { %v7448_v45 = vadd.f32 %v7343_v22, %v10356_v55  ;;  %v7451_v51 = vmul.f32 0.70710677, %v7430_v5  ;;  %v1899_v1 = vmul.f32 %v1883_v26, %v1211_v34  ;;  %v7457_v12 = vadd.f32 %v7171_v13, %v10357_v6 }
 0x2f8   : > { %v1314_v19 = vsel %vm1313_vm0, %v5684_v36, %v1310_v40  ;;  %v7453_v36 = vmin.f32 %v2137_v17, 16.0  ;;  %v2220_v30 = vadd.f32 0.00028619796, %v2219_v4  ;;  %v7459_v11 = vmin.f32 %v2257_v47, 16.0 }
 0x2f9   : > { %v1319_v27 = vsel %vm1316_vm1, %v1318_v52, %v1314_v19  ;;  %10358 = vst [vmem:[#allocation60_spill] sm:$0xff] %v7457_v12  ;;  %v7461_v15 = vmin.f32 %v2297_v49, 16.0  ;;  %v2337_v22 = vmul.f32 %v7444_v41, %v7444_v41  ;;  %v7466_v48 = vmul.f32 0.70710677, %v7448_v45 }
 0x2fa   : > { %v1320_v58 = vmul.f32 %v1319_v27, %v1295_v23  ;;  %v2377_v13 = vmul.f32 %v7451_v51, %v7451_v51  ;;  %v2139_v32 = vmul.f32 2.1237322e-06, %v7453_v36  ;;  %v7477_v39 = vmul.f32 0.70710677, %v7457_v12 }
 0x2fb   : > { %v7473_v0 = vpop.f32.mrf.mxu2  ;;  %v2221_v20 = vmul.f32 %v2220_v30, %v7416_v42  ;;  %v2259_v35 = vmul.f32 2.1237322e-06, %v7459_v11  ;;  %v2299_v54 = vmul.f32 2.1237322e-06, %v7461_v15  ;;  %v7482_v57 = vmin.f32 %v2337_v22, 16.0  ;;  %v5485_v30 = vld [vmem:[%s10120_s5 + $0x8] sm:$0xff] }
 0x2fc   : > { %v5245_v25 = vclamps-f32 %v1320_v58, 1.0  ;;  %10359 = vst [vmem:[#allocation59_spill] sm:$0xff] %v7477_v39  ;;  %v2417_v38 = vmul.f32 %v7466_v48, %v7466_v48  ;;  %v7486_v8 = vmin.f32 %v2377_v13, 16.0  ;;  %v7490_v40 = vadd.f32 %v7372_v59, %v10360_v16 }
 0x2fd   : > { %v2140_v21 = vadd.f32 0.00028619796, %v2139_v32  ;;  %v2177_v52 = vmul.f32 %v7477_v39, %v7477_v39  ;;  %v2222_v62 = vadd.f32 0.0036580483, %v2221_v20  ;;  %v2260_v23 = vadd.f32 0.00028619796, %v2259_v35 }
 0x2fe   : > { %v1884_v33 = vadd.f32 1.0, %v5245_v25  ;;  %v2300_v60 = vadd.f32 0.00028619796, %v2299_v54  ;;  %v2339_v19 = vmul.f32 2.1237322e-06, %v7482_v57  ;;  %v7495_v27 = vmin.f32 %v2417_v38, 16.0 }
 0x2ff   : > { %v2379_v58 = vmul.f32 2.1237322e-06, %v7486_v8  ;;  %v7499_v10 = vmul.f32 0.70710677, %v7490_v40  ;;  %v2141_v59 = vmul.f32 %v2140_v21, %v7453_v36  ;;  %v7504_v25 = vmin.f32 %v2177_v52, 16.0  ;;  %v10362_v20 = vld [vmem:[#allocation18_spill] sm:$0xff] }
 0x300   : > { %v1900_v14 = vmul.f32 %v1884_v33, %v1212_v2  ;;  %v2223_v26 = vmul.f32 %v2222_v62, %v7416_v42  ;;  %v2261_v63 = vmul.f32 %v2260_v23, %v7459_v11  ;;  %v2301_v34 = vmul.f32 %v2300_v60, %v7461_v15 }
 0x301   : > { %v2340_v17 = vadd.f32 0.00028619796, %v2339_v19  ;;  %v2419_v53 = vmul.f32 2.1237322e-06, %v7495_v27  ;;  %v2380_v2 = vadd.f32 0.00028619796, %v2379_v58  ;;  %v2457_v4 = vmul.f32 %v7499_v10, %v7499_v10 }
 0x302   : > { %v1915_v24 = vpack.c.bf16 %v1900_v14, %v1899_v1  ;;  %v2142_v47 = vadd.f32 0.0036580483, %v2141_v59  ;;  %v2179_v33 = vmul.f32 2.1237322e-06, %v7504_v25  ;;  %v2224_v49 = vadd.f32 0.05243302, %v2223_v26 }
 0x303   : > { %v7501_v9 = vpop.f32.mrf.mxu2  ;;  %v2262_v55 = vadd.f32 0.0036580483, %v2261_v63  ;;  %v2302_v1 = vadd.f32 0.0036580483, %v2301_v34  ;;  %v2341_v14 = vmul.f32 %v2340_v17, %v7482_v57  ;;  %v2420_v6 = vadd.f32 0.00028619796, %v2419_v53 }
 0x304   : > { %1994 = vmatpush.bf16.msra.mxu1 %v1915_v24  ;;  %v2381_v24 = vmul.f32 %v2380_v2, %v7486_v8  ;;  %v7518_v22 = vmin.f32 %v2457_v4, 16.0  ;;  %v2143_v54 = vmul.f32 %v2142_v47, %v7453_v36  ;;  %v2180_v38 = vadd.f32 0.00028619796, %v2179_v33  ;;  %v10363_v59 = vld [vmem:[#allocation20_spill] sm:$0xff]  ;;  %v10364_v33 = vld [vmem:[#allocation22_spill] sm:$0xff] }
 0x305   : > { %v2225_v16 = vmul.f32 %v2224_v49, %v7416_v42  ;;  %v2263_v21 = vmul.f32 %v2262_v55, %v7459_v11  ;;  %v2303_v52 = vmul.f32 %v2302_v1, %v7461_v15  ;;  %v2342_v62 = vadd.f32 0.0036580483, %v2341_v14 }
 0x306   : > { %v2421_v23 = vmul.f32 %v2420_v6, %v7495_v27  ;;  %v2382_v60 = vadd.f32 0.0036580483, %v2381_v24  ;;  %v2459_v19 = vmul.f32 2.1237322e-06, %v7518_v22  ;;  %v7541_v26 = vadd.f32 %v7396_v3, %v10363_v59 }
 0x307   : > { %1995 = vmatmul.bf16.vlgmr.msra.gmra.mxu1 %v5484_v61  ;;  %v10361_v61 = vld [vmem:[#allocation28_spill] sm:$0xff]  ;;  %v2144_v34 = vadd.f32 0.05243302, %v2143_v54  ;;  %v2181_v17 = vmul.f32 %v2180_v38, %v7504_v25  ;;  %v2226_v53 = vadd.f32 0.18741608, %v2225_v16  ;;  %v7548_v49 = vadd.f32 %v7473_v0, %v10364_v33 }
 0x308   : > { %v7522_v13 = vadd.f32 %v7383_v28, %v10361_v61  ;;  %v2264_v2 = vadd.f32 0.05243302, %v2263_v21  ;;  %v2304_v4 = vadd.f32 0.05243302, %v2303_v52  ;;  %v2422_v47 = vadd.f32 0.0036580483, %v2421_v23 }
 0x309   : > { %v2343_v1 = vmul.f32 %v2342_v62, %v7482_v57  ;;  %v2383_v3 = vmul.f32 %v2382_v60, %v7486_v8  ;;  %v2460_v14 = vadd.f32 0.00028619796, %v2459_v19  ;;  %v7557_v24 = vmul.f32 0.70710677, %v7541_v26 }
 0x30a   : > { %v7537_v58 = vmul.f32 0.70710677, %v7522_v13  ;;  %v7565_v54 = vmul.f32 %v2144_v34, %v7453_v36  ;;  %v2227_v38 = vmul.f32 %v2226_v53, %v7416_v42  ;;  %v2265_v16 = vmul.f32 %v2264_v2, %v7459_v11 }
 0x30b   : > { %v2100_v32 = vpop.f32.mrf.mxu2  ;;  %v7569_v21 = vadd.f32 0.0036580483, %v2181_v17  ;;  %v2423_v52 = vmul.f32 %v2422_v47, %v7495_v27  ;;  %v7573_v62 = vmul.f32 0.70710677, %v7548_v49  ;;  %v2305_v60 = vmul.f32 %v2304_v4, %v7461_v15 }
 0x30c   : > { %v7525_v35 = vadd.f32 %v2100_v32, %v10362_v20  ;;  %v2497_v6 = vmul.f32 %v7537_v58, %v7537_v58  ;;  %v10365_v32 = vld [vmem:[#allocation21_spill] sm:$0xff]  ;;  %10366 = vst [vmem:[#allocation54_spill] sm:$0xff] %v7565_v54  ;;  %v2344_v19 = vadd.f32 0.05243302, %v2343_v1  ;;  %v2384_v34 = vadd.f32 0.05243302, %v2383_v3 }
 0x30d   : > { %10367 = vst [vmem:[#allocation40_spill] sm:$0xff] %v7569_v21  ;;  %v2461_v53 = vmul.f32 %v2460_v14, %v7518_v22  ;;  %v2537_v17 = vmul.f32 %v7557_v24, %v7557_v24  ;;  %v7584_v2 = vadd.f32 1.1283791, %v2227_v38  ;;  %v2266_v47 = vadd.f32 0.18741608, %v2265_v16  ;;  %v5486_v3 = vld [vmem:[%s10120_s5 + $0x10] sm:$0xff] }
 0x30e   : > { %v7533_v28 = vmul.f32 0.70710677, %v7525_v35  ;;  %v7580_v33 = vmin.f32 %v2497_v6, 16.0  ;;  %v2424_v1 = vadd.f32 0.05243302, %v2423_v52  ;;  %v10369_v14 = vld [vmem:[#allocation19_spill] sm:$0xff]  ;;  %v2345_v38 = vmul.f32 %v2344_v19, %v7482_v57 }
 0x30f   : > { %10368 = vst [vmem:[#allocation45_spill] sm:$0xff] %v7584_v2  ;;  %v7596_v6 = vadd.f32 %v7501_v9, %v10369_v14  ;;  %v2385_v52 = vmul.f32 %v2384_v34, %v7486_v8  ;;  %v2462_v12 = vadd.f32 0.0036580483, %v2461_v53  ;;  %v7604_v39 = vmin.f32 %v2537_v17, 16.0 }
 0x310   : > { %v2697_v63 = vmul.f32 %v7533_v28, %v7533_v28  ;;  %v2499_v7 = vmul.f32 2.1237322e-06, %v7580_v33  ;;  %v7608_v18 = vadd.f32 %v7432_v43, %v10370_v31  ;;  %v2425_v19 = vmul.f32 %v2424_v1, %v7495_v27 }
 0x311   : > { %v7617_v34 = vmul.f32 0.70710677, %v7596_v6  ;;  %v7620_v17 = vmul.f32 %v2266_v47, %v7459_v11  ;;  %v2346_v14 = vadd.f32 0.18741608, %v2345_v38  ;;  %v2386_v56 = vadd.f32 0.18741608, %v2385_v52 }
 0x312   : > { %v7550_v55 = vmin.f32 %v2697_v63, 16.0  ;;  %v2539_v54 = vmul.f32 2.1237322e-06, %v7604_v39  ;;  %v7625_v1 = vmul.f32 0.70710677, %v7608_v18 }
 0x313   : > { %10371 = vst [vmem:[#allocation51_spill] sm:$0xff] %v7620_v17  ;;  %v2347_v29 = vmul.f32 %v2346_v14, %v7482_v57 }
 0x314   : > { %v2699_v61 = vmul.f32 2.1237322e-06, %v7550_v55  ;;  %v2710_v0 = vmul.f32 3.8918573e-05, %v7550_v55 }
 0x316   : > { %v2700_v23 = vadd.f32 0.00028619796, %v2699_v61  ;;  %v2711_v63 = vadd.f32 0.001143296, %v2710_v0  ;;  %v2617_v61 = vmul.f32 %v7573_v62, %v7573_v62  ;;  %v2306_v0 = vadd.f32 0.18741608, %v2305_v60 }
 0x317   : > { %2000 = vmatmul.bf16.gmra.mxu1 %v5485_v30  ;;  %v2102_v30 = vpop.f32.mrf.mxu2 }
 0x318   : > { %v7561_v20 = vadd.f32 %v2102_v30, %v10365_v32  ;;  %v2712_v4 = vmul.f32 %v2711_v63, %v7550_v55  ;;  %v2701_v32 = vmul.f32 %v2700_v23, %v7550_v55  ;;  %v2307_v47 = vmul.f32 %v2306_v0, %v7461_v15 }
 0x319   : > { %v2577_v0 = vmul.f32 %v7625_v1, %v7625_v1 }
 0x31a   : > { %v7577_v59 = vmul.f32 0.70710677, %v7561_v20  ;;  %v2713_v63 = vadd.f32 0.014752088, %v2712_v4  ;;  %v2702_v53 = vadd.f32 0.0036580483, %v2701_v32 }
 0x31b   : > { %v2308_v21 = vadd.f32 1.1283791, %v2307_v47  ;;  %v7653_v2 = vmin.f32 %v2577_v0, 16.0 }
 0x31c   : > { %v2737_v30 = vmul.f32 %v7577_v59, %v7577_v59  ;;  %v2714_v23 = vmul.f32 %v2713_v63, %v7550_v55  ;;  %v2463_v63 = vmul.f32 %v2462_v12, %v7518_v22  ;;  %v2657_v12 = vmul.f32 %v7617_v34, %v7617_v34 }
 0x31d   : > { %v2703_v52 = vmul.f32 %v2702_v53, %v7550_v55 }
 0x31e   : > { %v7600_v16 = vmin.f32 %v2737_v30, 16.0  ;;  %v7614_v30 = vmin.f32 %v2617_v61, 16.0  ;;  %v2715_v43 = vadd.f32 0.112945676, %v2714_v23  ;;  %v2500_v23 = vadd.f32 0.00028619796, %v2499_v7 }
 0x31f   : > { %v2704_v14 = vadd.f32 0.05243302, %v2703_v52  ;;  %v7665_v52 = vmul.f32 0.5, %v7490_v40  ;;  %v7678_v40 = vmul.f32 0.5, %v7522_v13 }
 0x320   : > { %v2739_v9 = vmul.f32 2.1237322e-06, %v7600_v16  ;;  %v2750_v60 = vmul.f32 3.8918573e-05, %v7600_v16  ;;  %v2619_v38 = vmul.f32 2.1237322e-06, %v7614_v30  ;;  %v2501_v53 = vmul.f32 %v2500_v23, %v7580_v33 }
 0x321   : > { %v7657_v23 = vmul.f32 %v2308_v21, %v7422_v50 }
 0x322   : > { %v2740_v31 = vadd.f32 0.00028619796, %v2739_v9  ;;  %v2751_v4 = vadd.f32 0.001143296, %v2750_v60  ;;  %v2426_v9 = vadd.f32 0.18741608, %v2425_v19 }
 0x324   : > { %v2741_v61 = vmul.f32 %v2740_v31, %v7600_v16  ;;  %v2752_v32 = vmul.f32 %v2751_v4, %v7600_v16  ;;  %v2387_v31 = vmul.f32 %v2386_v56, %v7486_v8  ;;  %v2540_v4 = vadd.f32 0.00028619796, %v2539_v54 }
 0x325   : > { %v2427_v17 = vmul.f32 %v2426_v9, %v7495_v27  ;;  %v2348_v54 = vadd.f32 1.1283791, %v2347_v29 }
 0x326   : > { %v2753_v37 = vadd.f32 0.014752088, %v2752_v32  ;;  %v2742_v46 = vadd.f32 0.0036580483, %v2741_v61  ;;  %v7643_v32 = vmin.f32 %v2657_v12, 16.0  ;;  %v7648_v61 = vmul.f32 0.5, %v7430_v5 }
 0x327   : > { %2005 = vmatmul.bf16.gmra.mxu1 %v5486_v3  ;;  %v2716_v3 = vmul.f32 %v2715_v43, %v7550_v55  ;;  %v2464_v43 = vadd.f32 0.05243302, %v2463_v63  ;;  %v2388_v47 = vadd.f32 1.1283791, %v2387_v31  ;;  %v2541_v9 = vmul.f32 %v2540_v4, %v7604_v39  ;;  %v5487_v5 = vld [vmem:[%s10120_s5 + $0x18] sm:$0xff] }
 0x328   : > { %v2754_v19 = vmul.f32 %v2753_v37, %v7600_v16  ;;  %10372 = vst [vmem:[#allocation50_spill] sm:$0xff] %v7648_v61  ;;  %v2743_v37 = vmul.f32 %v2742_v46, %v7600_v16  ;;  %v2428_v46 = vadd.f32 1.1283791, %v2427_v17  ;;  %v2659_v31 = vmul.f32 2.1237322e-06, %v7643_v32 }
 0x329   : > { %v2717_v60 = vadd.f32 0.4994258, %v2716_v3  ;;  %v2620_v3 = vadd.f32 0.00028619796, %v2619_v38  ;;  %v2502_v38 = vadd.f32 0.0036580483, %v2501_v53  ;;  %v7670_v50 = vmul.f32 %v2348_v54, %v7444_v41 }
 0x32a   : > { %v2755_v63 = vadd.f32 0.112945676, %v2754_v19  ;;  %v2744_v4 = vadd.f32 0.05243302, %v2743_v37  ;;  %v2542_v19 = vadd.f32 0.0036580483, %v2541_v9  ;;  %v7683_v54 = vmul.f32 %v2428_v46, %v7466_v48 }
 0x32b   : > { %v2718_v7 = vmul.f32 %v2717_v60, %v7550_v55  ;;  %v2465_v60 = vmul.f32 %v2464_v43, %v7518_v22  ;;  %v2621_v29 = vmul.f32 %v2620_v3, %v7614_v30  ;;  %v2705_v43 = vmul.f32 %v2704_v14, %v7550_v55  ;;  %10373 = vst [vmem:[#allocation46_spill] sm:$0xff] %v7670_v50 }
 0x32c   : > { %v2756_v12 = vmul.f32 %v2755_v63, %v7600_v16  ;;  %v2579_v53 = vmul.f32 2.1237322e-06, %v7653_v2  ;;  %v2630_v17 = vmul.f32 3.8918573e-05, %v7614_v30  ;;  %v2503_v3 = vmul.f32 %v2502_v38, %v7580_v33 }
 0x32d   : > { %v7645_v56 = vadd.f32 1.0, %v2718_v7  ;;  %v2466_v21 = vadd.f32 0.18741608, %v2465_v60  ;;  %v7673_v7 = vmul.f32 %v2388_v47, %v7451_v51  ;;  %v2622_v14 = vadd.f32 0.0036580483, %v2621_v29 }
 0x32e   : > { %v2757_v0 = vadd.f32 0.4994258, %v2756_v12  ;;  %v2660_v51 = vadd.f32 0.00028619796, %v2659_v31  ;;  %v2706_v60 = vadd.f32 0.18741608, %v2705_v43  ;;  %v2745_v9 = vmul.f32 %v2744_v4, %v7600_v16 }
 0x32f   : > { %5685 = vrcp.f32 %v7645_v56  ;;  %v2631_v37 = vadd.f32 0.001143296, %v2630_v17  ;;  %v7686_v47 = vmul.f32 0.5, %v7541_v26  ;;  %v7693_v38 = vmul.f32 %v2466_v21, %v7518_v22 }
 0x330   : > { %v2758_v41 = vmul.f32 %v2757_v0, %v7600_v16  ;;  %v2543_v29 = vmul.f32 %v2542_v19, %v7604_v39  ;;  %v2504_v46 = vadd.f32 0.05243302, %v2503_v3  ;;  %v2623_v31 = vmul.f32 %v2622_v14, %v7614_v30 }
 0x331   : > { %v2632_v48 = vmul.f32 %v2631_v37, %v7614_v30  ;;  %v2661_v26 = vmul.f32 %v2660_v51, %v7643_v32  ;;  %v2707_v4 = vmul.f32 %v2706_v60, %v7550_v55  ;;  %v2731_v0 = vand.u32 2147483648, %v7645_v56 }
 0x332   : > { %v7690_v12 = vadd.f32 1.0, %v2758_v41  ;;  %v2746_v21 = vadd.f32 0.18741608, %v2745_v9  ;;  %v2670_v19 = vmul.f32 3.8918573e-05, %v7643_v32  ;;  %vm2725_vm3 = vweird.f32 %v7645_v56 }
 0x333   : > { %v2633_v17 = vadd.f32 0.014752088, %v2632_v48  ;;  %v2729_v14 = vand.u32 2147483647, %v7645_v56  ;;  %v2505_v51 = vmul.f32 %v2504_v46, %v7580_v33  ;;  %v2662_v60 = vadd.f32 0.0036580483, %v2661_v26 }
 0x334   : > { %5687 = vrcp.f32 %v7690_v12  ;;  %v2671_v55 = vadd.f32 0.001143296, %v2670_v19  ;;  %v2708_v9 = vadd.f32 1.1283791, %v2707_v4  ;;  %vm2765_vm7 = vweird.f32 %v7690_v12 }
 0x335   : > { %v5686_v63 = vpop.eup %5685  ;;  %v2634_v37 = vmul.f32 %v2633_v17, %v7614_v30  ;;  %vm2730_vm6 = vcmp.eq.f32.partialorder %v2729_v14, 8.507059e+37  ;;  %v2663_v19 = vmul.f32 %v2662_v60, %v7643_v32 }
 0x336   : > { %v2721_v13 = vmul.f32 %v5686_v63, %v7645_v56  ;;  %vm2726_vm2 = vweird.f32 %v5686_v63  ;;  %v2672_v61 = vmul.f32 %v2671_v55, %v7643_v32 }
 0x337   : > { %2010 = vmatmul.bf16.gmra.mxu1 %v5487_v5  ;;  %v2580_v5 = vadd.f32 0.00028619796, %v2579_v53  ;;  %v2544_v53 = vadd.f32 0.05243302, %v2543_v29  ;;  %vm2727_vm5 = vmor %vm2725_vm3, %vm2726_vm2  ;;  %v2635_v48 = vadd.f32 0.112945676, %v2634_v37  ;;  %v2747_v29 = vmul.f32 %v2746_v21, %v7600_v16 }
 0x338   : > { %v2722_v43 = vsub.f32 1.0, %v2721_v13  ;;  %v2624_v13 = vadd.f32 0.05243302, %v2623_v31  ;;  %v2673_v4 = vadd.f32 0.014752088, %v2672_v61  ;;  %v2709_v16 = vmul.f32 %v2708_v9, %v7533_v28 }
 0x339   : > { %v2581_v3 = vmul.f32 %v2580_v5, %v7653_v2  ;;  %v2732_v5 = vor.u32 1.1754944e-38, %v2731_v0  ;;  %v2545_v17 = vmul.f32 %v2544_v53, %v7604_v39  ;;  %v2636_v56 = vmul.f32 %v2635_v48, %v7614_v30 }
 0x33a   : > { %v2723_v41 = vmul.f32 %v5686_v63, %v2722_v43  ;;  %v5688_v43 = vpop.eup %5687  ;;  %v2625_v46 = vmul.f32 %v2624_v13, %v7614_v30  ;;  %v2748_v0 = vadd.f32 1.1283791, %v2747_v29  ;;  %v2769_v21 = vand.u32 2147483647, %v7690_v12 }
 0x33b   : > { %v2761_v31 = vmul.f32 %v5688_v43, %v7690_v12  ;;  %v2771_v53 = vand.u32 2147483648, %v7690_v12  ;;  %v2674_v14 = vmul.f32 %v2673_v4, %v7643_v32  ;;  %vm2766_vm4 = vweird.f32 %v5688_v43 }
 0x33c   : > { %v2724_v50 = vadd.f32 %v5686_v63, %v2723_v41  ;;  %v2582_v41 = vadd.f32 0.0036580483, %v2581_v3  ;;  %v2626_v61 = vadd.f32 0.18741608, %v2625_v46  ;;  %v2230_v28 = vmul.f32 3.8918573e-05, %v7416_v42  ;;  %vm2767_vm8 = vmor %vm2765_vm7, %vm2766_vm4 }
 0x33d   : > { %v2675_v13 = vadd.f32 0.112945676, %v2674_v14  ;;  %v2664_v60 = vadd.f32 0.05243302, %v2663_v19  ;;  %v2749_v29 = vmul.f32 %v2748_v0, %v7577_v59  ;;  %vm2770_vm9 = vcmp.eq.f32.partialorder %v2769_v21, 8.507059e+37 }
 0x33e   : > { %v2728_v44 = vsel %vm2727_vm5, %v5686_v63, %v2724_v50  ;;  %v2762_v50 = vsub.f32 1.0, %v2761_v31  ;;  %v2637_v63 = vadd.f32 0.4994258, %v2636_v56  ;;  %v2231_v56 = vadd.f32 0.001143296, %v2230_v28 }
 0x33f   : > { %v2733_v26 = vsel %vm2730_vm6, %v2732_v5, %v2728_v44  ;;  %v2583_v44 = vmul.f32 %v2582_v41, %v7653_v2  ;;  %v2772_v5 = vor.u32 1.1754944e-38, %v2771_v53  ;;  %v2676_v31 = vmul.f32 %v2675_v13, %v7643_v32 }
 0x340   : > { %v2734_v37 = vmul.f32 %v2733_v26, %v2709_v16  ;;  %v2763_v55 = vmul.f32 %v5688_v43, %v2762_v50  ;;  %v2638_v3 = vmul.f32 %v2637_v63, %v7614_v30  ;;  %v2546_v41 = vadd.f32 0.18741608, %v2545_v17 }
 0x341   : > { %v2677_v19 = vadd.f32 0.4994258, %v2676_v31  ;;  %v2232_v16 = vmul.f32 %v2231_v56, %v7416_v42  ;;  %v7730_v12 = vmul.f32 0.5, %v7608_v18  ;;  %v2665_v59 = vmul.f32 %v2664_v60, %v7643_v32 }
 0x342   : > { %v2764_v9 = vadd.f32 %v5688_v43, %v2763_v55  ;;  %v7723_v48 = vadd.f32 1.0, %v2638_v3  ;;  %v5298_v26 = vclamps-f32 %v2734_v37, 1.0  ;;  %v2550_v63 = vmul.f32 3.8918573e-05, %v7604_v39 }
 0x343   : > { %v7735_v0 = vadd.f32 1.1283791, %v7693_v38  ;;  %v2627_v21 = vmul.f32 %v2626_v61, %v7614_v30  ;;  %v2678_v17 = vmul.f32 %v2677_v19, %v7643_v32  ;;  %v2233_v55 = vadd.f32 0.014752088, %v2232_v16 }
 0x344   : > { %v2768_v4 = vsel %vm2767_vm8, %v5688_v43, %v2764_v9  ;;  %5689 = vrcp.f32 %v7723_v48  ;;  %v2584_v43 = vadd.f32 0.05243302, %v2583_v44  ;;  %v2791_v14 = vadd.f32 1.0, %v5298_v26 }
 0x345   : > { %v2773_v46 = vsel %vm2770_vm9, %v2772_v5, %v2768_v4  ;;  %v2551_v37 = vadd.f32 0.001143296, %v2550_v63  ;;  %v2506_v3 = vadd.f32 0.18741608, %v2505_v51  ;;  %v2547_v18 = vmul.f32 %v2546_v41, %v7604_v39 }
 0x346   : > { %v2774_v50 = vmul.f32 %v2773_v46, %v2749_v29  ;;  %v2119_v13 = vmul.f32 0.5, %v7525_v35  ;;  %v7741_v28 = vadd.f32 1.0, %v2678_v17  ;;  %v2666_v9 = vadd.f32 0.18741608, %v2665_v59 }
 0x347   : > { %v2120_v38 = vmul.f32 0.5, %v7561_v20  ;;  %v2552_v30 = vmul.f32 %v2551_v37, %v7604_v39  ;;  %v2585_v61 = vmul.f32 %v2584_v43, %v7653_v2  ;;  %v2628_v29 = vadd.f32 1.1283791, %v2627_v21 }
 0x348   : > { %v5299_v53 = vclamps-f32 %v2774_v50, 1.0  ;;  %5691 = vrcp.f32 %v7741_v28  ;;  %v2807_v51 = vmul.f32 %v2791_v14, %v2119_v13  ;;  %v2234_v35 = vmul.f32 %v2233_v55, %v7416_v42 }
 0x349   : > { %v2553_v56 = vadd.f32 0.014752088, %v2552_v30  ;;  %v7750_v26 = vmul.f32 %v2506_v3, %v7580_v33  ;;  %v7752_v4 = vadd.f32 1.1283791, %v2547_v18  ;;  %v2590_v41 = vmul.f32 3.8918573e-05, %v7653_v2 }
 0x34a   : > { %v5690_v60 = vpop.eup %5689  ;;  %v2792_v44 = vadd.f32 1.0, %v5299_v53  ;;  %v2667_v46 = vmul.f32 %v2666_v9, %v7643_v32  ;;  %v2651_v16 = vand.u32 2147483648, %v7723_v48  ;;  %v2649_v63 = vand.u32 2147483647, %v7723_v48 }
 0x34b   : > { %v2641_v5 = vmul.f32 %v5690_v60, %v7723_v48  ;;  %v2554_v59 = vmul.f32 %v2553_v56, %v7604_v39  ;;  %vm2646_vm10 = vweird.f32 %v5690_v60  ;;  %v2591_v43 = vadd.f32 0.001143296, %v2590_v41 }
 0x34c   : > { %v2808_v31 = vmul.f32 %v2792_v44, %v2120_v38  ;;  %v2586_v21 = vadd.f32 0.18741608, %v2585_v61  ;;  %v2629_v17 = vmul.f32 %v2628_v29, %v7573_v62  ;;  %v2235_v14 = vadd.f32 0.112945676, %v2234_v35 }
 0x34d   : > { %v2642_v20 = vsub.f32 1.0, %v2641_v5  ;;  %v2555_v53 = vadd.f32 0.112945676, %v2554_v59  ;;  %vm2645_vm11 = vweird.f32 %v7723_v48  ;;  %v2592_v32 = vmul.f32 %v2591_v43, %v7653_v2 }
 0x34e   : > { %v2816_v19 = vpack.c.bf16 %v2808_v31, %v2807_v51  ;;  %v5692_v37 = vpop.eup %5691  ;;  %v2310_v3 = vmul.f32 3.8918573e-05, %v7461_v15  ;;  %v2668_v18 = vadd.f32 1.1283791, %v2667_v46  ;;  %vm2647_vm12 = vmor %vm2645_vm11, %vm2646_vm10  ;;  %v2652_v13 = vor.u32 1.1754944e-38, %v2651_v16 }
 0x34f   : > { %v2643_v50 = vmul.f32 %v5690_v60, %v2642_v20  ;;  %v2681_v9 = vmul.f32 %v5692_v37, %v7741_v28  ;;  %v2556_v38 = vmul.f32 %v2555_v53, %v7604_v39  ;;  %vm2650_vm13 = vcmp.eq.f32.partialorder %v2649_v63, 8.507059e+37 }
 0x350   : > { %2817 = vmatpush.bf16.msra.mxu3 %v2816_v19  ;;  %v2593_v62 = vadd.f32 0.014752088, %v2592_v32  ;;  %v2311_v30 = vadd.f32 0.001143296, %v2310_v3  ;;  %v2236_v48 = vmul.f32 %v2235_v14, %v7416_v42  ;;  %v2689_v51 = vand.u32 2147483647, %v7741_v28 }
 0x351   : > { %v2644_v55 = vadd.f32 %v5690_v60, %v2643_v50  ;;  %v2682_v29 = vsub.f32 1.0, %v2681_v9  ;;  %v2557_v5 = vadd.f32 0.4994258, %v2556_v38  ;;  %v2691_v31 = vand.u32 2147483648, %v7741_v28 }
 0x352   : > { %v2594_v56 = vmul.f32 %v2593_v62, %v7653_v2  ;;  %v2312_v35 = vmul.f32 %v2311_v30, %v7461_v15  ;;  %vm2686_vm14 = vweird.f32 %v5692_v37  ;;  %v2587_v46 = vmul.f32 %v2586_v21, %v7653_v2 }
 0x353   : > { %v2648_v44 = vsel %vm2647_vm12, %v5690_v60, %v2644_v55  ;;  %v2683_v41 = vmul.f32 %v5692_v37, %v2682_v29  ;;  %v2558_v60 = vmul.f32 %v2557_v5, %v7604_v39  ;;  %v2150_v59 = vmul.f32 3.8918573e-05, %v7453_v36 }
 0x354   : > { %v2653_v61 = vsel %vm2650_vm13, %v2652_v13, %v2648_v44  ;;  %v2595_v19 = vadd.f32 0.112945676, %v2594_v56  ;;  %v2313_v16 = vadd.f32 0.014752088, %v2312_v35  ;;  %vm2685_vm15 = vweird.f32 %v7741_v28 }
 0x355   : > { %v2654_v20 = vmul.f32 %v2653_v61, %v2629_v17  ;;  %v2684_v50 = vadd.f32 %v5692_v37, %v2683_v41  ;;  %v7774_v63 = vadd.f32 1.0, %v2558_v60  ;;  %v2237_v43 = vadd.f32 0.4994258, %v2236_v48  ;;  %vm2687_vm0 = vmor %vm2685_vm15, %vm2686_vm14 }
 0x356   : > { %v2669_v53 = vmul.f32 %v2668_v18, %v7617_v34  ;;  %v2692_v17 = vor.u32 1.1754944e-38, %v2691_v31  ;;  %v2596_v14 = vmul.f32 %v2595_v19, %v7653_v2  ;;  %v2314_v39 = vmul.f32 %v2313_v16, %v7461_v15 }
 0x357   : > { %v5296_v55 = vclamps-f32 %v2654_v20, 1.0  ;;  %v2688_v21 = vsel %vm2687_vm0, %v5692_v37, %v2684_v50  ;;  %vm2690_vm1 = vcmp.eq.f32.partialorder %v2689_v51, 8.507059e+37  ;;  %5693 = vrcp.f32 %v7774_v63 }
 0x358   : > { %v2588_v32 = vadd.f32 1.1283791, %v2587_v46  ;;  %v2693_v3 = vsel %vm2690_vm1, %v2692_v17, %v2688_v21  ;;  %v2597_v13 = vadd.f32 0.4994258, %v2596_v14  ;;  %v2151_v28 = vadd.f32 0.001143296, %v2150_v59 }
 0x359   : > { %v2694_v9 = vmul.f32 %v2693_v3, %v2669_v53  ;;  %v2470_v38 = vmul.f32 3.8918573e-05, %v7518_v22  ;;  %v2315_v44 = vadd.f32 0.112945676, %v2314_v39  ;;  %v2238_v34 = vmul.f32 %v2237_v43, %v7416_v42 }
 0x35a   : > { %v2117_v18 = vmul.f32 0.5, %v7548_v49  ;;  %v2118_v62 = vmul.f32 0.5, %v7596_v6  ;;  %v2598_v30 = vmul.f32 %v2597_v13, %v7653_v2  ;;  %v2270_v37 = vmul.f32 3.8918573e-05, %v7459_v11 }
 0x35b   : > { %v5297_v61 = vclamps-f32 %v2694_v9, 1.0  ;;  %v2789_v29 = vadd.f32 1.0, %v5296_v55  ;;  %v2471_v5 = vadd.f32 0.001143296, %v2470_v38  ;;  %v2316_v48 = vmul.f32 %v2315_v44, %v7461_v15 }
 0x35c   : > { %v2549_v51 = vmul.f32 %v7752_v4, %v7557_v24  ;;  %v7790_v31 = vmul.f32 %v2588_v32, %v7625_v1  ;;  %v7792_v42 = vadd.f32 1.0, %v2598_v30  ;;  %v7795_v49 = vmul.f32 %v2151_v28, %v7453_v36 }
 0x35d   : > { %v5694_v6 = vpop.eup %5693  ;;  %v2790_v2 = vadd.f32 1.0, %v5297_v61  ;;  %v2472_v56 = vmul.f32 %v2471_v5, %v7518_v22  ;;  %v2317_v35 = vadd.f32 0.4994258, %v2316_v48  ;;  %v7798_v20 = vadd.f32 1.0, %v2238_v34 }
 0x35e   : > { %v2561_v41 = vmul.f32 %v5694_v6, %v7774_v63  ;;  %v2569_v60 = vand.u32 2147483647, %v7774_v63  ;;  %5695 = vrcp.f32 %v7792_v42  ;;  %v2271_v24 = vadd.f32 0.001143296, %v2270_v37 }
 0x35f   : > { %v2805_v1 = vmul.f32 %v2789_v29, %v2117_v18  ;;  %v2806_v4 = vmul.f32 %v2790_v2, %v2118_v62  ;;  %v2571_v46 = vand.u32 2147483648, %v7774_v63  ;;  %v2473_v19 = vadd.f32 0.014752088, %v2472_v56 }
 0x360   : > { %v2562_v16 = vsub.f32 1.0, %v2561_v41  ;;  %v2510_v59 = vmul.f32 3.8918573e-05, %v7580_v33  ;;  %v2390_v50 = vmul.f32 3.8918573e-05, %v7486_v8  ;;  %v2318_v43 = vmul.f32 %v2317_v35, %v7461_v15 }
 0x361   : > { %v2815_v53 = vpack.c.bf16 %v2806_v4, %v2805_v1  ;;  %v2474_v17 = vmul.f32 %v2473_v19, %v7518_v22  ;;  %v2350_v14 = vmul.f32 3.8918573e-05, %v7482_v57  ;;  %5697 = vrcp.f32 %v7798_v20 }
 0x362   : > { %v2563_v39 = vmul.f32 %v5694_v6, %v2562_v16  ;;  %vm2566_vm2 = vweird.f32 %v5694_v6  ;;  %v2511_v55 = vadd.f32 0.001143296, %v2510_v59  ;;  %v2391_v21 = vadd.f32 0.001143296, %v2390_v50 }
 0x363   : > { %2818 = vmatpush.bf16.msra.mxu3 %v2815_v53  ;;  %vm2565_vm3 = vweird.f32 %v7774_v63  ;;  %vm7811_vm5 = vcmp.eq.f32.partialorder %v2569_v60, 8.507059e+37  ;;  %v2572_v3 = vor.u32 1.1754944e-38, %v2571_v46  ;;  %v2475_v15 = vadd.f32 0.112945676, %v2474_v17 }
 0x364   : > { %v5696_v13 = vpop.eup %5695  ;;  %v2564_v28 = vadd.f32 %v5694_v6, %v2563_v39  ;;  %v2512_v9 = vmul.f32 %v2511_v55, %v7580_v33  ;;  %v2392_v38 = vmul.f32 %v2391_v21, %v7486_v8  ;;  %v7817_v44 = vadd.f32 1.0, %v2318_v43  ;;  %vm2567_vm6 = vmor %vm2565_vm3, %vm2566_vm2 }
 0x365   : > { %v2601_v34 = vmul.f32 %v5696_v13, %v7792_v42  ;;  %v2609_v18 = vand.u32 2147483647, %v7792_v42  ;;  %v2476_v63 = vmul.f32 %v2475_v15, %v7518_v22  ;;  %v2351_v62 = vadd.f32 0.001143296, %v2350_v14 }
 0x366   : > { %v2568_v30 = vsel %vm2567_vm6, %v5694_v6, %v2564_v28  ;;  %v2513_v37 = vadd.f32 0.014752088, %v2512_v9  ;;  %v2393_v61 = vadd.f32 0.014752088, %v2392_v38  ;;  %v2430_v29 = vmul.f32 3.8918573e-05, %v7495_v27 }
 0x367   : > { %v7823_v5 = vpop.eup %5697  ;;  %v2573_v48 = vsel %vm7811_vm5, %v2572_v3, %v2568_v30  ;;  %v2602_v2 = vsub.f32 1.0, %v2601_v34  ;;  %v2611_v56 = vand.u32 2147483648, %v7792_v42  ;;  %v2477_v35 = vadd.f32 0.4994258, %v2476_v63 }
 0x368   : > { %v2514_v41 = vmul.f32 %v2513_v37, %v7580_v33  ;;  %v2394_v60 = vmul.f32 %v2393_v61, %v7486_v8  ;;  %v2431_v1 = vadd.f32 0.001143296, %v2430_v29  ;;  %5699 = vrcp.f32 %v7817_v44 }
 0x369   : > { %v2574_v6 = vmul.f32 %v2573_v48, %v2549_v51  ;;  %v2603_v4 = vmul.f32 %v5696_v13, %v2602_v2  ;;  %vm2606_vm4 = vweird.f32 %v5696_v13  ;;  %v2478_v46 = vmul.f32 %v2477_v35, %v7518_v22 }
 0x36a   : > { %v2515_v19 = vadd.f32 0.112945676, %v2514_v41  ;;  %v2395_v16 = vadd.f32 0.112945676, %v2394_v60  ;;  %v2432_v59 = vmul.f32 %v2431_v1, %v7495_v27  ;;  %v2272_v50 = vmul.f32 %v2271_v24, %v7459_v11 }
 0x36b   : > { %v2604_v43 = vadd.f32 %v5696_v13, %v2603_v4  ;;  %vm2605_vm7 = vweird.f32 %v7792_v42  ;;  %v7835_v53 = vadd.f32 1.0, %v2478_v46  ;;  %v2352_v17 = vmul.f32 %v2351_v62, %v7482_v57 }
 0x36c   : > { %vm2607_vm8 = vmor %vm2605_vm7, %vm2606_vm4  ;;  %v2612_v14 = vor.u32 1.1754944e-38, %v2611_v56  ;;  %v2516_v51 = vmul.f32 %v2515_v19, %v7580_v33  ;;  %v2396_v39 = vmul.f32 %v2395_v16, %v7486_v8  ;;  %v2433_v22 = vadd.f32 0.014752088, %v2432_v59 }
 0x36d   : > { %v5294_v55 = vclamps-f32 %v2574_v6, 1.0  ;;  %v2608_v21 = vsel %vm2607_vm8, %v5696_v13, %v2604_v43  ;;  %vm2610_vm9 = vcmp.eq.f32.partialorder %v2609_v18, 8.507059e+37  ;;  %5701 = vrcp.f32 %v7835_v53 }
 0x36e   : > { %v7841_v24 = vpop.eup %5699  ;;  %v2508_v42 = vadd.f32 1.1283791, %v7750_v26  ;;  %v2613_v32 = vsel %vm2610_vm9, %v2612_v14, %v2608_v21  ;;  %v2517_v3 = vadd.f32 0.4994258, %v2516_v51  ;;  %v2273_v15 = vadd.f32 0.014752088, %v2272_v50 }
 0x36f   : > { %v2614_v28 = vmul.f32 %v2613_v32, %v7790_v31  ;;  %v2397_v9 = vadd.f32 0.4994258, %v2396_v39  ;;  %v2434_v38 = vmul.f32 %v2433_v22, %v7495_v27  ;;  %v2353_v34 = vadd.f32 0.014752088, %v2352_v17 }
 0x370   : > { %v7848_v63 = vmul.f32 %v7735_v0, %v7499_v10  ;;  %v2518_v13 = vmul.f32 %v2517_v3, %v7580_v33  ;;  %v2241_v18 = vmul.f32 %v7823_v5, %v7798_v20  ;;  %v2153_v26 = vadd.f32 0.014752088, %v7795_v49 }
 0x371   : > { %v5295_v62 = vclamps-f32 %v2614_v28, 1.0  ;;  %v2787_v30 = vadd.f32 1.0, %v5294_v55  ;;  %v2398_v37 = vmul.f32 %v2397_v9, %v7486_v8  ;;  %v2435_v31 = vadd.f32 0.112945676, %v2434_v38 }
 0x372   : > { %v7856_v61 = vmul.f32 %v2508_v42, %v7537_v58  ;;  %v7858_v29 = vadd.f32 1.0, %v2518_v13  ;;  %v2321_v10 = vmul.f32 %v7841_v24, %v7817_v44  ;;  %v2274_v33 = vmul.f32 %v2273_v15, %v7459_v11  ;;  %v7892_v15 = vpop.permute.xlu1 %1925 }
 0x373   : > { %v5702_v0 = vpop.eup %5701  ;;  %v2788_v48 = vadd.f32 1.0, %v5295_v62  ;;  %v7863_v2 = vadd.f32 1.0, %v2398_v37  ;;  %v2436_v49 = vmul.f32 %v2435_v31, %v7495_v27  ;;  %v2354_v56 = vmul.f32 %v2353_v34, %v7482_v57  ;;  %v5813_v37 = vld [vmem:[%s6182_s17] sm:$0xff] }
 0x374   : > { %v2481_v8 = vmul.f32 %v5702_v0, %v7835_v53  ;;  %5703 = vrcp.f32 %v7858_v29  ;;  %v2242_v58 = vsub.f32 1.0, %v2241_v18  ;;  %v7870_v35 = vmul.f32 %v2153_v26, %v7453_v36 }
 0x375   : > { %v2803_v41 = vmul.f32 %v2787_v30, %v7686_v47  ;;  %v2804_v60 = vmul.f32 %v2788_v48, %v7730_v12  ;;  %v2489_v1 = vand.u32 2147483647, %v7835_v53  ;;  %5705 = vrcp.f32 %v7863_v2 }
 0x376   : > { %v2482_v6 = vsub.f32 1.0, %v2481_v8  ;;  %v2491_v4 = vand.u32 2147483648, %v7835_v53  ;;  %v2322_v46 = vsub.f32 1.0, %v2321_v10  ;;  %v2249_v19 = vand.u32 2147483647, %v7798_v20 }
 0x377   : > { %v2814_v16 = vpack.c.bf16 %v2804_v60, %v2803_v41  ;;  %v2437_v59 = vadd.f32 0.4994258, %v2436_v49  ;;  %v2355_v50 = vadd.f32 0.112945676, %v2354_v56  ;;  %v2251_v43 = vand.u32 2147483648, %v7798_v20 }
 0x378   : > { %v2483_v17 = vmul.f32 %v5702_v0, %v2482_v6  ;;  %vm2486_vm10 = vweird.f32 %v5702_v0  ;;  %v2329_v47 = vand.u32 2147483647, %v7817_v44  ;;  %v7881_v12 = vmul.f32 %v7823_v5, %v2242_v58 }
 0x379   : > { %2819 = vmatpush.bf16.msra.mxu3 %v2814_v16  ;;  %vm2485_vm11 = vweird.f32 %v7835_v53  ;;  %vm7884_vm12 = vcmp.eq.f32.partialorder %v2489_v1, 8.507059e+37  ;;  %v2438_v51 = vmul.f32 %v2437_v59, %v7495_v27  ;;  %v2331_v39 = vand.u32 2147483648, %v7817_v44 }
 0x37a   : > { %v5704_v22 = vpop.eup %5703  ;;  %v2484_v55 = vadd.f32 %v5702_v0, %v2483_v17  ;;  %v2492_v21 = vor.u32 1.1754944e-38, %v2491_v4  ;;  %v2323_v42 = vmul.f32 %v7841_v24, %v2322_v46  ;;  %vm2326_vm13 = vweird.f32 %v7841_v24  ;;  %vm2487_vm14 = vmor %vm2485_vm11, %vm2486_vm10 }
 0x37b   : > { %v2275_v32 = vadd.f32 0.112945676, %v2274_v33  ;;  %v5706_v3 = vpop.eup %5705  ;;  %v2521_v53 = vmul.f32 %v5704_v22, %v7858_v29  ;;  %vm2525_vm15 = vweird.f32 %v7858_v29  ;;  %v7897_v28 = vadd.f32 1.0, %v2438_v51 }
 0x37c   : > { %v2356_v9 = vmul.f32 %v2355_v50, %v7482_v57  ;;  %v2488_v38 = vsel %vm2487_vm14, %v5702_v0, %v2484_v55  ;;  %v2529_v34 = vand.u32 2147483647, %v7858_v29  ;;  %v2401_v18 = vmul.f32 %v5706_v3, %v7863_v2 }
 0x37d   : > { %vm2325_vm0 = vweird.f32 %v7817_v44  ;;  %v2493_v26 = vsel %vm7884_vm12, %v2492_v21, %v2488_v38  ;;  %v2522_v62 = vsub.f32 1.0, %v2521_v53  ;;  %v2531_v30 = vand.u32 2147483648, %v7858_v29 }
 0x37e   : > { %5707 = vrcp.f32 %v7897_v28  ;;  %v2402_v10 = vsub.f32 1.0, %v2401_v18  ;;  %v2409_v33 = vand.u32 2147483647, %v7863_v2  ;;  %v2411_v0 = vand.u32 2147483648, %v7863_v2  ;;  %vm7945_vm11 = vmor %vm2325_vm0, %vm2326_vm13 }
 0x37f   : > { %v2494_v48 = vmul.f32 %v2493_v26, %v7848_v63  ;;  %v2523_v49 = vmul.f32 %v5704_v22, %v2522_v62  ;;  %vm2526_vm1 = vweird.f32 %v5704_v22  ;;  %v2357_v56 = vadd.f32 0.4994258, %v2356_v9 }
 0x380   : > { %v2403_v8 = vmul.f32 %v5706_v3, %v2402_v10  ;;  %vm2405_vm2 = vweird.f32 %v7863_v2  ;;  %vm2406_vm3 = vweird.f32 %v5706_v3  ;;  %vm7915_vm5 = vcmp.eq.f32.partialorder %v2329_v47, 8.507059e+37  ;;  %vm2527_vm4 = vmor %vm2525_vm15, %vm2526_vm1  ;;  %v10389_v2 = vld [vmem:[#allocation57_spill] sm:$0xff] }
 0x381   : > { %v2276_v41 = vmul.f32 %v2275_v32, %v7459_v11  ;;  %v2524_v60 = vadd.f32 %v5704_v22, %v2523_v49  ;;  %vm2530_vm6 = vcmp.eq.f32.partialorder %v2529_v34, 8.507059e+37  ;;  %v2532_v1 = vor.u32 1.1754944e-38, %v2531_v30  ;;  %vm2407_vm9 = vmor %vm2405_vm2, %vm2406_vm3  ;;  %v7952_v32 = vpop.permute.xlu0 %1930  ;;  %v5814_v30 = vld [vmem:[%s6182_s17 + $0x8] sm:$0xff] }
 0x382   : > { %v2358_v63 = vmul.f32 %v2357_v56, %v7482_v57  ;;  %v2404_v6 = vadd.f32 %v5706_v3, %v2403_v8  ;;  %vm7924_vm7 = vcmp.eq.f32.partialorder %v2409_v33, 8.507059e+37  ;;  %v2412_v46 = vor.u32 1.1754944e-38, %v2411_v0 }
 0x383   : > { %v2324_v16 = vadd.f32 %v7841_v24, %v2323_v42  ;;  %vm2246_vm8 = vweird.f32 %v7823_v5  ;;  %v5292_v50 = vclamps-f32 %v2494_v48, 1.0  ;;  %v2528_v17 = vsel %vm2527_vm4, %v5704_v22, %v2524_v60 }
 0x384   : > { %v1996_v27 = vpop.f32.mrf.mxu1  ;;  %v5708_v59 = vpop.eup %5707  ;;  %v7933_v57 = vadd.f32 1.0, %v2358_v63  ;;  %v2155_v29 = vadd.f32 0.112945676, %v7870_v35  ;;  %v2533_v47 = vsel %vm2530_vm6, %v2532_v1, %v2528_v17  ;;  %v2408_v14 = vsel %vm2407_vm9, %v5706_v3, %v2404_v6 }
 0x385   : > { %v1997_v13 = vadd.f32 %v1996_v27, %v7892_v15  ;;  %v2441_v51 = vmul.f32 %v5708_v59, %v7897_v28  ;;  %vm2245_vm10 = vweird.f32 %v7798_v20  ;;  %v2277_v21 = vadd.f32 0.4994258, %v2276_v41 }
 0x386   : > { %v2534_v42 = vmul.f32 %v2533_v47, %v7856_v61  ;;  %v2413_v22 = vsel %vm7924_vm7, %v2412_v46, %v2408_v14  ;;  %v2332_v35 = vor.u32 1.1754944e-38, %v2331_v39  ;;  %5709 = vrcp.f32 %v7933_v57  ;;  %vm7982_vm0 = vmor %vm2245_vm10, %vm2246_vm8 }
 0x387   : > { %v7909_v31 = vadd.f32 %v5813_v37, %v1997_v13  ;;  %v2442_v61 = vsub.f32 1.0, %v2441_v51  ;;  %v2449_v3 = vand.u32 2147483647, %v7897_v28  ;;  %v2451_v53 = vand.u32 2147483648, %v7897_v28 }
 0x388   : > { %v2328_v27 = vsel %vm7945_vm11, %v7841_v24, %v2324_v16  ;;  %v5293_v9 = vclamps-f32 %v2534_v42, 1.0  ;;  %v2785_v38 = vadd.f32 1.0, %v5292_v50  ;;  %v2156_v44 = vmul.f32 %v2155_v29, %v7453_v36 }
 0x389   : > { %10378 = vst [vmem:[#allocation58_spill] sm:$0xff] %v7909_v31  ;;  %2879 = vadd.xlane.f32.xlu2 %v7909_v31  ;;  %v2414_v39 = vmul.f32 %v2413_v22, %v7673_v7  ;;  %v2443_v13 = vmul.f32 %v5708_v59, %v2442_v61  ;;  %vm2446_vm12 = vweird.f32 %v5708_v59  ;;  %v2278_v18 = vmul.f32 %v2277_v21, %v7459_v11 }
 0x38a   : > { %v2786_v26 = vadd.f32 1.0, %v5293_v9  ;;  %v2333_v62 = vsel %vm7915_vm5, %v2332_v35, %v2328_v27  ;;  %v2244_v24 = vadd.f32 %v7823_v5, %v7881_v12  ;;  %vm2445_vm13 = vweird.f32 %v7897_v28  ;;  %v10390_v35 = vld [vmem:[#allocation45_spill] sm:$0xff]  ;;  %v10392_v9 = vld [vmem:[#allocation40_spill] sm:$0xff] }
 0x38b   : > { %v2444_v10 = vadd.f32 %v5708_v59, %v2443_v13  ;;  %v2452_v33 = vor.u32 1.1754944e-38, %v2451_v53  ;;  %v7971_v0 = vadd.f32 1.0, %v2278_v18  ;;  %v2801_v48 = vmul.f32 %v2785_v38, %v7665_v52  ;;  %vm2447_vm14 = vmor %vm2445_vm13, %vm2446_vm12 }
 0x38c   : > { %v1998_v55 = vpop.f32.mrf.mxu1  ;;  %v5710_v7 = vpop.eup %5709  ;;  %v2802_v11 = vmul.f32 %v2786_v26, %v7678_v40  ;;  %v2157_v49 = vadd.f32 0.4994258, %v2156_v44  ;;  %v2190_v56 = vmul.f32 3.8918573e-05, %v7504_v25  ;;  %v5290_v8 = vclamps-f32 %v2414_v39, 1.0  ;;  %v10393_v44 = vld [vmem:[#allocation46_spill] sm:$0xff] }
 0x38d   : > { %v1999_v34 = vadd.f32 %v1998_v55, %v7952_v32  ;;  %v2448_v58 = vsel %vm2447_vm14, %v5708_v59, %v2444_v10  ;;  %vm2450_vm15 = vcmp.eq.f32.partialorder %v2449_v3, 8.507059e+37  ;;  %v2361_v12 = vmul.f32 %v5710_v7, %v7933_v57  ;;  %v10391_v3 = vld [vmem:[#allocation51_spill] sm:$0xff] }
 0x38e   : > { %v2813_v28 = vpack.c.bf16 %v2802_v11, %v2801_v48  ;;  %v2453_v41 = vsel %vm2450_vm15, %v2452_v33, %v2448_v58  ;;  %v2252_v40 = vor.u32 1.1754944e-38, %v2251_v43  ;;  %5711 = vrcp.f32 %v7971_v0  ;;  %v10394_v48 = vld [vmem:[#allocation44_spill] sm:$0xff] }
 0x38f   : > { %v7966_v37 = vadd.f32 %v5814_v30, %v1999_v34  ;;  %v2454_v60 = vmul.f32 %v2453_v41, %v7683_v54  ;;  %v2334_v1 = vmul.f32 %v2333_v62, %v7657_v23  ;;  %v2362_v63 = vsub.f32 1.0, %v2361_v12 }
 0x390   : > { %v2248_v6 = vsel %vm7982_vm0, %v7823_v5, %v2244_v24  ;;  %2820 = vmatpush.bf16.msra.mxu3 %v2813_v28  ;;  %v2369_v4 = vand.u32 2147483647, %v7933_v57  ;;  %v2371_v46 = vand.u32 2147483648, %v7933_v57  ;;  %v2158_v16 = vmul.f32 %v2157_v49, %v7453_v36  ;;  %v10395_v49 = vld [vmem:[#allocation38_spill] sm:$0xff] }
 0x391   : > { %10385 = vst [vmem:[#allocation42_spill] sm:$0xff] %v7966_v37  ;;  %2881 = vadd.xlane.f32.xlu1 %v7966_v37  ;;  %v2191_v59 = vadd.f32 0.001143296, %v2190_v56  ;;  %v5291_v43 = vclamps-f32 %v2454_v60, 1.0  ;;  %v2783_v50 = vadd.f32 1.0, %v5290_v8  ;;  %v2363_v17 = vmul.f32 %v5710_v7, %v2362_v63  ;;  %v10396_v8 = vld [vmem:[#allocation49_spill] sm:$0xff] }
 0x392   : > { %vm2366_vm1 = vweird.f32 %v5710_v7  ;;  %v2112_v54 = vmul.f32 0.5, %v7448_v45  ;;  %vm2250_vm2 = vcmp.eq.f32.partialorder %v2249_v19, 8.507059e+37  ;;  %v8000_v23 = vadd.f32 1.0, %v2158_v16  ;;  %v10388_v45 = vld [vmem:[#allocation50_spill] sm:$0xff] }
 0x393   : > { %v2192_v5 = vmul.f32 %v2191_v59, %v7504_v25  ;;  %v2784_v29 = vadd.f32 1.0, %v5291_v43  ;;  %v2364_v47 = vadd.f32 %v5710_v7, %v2363_v17  ;;  %vm2365_vm3 = vweird.f32 %v7933_v57 }
 0x394   : > { %v2253_v14 = vsel %vm2250_vm2, %v2252_v40, %v2248_v6  ;;  %v5712_v51 = vpop.eup %5711  ;;  %v5288_v55 = vclamps-f32 %v2334_v1, 1.0  ;;  %vm2367_vm5 = vmor %vm2365_vm3, %vm2366_vm1  ;;  %vm2370_vm6 = vcmp.eq.f32.partialorder %v2369_v4, 8.507059e+37  ;;  %v2372_v21 = vor.u32 1.1754944e-38, %v2371_v46 }
 0x395   : > { %5713 = vrcp.f32 %v8000_v23  ;;  %v2799_v42 = vmul.f32 %v2783_v50, %v10388_v45  ;;  %v2800_v20 = vmul.f32 %v2784_v29, %v2112_v54  ;;  %v2368_v19 = vsel %vm2367_vm5, %v5710_v7, %v2364_v47  ;;  %v10397_v54 = vld [vmem:[#allocation54_spill] sm:$0xff] }
 0x396   : > { %v2281_v22 = vmul.f32 %v5712_v51, %v7971_v0  ;;  %v2229_v61 = vmul.f32 %v10390_v35, %v10389_v2  ;;  %v2268_v53 = vadd.f32 1.1283791, %v10391_v3  ;;  %v2373_v57 = vsel %vm2370_vm6, %v2372_v21, %v2368_v19  ;;  %v10398_v21 = vld [vmem:[#allocation55_spill] sm:$0xff]  ;;  %v10399_v19 = vld [vmem:[#allocation52_spill] sm:$0xff] }
 0x397   : > { %v2193_v27 = vadd.f32 0.014752088, %v2192_v5  ;;  %v2183_v38 = vmul.f32 %v10392_v9, %v7504_v25  ;;  %v2812_v34 = vpack.c.bf16 %v2800_v20, %v2799_v42  ;;  %v2374_v39 = vmul.f32 %v2373_v57, %v10393_v44  ;;  %v2001_v20 = vpop.f32.mrf.mxu1 }
 0x398   : > { %v2282_v13 = vsub.f32 1.0, %v2281_v22  ;;  %v2781_v18 = vadd.f32 1.0, %v5288_v55  ;;  %v2254_v26 = vmul.f32 %v2253_v14, %v2229_v61  ;;  %v2291_v62 = vand.u32 2147483648, %v7971_v0  ;;  %v8028_v55 = vpop.permute.xlu2 %1935 }
 0x399   : > { %v2194_v30 = vmul.f32 %v2193_v27, %v7504_v25  ;;  %2821 = vmatpush.bf16.msra.mxu3 %v2812_v34  ;;  %v5289_v24 = vclamps-f32 %v2374_v39, 1.0  ;;  %vm2286_vm4 = vweird.f32 %v5712_v51  ;;  %v2289_v33 = vand.u32 2147483647, %v7971_v0  ;;  %v5815_v27 = vld [vmem:[%s6182_s17 + $0x10] sm:$0xff] }
 0x39a   : > { %v2283_v10 = vmul.f32 %v5712_v51, %v2282_v13  ;;  %v2269_v11 = vmul.f32 %v2268_v53, %v10394_v48  ;;  %v2109_v56 = vmul.f32 0.5, %v10395_v49  ;;  %v2110_v58 = vmul.f32 0.5, %v10396_v8  ;;  %v10401_v48 = vld [vmem:[#allocation53_spill] sm:$0xff] }
 0x39b   : > { %v8016_v7 = vpop.eup %5713  ;;  %v2195_v12 = vadd.f32 0.112945676, %v2194_v30  ;;  %v2782_v28 = vadd.f32 1.0, %v5289_v24  ;;  %vm2285_vm7 = vweird.f32 %v7971_v0  ;;  %v5286_v60 = vclamps-f32 %v2254_v26, 1.0  ;;  %v8045_v26 = vpop.permute.xlu1 %1940 }
 0x39c   : > { %v2284_v41 = vadd.f32 %v5712_v51, %v2283_v10  ;;  %v2161_v52 = vmul.f32 %v8016_v7, %v8000_v23  ;;  %v2797_v40 = vmul.f32 %v2781_v18, %v2109_v56  ;;  %vm2287_vm8 = vmor %vm2285_vm7, %vm2286_vm4  ;;  %v2292_v1 = vor.u32 1.1754944e-38, %v2291_v62  ;;  %v5816_v56 = vld [vmem:[%s6182_s17 + $0x18] sm:$0xff] }
 0x39d   : > { %v2196_v63 = vmul.f32 %v2195_v12, %v7504_v25  ;;  %v2798_v6 = vmul.f32 %v2782_v28, %v2110_v58  ;;  %vm2290_vm9 = vcmp.eq.f32.partialorder %v2289_v33, 8.507059e+37  ;;  %v2184_v16 = vadd.f32 0.05243302, %v2183_v38 }
 0x39e   : > { %v2288_v4 = vsel %vm2287_vm8, %v5712_v51, %v2284_v41  ;;  %v2162_v46 = vsub.f32 1.0, %v2161_v52  ;;  %v2146_v0 = vadd.f32 0.18741608, %v10397_v54  ;;  %v2779_v5 = vadd.f32 1.0, %v5286_v60  ;;  %v8054_v52 = vpop.permute.xlu0 %1945 }
 0x39f   : > { %v2293_v59 = vsel %vm2290_vm9, %v2292_v1, %v2288_v4  ;;  %v2197_v43 = vadd.f32 0.4994258, %v2196_v63  ;;  %v2811_v50 = vpack.c.bf16 %v2798_v6, %v2797_v40  ;;  %v2185_v51 = vmul.f32 %v2184_v16, %v7504_v25  ;;  %v2003_v24 = vpop.f32.mrf.mxu1  ;;  %v10403_v40 = vld [vmem:[#allocation59_spill] sm:$0xff] }
 0x3a0   : > { %v2294_v17 = vmul.f32 %v2293_v59, %v2269_v11  ;;  %v2163_v14 = vmul.f32 %v8016_v7, %v2162_v46  ;;  %v2107_v45 = vmul.f32 0.5, %v10398_v21  ;;  %v2108_v22 = vmul.f32 0.5, %v10399_v19 }
 0x3a1   : > { %v2198_v29 = vmul.f32 %v2197_v43, %v7504_v25  ;;  %2822 = vmatpush.bf16.msra.mxu3 %v2811_v50  ;;  %v2002_v35 = vadd.f32 %v2001_v20, %v8028_v55  ;;  %v2147_v61 = vmul.f32 %v2146_v0, %v7453_v36  ;;  %vm2166_vm10 = vweird.f32 %v8016_v7  ;;  %v5817_v43 = vld [vmem:[%s6182_s17 + $0x20] sm:$0xff] }
 0x3a2   : > { %v5287_v47 = vclamps-f32 %v2294_v17, 1.0  ;;  %v2795_v3 = vmul.f32 %v2779_v5, %v2107_v45  ;;  %v2164_v57 = vadd.f32 %v8016_v7, %v2163_v14  ;;  %v2186_v38 = vadd.f32 0.18741608, %v2185_v51  ;;  %v10405_v0 = vld [vmem:[#allocation48_spill] sm:$0xff]  ;;  %v8064_v51 = vpop.permute.xlu2 %1950 }
 0x3a3   : > { %v2199_v42 = vadd.f32 1.0, %v2198_v29  ;;  %v8038_v9 = vadd.f32 %v5815_v27, %v2002_v35  ;;  %v2171_v34 = vand.u32 2147483648, %v8000_v23  ;;  %vm2165_vm11 = vweird.f32 %v8000_v23  ;;  %v10406_v29 = vld [vmem:[#allocation60_spill] sm:$0xff]  ;;  %v8071_v35 = vpop.permute.xlu1 %1955 }
 0x3a4   : > { %v2780_v2 = vadd.f32 1.0, %v5287_v47  ;;  %v2169_v39 = vand.u32 2147483647, %v8000_v23  ;;  %vm2167_vm12 = vmor %vm2165_vm11, %vm2166_vm10  ;;  %v2148_v36 = vadd.f32 1.1283791, %v2147_v61  ;;  %v2187_v62 = vmul.f32 %v2186_v38, %v7504_v25  ;;  %v5819_v61 = vld [vmem:[%s10120_s5] sm:$0xff] }
 0x3a5   : > { %5715 = vrcp.f32 %v2199_v42  ;;  %10400 = vst [vmem:[#allocation56_spill] sm:$0xff] %v8038_v9  ;;  %2883 = vadd.xlane.f32.xlu0 %v8038_v9  ;;  %v2168_v13 = vsel %vm2167_vm12, %v8016_v7, %v2164_v57  ;;  %v2172_v30 = vor.u32 1.1754944e-38, %v2171_v34  ;;  %v2004_v33 = vadd.f32 %v2003_v24, %v8045_v26  ;;  %v5820_v57 = vld [vmem:[%s6182_s17 + $0x30] sm:$0xff]  ;;  %v5821_v38 = vld [vmem:[%s10120_s5 + $0x8] sm:$0xff] }
 0x3a6   : > { %v2796_v53 = vmul.f32 %v2780_v2, %v2108_v22  ;;  %vm2170_vm13 = vcmp.eq.f32.partialorder %v2169_v39, 8.507059e+37  ;;  %v2149_v11 = vmul.f32 %v2148_v36, %v10401_v48  ;;  %v2188_v58 = vadd.f32 1.1283791, %v2187_v62  ;;  %v5818_v22 = vld [vmem:[%s6182_s17 + $0x28] sm:$0xff]  ;;  %v5822_v34 = vld [vmem:[%s10120_s5 + $0x10] sm:$0xff]  ;;  %v8096_v24 = vpop.permute.xlu0 %1960  ;;  %v5824_v48 = vld [vmem:[%s6182_s17 + $0x38] sm:$0xff] }
 0x3a7   : > { %v2173_v23 = vsel %vm2170_vm13, %v2172_v30, %v2168_v13  ;;  %v8051_v8 = vadd.f32 %v5816_v56, %v2004_v33  ;;  %v2211_v7 = vand.u32 2147483648, %v2199_v42  ;;  %v2209_v25 = vand.u32 2147483647, %v2199_v42  ;;  %v2006_v63 = vpop.f32.mrf.mxu1  ;;  %v10409_v36 = vld [vmem:[#allocation17_spill] sm:$0xff] }
 0x3a8   : > { %v2810_v44 = vpack.c.bf16 %v2796_v53, %v2795_v3  ;;  %v2174_v12 = vmul.f32 %v2173_v23, %v2149_v11  ;;  %vm2205_vm15 = vweird.f32 %v2199_v42  ;;  %v2189_v60 = vmul.f32 %v2188_v58, %v10403_v40 }
 0x3a9   : > { %10402 = vst [vmem:[#allocation34_spill] sm:$0xff] %v8051_v8  ;;  %2885 = vadd.xlane.f32.xlu2 %v8051_v8  ;;  %v2212_v1 = vor.u32 1.1754944e-38, %v2211_v7  ;;  %vm2210_vm1 = vcmp.eq.f32.partialorder %v2209_v25, 8.507059e+37  ;;  %v2007_v46 = vadd.f32 %v2006_v63, %v8054_v52  ;;  %v2105_v5 = vmul.f32 0.5, %v10405_v0 }
 0x3aa   : > { %2823 = vmatpush.bf16.msra.mxu3 %v2810_v44  ;;  %v5284_v6 = vclamps-f32 %v2174_v12, 1.0  ;;  %v2106_v47 = vmul.f32 0.5, %v10406_v29  ;;  %v5823_v44 = vld [vmem:[%s10120_s5 + $0x18] sm:$0xff] }
 0x3ab   : > { %v5716_v18 = vpop.eup %5715  ;;  %v8059_v50 = vadd.f32 %v5817_v43, %v2007_v46 }
 0x3ac   : > { %v2201_v10 = vmul.f32 %v5716_v18, %v2199_v42  ;;  %vm2206_vm14 = vweird.f32 %v5716_v18  ;;  %v2777_v54 = vadd.f32 1.0, %v5284_v6 }
 0x3ad   : > { %vm2207_vm0 = vmor %vm2205_vm15, %vm2206_vm14  ;;  %10404 = vst [vmem:[#allocation47_spill] sm:$0xff] %v8059_v50  ;;  %2887 = vadd.xlane.f32.xlu1 %v8059_v50 }
 0x3ae   : > { %v2202_v49 = vsub.f32 1.0, %v2201_v10  ;;  %v2793_v45 = vmul.f32 %v2777_v54, %v2105_v5 }
 0x3af   : > { %v2008_v21 = vpop.f32.mrf.mxu1 }
 0x3b0   : > { %v2203_v28 = vmul.f32 %v5716_v18, %v2202_v49  ;;  %v2009_v20 = vadd.f32 %v2008_v21, %v8064_v51  ;;  %v5826_v21 = vld [vmem:[%s6182_s17 + $0x48] sm:$0xff] }
 0x3b2   : > { %v2204_v41 = vadd.f32 %v5716_v18, %v2203_v28  ;;  %v8068_v2 = vadd.f32 %v5818_v22, %v2009_v20  ;;  %v5827_v22 = vld [vmem:[%s6182_s17 + $0x50] sm:$0xff] }
 0x3b4   : > { %v2208_v4 = vsel %vm2207_vm0, %v5716_v18, %v2204_v41  ;;  %10407 = vst [vmem:[#allocation31_spill] sm:$0xff] %v8068_v2  ;;  %2889 = vadd.xlane.f32.xlu2 %v8068_v2 }
 0x3b5   : > { %v2213_v16 = vsel %vm2210_vm1, %v2212_v1, %v2208_v4 }
 0x3b6   : > { %v2214_v59 = vmul.f32 %v2213_v16, %v2189_v60 }
 0x3b7   : > { %v2011_v3 = vpop.f32.mrf.mxu1 }
 0x3b8   : > { %v5285_v17 = vclamps-f32 %v2214_v59, 1.0  ;;  %v2012_v53 = vadd.f32 %v2011_v3, %v8071_v35 }
 0x3ba   : > { %v2778_v14 = vadd.f32 1.0, %v5285_v17  ;;  %v8078_v27 = vadd.f32 %v5820_v57, %v2012_v53  ;;  %v5825_v17 = vld [vmem:[%s6182_s17 + $0x40] sm:$0xff]  ;;  %v5828_v57 = vld [vmem:[%s6182_s17 + $0x58] sm:$0xff] }
 0x3bc   : > { %v2794_v42 = vmul.f32 %v2778_v14, %v2106_v47  ;;  %10408 = vst [vmem:[#allocation43_spill] sm:$0xff] %v8078_v27  ;;  %2891 = vadd.xlane.f32.xlu2 %v8078_v27 }
 0x3be   : > { %v2809_v19 = vpack.c.bf16 %v2794_v42, %v2793_v45 }
 0x3bf   : > { %v2013_v30 = vpop.f32.mrf.mxu1 }
 0x3c0   : > { %2824 = vmatpush.bf16.msra.mxu3 %v2809_v19  ;;  %v2014_v10 = vadd.f32 %v2013_v30, %v8096_v24 }
 0x3c2   : > { %v8101_v11 = vadd.f32 %v5824_v48, %v2014_v10  ;;  %v5829_v10 = vld [vmem:[%s6182_s17 + $0x60] sm:$0xff] }
 0x3c3   : > { %2825 = vmatmul.bf16.vlgmr.msra.gmra.mxu3 %v5819_v61 }
 0x3c4   : > { %10410 = vst [vmem:[#allocation29_spill] sm:$0xff] %v8101_v11 }
 0x3d3   : > { %2830 = vmatmul.bf16.gmra.mxu3 %v5821_v38 }
 0x3e3   : > { %2835 = vmatmul.bf16.gmra.mxu3 %v5822_v34 }
 0x3f3   : > { %2840 = vmatmul.bf16.gmra.mxu3 %v5823_v44  ;;  %v5503_v44 = vld [vmem:[%s10124_s9 + $0x74] sm:$0xf0] }
 0x3fc   : > { %v2880_v39 = vpop.xlane.xlu2 %2879 }
 0x3fd   : > { %v2911_v13 = vmul.f32 %v2880_v39, %v10409_v36  ;;  %v5502_v39 = vld [vmem:[%s10124_s9 + $0x74] sm:$0xf] }
 0x3ff   : > { %v8092_v18 = vsub.f32 %v7909_v31, %v2911_v13 }
 0x401   : > { %v2943_v62 = vmul.f32 %v8092_v18, %v8092_v18 }
 0x403   : > { %2959 = vadd.xlane.f32.xlu0 %v2943_v62  ;;  %v5368_v62 = vld [vmem:[%s10124_s9 + $0x78] sm:$0xf0] }
 0x404   : > { %v2882_v33 = vpop.xlane.xlu1 %2881  ;;  %v5371_v30 = vor.u32 %v5502_v39, %v5368_v62  ;;  %v5344_v39 = vld [vmem:[%s10124_s9 + $0x48] sm:$0xf0] }
 0x405   : > { %v2912_v23 = vmul.f32 %v2882_v33, %v10409_v36 }
 0x406   : > { %3379 = vmatpush.bf16.msrb.mxu3 %v5371_v30 }
 0x407   : > { %v8104_v49 = vsub.f32 %v7966_v37, %v2912_v23 }
 0x409   : > { %v2944_v56 = vmul.f32 %v8104_v49, %v8104_v49 }
 0x40b   : > { %2893 = vadd.xlane.f32.xlu0 %v8101_v11  ;;  %2961 = vadd.xlane.f32.xlu1 %v2944_v56 }
 0x418   : > { %v2884_v58 = vpop.xlane.xlu0 %2883 }
 0x419   : > { %v2913_v7 = vmul.f32 %v2884_v58, %v10409_v36  ;;  %v5830_v58 = vld [vmem:[%s6182_s17 + $0x68] sm:$0xff] }
 0x41b   : > { %v8111_v12 = vsub.f32 %v8038_v9, %v2913_v7 }
 0x41c   : > { %v2886_v25 = vpop.xlane.xlu2 %2885 }
 0x41d   : > { %v2945_v28 = vmul.f32 %v8111_v12, %v8111_v12  ;;  %v2914_v41 = vmul.f32 %v2886_v25, %v10409_v36  ;;  %v5500_v25 = vld [vmem:[%s10124_s9 + $0x64] sm:$0xf] }
 0x41f   : > { %2963 = vadd.xlane.f32.xlu1 %v2945_v28  ;;  %v8117_v40 = vsub.f32 %v8051_v8, %v2914_v41  ;;  %v5501_v28 = vld [vmem:[%s10124_s9 + $0x64] sm:$0xf0] }
 0x420   : > { %v2888_v1 = vpop.xlane.xlu1 %2887 }
 0x421   : > { %v2946_v60 = vmul.f32 %v8117_v40, %v8117_v40  ;;  %v2915_v63 = vmul.f32 %v2888_v1, %v10409_v36 }
 0x423   : > { %2965 = vadd.xlane.f32.xlu2 %v2946_v60  ;;  %v8123_v6 = vsub.f32 %v8059_v50, %v2915_v63  ;;  %v5350_v60 = vld [vmem:[%s10124_s9 + $0x50] sm:$0xf]  ;;  %v5499_v63 = vld [vmem:[%s10124_s9 + $0x54] sm:$0xf0] }
 0x425   : > { %v2947_v4 = vmul.f32 %v8123_v6, %v8123_v6 }
 0x427   : > { %v2890_v46 = vpop.xlane.xlu2 %2889 }
 0x428   : > { %v2916_v43 = vmul.f32 %v2890_v46, %v10409_v36  ;;  %v5352_v46 = vld [vmem:[%s10124_s9 + $0x58] sm:$0xf0] }
 0x42a   : > { %v8134_v0 = vsub.f32 %v8068_v2, %v2916_v43 }
 0x42b   : > { %2967 = vadd.xlane.f32.xlu2 %v2947_v4  ;;  %v5498_v4 = vld [vmem:[%s10124_s9 + $0x54] sm:$0xf] }
 0x42c   : > { %v2948_v14 = vmul.f32 %v8134_v0, %v8134_v0 }
 0x42f   : > { %v2892_v5 = vpop.xlane.xlu2 %2891 }
 0x446   : > { %v2826_v16 = vpop.f32.mrf.mxu3 }
 0x447   : > { %v2827_v59 = vadd.f32 %v2826_v16, %v7892_v15  ;;  %v2917_v15 = vmul.f32 %v2892_v5, %v10409_v36  ;;  %v5351_v16 = vor.u32 %v5499_v63, %v5350_v60 }
 0x449   : > { %v8130_v54 = vadd.f32 %v5825_v17, %v2827_v59  ;;  %v8145_v42 = vsub.f32 %v8078_v27, %v2917_v15  ;;  %v5355_v59 = vor.u32 %v5498_v4, %v5352_v46  ;;  %v5326_v46 = vld [vmem:[%s10124_s9 + $0x20] sm:$0xf] }
 0x44b   : > { %10411 = vst [vmem:[#allocation35_spill] sm:$0xff] %v8130_v54  ;;  %2895 = vadd.xlane.f32.xlu0 %v8130_v54 }
 0x44e   : > { %v2828_v29 = vpop.f32.mrf.mxu3 }
 0x44f   : > { %v2829_v47 = vadd.f32 %v2828_v29, %v7952_v32  ;;  %v2949_v32 = vmul.f32 %v8145_v42, %v8145_v42 }
 0x451   : > { %v8141_v45 = vadd.f32 %v5826_v21, %v2829_v47  ;;  %v5831_v47 = vld [vmem:[%s6182_s17 + $0x70] sm:$0xff] }
 0x453   : > { %10412 = vst [vmem:[#allocation30_spill] sm:$0xff] %v8141_v45  ;;  %2897 = vadd.xlane.f32.xlu1 %v8141_v45  ;;  %2969 = vadd.xlane.f32.xlu0 %v2948_v14 }
 0x456   : > { %v2831_v20 = vpop.f32.mrf.mxu3 }
 0x457   : > { %v2832_v19 = vadd.f32 %v2831_v20, %v8028_v55  ;;  %v5366_v55 = vld [vmem:[%s10124_s9 + $0x70] sm:$0xf] }
 0x458   : > { %v5367_v13 = vor.u32 %v5503_v44, %v5366_v55  ;;  %v5496_v55 = vld [vmem:[%s10124_s9 + $0x44] sm:$0xf] }
 0x459   : > { %v8151_v61 = vadd.f32 %v5827_v22, %v2832_v19 }
 0x45a   : > { %3330 = vmatpush.bf16.msrb.mxu1 %v5367_v13  ;;  %v5495_v13 = vld [vmem:[%s10124_s9 + $0x34] sm:$0xf0] }
 0x45b   : > { %10413 = vst [vmem:[#allocation39_spill] sm:$0xff] %v8151_v61  ;;  %2899 = vadd.xlane.f32.xlu1 %v8151_v61  ;;  %2971 = vadd.xlane.f32.xlu0 %v2949_v32 }
 0x45e   : > { %v2833_v3 = vpop.f32.mrf.mxu3 }
 0x45f   : > { %v2834_v53 = vadd.f32 %v2833_v3, %v8045_v26 }
 0x461   : > { %v8156_v38 = vadd.f32 %v5828_v57, %v2834_v53  ;;  %v5342_v57 = vld [vmem:[%s10124_s9 + $0x40] sm:$0xf] }
 0x463   : > { %10414 = vst [vmem:[#allocation33_spill] sm:$0xff] %v8156_v38  ;;  %2901 = vadd.xlane.f32.xlu2 %v8156_v38 }
 0x466   : > { %v2836_v34 = vpop.f32.mrf.mxu3 }
 0x467   : > { %v2837_v26 = vadd.f32 %v2836_v34, %v8054_v52  ;;  %v5358_v52 = vld [vmem:[%s10124_s9 + $0x60] sm:$0xf]  ;;  %v5497_v34 = vld [vmem:[%s10124_s9 + $0x44] sm:$0xf0] }
 0x468   : > { %v5359_v41 = vor.u32 %v5501_v28, %v5358_v52  ;;  %v5343_v44 = vor.u32 %v5497_v34, %v5342_v57  ;;  %v5320_v34 = vld [vmem:[%s10124_s9 + $0x18] sm:$0xf0] }
 0x469   : > { %v8173_v33 = vadd.f32 %v5829_v10, %v2837_v26  ;;  %v5334_v26 = vld [vmem:[%s10124_s9 + $0x30] sm:$0xf]  ;;  %v5347_v10 = vor.u32 %v5496_v55, %v5344_v39 }
 0x46a   : > { %3331 = vmatpush.bf16.msrb.mxu1 %v5359_v41 }
 0x46b   : > { %10415 = vst [vmem:[#allocation41_spill] sm:$0xff] %v8173_v33  ;;  %2903 = vadd.xlane.f32.xlu2 %v8173_v33 }
 0x46e   : > { %v2838_v23 = vpop.f32.mrf.mxu3  ;;  %3332 = vmatpush.bf16.msrb.mxu1 %v5351_v16  ;;  %v5493_v16 = vld [vmem:[%s10124_s9 + $0x24] sm:$0xf0] }
 0x46f   : > { %v2839_v48 = vadd.f32 %v2838_v23, %v8064_v51  ;;  %v5360_v51 = vld [vmem:[%s10124_s9 + $0x68] sm:$0xf0]  ;;  %v5494_v23 = vld [vmem:[%s10124_s9 + $0x34] sm:$0xf] }
 0x470   : > { %v5363_v1 = vor.u32 %v5500_v25, %v5360_v51 }
 0x471   : > { %v8178_v7 = vadd.f32 %v5830_v58, %v2839_v48  ;;  %v5336_v48 = vld [vmem:[%s10124_s9 + $0x38] sm:$0xf0] }
 0x472   : > { %3380 = vmatpush.bf16.msrb.mxu3 %v5363_v1  ;;  %3333 = vmatpush.bf16.msrb.mxu1 %v5343_v44  ;;  %v5339_v58 = vor.u32 %v5494_v23, %v5336_v48 }
 0x473   : > { %10416 = vst [vmem:[#allocation27_spill] sm:$0xff] %v8178_v7  ;;  %2905 = vadd.xlane.f32.xlu0 %v8178_v7 }
 0x476   : > { %v2960_v56 = vpop.xlane.xlu0 %2959  ;;  %v2841_v43 = vpop.f32.mrf.mxu3  ;;  %3381 = vmatpush.bf16.msrb.mxu3 %v5355_v59  ;;  %v5327_v59 = vor.u32 %v5493_v16, %v5326_v46 }
 0x477   : > { %v2842_v17 = vadd.f32 %v2841_v43, %v8071_v35  ;;  %v2991_v35 = vmul.f32 %v2960_v56, %v10409_v36  ;;  %v5335_v56 = vor.u32 %v5495_v13, %v5334_v26  ;;  %v5492_v43 = vld [vmem:[%s10124_s9 + $0x24] sm:$0xf] }
 0x479   : > { %v8208_v14 = vadd.f32 %v5831_v47, %v2842_v17  ;;  %v3007_v32 = vadd.f32 1e-05, %v2991_v35  ;;  %3334 = vmatpush.bf16.msrb.mxu1 %v5335_v56  ;;  %v5328_v17 = vld [vmem:[%s10124_s9 + $0x28] sm:$0xf0]  ;;  %v5490_v35 = vld [vmem:[%s10124_s9 + $0x14] sm:$0xf] }
 0x47a   : > { %3382 = vmatpush.bf16.msrb.mxu3 %v5347_v10  ;;  %v5323_v44 = vor.u32 %v5490_v35, %v5320_v34  ;;  %v5488_v10 = vld [vmem:[%s10124_s9 + $0x4] sm:$0xf] }
 0x47b   : > { %10417 = vst [vmem:[#allocation24_spill] sm:$0xff] %v8208_v14  ;;  %2907 = vadd.xlane.f32.xlu0 %v8208_v14  ;;  %5717 = vrsqrt.f32 %v3007_v32  ;;  %vm3029_vm5 = vweird.f32 %v3007_v32 }
 0x47d   : > { %3335 = vmatpush.bf16.msrb.mxu1 %v5327_v59 }
 0x47e   : > { %v2894_v5 = vpop.xlane.xlu0 %2893  ;;  %v2962_v20 = vpop.xlane.xlu1 %2961  ;;  %3383 = vmatpush.bf16.msrb.mxu3 %v5339_v58  ;;  %v8308_v58 = vld [vmem:[%s10122_s7] ss:$0 sm:$0xff] }
 0x47f   : > { %v2918_v29 = vmul.f32 %v2894_v5, %v10409_v36  ;;  %v2992_v19 = vmul.f32 %v2962_v20, %v10409_v36  ;;  %v5331_v5 = vor.u32 %v5492_v43, %v5328_v17  ;;  %v5491_v20 = vld [vmem:[%s10124_s9 + $0x14] sm:$0xf0] }
 0x481   : > { %v8211_v15 = vsub.f32 %v8101_v11, %v2918_v29  ;;  %v3008_v22 = vadd.f32 1e-05, %v2992_v19  ;;  %v8218_v3 = vpop.eup %5717 }
 0x482   : > { %v3024_v62 = vmul.f32 %v8218_v3, %v3007_v32  ;;  %vm3030_vm2 = vweird.f32 %v8218_v3  ;;  %3384 = vmatpush.bf16.msrb.mxu3 %v5331_v5 }
 0x483   : > { %v2950_v21 = vmul.f32 %v8211_v15, %v8211_v15  ;;  %5719 = vrsqrt.f32 %v3008_v22  ;;  %vm8279_vm6 = vmor %vm3029_vm5, %vm3030_vm2  ;;  %vm3039_vm4 = vweird.f32 %v3008_v22 }
 0x484   : > { %v3025_v52 = vmul.f32 %v8218_v3, %v3024_v62  ;;  %v5489_v62 = vld [vmem:[%s10124_s9 + $0x4] sm:$0xf0] }
 0x485   : > { %2973 = vadd.xlane.f32.xlu1 %v2950_v21  ;;  %v5318_v21 = vld [vmem:[%s10124_s9 + $0x10] sm:$0xf] }
 0x486   : > { %v3026_v25 = vmul.f32 0.5, %v3025_v52  ;;  %v5319_v57 = vor.u32 %v5491_v20, %v5318_v21  ;;  %3385 = vmatpush.bf16.msrb.mxu3 %v5323_v44  ;;  %v8313_v52 = vld [vmem:[%s10123_s8] ss:$0 sm:$0xff] }
 0x488   : > { %v3027_v1 = vsub.f32 1.5, %v3026_v25  ;;  %3336 = vmatpush.bf16.msrb.mxu1 %v5319_v57 }
 0x489   : > { %v8220_v53 = vpop.eup %5719 }
 0x48a   : > { %v3034_v30 = vmul.f32 %v8220_v53, %v3008_v22  ;;  %v3028_v29 = vmul.f32 %v8218_v3, %v3027_v1  ;;  %vm3040_vm3 = vweird.f32 %v8220_v53  ;;  %v5310_v22 = vld [vmem:[%s10124_s9] sm:$0xf] }
 0x48b   : > { %vm3041_vm7 = vmor %vm3039_vm4, %vm3040_vm3 }
 0x48c   : > { %v3035_v28 = vmul.f32 %v8220_v53, %v3034_v30  ;;  %v3032_v39 = vsel %vm8279_vm6, %v8218_v3, %v3028_v29  ;;  %v5311_v30 = vor.u32 %v5489_v62, %v5310_v22  ;;  %v5312_v3 = vld [vmem:[%s10124_s9 + $0x8] sm:$0xf0] }
 0x48d   : > { %v3183_v23 = vmul.f32 %v3032_v39, %v8092_v18  ;;  %v5315_v56 = vor.u32 %v5488_v10, %v5312_v3  ;;  %v2843_v39 = vpop.f32.mrf.mxu3 }
 0x48e   : > { %v3036_v41 = vmul.f32 0.5, %v3035_v28  ;;  %3337 = vmatpush.bf16.msrb.mxu1 %v5311_v30  ;;  %v2844_v30 = vadd.f32 %v2843_v39, %v8096_v24 }
 0x48f   : > { %3386 = vmatpush.bf16.msrb.mxu3 %v5315_v56  ;;  %v3202_v18 = vmul.f32 %v8308_v58, %v3183_v23 }
 0x490   : > { %v3037_v63 = vsub.f32 1.5, %v3036_v41 }
 0x492   : > { %v2964_v51 = vpop.xlane.xlu1 %2963  ;;  %v3038_v47 = vmul.f32 %v8220_v53, %v3037_v63 }
 0x493   : > { %v2993_v60 = vmul.f32 %v2964_v51, %v10409_v36 }
 0x494   : > { %v3042_v26 = vsel %vm3041_vm7, %v8220_v53, %v3038_v47 }
 0x495   : > { %v8251_v4 = vadd.f32 1e-05, %v2993_v60  ;;  %v3184_v48 = vmul.f32 %v3042_v26, %v8104_v49  ;;  %v3221_v60 = vadd.f32 %v8313_v52, %v3202_v18 }
 0x496   : > { %v2966_v32 = vpop.xlane.xlu2 %2965 }
 0x497   : > { %5721 = vrsqrt.f32 %v8251_v4  ;;  %v2994_v55 = vmul.f32 %v2966_v32, %v10409_v36  ;;  %v3203_v49 = vmul.f32 %v8308_v58, %v3184_v48  ;;  %vm3049_vm10 = vweird.f32 %v8251_v4 }
 0x499   : > { %v3010_v13 = vadd.f32 1e-05, %v2994_v55  ;;  %v3222_v1 = vadd.f32 %v8313_v52, %v3203_v49  ;;  %v5832_v49 = vld [vmem:[%s6182_s17 + $0x78] sm:$0xff]  ;;  %s10524_s17 = smov %s10523_s25 }
 0x49a   : > { %s5946_s12 = scalar_lea.hbm %s10524_s17, 256  ;;  %p5947_p0 = scmp.lt.s32.totalorder %s5941_s18, %s10524_s17 }
 0x49b   : > { %5723 = vrsqrt.f32 %v3010_v13  ;;  %v3237_v16 = vpack.c.bf16 %v3222_v1, %v3221_v60  ;;  %vm3059_vm12 = vweird.f32 %v3010_v13  ;;  %p5948_p7 = scmp.lt.s32.totalorder %s5946_s12, %s5942_s16 }
 0x49d   : > { %v5722_v53 = vpop.eup %5721  ;;  %3338 = vmatmul.bf16.vlgmr.msrb.gmra.mxu1 %v3237_v16  ;;  %3387 = vmatmul.bf16.vlgmr.msrb.gmra.mxu3 %v3237_v16  ;;  %p5949_p5 = por %p5948_p7, %p5947_p0 }
 0x49e   : > { %v3044_v28 = vmul.f32 %v5722_v53, %v8251_v4  ;;  %v2968_v25 = vpop.xlane.xlu2 %2967  ;;  %vm3050_vm8 = vweird.f32 %v5722_v53 }
 0x49f   : > { %v2995_v51 = vmul.f32 %v2968_v25, %v10409_v36  ;;  %vm3051_vm11 = vmor %vm3049_vm10, %vm3050_vm8  ;;  %p5950_p8 = pnand %p5949_p5, %p5945_p13 }
 0x4a0   : > { %v3045_v63 = vmul.f32 %v5722_v53, %v3044_v28 }
 0x4a1   : > { %v5724_v41 = vpop.eup %5723  ;;  %v3011_v43 = vadd.f32 1e-05, %v2995_v51 }
 0x4a2   : > { %v3054_v46 = vmul.f32 %v5724_v41, %v3010_v13  ;;  %v3046_v17 = vmul.f32 0.5, %v3045_v63  ;;  %vm3060_vm9 = vweird.f32 %v5724_v41 }
 0x4a3   : > { %5725 = vrsqrt.f32 %v3011_v43  ;;  %vm3061_vm13 = vmor %vm3059_vm12, %vm3060_vm9  ;;  %vm3069_vm15 = vweird.f32 %v3011_v43 }
 0x4a4   : > { %v3055_v59 = vmul.f32 %v5724_v41, %v3054_v46  ;;  %v3047_v29 = vsub.f32 1.5, %v3046_v17 }
 0x4a6   : > { %v3056_v5 = vmul.f32 0.5, %v3055_v59  ;;  %v3048_v21 = vmul.f32 %v5722_v53, %v3047_v29 }
 0x4a8   : > { %v3057_v47 = vsub.f32 1.5, %v3056_v5  ;;  %v3052_v55 = vsel %vm3051_vm11, %v5722_v53, %v3048_v21 }
 0x4a9   : > { %v5726_v19 = vpop.eup %5725  ;;  %v3185_v22 = vmul.f32 %v3052_v55, %v8111_v12 }
 0x4aa   : > { %v3058_v20 = vmul.f32 %v5724_v41, %v3057_v47  ;;  %v3064_v34 = vmul.f32 %v5726_v19, %v3011_v43  ;;  %vm3070_vm14 = vweird.f32 %v5726_v19 }
 0x4ab   : > { %v3204_v4 = vmul.f32 %v8308_v58, %v3185_v22  ;;  %vm3071_vm0 = vmor %vm3069_vm15, %vm3070_vm14 }
 0x4ac   : > { %v3062_v44 = vsel %vm3061_vm13, %v5724_v41, %v3058_v20  ;;  %v3065_v10 = vmul.f32 %v5726_v19, %v3064_v34  ;;  %v8341_v41 = vadd.f32 %v5832_v49, %v2844_v30 }
 0x4ad   : > { %v3186_v62 = vmul.f32 %v3062_v44, %v8117_v40  ;;  %v3223_v56 = vadd.f32 %v8313_v52, %v3204_v4 }
 0x4ae   : > { %v3066_v18 = vmul.f32 0.5, %v3065_v10  ;;  %10420 = vst [vmem:[#allocation32_spill] sm:$0xff] %v8341_v41 }
 0x4af   : > { %v3205_v13 = vmul.f32 %v8308_v58, %v3186_v62 }
 0x4b0   : > { %v3067_v51 = vsub.f32 1.5, %v3066_v18 }
 0x4b1   : > { %v3224_v12 = vadd.f32 %v8313_v52, %v3205_v13 }
 0x4b2   : > { %v3068_v16 = vmul.f32 %v5726_v19, %v3067_v51 }
 0x4b3   : > { %v3238_v25 = vpack.c.bf16 %v3224_v12, %v3223_v56 }
 0x4b4   : > { %v3072_v21 = vsel %vm3071_vm0, %v5726_v19, %v3068_v16 }
 0x4b5   : > { %3343 = vmatmul.bf16.gmra.mxu1 %v3238_v25  ;;  %3392 = vmatmul.bf16.gmra.mxu3 %v3238_v25  ;;  %v3187_v34 = vmul.f32 %v3072_v21, %v8123_v6 }
 0x4b7   : > { %v3206_v19 = vmul.f32 %v8308_v58, %v3187_v34 }
 0x4b9   : > { %v3225_v13 = vadd.f32 %v8313_v52, %v3206_v19 }
 0x4be   : > { %v2896_v35 = vpop.xlane.xlu0 %2895 }
 0x4bf   : > { %v2919_v32 = vmul.f32 %v2896_v35, %v10409_v36 }
 0x4c1   : > { %v8324_v57 = vsub.f32 %v8130_v54, %v2919_v32 }
 0x4c3   : > { %v2951_v26 = vmul.f32 %v8324_v57, %v8324_v57 }
 0x4c5   : > { %2975 = vadd.xlane.f32.xlu1 %v2951_v26 }
 0x4c6   : > { %v2898_v3 = vpop.xlane.xlu1 %2897  ;;  %v2970_v53 = vpop.xlane.xlu0 %2969 }
 0x4c7   : > { %v2920_v23 = vmul.f32 %v2898_v3, %v10409_v36  ;;  %v2996_v48 = vmul.f32 %v2970_v53, %v10409_v36 }
 0x4c9   : > { %v8338_v40 = vsub.f32 %v8141_v45, %v2920_v23  ;;  %v3012_v28 = vadd.f32 1e-05, %v2996_v48 }
 0x4cb   : > { %v2952_v24 = vmul.f32 %v8338_v40, %v8338_v40  ;;  %5727 = vrsqrt.f32 %v3012_v28  ;;  %vm3079_vm2 = vweird.f32 %v3012_v28 }
 0x4cd   : > { %2977 = vadd.xlane.f32.xlu2 %v2952_v24  ;;  %2909 = vadd.xlane.f32.xlu1 %v8341_v41 }
 0x4ce   : > { %v2900_v60 = vpop.xlane.xlu1 %2899  ;;  %v2972_v26 = vpop.xlane.xlu0 %2971 }
 0x4cf   : > { %v2921_v1 = vmul.f32 %v2900_v60, %v10409_v36  ;;  %v2997_v49 = vmul.f32 %v2972_v26, %v10409_v36 }
 0x4d1   : > { %v5728_v63 = vpop.eup %5727  ;;  %v8348_v46 = vsub.f32 %v8151_v61, %v2921_v1  ;;  %v3013_v51 = vadd.f32 1e-05, %v2997_v49 }
 0x4d2   : > { %v3074_v59 = vmul.f32 %v5728_v63, %v3012_v28  ;;  %vm3080_vm1 = vweird.f32 %v5728_v63 }
 0x4d3   : > { %v2953_v17 = vmul.f32 %v8348_v46, %v8348_v46  ;;  %vm3081_vm3 = vmor %vm3079_vm2, %vm3080_vm1  ;;  %5729 = vrsqrt.f32 %v3013_v51  ;;  %vm3089_vm4 = vweird.f32 %v3013_v51 }
 0x4d4   : > { %v3075_v5 = vmul.f32 %v5728_v63, %v3074_v59 }
 0x4d5   : > { %2979 = vadd.xlane.f32.xlu2 %v2953_v17 }
 0x4d6   : > { %v3076_v29 = vmul.f32 0.5, %v3075_v5  ;;  %v2902_v47 = vpop.xlane.xlu2 %2901 }
 0x4d7   : > { %v2922_v20 = vmul.f32 %v2902_v47, %v10409_v36 }
 0x4d8   : > { %v3077_v35 = vsub.f32 1.5, %v3076_v29 }
 0x4d9   : > { %v8354_v32 = vsub.f32 %v8156_v38, %v2922_v20  ;;  %v5730_v1 = vpop.eup %5729 }
 0x4da   : > { %v3078_v55 = vmul.f32 %v5728_v63, %v3077_v35  ;;  %v3084_v16 = vmul.f32 %v5730_v1, %v3013_v51  ;;  %vm3090_vm5 = vweird.f32 %v5730_v1 }
 0x4db   : > { %v2954_v43 = vmul.f32 %v8354_v32, %v8354_v32  ;;  %vm3091_vm7 = vmor %vm3089_vm4, %vm3090_vm5 }
 0x4dc   : > { %v3082_v44 = vsel %vm3081_vm3, %v5728_v63, %v3078_v55  ;;  %v3085_v17 = vmul.f32 %v5730_v1, %v3084_v16 }
 0x4dd   : > { %2981 = vadd.xlane.f32.xlu0 %v2954_v43  ;;  %v3188_v39 = vmul.f32 %v3082_v44, %v8134_v0 }
 0x4de   : > { %v2904_v22 = vpop.xlane.xlu2 %2903  ;;  %v3086_v29 = vmul.f32 0.5, %v3085_v17 }
 0x4df   : > { %v2923_v62 = vmul.f32 %v2904_v22, %v10409_v36  ;;  %v3207_v4 = vmul.f32 %v8308_v58, %v3188_v39 }
 0x4e0   : > { %v3087_v21 = vsub.f32 1.5, %v3086_v29 }
 0x4e1   : > { %v8364_v6 = vsub.f32 %v8173_v33, %v2923_v62  ;;  %v3226_v30 = vadd.f32 %v8313_v52, %v3207_v4 }
 0x4e2   : > { %v3088_v35 = vmul.f32 %v5730_v1, %v3087_v21 }
 0x4e3   : > { %v2955_v10 = vmul.f32 %v8364_v6, %v8364_v6  ;;  %v3239_v3 = vpack.c.bf16 %v3226_v30, %v3225_v13 }
 0x4e4   : > { %v3092_v55 = vsel %vm3091_vm7, %v5730_v1, %v3088_v35 }
 0x4e5   : > { %2983 = vadd.xlane.f32.xlu1 %v2955_v10  ;;  %3348 = vmatmul.bf16.gmra.mxu1 %v3239_v3  ;;  %v3189_v44 = vmul.f32 %v3092_v55, %v8145_v42  ;;  %v578_v42 = vld [vmem:[%s10125_s10] sm:$0x3] }
 0x4e6   : > { %v2906_v0 = vpop.xlane.xlu0 %2905  ;;  %3397 = vmatmul.bf16.gmra.mxu3 %v3239_v3  ;;  %v8412_v49 = vperm.slane %v578_v42, 1 }
 0x4e7   : > { %v2924_v53 = vmul.f32 %v2906_v0, %v10409_v36  ;;  %v3208_v19 = vmul.f32 %v8308_v58, %v3189_v44  ;;  %v8399_v0 = vperm.slane %v578_v42, 0 }
 0x4e8   : > { %10422 = vst [vmem:[#allocation26_spill] sm:$0xff] %v8412_v49 }
 0x4e9   : > { %v8372_v23 = vsub.f32 %v8178_v7, %v2924_v53  ;;  %v3227_v62 = vadd.f32 %v8313_v52, %v3208_v19 }
 0x4eb   : > { %v2956_v48 = vmul.f32 %v8372_v23, %v8372_v23 }
 0x4ed   : > { %2985 = vadd.xlane.f32.xlu2 %v2956_v48 }
 0x4ee   : > { %v2908_v56 = vpop.xlane.xlu0 %2907 }
 0x4ef   : > { %v2925_v12 = vmul.f32 %v2908_v56, %v10409_v36 }
 0x4f1   : > { %v8378_v28 = vsub.f32 %v8208_v14, %v2925_v12 }
 0x4f3   : > { %v2957_v25 = vmul.f32 %v8378_v28, %v8378_v28 }
 0x4f5   : > { %2987 = vadd.xlane.f32.xlu0 %v2957_v25 }
 0x4f8   : > { %v2974_v18 = vpop.xlane.xlu1 %2973 }
 0x4f9   : > { %v2998_v24 = vmul.f32 %v2974_v18, %v10409_v36 }
 0x4fb   : > { %v3014_v60 = vadd.f32 1e-05, %v2998_v24 }
 0x4fd   : > { %5731 = vrsqrt.f32 %v3014_v60  ;;  %vm3099_vm8 = vweird.f32 %v3014_v60 }
 0x503   : > { %v5732_v63 = vpop.eup %5731 }
 0x504   : > { %v3094_v59 = vmul.f32 %v5732_v63, %v3014_v60  ;;  %vm3100_vm6 = vweird.f32 %v5732_v63 }
 0x505   : > { %vm3101_vm9 = vmor %vm3099_vm8, %vm3100_vm6 }
 0x506   : > { %v3095_v5 = vmul.f32 %v5732_v63, %v3094_v59 }
 0x508   : > { %v3096_v47 = vmul.f32 0.5, %v3095_v5 }
 0x50a   : > { %v3097_v20 = vsub.f32 1.5, %v3096_v47 }
 0x50c   : > { %v3098_v34 = vmul.f32 %v5732_v63, %v3097_v20 }
 0x50e   : > { %v3102_v43 = vsel %vm3101_vm9, %v5732_v63, %v3098_v34 }
 0x50f   : > { %v3190_v39 = vmul.f32 %v3102_v43, %v8211_v15 }
 0x511   : > { %v3209_v26 = vmul.f32 %v8308_v58, %v3190_v39 }
 0x513   : > { %v3228_v4 = vadd.f32 %v8313_v52, %v3209_v26 }
 0x515   : > { %v3240_v13 = vpack.c.bf16 %v3228_v4, %v3227_v62 }
 0x517   : > { %3353 = vmatmul.bf16.gmra.mxu1 %v3240_v13  ;;  %3402 = vmatmul.bf16.gmra.mxu3 %v3240_v13 }
 0x51a   : > { %v3339_v53 = vpop.f32.mrf.mxu1 }
 0x51b   : > { %v8402_v48 = vadd.f32 %v3339_v53, %v8399_v0 }
 0x51d   : > { %v8405_v56 = vmul.f32 0.70710677, %v8402_v48 }
 0x51f   : > { %v3492_v12 = vmul.f32 %v8405_v56, %v8405_v56 }
 0x520   : > { %v3388_v24 = vpop.f32.mrf.mxu3 }
 0x521   : > { %v8409_v25 = vmin.f32 %v3492_v12, 16.0  ;;  %v8415_v60 = vadd.f32 %v3388_v24, %v8412_v49 }
 0x522   : > { %v3341_v17 = vpop.f32.mrf.mxu1 }
 0x523   : > { %v3505_v18 = vmul.f32 3.8918573e-05, %v8409_v25  ;;  %v8419_v63 = vmul.f32 0.70710677, %v8415_v60  ;;  %v8424_v5 = vadd.f32 %v3341_v17, %v8399_v0 }
 0x525   : > { %v3506_v51 = vadd.f32 0.001143296, %v3505_v18  ;;  %v3532_v59 = vmul.f32 %v8419_v63, %v8419_v63  ;;  %v8430_v20 = vmul.f32 0.70710677, %v8424_v5 }
 0x527   : > { %v3507_v1 = vmul.f32 %v3506_v51, %v8409_v25  ;;  %v8427_v21 = vmin.f32 %v3532_v59, 16.0  ;;  %v3572_v55 = vmul.f32 %v8430_v20, %v8430_v20 }
 0x529   : > { %v3508_v16 = vadd.f32 0.014752088, %v3507_v1  ;;  %v3545_v44 = vmul.f32 3.8918573e-05, %v8427_v21  ;;  %v8437_v39 = vmin.f32 %v3572_v55, 16.0 }
 0x52b   : > { %v3509_v47 = vmul.f32 %v3508_v16, %v8409_v25  ;;  %v3546_v4 = vadd.f32 0.001143296, %v3545_v44  ;;  %v3585_v13 = vmul.f32 3.8918573e-05, %v8437_v39 }
 0x52d   : > { %v3510_v43 = vadd.f32 0.112945676, %v3509_v47 }
 0x52f   : > { %v3511_v62 = vmul.f32 %v3510_v43, %v8409_v25 }
 0x538   : > { %v2976_v22 = vpop.xlane.xlu1 %2975 }
 0x539   : > { %v2999_v35 = vmul.f32 %v2976_v22, %v10409_v36  ;;  %v3586_v22 = vadd.f32 0.001143296, %v3585_v13 }
 0x53b   : > { %v8439_v19 = vadd.f32 1e-05, %v2999_v35  ;;  %v3587_v42 = vmul.f32 %v3586_v22, %v8437_v39 }
 0x53d   : > { %5733 = vrsqrt.f32 %v8439_v19  ;;  %v3588_v53 = vadd.f32 0.014752088, %v3587_v42  ;;  %vm3109_vm10 = vweird.f32 %v8439_v19 }
 0x53f   : > { %v3589_v16 = vmul.f32 %v3588_v53, %v8437_v39 }
 0x540   : > { %v2910_v30 = vpop.xlane.xlu1 %2909  ;;  %v2978_v29 = vpop.xlane.xlu2 %2977 }
 0x541   : > { %v2926_v10 = vmul.f32 %v2910_v30, %v10409_v36  ;;  %v3000_v34 = vmul.f32 %v2978_v29, %v10409_v36  ;;  %v3512_v30 = vadd.f32 0.4994258, %v3511_v62  ;;  %v3390_v29 = vpop.f32.mrf.mxu3  ;;  %v3590_v44 = vadd.f32 0.112945676, %v3589_v16 }
 0x542   : > { %v8464_v55 = vadd.f32 %v3390_v29, %v8412_v49 }
 0x543   : > { %v8392_v3 = vsub.f32 %v8341_v41, %v2926_v10  ;;  %v8441_v26 = vadd.f32 1e-05, %v3000_v34  ;;  %v3547_v10 = vmul.f32 %v3546_v4, %v8427_v21  ;;  %v8450_v12 = vpop.eup %5733  ;;  %v3513_v18 = vmul.f32 %v3512_v30, %v8409_v25 }
 0x544   : > { %v3104_v59 = vmul.f32 %v8450_v12, %v8439_v19  ;;  %v8469_v4 = vmul.f32 0.70710677, %v8464_v55  ;;  %v3591_v42 = vmul.f32 %v3590_v44, %v8437_v39  ;;  %v3574_v44 = vmul.f32 2.1237322e-06, %v8437_v39 }
 0x545   : > { %10421 = vst [vmem:[#allocation37_spill] sm:$0xff] %v8392_v3  ;;  %v2958_v15 = vmul.f32 %v8392_v3, %v8392_v3  ;;  %5735 = vrsqrt.f32 %v8441_v26  ;;  %v3548_v24 = vadd.f32 0.014752088, %v3547_v10  ;;  %v8460_v35 = vadd.f32 1.0, %v3513_v18 }
 0x546   : > { %v3105_v13 = vmul.f32 %v8450_v12, %v3104_v59  ;;  %v3534_v18 = vmul.f32 2.1237322e-06, %v8427_v21  ;;  %v3575_v33 = vadd.f32 0.00028619796, %v3574_v44  ;;  %vm3110_vm11 = vweird.f32 %v8450_v12 }
 0x547   : > { %2989 = vadd.xlane.f32.xlu1 %v2958_v15  ;;  %v3494_v15 = vmul.f32 2.1237322e-06, %v8409_v25  ;;  %v3549_v34 = vmul.f32 %v3548_v24, %v8427_v21  ;;  %5737 = vrcp.f32 %v8460_v35  ;;  %vm8511_vm13 = vmor %vm3109_vm10, %vm3110_vm11  ;;  %vm3119_vm14 = vweird.f32 %v8441_v26 }
 0x548   : > { %v2980_v17 = vpop.xlane.xlu2 %2979  ;;  %vm3520_vm1 = vweird.f32 %v8460_v35 }
 0x549   : > { %v3495_v1 = vadd.f32 0.00028619796, %v3494_v15  ;;  %v3001_v62 = vmul.f32 %v2980_v17, %v10409_v36  ;;  %v3550_v30 = vadd.f32 0.112945676, %v3549_v34  ;;  %v3612_v15 = vmul.f32 %v8469_v4, %v8469_v4 }
 0x54b   : > { %v8453_v51 = vpop.eup %5735  ;;  %v3496_v43 = vmul.f32 %v3495_v1, %v8409_v25  ;;  %v8477_v53 = vadd.f32 1e-05, %v3001_v62  ;;  %v8480_v24 = vmin.f32 %v3612_v15, 16.0  ;;  %v3106_v1 = vmul.f32 0.5, %v3105_v13 }
 0x54c   : > { %v3114_v47 = vmul.f32 %v8453_v51, %v8441_v26  ;;  %v3551_v59 = vmul.f32 %v3550_v30, %v8427_v21  ;;  %v3535_v62 = vadd.f32 0.00028619796, %v3534_v18  ;;  %vm3120_vm12 = vweird.f32 %v8453_v51 }
 0x54d   : > { %v3497_v10 = vadd.f32 0.0036580483, %v3496_v43  ;;  %v3625_v34 = vmul.f32 3.8918573e-05, %v8480_v24  ;;  %v8485_v43 = vpop.eup %5737  ;;  %5739 = vrsqrt.f32 %v8477_v53  ;;  %v3107_v13 = vsub.f32 1.5, %v3106_v1  ;;  %vm8517_vm15 = vmor %vm3119_vm14, %vm3120_vm12 }
 0x54e   : > { %v3115_v22 = vmul.f32 %v8453_v51, %v3114_v47  ;;  %v3592_v47 = vadd.f32 0.4994258, %v3591_v42  ;;  %v3552_v14 = vadd.f32 0.4994258, %v3551_v59  ;;  %v3536_v18 = vmul.f32 %v3535_v62, %v8427_v21 }
 0x54f   : > { %v3498_v29 = vmul.f32 %v3497_v10, %v8409_v25  ;;  %v3626_v41 = vadd.f32 0.001143296, %v3625_v34  ;;  %v3516_v10 = vmul.f32 %v8485_v43, %v8460_v35  ;;  %v3108_v59 = vmul.f32 %v8450_v12, %v3107_v13 }
 0x550   : > { %v3116_v16 = vmul.f32 0.5, %v3115_v22  ;;  %v2982_v17 = vpop.xlane.xlu0 %2981  ;;  %v3593_v42 = vmul.f32 %v3592_v47, %v8437_v39  ;;  %vm3521_vm0 = vweird.f32 %v8485_v43  ;;  %vm3129_vm6 = vweird.f32 %v8477_v53 }
 0x551   : > { %v3002_v15 = vmul.f32 %v2982_v17, %v10409_v36  ;;  %v3499_v30 = vadd.f32 0.05243302, %v3498_v29  ;;  %v3627_v7 = vmul.f32 %v3626_v41, %v8480_v24  ;;  %v3553_v41 = vmul.f32 %v3552_v14, %v8427_v21  ;;  %vm8558_vm2 = vmor %vm3520_vm1, %vm3521_vm0 }
 0x552   : > { %v3117_v22 = vsub.f32 1.5, %v3116_v16  ;;  %v3517_v34 = vsub.f32 1.0, %v3516_v10  ;;  %v8506_v44 = vadd.f32 1.0, %v3593_v42  ;;  %v3614_v10 = vmul.f32 2.1237322e-06, %v8480_v24 }
 0x553   : > { %v8497_v17 = vadd.f32 1e-05, %v3002_v15  ;;  %v3628_v1 = vadd.f32 0.014752088, %v3627_v7  ;;  %v8499_v16 = vpop.eup %5739  ;;  %v3500_v47 = vmul.f32 %v3499_v30, %v8409_v25  ;;  %v3576_v15 = vmul.f32 %v3575_v33, %v8437_v39 }
 0x554   : > { %v3118_v29 = vmul.f32 %v8453_v51, %v3117_v22  ;;  %v3124_v14 = vmul.f32 %v8499_v16, %v8477_v53  ;;  %v3537_v22 = vadd.f32 0.0036580483, %v3536_v18  ;;  %v8524_v19 = vadd.f32 1.0, %v3553_v41 }
 0x555   : > { %v3629_v62 = vmul.f32 %v3628_v1, %v8480_v24  ;;  %5741 = vrsqrt.f32 %v8497_v17  ;;  %v3112_v33 = vsel %vm8511_vm13, %v8450_v12, %v3108_v59  ;;  %v3501_v1 = vadd.f32 0.18741608, %v3500_v47 }
 0x556   : > { %v3122_v26 = vsel %vm8517_vm15, %v8453_v51, %v3118_v29  ;;  %v3518_v38 = vmul.f32 %v8485_v43, %v3517_v34  ;;  %5743 = vrcp.f32 %v8506_v44  ;;  %v3577_v41 = vadd.f32 0.0036580483, %v3576_v15 }
 0x557   : > { %v3630_v30 = vadd.f32 0.112945676, %v3629_v62  ;;  %v3191_v62 = vmul.f32 %v3112_v33, %v8324_v57  ;;  %v3192_v61 = vmul.f32 %v3122_v26, %v8338_v40  ;;  %v3538_v45 = vmul.f32 %v3537_v22, %v8427_v21  ;;  %v3344_v26 = vpop.f32.mrf.mxu1 }
 0x558   : > { %v2984_v42 = vpop.xlane.xlu1 %2983  ;;  %5745 = vrcp.f32 %v8524_v19  ;;  %v3615_v51 = vadd.f32 0.00028619796, %v3614_v10  ;;  %v3125_v47 = vmul.f32 %v8499_v16, %v3124_v14  ;;  %v3502_v34 = vmul.f32 %v3501_v1, %v8409_v25 }
 0x559   : > { %v3631_v18 = vmul.f32 %v3630_v30, %v8480_v24  ;;  %v3003_v12 = vmul.f32 %v2984_v42, %v10409_v36  ;;  %v3210_v59 = vmul.f32 %v8308_v58, %v3191_v62  ;;  %v3519_v57 = vadd.f32 %v8485_v43, %v3518_v38 }
 0x55a   : > { %v3524_v15 = vand.u32 2147483647, %v8460_v35  ;;  %v3578_v13 = vmul.f32 %v3577_v41, %v8437_v39  ;;  %v3211_v30 = vmul.f32 %v8308_v58, %v3192_v61  ;;  %v3526_v14 = vand.u32 2147483648, %v8460_v35 }
 0x55b   : > { %v3632_v7 = vadd.f32 0.4994258, %v3631_v18  ;;  %v8542_v29 = vpop.eup %5741  ;;  %v3539_v25 = vadd.f32 0.05243302, %v3538_v45  ;;  %v8556_v42 = vadd.f32 1e-05, %v3003_v12  ;;  %v3616_v33 = vmul.f32 %v3615_v51, %v8480_v24 }
 0x55c   : > { %v8552_v10 = vpop.eup %5743  ;;  %v3229_v1 = vadd.f32 %v8313_v52, %v3210_v59  ;;  %v3230_v61 = vadd.f32 %v8313_v52, %v3211_v30  ;;  %v3126_v41 = vmul.f32 0.5, %v3125_v47  ;;  %v3503_v62 = vadd.f32 1.1283791, %v3502_v34 }
 0x55d   : > { %v3633_v22 = vmul.f32 %v3632_v7, %v8480_v24  ;;  %v3523_v45 = vsel %vm8558_vm2, %v8485_v43, %v3519_v57  ;;  %v3134_v35 = vmul.f32 %v8542_v29, %v8497_v17  ;;  %v3579_v12 = vadd.f32 0.05243302, %v3578_v13  ;;  %v3393_v57 = vpop.f32.mrf.mxu3 }
 0x55e   : > { %v8571_v7 = vpop.eup %5745  ;;  %v3596_v51 = vmul.f32 %v8552_v10, %v8506_v44  ;;  %v3241_v30 = vpack.c.bf16 %v3230_v61, %v3229_v1  ;;  %v3527_v54 = vor.u32 1.1754944e-38, %v3526_v14  ;;  %v3540_v47 = vmul.f32 %v3539_v25, %v8427_v21 }
 0x55f   : > { %v8575_v59 = vadd.f32 1.0, %v3633_v22  ;;  %5747 = vrsqrt.f32 %v8556_v42  ;;  %vm3525_vm3 = vcmp.eq.f32.partialorder %v3524_v15, 8.507059e+37  ;;  %v3617_v43 = vadd.f32 0.0036580483, %v3616_v33 }
 0x560   : > { %v2986_v40 = vpop.xlane.xlu2 %2985  ;;  %3358 = vmatmul.bf16.gmra.mxu1 %v3241_v30  ;;  %3407 = vmatmul.bf16.gmra.mxu3 %v3241_v30  ;;  %v3556_v13 = vmul.f32 %v8571_v7, %v8524_v19  ;;  %v3135_v22 = vmul.f32 %v8542_v29, %v3134_v35  ;;  %v3504_v14 = vmul.f32 %v3503_v62, %v8405_v56  ;;  %v3597_v38 = vsub.f32 1.0, %v3596_v51  ;;  %v5511_v51 = vld [vmem:[%s10429_s19 + $0x38] sm:$0xff] }
 0x561   : > { %v3004_v18 = vmul.f32 %v2986_v40, %v10409_v36  ;;  %v3528_v40 = vsel %vm3525_vm3, %v3527_v54, %v3523_v45  ;;  %v3580_v25 = vmul.f32 %v3579_v12, %v8437_v39  ;;  %v3127_v15 = vsub.f32 1.5, %v3126_v41  ;;  %v3346_v12 = vpop.f32.mrf.mxu1  ;;  %4951 = vmatpush.bf16.msrb.mxu0 %v5511_v51  ;;  %5522 = vmatpush.bf16.msra.mxu1 %v5511_v51 }
 0x562   : > { %v3541_v33 = vadd.f32 0.18741608, %v3540_v47  ;;  %v8589_v1 = vadd.f32 %v3344_v26, %v8399_v0  ;;  %v8591_v54 = vmul.f32 %v3528_v40, %v3504_v14  ;;  %v3618_v61 = vmul.f32 %v3617_v43, %v8480_v24 }
 0x563   : > { %v8579_v34 = vadd.f32 1e-05, %v3004_v18  ;;  %v8595_v18 = vadd.f32 %v3393_v57, %v8412_v49  ;;  %v3557_v56 = vsub.f32 1.0, %v3556_v13  ;;  %v3136_v62 = vmul.f32 0.5, %v3135_v22 }
 0x564   : > { %vm3130_vm5 = vweird.f32 %v8499_v16  ;;  %v8601_v35 = vmul.f32 0.5, %v8402_v48  ;;  %v3581_v41 = vadd.f32 0.18741608, %v3580_v25  ;;  %v3598_v26 = vmul.f32 %v8552_v10, %v3597_v38 }
 0x565   : > { %5749 = vrsqrt.f32 %v8579_v34  ;;  %v8597_v45 = vpop.eup %5747  ;;  %v8610_v47 = vmul.f32 %v8499_v16, %v3127_v15  ;;  %v3542_v43 = vmul.f32 %v3541_v33, %v8427_v21  ;;  %v8616_v57 = vmul.f32 0.70710677, %v8589_v1  ;;  %v5510_v21 = vld [vmem:[%s10429_s19 + $0x30] sm:$0xff]  ;;  %v3395_v51 = vpop.f32.mrf.mxu3  ;;  %vm8680_vm13 = vmor %vm3129_vm6, %vm3130_vm5 }
 0x566   : > { %5751 = vrcp.f32 %v8575_v59  ;;  %vm3139_vm4 = vweird.f32 %v8497_v17  ;;  %v3619_v22 = vadd.f32 0.05243302, %v3618_v61  ;;  %v3144_v14 = vmul.f32 %v8597_v45, %v8556_v42  ;;  %4952 = vmatpush.bf16.msrb.mxu0 %v5510_v21  ;;  %5523 = vmatpush.bf16.msra.mxu1 %v5510_v21 }
 0x567   : > { %v8625_v25 = vmul.f32 0.70710677, %v8595_v18  ;;  %v3558_v38 = vmul.f32 %v8571_v7, %v3557_v56  ;;  %vm3560_vm7 = vweird.f32 %v8524_v19  ;;  %v3566_v15 = vand.u32 2147483648, %v8524_v19 }
 0x568   : > { %v3137_v33 = vsub.f32 1.5, %v3136_v62  ;;  %v8634_v61 = vadd.f32 %v3346_v12, %v8399_v0  ;;  %v3582_v13 = vmul.f32 %v3581_v41, %v8437_v39  ;;  %v3599_v48 = vadd.f32 %v8552_v10, %v3598_v26 }
 0x569   : > { %vm3601_vm8 = vweird.f32 %v8552_v10  ;;  %vm3600_vm9 = vweird.f32 %v8506_v44  ;;  %v3606_v56 = vand.u32 2147483648, %v8506_v44  ;;  %v3652_v12 = vmul.f32 %v8616_v57, %v8616_v57 }
 0x56a   : > { %v3604_v39 = vand.u32 2147483647, %v8506_v44  ;;  %v3620_v41 = vmul.f32 %v3619_v22, %v8480_v24  ;;  %v3145_v26 = vmul.f32 %v8597_v45, %v3144_v14  ;;  %v3692_v27 = vmul.f32 %v8625_v25, %v8625_v25  ;;  %vm8656_vm12 = vmor %vm3600_vm9, %vm3601_vm8 }
 0x56b   : > { %v8607_v30 = vpop.eup %5749  ;;  %vm3561_vm10 = vweird.f32 %v8571_v7  ;;  %vm3140_vm11 = vweird.f32 %v8542_v29  ;;  %v8661_v44 = vmul.f32 0.70710677, %v8634_v61  ;;  %v8664_v22 = vadd.f32 %v3395_v51, %v8412_v49 }
 0x56c   : > { %v8618_v40 = vpop.eup %5751  ;;  %v3154_v11 = vmul.f32 %v8607_v30, %v8579_v34  ;;  %v3138_v14 = vmul.f32 %v8542_v29, %v3137_v33  ;;  %v3583_v50 = vadd.f32 1.1283791, %v3582_v13  ;;  %v3603_v21 = vsel %vm8656_vm12, %v8552_v10, %v3599_v48  ;;  %vm8690_vm15 = vmor %vm3139_vm4, %vm3140_vm11 }
 0x56d   : > { %v3636_v62 = vmul.f32 %v8618_v40, %v8575_v59  ;;  %v8672_v9 = vadd.f32 %v8571_v7, %v3558_v38  ;;  %v3607_v37 = vor.u32 1.1754944e-38, %v3606_v56  ;;  %v8674_v3 = vmin.f32 %v3652_v12, 16.0  ;;  %vm8709_vm0 = vmor %vm3560_vm7, %vm3561_vm10 }
 0x56e   : > { %v3155_v8 = vmul.f32 %v8607_v30, %v3154_v11  ;;  %vm3605_vm14 = vcmp.eq.f32.partialorder %v3604_v39, 8.507059e+37  ;;  %v3621_v2 = vadd.f32 0.18741608, %v3620_v41  ;;  %v3146_v10 = vmul.f32 0.5, %v3145_v26  ;;  %v5519_v39 = vld [vmem:[%s10429_s19 + $0x78] sm:$0xff] }
 0x56f   : > { %v3637_v31 = vsub.f32 1.0, %v3636_v62  ;;  %v8684_v48 = vmin.f32 %v3692_v27, 16.0  ;;  %v3608_v13 = vsel %vm3605_vm14, %v3607_v37, %v3603_v21  ;;  %v3732_v53 = vmul.f32 %v8661_v44, %v8661_v44  ;;  %5000 = vmatpush.bf16.msrb.mxu2 %v5519_v39  ;;  %5530 = vmatpush.bf16.msra.mxu3 %v5519_v39  ;;  %v5517_v39 = vld [vmem:[%s10429_s19 + $0x68] sm:$0xff] }
 0x570   : > { %v8697_v38 = vmul.f32 0.70710677, %v8664_v22  ;;  %v3132_v27 = vsel %vm8680_vm13, %v8499_v16, %v8610_v47  ;;  %v8703_v51 = vadd.f32 1.1283791, %v3542_v43  ;;  %v3584_v37 = vmul.f32 %v3583_v50, %v8430_v20 }
 0x571   : > { %v3156_v56 = vmul.f32 0.5, %v3155_v8  ;;  %v3142_v62 = vsel %vm8690_vm15, %v8542_v29, %v3138_v14  ;;  %v3563_v16 = vsel %vm8709_vm0, %v8571_v7, %v8672_v9  ;;  %v3567_v47 = vor.u32 1.1754944e-38, %v3566_v15 }
 0x572   : > { %v3638_v43 = vmul.f32 %v8618_v40, %v3637_v31  ;;  %v3654_v12 = vmul.f32 2.1237322e-06, %v8674_v3  ;;  %v10438_v8 = vand.u32 2147483647, %v8524_v19  ;;  %v8732_v20 = vmul.f32 %v3608_v13, %v3584_v37 }
 0x573   : > { %v3147_v29 = vsub.f32 1.5, %v3146_v10  ;;  %v3694_v9 = vmul.f32 2.1237322e-06, %v8684_v48  ;;  %v3193_v7 = vmul.f32 %v3132_v27, %v8348_v46  ;;  %v3622_v31 = vmul.f32 %v3621_v2, %v8480_v24  ;;  %v5518_v2 = vld [vmem:[%s10429_s19 + $0x70] sm:$0xff] }
 0x574   : > { %vm8728_vm1 = vcmp.eq.f32.partialorder %v10438_v8, 8.507059e+37  ;;  %v8737_v15 = vmin.f32 %v3732_v53, 16.0  ;;  %v3772_v41 = vmul.f32 %v8697_v38, %v8697_v38  ;;  %v3194_v19 = vmul.f32 %v3142_v62, %v8354_v32  ;;  %v5509_v32 = vld [vmem:[%s10429_s19 + $0x28] sm:$0xff]  ;;  %v3349_v53 = vpop.f32.mrf.mxu1  ;;  %5001 = vmatpush.bf16.msrb.mxu2 %v5518_v2  ;;  %5531 = vmatpush.bf16.msra.mxu3 %v5518_v2 }
 0x575   : > { %vm3640_vm2 = vweird.f32 %v8575_v59  ;;  %v3644_v26 = vand.u32 2147483647, %v8575_v59  ;;  %v3157_v14 = vsub.f32 1.5, %v3156_v56  ;;  %v3212_v21 = vmul.f32 %v8308_v58, %v3193_v7  ;;  %4953 = vmatpush.bf16.msrb.mxu0 %v5509_v32  ;;  %5524 = vmatpush.bf16.msra.mxu1 %v5509_v32 }
 0x576   : > { %v3639_v46 = vadd.f32 %v8618_v40, %v3638_v43  ;;  %vm3641_vm3 = vweird.f32 %v8618_v40  ;;  %v3655_v24 = vadd.f32 0.00028619796, %v3654_v12  ;;  %v3213_v33 = vmul.f32 %v8308_v58, %v3194_v19  ;;  %v5514_v19 = vld [vmem:[%s10429_s19 + $0x50] sm:$0xff] }
 0x577   : > { %v3646_v10 = vand.u32 2147483648, %v8575_v59  ;;  %v3148_v11 = vmul.f32 %v8597_v45, %v3147_v29  ;;  %vm3150_vm5 = vweird.f32 %v8597_v45  ;;  %v3695_v13 = vadd.f32 0.00028619796, %v3694_v9  ;;  %vm8766_vm6 = vmor %vm3640_vm2, %vm3641_vm3 }
 0x578   : > { %v3734_v27 = vmul.f32 2.1237322e-06, %v8737_v15  ;;  %v8758_v17 = vmin.f32 %v3772_v41, 16.0  ;;  %v3231_v37 = vadd.f32 %v8313_v52, %v3212_v21  ;;  %v3232_v56 = vadd.f32 %v8313_v52, %v3213_v33  ;;  %v5508_v52 = vld [vmem:[%s10429_s19 + $0x20] sm:$0xff]  ;;  %5002 = vmatpush.bf16.msrb.mxu2 %v5517_v39  ;;  %5532 = vmatpush.bf16.msra.mxu3 %v5517_v39 }
 0x579   : > { %v3623_v62 = vadd.f32 1.1283791, %v3622_v31  ;;  %vm3149_vm4 = vweird.f32 %v8556_v42  ;;  %v3158_v12 = vmul.f32 %v8607_v30, %v3157_v14  ;;  %vm3160_vm7 = vweird.f32 %v8607_v30  ;;  %4954 = vmatpush.bf16.msrb.mxu0 %v5508_v52  ;;  %5525 = vmatpush.bf16.msra.mxu1 %v5508_v52 }
 0x57a   : > { %v3643_v59 = vsel %vm8766_vm6, %v8618_v40, %v3639_v46  ;;  %vm8784_vm8 = vmor %vm3149_vm4, %vm3150_vm5  ;;  %v3656_v8 = vmul.f32 %v3655_v24, %v8674_v3  ;;  %v8790_v29 = vadd.f32 %v3349_v53, %v8399_v0  ;;  %v3242_v9 = vpack.c.bf16 %v3232_v56, %v3231_v37 }
 0x57b   : > { %v3647_v7 = vor.u32 1.1754944e-38, %v3646_v10  ;;  %v3696_v31 = vmul.f32 %v3695_v13, %v8684_v48  ;;  %vm3159_vm9 = vweird.f32 %v8579_v34  ;;  %v3152_v40 = vsel %vm8784_vm8, %v8597_v45, %v3148_v11  ;;  %v5507_v45 = vld [vmem:[%s10429_s19 + $0x18] sm:$0xff] }
 0x57c   : > { %v3568_v41 = vsel %vm8728_vm1, %v3567_v47, %v3563_v16  ;;  %vm3645_vm10 = vcmp.eq.f32.partialorder %v3644_v26, 8.507059e+37  ;;  %vm8801_vm11 = vmor %vm3159_vm9, %vm3160_vm7  ;;  %v3735_v14 = vadd.f32 0.00028619796, %v3734_v27  ;;  %v3774_v21 = vmul.f32 2.1237322e-06, %v8758_v17  ;;  %3363 = vmatmul.bf16.gmra.mxu1 %v3242_v9  ;;  %3412 = vmatmul.bf16.gmra.mxu3 %v3242_v9  ;;  %v5516_v16 = vld [vmem:[%s10429_s19 + $0x60] sm:$0xff] }
 0x57d   : > { %v3544_v34 = vmul.f32 %v8703_v51, %v8419_v63  ;;  %v3648_v46 = vsel %vm3645_vm10, %v3647_v7, %v3643_v59  ;;  %v3162_v47 = vsel %vm8801_vm11, %v8607_v30, %v3158_v12  ;;  %v3665_v50 = vmul.f32 3.8918573e-05, %v8674_v3  ;;  %v2988_v51 = vpop.xlane.xlu0 %2987  ;;  %4955 = vmatpush.bf16.msrb.mxu0 %v5507_v45  ;;  %5003 = vmatpush.bf16.msrb.mxu2 %v5516_v16  ;;  %v3398_v12 = vpop.f32.mrf.mxu3 }
 0x57e   : > { %v3624_v26 = vmul.f32 %v3623_v62, %v8469_v4  ;;  %v3657_v63 = vadd.f32 0.0036580483, %v3656_v8  ;;  %v8820_v24 = vmul.f32 0.70710677, %v8790_v29  ;;  %v3195_v33 = vmul.f32 %v3152_v40, %v8364_v6  ;;  %5533 = vmatpush.bf16.msra.mxu3 %v5516_v16  ;;  %5526 = vmatpush.bf16.msra.mxu1 %v5507_v45 }
 0x57f   : > { %v3569_v32 = vmul.f32 %v3568_v41, %v3544_v34  ;;  %v5374_v2 = vclamps-f32 %v8732_v20, 1.0  ;;  %v3697_v10 = vadd.f32 0.0036580483, %v3696_v31  ;;  %v3196_v11 = vmul.f32 %v3162_v47, %v8372_v23  ;;  %v5506_v20 = vld [vmem:[%s10429_s19 + $0x10] sm:$0xff]  ;;  %v5515_v23 = vld [vmem:[%s10429_s19 + $0x58] sm:$0xff]  ;;  %v5505_v41 = vld [vmem:[%s10429_s19 + $0x8] sm:$0xff] }
 0x580   : > { %v8826_v30 = vmul.f32 0.5, %v8415_v60  ;;  %v3649_v13 = vmul.f32 %v3648_v46, %v3624_v26  ;;  %v3736_v4 = vmul.f32 %v3735_v14, %v8737_v15  ;;  %v3775_v53 = vadd.f32 0.00028619796, %v3774_v21  ;;  %v8850_v31 = vld [vmem:[%s10123_s8] ss:$0 sm:$0xff] }
 0x581   : > { %v3430_v27 = vmul.f32 0.5, %v8424_v5  ;;  %v3005_v37 = vmul.f32 %v2988_v51, %v10409_v36  ;;  %v3215_v6 = vmul.f32 %v8308_v58, %v3196_v11  ;;  %v3666_v60 = vadd.f32 0.001143296, %v3665_v50  ;;  %4956 = vmatpush.bf16.msrb.mxu0 %v5506_v20  ;;  %5004 = vmatpush.bf16.msrb.mxu2 %v5515_v23  ;;  %v5504_v11 = vld [vmem:[%s10429_s19] sm:$0xff] }
 0x582   : > { %v10447_v56 = vclamps-f32 %v8591_v54, 1.0  ;;  %v3658_v5 = vmul.f32 %v3657_v63, %v8674_v3  ;;  %v3812_v43 = vmul.f32 %v8820_v24, %v8820_v24  ;;  %v3214_v52 = vmul.f32 %v8308_v58, %v3195_v33  ;;  %5534 = vmatpush.bf16.msra.mxu3 %v5515_v23  ;;  %5527 = vmatpush.bf16.msra.mxu1 %v5506_v20 }
 0x583   : > { %v5373_v39 = vclamps-f32 %v3569_v32, 1.0  ;;  %v4774_v59 = vadd.f32 1.0, %v5374_v2  ;;  %v3698_v42 = vmul.f32 %v3697_v10, %v8684_v48  ;;  %v3667_v8 = vmul.f32 %v3666_v60, %v8674_v3  ;;  %v3351_v10 = vpop.f32.mrf.mxu1 }
 0x584   : > { %v4772_v62 = vadd.f32 1.0, %v10447_v56  ;;  %v5375_v9 = vclamps-f32 %v3649_v13, 1.0  ;;  %v3737_v7 = vadd.f32 0.0036580483, %v3736_v4  ;;  %v3776_v54 = vmul.f32 %v3775_v53, %v8758_v17  ;;  %v5513_v13 = vld [vmem:[%s10429_s19 + $0x48] sm:$0xff] }
 0x585   : > { %v3234_v40 = vadd.f32 %v8850_v31, %v3215_v6  ;;  %v8853_v58 = vadd.f32 1e-05, %v3005_v37  ;;  %v3668_v14 = vadd.f32 0.014752088, %v3667_v8  ;;  %v3659_v21 = vadd.f32 0.05243302, %v3658_v5  ;;  %4957 = vmatpush.bf16.msrb.mxu0 %v5505_v41  ;;  %5005 = vmatpush.bf16.msrb.mxu2 %v5514_v19 }
 0x586   : > { %v8861_v34 = vmin.f32 %v3812_v43, 16.0  ;;  %v3233_v46 = vadd.f32 %v8850_v31, %v3214_v52  ;;  %v3745_v45 = vmul.f32 3.8918573e-05, %v8737_v15  ;;  %v4806_v16 = vmul.f32 %v4774_v59, %v3430_v27  ;;  %5535 = vmatpush.bf16.msra.mxu3 %v5514_v19  ;;  %5528 = vmatpush.bf16.msra.mxu1 %v5505_v41 }
 0x587   : > { %v3699_v47 = vadd.f32 0.05243302, %v3698_v42  ;;  %v8866_v50 = vadd.f32 %v3398_v12, %v8412_v49  ;;  %v3669_v26 = vmul.f32 %v3668_v14, %v8674_v3  ;;  %v4775_v63 = vadd.f32 1.0, %v5375_v9 }
 0x588   : > { %v3738_v51 = vmul.f32 %v3737_v7, %v8737_v15  ;;  %v3777_v33 = vadd.f32 0.0036580483, %v3776_v54  ;;  %v3243_v32 = vpack.c.bf16 %v3234_v40, %v3233_v46  ;;  %v4804_v2 = vmul.f32 %v4772_v62, %v8601_v35 }
 0x589   : > { %5753 = vrsqrt.f32 %v8853_v58  ;;  %v3670_v4 = vadd.f32 0.112945676, %v3669_v26  ;;  %v3746_v53 = vadd.f32 0.001143296, %v3745_v45  ;;  %v4773_v27 = vadd.f32 1.0, %v5373_v39  ;;  %4958 = vmatpush.bf16.msrb.mxu0 %v5504_v11  ;;  %5006 = vmatpush.bf16.msrb.mxu2 %v5513_v13  ;;  %v5512_v39 = vld [vmem:[%s10429_s19 + $0x40] sm:$0xff] }
 0x58a   : > { %v3431_v37 = vmul.f32 0.5, %v8464_v55  ;;  %v3660_v35 = vmul.f32 %v3659_v21, %v8674_v3  ;;  %v3814_v6 = vmul.f32 2.1237322e-06, %v8861_v34  ;;  %v3700_v20 = vmul.f32 %v3699_v47, %v8684_v48  ;;  %v3400_v55 = vpop.f32.mrf.mxu3  ;;  %5536 = vmatpush.bf16.msra.mxu3 %v5513_v13  ;;  %5529 = vmatpush.bf16.msra.mxu1 %v5504_v11 }
 0x58b   : > { %v8883_v23 = vmul.f32 0.70710677, %v8866_v50  ;;  %v3671_v60 = vmul.f32 %v3670_v4, %v8674_v3  ;;  %v3747_v56 = vmul.f32 %v3746_v53, %v8737_v15  ;;  %v3739_v5 = vadd.f32 0.05243302, %v3738_v51 }
 0x58c   : > { %v4807_v62 = vmul.f32 %v4775_v63, %v3431_v37  ;;  %v8888_v43 = vadd.f32 %v3351_v10, %v8399_v0  ;;  %3368 = vmatmul.bf16.gmra.mxu1 %v3243_v32  ;;  %3417 = vmatmul.bf16.gmra.mxu3 %v3243_v32  ;;  %v4836_v12 = vpack.c.bf16 %v4806_v16, %v4804_v2  ;;  %v3661_v9 = vadd.f32 0.18741608, %v3660_v35 }
 0x58d   : > { %v3778_v52 = vmul.f32 %v3777_v33, %v8758_v17  ;;  %v3672_v59 = vadd.f32 0.4994258, %v3671_v60  ;;  %v3748_v42 = vadd.f32 0.014752088, %v3747_v56  ;;  %v4805_v8 = vmul.f32 %v4773_v27, %v8826_v30  ;;  %5007 = vmatpush.bf16.msrb.mxu2 %v5512_v39 }
 0x58e   : > { %v3815_v7 = vadd.f32 0.00028619796, %v3814_v6  ;;  %v3852_v40 = vmul.f32 %v8883_v23, %v8883_v23  ;;  %v8900_v41 = vadd.f32 %v3400_v55, %v8412_v49  ;;  %v3701_v21 = vadd.f32 0.18741608, %v3700_v20  ;;  %4959 = vmatmul.bf16.vlgmr.msrb.gmra.mxu0 %v4836_v12  ;;  %5537 = vmatpush.bf16.msra.mxu3 %v5512_v39 }
 0x58f   : > { %v8895_v54 = vpop.eup %5753  ;;  %v3673_v19 = vmul.f32 %v3672_v59, %v8674_v3  ;;  %v3749_v14 = vmul.f32 %v3748_v42, %v8737_v15  ;;  %v8905_v46 = vmul.f32 0.70710677, %v8888_v43  ;;  %v4837_v30 = vpack.c.bf16 %v4807_v62, %v4805_v8 }
 0x590   : > { %v3740_v45 = vmul.f32 %v3739_v5, %v8737_v15  ;;  %v3779_v16 = vadd.f32 0.05243302, %v3778_v52  ;;  %v3662_v63 = vmul.f32 %v3661_v9, %v8674_v3  ;;  %v3164_v51 = vmul.f32 %v8895_v54, %v8853_v58 }
 0x591   : > { %v8908_v47 = vadd.f32 1.0, %v3673_v19  ;;  %v3750_v26 = vadd.f32 0.112945676, %v3749_v14  ;;  %v3816_v33 = vmul.f32 %v3815_v7, %v8861_v34  ;;  %v8914_v32 = vmin.f32 %v3852_v40, 16.0  ;;  %5008 = vmatmul.bf16.vlgmr.msrb.gmra.mxu2 %v4837_v30 }
 0x592   : > { %v8917_v2 = vmul.f32 0.70710677, %v8900_v41  ;;  %v3702_v10 = vmul.f32 %v3701_v21, %v8684_v48  ;;  %v3892_v11 = vmul.f32 %v8905_v46, %v8905_v46  ;;  %v8925_v13 = vmul.f32 0.5, %v8589_v1 }
 0x593   : > { %5755 = vrcp.f32 %v8908_v47  ;;  %v3751_v3 = vmul.f32 %v3750_v26, %v8737_v15  ;;  %v3741_v4 = vadd.f32 0.18741608, %v3740_v45  ;;  %v3780_v53 = vmul.f32 %v3779_v16, %v8758_v17 }
 0x594   : > { %v3663_v27 = vadd.f32 1.1283791, %v3662_v63  ;;  %v8929_v37 = vmul.f32 0.5, %v8595_v18  ;;  %v3165_v35 = vmul.f32 %v8895_v54, %v3164_v51  ;;  %v3817_v20 = vadd.f32 0.0036580483, %v3816_v33 }
 0x595   : > { %v3752_v6 = vadd.f32 0.4994258, %v3751_v3  ;;  %v3854_v60 = vmul.f32 2.1237322e-06, %v8914_v32  ;;  %v3932_v56 = vmul.f32 %v8917_v2, %v8917_v2  ;;  %v3705_v62 = vmul.f32 3.8918573e-05, %v8684_v48 }
 0x596   : > { %v3703_v1 = vadd.f32 1.1283791, %v3702_v10  ;;  %v8937_v5 = vmul.f32 0.5, %v8634_v61  ;;  %v8939_v55 = vmin.f32 %v3892_v11, 16.0  ;;  %v3742_v52 = vmul.f32 %v3741_v4, %v8737_v15 }
 0x597   : > { %v3753_v18 = vmul.f32 %v3752_v6, %v8737_v15  ;;  %v8944_v39 = vmul.f32 0.5, %v8664_v22  ;;  %v3781_v59 = vadd.f32 0.18741608, %v3780_v53  ;;  %v3706_v42 = vadd.f32 0.001143296, %v3705_v62 }
 0x598   : > { %v3664_v8 = vmul.f32 %v3663_v27, %v8616_v57  ;;  %v8947_v9 = vmul.f32 0.5, %v3165_v35  ;;  %v3818_v40 = vmul.f32 %v3817_v20, %v8861_v34  ;;  %v3855_v19 = vadd.f32 0.00028619796, %v3854_v60 }
 0x599   : > { %v5756_v12 = vpop.eup %5755  ;;  %v8950_v61 = vadd.f32 1.0, %v3753_v18  ;;  %v8953_v14 = vmin.f32 %v3932_v56, 16.0  ;;  %v3707_v15 = vmul.f32 %v3706_v42, %v8684_v48  ;;  %v8957_v22 = vmul.f32 %v3703_v1, %v8625_v25 }
 0x59a   : > { %v3676_v7 = vmul.f32 %v5756_v12, %v8908_v47  ;;  %v3894_v21 = vmul.f32 2.1237322e-06, %v8939_v55  ;;  %v3743_v57 = vadd.f32 1.1283791, %v3742_v52  ;;  %v3782_v45 = vmul.f32 %v3781_v59, %v8758_v17 }
 0x59b   : > { %5757 = vrcp.f32 %v8950_v61  ;;  %v3686_v16 = vand.u32 2147483648, %v8908_v47  ;;  %v3708_v26 = vadd.f32 0.014752088, %v3707_v15  ;;  %vm3681_vm12 = vweird.f32 %v5756_v12 }
 0x59c   : > { %v3677_v30 = vsub.f32 1.0, %v3676_v7  ;;  %v3684_v51 = vand.u32 2147483647, %v8908_v47  ;;  %v3785_v33 = vmul.f32 3.8918573e-05, %v8758_v17  ;;  %v3856_v25 = vmul.f32 %v3855_v19, %v8914_v32 }
 0x59d   : > { %v3819_v10 = vadd.f32 0.05243302, %v3818_v40  ;;  %v3934_v11 = vmul.f32 2.1237322e-06, %v8953_v14  ;;  %v3709_v3 = vmul.f32 %v3708_v26, %v8684_v48  ;;  %v3895_v4 = vadd.f32 0.00028619796, %v3894_v21 }
 0x59e   : > { %v3678_v63 = vmul.f32 %v5756_v12, %v3677_v30  ;;  %vm3680_vm13 = vweird.f32 %v8908_v47  ;;  %v3786_v27 = vadd.f32 0.001143296, %v3785_v33  ;;  %v3744_v35 = vmul.f32 %v3743_v57, %v8661_v44 }
 0x59f   : > { %vm3682_vm14 = vmor %vm3680_vm13, %vm3681_vm12  ;;  %v3687_v6 = vor.u32 1.1754944e-38, %v3686_v16  ;;  %v3710_v20 = vadd.f32 0.112945676, %v3709_v3  ;;  %v3825_v60 = vmul.f32 3.8918573e-05, %v8861_v34  ;;  %vm3685_vm15 = vcmp.eq.f32.partialorder %v3684_v51, 8.507059e+37 }
 0x5a0   : > { %v3679_v53 = vadd.f32 %v5756_v12, %v3678_v63  ;;  %v3783_v62 = vadd.f32 1.1283791, %v3782_v45  ;;  %v3787_v18 = vmul.f32 %v3786_v27, %v8758_v17  ;;  %v3857_v52 = vadd.f32 0.0036580483, %v3856_v25 }
 0x5a1   : > { %v5758_v56 = vpop.eup %5757  ;;  %v3711_v47 = vmul.f32 %v3710_v20, %v8684_v48  ;;  %v3896_v7 = vmul.f32 %v3895_v4, %v8939_v55  ;;  %v3935_v44 = vadd.f32 0.00028619796, %v3934_v11  ;;  %v3826_v19 = vadd.f32 0.001143296, %v3825_v60 }
 0x5a2   : > { %v3683_v1 = vsel %vm3682_vm14, %v5756_v12, %v3679_v53  ;;  %v3756_v42 = vmul.f32 %v5758_v56, %v8950_v61  ;;  %v3788_v40 = vadd.f32 0.014752088, %v3787_v18  ;;  %v3820_v15 = vmul.f32 %v3819_v10, %v8861_v34 }
 0x5a3   : > { %v3688_v59 = vsel %vm3685_vm15, %v3687_v6, %v3683_v1  ;;  %v3764_v30 = vand.u32 2147483647, %v8950_v61  ;;  %v3712_v12 = vadd.f32 0.4994258, %v3711_v47  ;;  %v3766_v45 = vand.u32 2147483648, %v8950_v61 }
 0x5a4   : > { %v3757_v21 = vsub.f32 1.0, %v3756_v42  ;;  %v3689_v57 = vmul.f32 %v3688_v59, %v3664_v8  ;;  %v3789_v16 = vmul.f32 %v3788_v40, %v8758_v17  ;;  %v3827_v26 = vmul.f32 %v3826_v19, %v8861_v34 }
 0x5a5   : > { %vm3761_vm0 = vweird.f32 %v5758_v56  ;;  %v3713_v51 = vmul.f32 %v3712_v12, %v8684_v48  ;;  %v3865_v33 = vmul.f32 3.8918573e-05, %v8914_v32  ;;  %v3897_v25 = vadd.f32 0.0036580483, %v3896_v7 }
 0x5a6   : > { %v3758_v63 = vmul.f32 %v5758_v56, %v3757_v21  ;;  %vm3760_vm1 = vweird.f32 %v8950_v61  ;;  %v3790_v10 = vadd.f32 0.112945676, %v3789_v16  ;;  %v3828_v11 = vadd.f32 0.014752088, %v3827_v26 }
 0x5a7   : > { %v8983_v4 = vadd.f32 1.0, %v3713_v51  ;;  %v3905_v8 = vmul.f32 3.8918573e-05, %v8939_v55  ;;  %v3866_v53 = vadd.f32 0.001143296, %v3865_v33  ;;  %v5376_v27 = vclamps-f32 %v3689_v57, 1.0  ;;  %vm3762_vm2 = vmor %vm3760_vm1, %vm3761_vm0 }
 0x5a8   : > { %v3759_v3 = vadd.f32 %v5758_v56, %v3758_v63  ;;  %v3767_v6 = vor.u32 1.1754944e-38, %v3766_v45  ;;  %v3791_v20 = vmul.f32 %v3790_v10, %v8758_v17  ;;  %v3829_v48 = vmul.f32 %v3828_v11, %v8861_v34 }
 0x5a9   : > { %v3821_v60 = vadd.f32 0.18741608, %v3820_v15  ;;  %vm3765_vm3 = vcmp.eq.f32.partialorder %v3764_v30, 8.507059e+37  ;;  %5759 = vrcp.f32 %v8983_v4  ;;  %v3858_v61 = vmul.f32 %v3857_v52, %v8914_v32 }
 0x5aa   : > { %v3763_v1 = vsel %vm3762_vm2, %v5758_v56, %v3759_v3  ;;  %v3792_v59 = vadd.f32 0.4994258, %v3791_v20  ;;  %v3830_v42 = vadd.f32 0.112945676, %v3829_v48  ;;  %v3936_v47 = vmul.f32 %v3935_v44, %v8953_v14 }
 0x5ab   : > { %v3768_v18 = vsel %vm3765_vm3, %v3767_v6, %v3763_v1  ;;  %v3906_v40 = vadd.f32 0.001143296, %v3905_v8  ;;  %v3867_v19 = vmul.f32 %v3866_v53, %v8914_v32  ;;  %v3898_v21 = vmul.f32 %v3897_v25, %v8939_v55 }
 0x5ac   : > { %v3769_v7 = vmul.f32 %v3768_v18, %v3744_v35  ;;  %v4776_v12 = vadd.f32 1.0, %v5376_v27  ;;  %v3793_v15 = vmul.f32 %v3792_v59, %v8758_v17  ;;  %v3831_v56 = vmul.f32 %v3830_v42, %v8861_v34 }
 0x5ad   : > { %v3907_v57 = vmul.f32 %v3906_v40, %v8939_v55  ;;  %v3868_v52 = vadd.f32 0.014752088, %v3867_v19  ;;  %v3945_v45 = vmul.f32 3.8918573e-05, %v8953_v14  ;;  %v8998_v16 = vmul.f32 %v3783_v62, %v8697_v38 }
 0x5ae   : > { %v5378_v30 = vclamps-f32 %v3769_v7, 1.0  ;;  %v3859_v35 = vadd.f32 0.05243302, %v3858_v61  ;;  %v9000_v44 = vadd.f32 1.0, %v3793_v15  ;;  %v3832_v26 = vadd.f32 0.4994258, %v3831_v56 }
 0x5af   : > { %v5760_v63 = vpop.eup %5759  ;;  %v3908_v33 = vadd.f32 0.014752088, %v3907_v57  ;;  %v3869_v17 = vmul.f32 %v3868_v52, %v8914_v32  ;;  %v3946_v25 = vadd.f32 0.001143296, %v3945_v45  ;;  %v3899_v10 = vadd.f32 0.05243302, %v3898_v21 }
 0x5b0   : > { %v4778_v51 = vadd.f32 1.0, %v5378_v30  ;;  %v3937_v11 = vadd.f32 0.0036580483, %v3936_v47  ;;  %v3716_v3 = vmul.f32 %v5760_v63, %v8983_v4  ;;  %5761 = vrcp.f32 %v9000_v44 }
 0x5b1   : > { %v4808_v8 = vmul.f32 %v4776_v12, %v8925_v13  ;;  %v3724_v62 = vand.u32 2147483647, %v8983_v4  ;;  %v3833_v53 = vmul.f32 %v3832_v26, %v8861_v34  ;;  %v3909_v6 = vmul.f32 %v3908_v33, %v8939_v55 }
 0x5b2   : > { %v4810_v38 = vmul.f32 %v4778_v51, %v8937_v5  ;;  %v3717_v27 = vsub.f32 1.0, %v3716_v3  ;;  %v3870_v20 = vadd.f32 0.112945676, %v3869_v17  ;;  %v3947_v48 = vmul.f32 %v3946_v25, %v8953_v14 }
 0x5b3   : > { %vm3721_vm5 = vweird.f32 %v5760_v63  ;;  %v3726_v61 = vand.u32 2147483648, %v8983_v4  ;;  %v9012_v18 = vadd.f32 1.0, %v3833_v53  ;;  %v3910_v13 = vadd.f32 0.112945676, %v3909_v6 }
 0x5b4   : > { %v4838_v1 = vpack.c.bf16 %v4810_v38, %v4808_v8  ;;  %v3718_v59 = vmul.f32 %v5760_v63, %v3717_v27  ;;  %v3871_v5 = vmul.f32 %v3870_v20, %v8914_v32  ;;  %v3948_v42 = vadd.f32 0.014752088, %v3947_v48 }
 0x5b5   : > { %v3900_v47 = vmul.f32 %v3899_v10, %v8939_v55  ;;  %v3938_v7 = vmul.f32 %v3937_v11, %v8953_v14  ;;  %vm3720_vm6 = vweird.f32 %v8983_v4  ;;  %5763 = vrcp.f32 %v9012_v18 }
 0x5b6   : > { %4964 = vmatmul.bf16.gmra.mxu0 %v4838_v1  ;;  %v5762_v40 = vpop.eup %5761  ;;  %v3719_v19 = vadd.f32 %v5760_v63, %v3718_v59  ;;  %v3911_v21 = vmul.f32 %v3910_v13, %v8939_v55  ;;  %v3872_v12 = vadd.f32 0.4994258, %v3871_v5  ;;  %v3949_v15 = vmul.f32 %v3948_v42, %v8953_v14  ;;  %vm3722_vm4 = vmor %vm3720_vm6, %vm3721_vm5 }
 0x5b7   : > { %v3822_v56 = vmul.f32 %v3821_v60, %v8861_v34  ;;  %v3860_v30 = vmul.f32 %v3859_v35, %v8914_v32  ;;  %v3727_v57 = vor.u32 1.1754944e-38, %v3726_v61  ;;  %v3796_v52 = vmul.f32 %v5762_v40, %v9000_v44 }
 0x5b8   : > { %v3723_v45 = vsel %vm3722_vm4, %v5760_v63, %v3719_v19  ;;  %vm3725_vm7 = vcmp.eq.f32.partialorder %v3724_v62, 8.507059e+37  ;;  %v3912_v4 = vadd.f32 0.4994258, %v3911_v21  ;;  %v3873_v26 = vmul.f32 %v3872_v12, %v8914_v32 }
 0x5b9   : > { %v3939_v51 = vadd.f32 0.05243302, %v3938_v7  ;;  %v3728_v33 = vsel %vm3725_vm7, %v3727_v57, %v3723_v45  ;;  %v3797_v17 = vsub.f32 1.0, %v3796_v52  ;;  %v3950_v25 = vadd.f32 0.112945676, %v3949_v15 }
 0x5ba   : > { %v3901_v10 = vadd.f32 0.18741608, %v3900_v47  ;;  %v3806_v11 = vand.u32 2147483648, %v9000_v44  ;;  %v3913_v34 = vmul.f32 %v3912_v4, %v8939_v55  ;;  %v9028_v60 = vadd.f32 1.0, %v3873_v26  ;;  %v2990_v45 = vpop.xlane.xlu1 %2989 }
 0x5bb   : > { %v5764_v35 = vpop.eup %5763  ;;  %v3729_v3 = vmul.f32 %v3728_v33, %v8957_v22  ;;  %v3798_v8 = vmul.f32 %v5762_v40, %v3797_v17  ;;  %vm3801_vm8 = vweird.f32 %v5762_v40  ;;  %v3804_v63 = vand.u32 2147483647, %v9000_v44 }
 0x5bc   : > { %v3823_v38 = vadd.f32 1.1283791, %v3822_v56  ;;  %v3861_v62 = vadd.f32 0.18741608, %v3860_v30  ;;  %v3836_v53 = vmul.f32 %v5764_v35, %v9012_v18  ;;  %v9033_v27 = vadd.f32 1.0, %v3913_v34 }
 0x5bd   : > { %v3799_v6 = vadd.f32 %v5762_v40, %v3798_v8  ;;  %vm3800_vm9 = vweird.f32 %v9000_v44  ;;  %5765 = vrcp.f32 %v9028_v60  ;;  %v3951_v20 = vmul.f32 %v3950_v25, %v8953_v14 }
 0x5be   : > { %v3940_v48 = vmul.f32 %v3939_v51, %v8953_v14  ;;  %vm3802_vm10 = vmor %vm3800_vm9, %vm3801_vm8  ;;  %v3807_v22 = vor.u32 1.1754944e-38, %v3806_v11  ;;  %v3837_v1 = vsub.f32 1.0, %v3836_v53  ;;  %5767 = vrcp.f32 %v9033_v27 }
 0x5bf   : > { %v3902_v61 = vmul.f32 %v3901_v10, %v8939_v55  ;;  %v5377_v59 = vclamps-f32 %v3729_v3, 1.0  ;;  %v3803_v13 = vsel %vm3802_vm10, %v5762_v40, %v3799_v6  ;;  %vm3805_vm11 = vcmp.eq.f32.partialorder %v3804_v63, 8.507059e+37 }
 0x5c0   : > { %v3808_v5 = vsel %vm3805_vm11, %v3807_v22, %v3803_v13  ;;  %v3838_v42 = vmul.f32 %v5764_v35, %v3837_v1  ;;  %vm3841_vm12 = vweird.f32 %v5764_v35  ;;  %v3846_v44 = vand.u32 2147483648, %v9012_v18 }
 0x5c1   : > { %v3824_v47 = vmul.f32 %v3823_v38, %v8820_v24  ;;  %v3809_v7 = vmul.f32 %v3808_v5, %v8998_v16  ;;  %v3844_v19 = vand.u32 2147483647, %v9012_v18  ;;  %v3952_v21 = vadd.f32 0.4994258, %v3951_v20 }
 0x5c2   : > { %v3862_v12 = vmul.f32 %v3861_v62, %v8914_v32  ;;  %v3941_v15 = vadd.f32 0.18741608, %v3940_v48  ;;  %v3839_v56 = vadd.f32 %v5764_v35, %v3838_v42  ;;  %vm3840_vm13 = vweird.f32 %v9012_v18 }
 0x5c3   : > { %v5766_v55 = vpop.eup %5765  ;;  %v3903_v40 = vadd.f32 1.1283791, %v3902_v61  ;;  %v5379_v30 = vclamps-f32 %v3809_v7, 1.0  ;;  %v4777_v57 = vadd.f32 1.0, %v5377_v59  ;;  %vm3842_vm14 = vmor %vm3840_vm13, %vm3841_vm12  ;;  %v3953_v52 = vmul.f32 %v3952_v21, %v8953_v14 }
 0x5c4   : > { %v5768_v24 = vpop.eup %5767  ;;  %v3843_v4 = vsel %vm3842_vm14, %v5764_v35, %v3839_v56  ;;  %v3847_v16 = vor.u32 1.1754944e-38, %v3846_v44  ;;  %v3876_v26 = vmul.f32 %v5766_v55, %v9028_v60  ;;  %v3006_v51 = vmul.f32 %v2990_v45, %v10409_v36 }
 0x5c5   : > { %v4779_v32 = vadd.f32 1.0, %v5379_v30  ;;  %vm3845_vm15 = vcmp.eq.f32.partialorder %v3844_v19, 8.507059e+37  ;;  %v3916_v33 = vmul.f32 %v5768_v24, %v9033_v27  ;;  %v3924_v18 = vand.u32 2147483647, %v9033_v27 }
 0x5c6   : > { %v3848_v17 = vsel %vm3845_vm15, %v3847_v16, %v3843_v4  ;;  %v3877_v25 = vsub.f32 1.0, %v3876_v26  ;;  %v9052_v10 = vadd.f32 1.0, %v3953_v52  ;;  %v9054_v11 = vadd.f32 1e-05, %v3006_v51 }
 0x5c7   : > { %v4809_v34 = vmul.f32 %v4777_v57, %v8929_v37  ;;  %v4811_v35 = vmul.f32 %v4779_v32, %v8944_v39  ;;  %v3917_v3 = vsub.f32 1.0, %v3916_v33  ;;  %v3926_v8 = vand.u32 2147483648, %v9033_v27 }
 0x5c8   : > { %v3878_v36 = vmul.f32 %v5766_v55, %v3877_v25  ;;  %vm3881_vm0 = vweird.f32 %v5766_v55  ;;  %v3886_v63 = vand.u32 2147483648, %v9028_v60  ;;  %5769 = vrcp.f32 %v9052_v10 }
 0x5c9   : > { %v4839_v38 = vpack.c.bf16 %v4811_v35, %v4809_v34  ;;  %v3849_v62 = vmul.f32 %v3848_v17, %v3824_v47  ;;  %v3918_v53 = vmul.f32 %v5768_v24, %v3917_v3  ;;  %vm3921_vm1 = vweird.f32 %v5768_v24 }
 0x5ca   : > { %v3879_v6 = vadd.f32 %v5766_v55, %v3878_v36  ;;  %vm3880_vm2 = vweird.f32 %v9028_v60  ;;  %v3884_v37 = vand.u32 2147483647, %v9028_v60  ;;  %5771 = vrsqrt.f32 %v9054_v11 }
 0x5cb   : > { %v3167_v39 = vsub.f32 1.5, %v8947_v9  ;;  %5013 = vmatmul.bf16.gmra.mxu2 %v4839_v38  ;;  %v3919_v20 = vadd.f32 %v5768_v24, %v3918_v53  ;;  %vm3920_vm3 = vweird.f32 %v9033_v27  ;;  %vm9067_vm5 = vmor %vm3880_vm2, %vm3881_vm0  ;;  %v3863_v22 = vadd.f32 1.1283791, %v3862_v12  ;;  %v10452_v38 = vld [vmem:[#allocation37_spill] sm:$0xff]  ;;  %v5834_v53 = vld [vmem:[%s10122_s7] ss:$0 sm:$0xff] }
 0x5cc   : > { %v3904_v1 = vmul.f32 %v3903_v40, %v8905_v46  ;;  %vm3922_vm6 = vmor %vm3920_vm3, %vm3921_vm1  ;;  %v3927_v61 = vor.u32 1.1754944e-38, %v3926_v8  ;;  %v3883_v60 = vsel %vm9067_vm5, %v5766_v55, %v3879_v6  ;;  %v5380_v59 = vclamps-f32 %v3849_v62, 1.0  ;;  %v3354_v8 = vpop.f32.mrf.mxu1 }
 0x5cd   : > { %v3923_v13 = vsel %vm3922_vm6, %v5768_v24, %v3919_v20  ;;  %vm3925_vm4 = vcmp.eq.f32.partialorder %v3924_v18, 8.507059e+37  ;;  %v3887_v9 = vor.u32 1.1754944e-38, %v3886_v63  ;;  %v3436_v27 = vmul.f32 0.5, %v8790_v29 }
 0x5ce   : > { %v5770_v5 = vpop.eup %5769  ;;  %v3942_v42 = vmul.f32 %v3941_v15, %v8953_v14  ;;  %v3928_v44 = vsel %vm3925_vm4, %v3927_v61, %v3923_v13  ;;  %vm3885_vm7 = vcmp.eq.f32.partialorder %v3884_v37, 8.507059e+37  ;;  %vm3169_vm8 = vweird.f32 %v8853_v58 }
 0x5cf   : > { %v3929_v47 = vmul.f32 %v3928_v44, %v3904_v1  ;;  %v3888_v46 = vsel %vm3885_vm7, %v3887_v9, %v3883_v60  ;;  %v3956_v7 = vmul.f32 %v5770_v5, %v9052_v10  ;;  %v3168_v21 = vmul.f32 %v8895_v54, %v3167_v39 }
 0x5d0   : > { %v5772_v19 = vpop.eup %5771  ;;  %vm3170_vm9 = vweird.f32 %v8895_v54  ;;  %v3864_v12 = vmul.f32 %v3863_v22, %v8883_v23  ;;  %v3438_v56 = vmul.f32 0.5, %v8888_v43  ;;  %v4780_v55 = vadd.f32 1.0, %v5380_v59  ;;  %v3403_v59 = vpop.f32.mrf.mxu3 }
 0x5d1   : > { %v5382_v29 = vclamps-f32 %v3929_v47, 1.0  ;;  %v3957_v14 = vsub.f32 1.0, %v3956_v7  ;;  %v3174_v15 = vmul.f32 %v5772_v19, %v9054_v11  ;;  %v3943_v40 = vadd.f32 1.1283791, %v3942_v42  ;;  %vm9087_vm10 = vmor %vm3169_vm8, %vm3170_vm9 }
 0x5d2   : > { %v3889_v30 = vmul.f32 %v3888_v46, %v3864_v12  ;;  %v3964_v57 = vand.u32 2147483647, %v9052_v10  ;;  %v3966_v52 = vand.u32 2147483648, %v9052_v10  ;;  %vm3961_vm11 = vweird.f32 %v5770_v5 }
 0x5d3   : > { %v4782_v23 = vadd.f32 1.0, %v5382_v29  ;;  %v3958_v24 = vmul.f32 %v5770_v5, %v3957_v14  ;;  %v3175_v43 = vmul.f32 %v5772_v19, %v3174_v15  ;;  %vm3960_vm12 = vweird.f32 %v9052_v10 }
 0x5d4   : > { %v3172_v4 = vsel %vm9087_vm10, %v8895_v54, %v3168_v21  ;;  %v4812_v16 = vmul.f32 %v4780_v55, %v3436_v27  ;;  %v3944_v58 = vmul.f32 %v3943_v40, %v8917_v2  ;;  %v5381_v33 = vclamps-f32 %v3889_v30, 1.0  ;;  %vm3962_vm13 = vmor %vm3960_vm12, %vm3961_vm11  ;;  %v3356_v13 = vpop.f32.mrf.mxu1 }
 0x5d5   : > { %v4814_v26 = vmul.f32 %v4782_v23, %v3438_v56  ;;  %v3959_v51 = vadd.f32 %v5770_v5, %v3958_v24  ;;  %v3176_v32 = vmul.f32 0.5, %v3175_v43  ;;  %vm3965_vm14 = vcmp.eq.f32.partialorder %v3964_v57, 8.507059e+37 }
 0x5d6   : > { %v3967_v18 = vor.u32 1.1754944e-38, %v3966_v52  ;;  %vm3180_vm15 = vweird.f32 %v5772_v19  ;;  %v3197_v10 = vmul.f32 %v3172_v4, %v8378_v28  ;;  %vm3179_vm0 = vweird.f32 %v9054_v11 }
 0x5d7   : > { %v4840_v17 = vpack.c.bf16 %v4814_v26, %v4812_v16  ;;  %v3963_v25 = vsel %vm3962_vm13, %v5770_v5, %v3959_v51  ;;  %v3177_v34 = vsub.f32 1.5, %v3176_v32  ;;  %vm3181_vm1 = vmor %vm3179_vm0, %vm3180_vm15  ;;  %v4781_v2 = vadd.f32 1.0, %v5381_v33 }
 0x5d8   : > { %v3968_v35 = vsel %vm3965_vm14, %v3967_v18, %v3963_v25  ;;  %v3216_v6 = vmul.f32 %v5834_v53, %v3197_v10  ;;  %v3437_v37 = vmul.f32 0.5, %v8866_v50  ;;  %v3439_v28 = vmul.f32 0.5, %v8900_v41  ;;  %v3405_v5 = vpop.f32.mrf.mxu3 }
 0x5d9   : > { %4969 = vmatmul.bf16.gmra.mxu0 %v4840_v17  ;;  %v3969_v3 = vmul.f32 %v3968_v35, %v3944_v58  ;;  %v3178_v54 = vmul.f32 %v5772_v19, %v3177_v34  ;;  %v9134_v55 = vadd.f32 %v3403_v59, %v8412_v49  ;;  %v9150_v45 = vadd.f32 %v3356_v13, %v8399_v0 }
 0x5da   : > { %v4813_v48 = vmul.f32 %v4781_v2, %v3437_v37  ;;  %v3235_v22 = vadd.f32 %v8850_v31, %v3216_v6  ;;  %v9162_v51 = vadd.f32 %v3405_v5, %v8412_v49 }
 0x5db   : > { %v5383_v36 = vclamps-f32 %v3969_v3, 1.0  ;;  %v3182_v63 = vsel %vm3181_vm1, %v5772_v19, %v3178_v54  ;;  %v9126_v19 = vadd.f32 %v3354_v8, %v8399_v0  ;;  %v9144_v57 = vmul.f32 0.70710677, %v9134_v55 }
 0x5dc   : > { %v3198_v62 = vmul.f32 %v3182_v63, %v10452_v38  ;;  %v9159_v26 = vmul.f32 0.70710677, %v9150_v45  ;;  %v9174_v34 = vmul.f32 0.70710677, %v9162_v51 }
 0x5dd   : > { %v4783_v39 = vadd.f32 1.0, %v5383_v36  ;;  %v3359_v9 = vpop.f32.mrf.mxu1  ;;  %v9131_v29 = vmul.f32 0.70710677, %v9126_v19  ;;  %v4012_v4 = vmul.f32 %v9144_v57, %v9144_v57 }
 0x5de   : > { %v3217_v20 = vmul.f32 %v5834_v53, %v3198_v62  ;;  %v9107_v50 = vadd.f32 %v3359_v9, %v8399_v0  ;;  %v4052_v25 = vmul.f32 %v9159_v26, %v9159_v26  ;;  %v4092_v63 = vmul.f32 %v9174_v34, %v9174_v34 }
 0x5df   : > { %v4815_v11 = vmul.f32 %v4783_v39, %v3439_v28  ;;  %v3972_v30 = vmul.f32 %v9131_v29, %v9131_v29  ;;  %v9167_v18 = vmin.f32 %v4012_v4, 16.0 }
 0x5e0   : > { %v3236_v1 = vadd.f32 %v8850_v31, %v3217_v20  ;;  %v9110_v41 = vmul.f32 0.70710677, %v9107_v50  ;;  %v9178_v2 = vmin.f32 %v4052_v25, 16.0 }
 0x5e1   : > { %v4841_v61 = vpack.c.bf16 %v4815_v11, %v4813_v48  ;;  %v9152_v43 = vmin.f32 %v3972_v30, 16.0  ;;  %v4014_v54 = vmul.f32 2.1237322e-06, %v9167_v18 }
 0x5e2   : > { %v3244_v60 = vpack.c.bf16 %v3236_v1, %v3235_v22  ;;  %v4132_v42 = vmul.f32 %v9110_v41, %v9110_v41  ;;  %v4054_v11 = vmul.f32 2.1237322e-06, %v9178_v2  ;;  %v9195_v22 = vmin.f32 %v4092_v63, 16.0 }
 0x5e3   : > { %5018 = vmatmul.bf16.gmra.mxu2 %v4841_v61  ;;  %v3408_v27 = vpop.f32.mrf.mxu3  ;;  %v3974_v33 = vmul.f32 2.1237322e-06, %v9152_v43  ;;  %v4015_v39 = vadd.f32 0.00028619796, %v4014_v54 }
 0x5e4   : > { %3373 = vmatmul.bf16.gmra.mxu1 %v3244_v60  ;;  %3422 = vmatmul.bf16.gmra.mxu3 %v3244_v60  ;;  %v9115_v31 = vadd.f32 %v3408_v27, %v8412_v49  ;;  %v9117_v44 = vmin.f32 %v4132_v42, 16.0  ;;  %v4055_v27 = vadd.f32 0.00028619796, %v4054_v11  ;;  %v4094_v42 = vmul.f32 2.1237322e-06, %v9195_v22 }
 0x5e5   : > { %v3361_v12 = vpop.f32.mrf.mxu1  ;;  %v3975_v3 = vadd.f32 0.00028619796, %v3974_v33  ;;  %v4016_v13 = vmul.f32 %v4015_v39, %v9167_v18 }
 0x5e6   : > { %v9120_v47 = vmul.f32 0.70710677, %v9115_v31  ;;  %v4145_v46 = vmul.f32 3.8918573e-05, %v9117_v44  ;;  %v9137_v14 = vadd.f32 %v3361_v12, %v8399_v0  ;;  %v4095_v4 = vadd.f32 0.00028619796, %v4094_v42 }
 0x5e7   : > { %v3976_v37 = vmul.f32 %v3975_v3, %v9152_v43 }
 0x5e8   : > { %v4172_v7 = vmul.f32 %v9120_v47, %v9120_v47  ;;  %v4146_v21 = vadd.f32 0.001143296, %v4145_v46  ;;  %v9147_v52 = vmul.f32 0.70710677, %v9137_v14 }
 0x5e9   : > { %v3977_v60 = vadd.f32 0.0036580483, %v3976_v37 }
 0x5ea   : > { %v9128_v56 = vmin.f32 %v4172_v7, 16.0  ;;  %v4147_v15 = vmul.f32 %v4146_v21, %v9117_v44  ;;  %v4212_v16 = vmul.f32 %v9147_v52, %v9147_v52  ;;  %v4134_v7 = vmul.f32 2.1237322e-06, %v9117_v44 }
 0x5eb   : > { %v3410_v36 = vpop.f32.mrf.mxu3  ;;  %v3978_v12 = vmul.f32 %v3977_v60, %v9152_v43 }
 0x5ec   : > { %v4185_v40 = vmul.f32 3.8918573e-05, %v9128_v56  ;;  %v4148_v23 = vadd.f32 0.014752088, %v4147_v15  ;;  %v9169_v17 = vmin.f32 %v4212_v16, 16.0  ;;  %v9184_v62 = vadd.f32 %v3410_v36, %v8412_v49 }
 0x5ed   : > { %v3979_v25 = vadd.f32 0.05243302, %v3978_v12  ;;  %v4096_v36 = vmul.f32 %v4095_v4, %v9195_v22 }
 0x5ee   : > { %v4186_v24 = vadd.f32 0.001143296, %v4185_v40  ;;  %v4149_v32 = vmul.f32 %v4148_v23, %v9117_v44  ;;  %v4225_v8 = vmul.f32 3.8918573e-05, %v9169_v17  ;;  %v9189_v28 = vmul.f32 0.70710677, %v9184_v62 }
 0x5ef   : > { %v4017_v40 = vadd.f32 0.0036580483, %v4016_v13 }
 0x5f0   : > { %v4187_v58 = vmul.f32 %v4186_v24, %v9128_v56  ;;  %v4150_v35 = vadd.f32 0.112945676, %v4149_v32  ;;  %v4226_v20 = vadd.f32 0.001143296, %v4225_v8  ;;  %v4252_v59 = vmul.f32 %v9189_v28, %v9189_v28 }
 0x5f1   : > { %v4056_v24 = vmul.f32 %v4055_v27, %v9178_v2  ;;  %v4174_v32 = vmul.f32 2.1237322e-06, %v9128_v56 }
 0x5f2   : > { %v4188_v10 = vadd.f32 0.014752088, %v4187_v58  ;;  %v4151_v38 = vmul.f32 %v4150_v35, %v9117_v44  ;;  %v4227_v9 = vmul.f32 %v4226_v20, %v9169_v17  ;;  %v9209_v15 = vmin.f32 %v4252_v59, 16.0 }
 0x5f3   : > { %v4135_v58 = vadd.f32 0.00028619796, %v4134_v7  ;;  %v4057_v8 = vadd.f32 0.0036580483, %v4056_v24  ;;  %v4175_v63 = vadd.f32 0.00028619796, %v4174_v32 }
 0x5f4   : > { %v4189_v53 = vmul.f32 %v4188_v10, %v9128_v56  ;;  %v4152_v1 = vadd.f32 0.4994258, %v4151_v38  ;;  %v4228_v30 = vadd.f32 0.014752088, %v4227_v9  ;;  %v4265_v35 = vmul.f32 3.8918573e-05, %v9209_v15 }
 0x5f5   : > { %v4018_v10 = vmul.f32 %v4017_v40, %v9167_v18  ;;  %v4136_v38 = vmul.f32 %v4135_v58, %v9117_v44  ;;  %v4176_v60 = vmul.f32 %v4175_v63, %v9128_v56  ;;  %v3985_v7 = vmul.f32 3.8918573e-05, %v9152_v43 }
 0x5f6   : > { %v4190_v61 = vadd.f32 0.112945676, %v4189_v53  ;;  %v4153_v46 = vmul.f32 %v4152_v1, %v9117_v44  ;;  %v4229_v3 = vmul.f32 %v4228_v30, %v9169_v17  ;;  %v4266_v37 = vadd.f32 0.001143296, %v4265_v35 }
 0x5f7   : > { %v4019_v39 = vadd.f32 0.05243302, %v4018_v10  ;;  %v4058_v1 = vmul.f32 %v4057_v8, %v9178_v2  ;;  %v4137_v13 = vadd.f32 0.0036580483, %v4136_v38  ;;  %v4177_v4 = vadd.f32 0.0036580483, %v4176_v60 }
 0x5f8   : > { %v4191_v21 = vmul.f32 %v4190_v61, %v9128_v56  ;;  %v9214_v16 = vadd.f32 1.0, %v4153_v46  ;;  %v4230_v20 = vadd.f32 0.112945676, %v4229_v3  ;;  %v4097_v61 = vadd.f32 0.0036580483, %v4096_v36 }
 0x5f9   : > { %v3364_v6 = vpop.f32.mrf.mxu1  ;;  %v4267_v46 = vmul.f32 %v4266_v37, %v9209_v15  ;;  %v4138_v32 = vmul.f32 %v4137_v13, %v9117_v44  ;;  %v3986_v35 = vadd.f32 0.001143296, %v3985_v7  ;;  %v9255_v37 = vmul.f32 0.5, %v9126_v19 }
 0x5fa   : > { %v9192_v48 = vadd.f32 %v3364_v6, %v8399_v0  ;;  %v4192_v33 = vadd.f32 0.4994258, %v4191_v21  ;;  %5773 = vrcp.f32 %v9214_v16  ;;  %v3980_v6 = vmul.f32 %v3979_v25, %v9152_v43 }
 0x5fb   : > { %v4020_v21 = vmul.f32 %v4019_v39, %v9167_v18  ;;  %v4231_v12 = vmul.f32 %v4230_v20, %v9169_v17  ;;  %v4098_v24 = vmul.f32 %v4097_v61, %v9195_v22  ;;  %v4268_v25 = vadd.f32 0.014752088, %v4267_v46 }
 0x5fc   : > { %v9202_v5 = vmul.f32 0.70710677, %v9192_v48  ;;  %v4193_v53 = vmul.f32 %v4192_v33, %v9128_v56  ;;  %v3981_v42 = vadd.f32 0.18741608, %v3980_v6  ;;  %v4214_v6 = vmul.f32 2.1237322e-06, %v9169_v17 }
 0x5fd   : > { %v4021_v10 = vadd.f32 0.18741608, %v4020_v21  ;;  %v4232_v3 = vadd.f32 0.4994258, %v4231_v12  ;;  %v4099_v38 = vadd.f32 0.05243302, %v4098_v24  ;;  %v4269_v60 = vmul.f32 %v4268_v25, %v9209_v15 }
 0x5fe   : > { %v4292_v23 = vmul.f32 %v9202_v5, %v9202_v5  ;;  %v9230_v9 = vadd.f32 1.0, %v4193_v53  ;;  %v3982_v33 = vmul.f32 %v3981_v42, %v9152_v43  ;;  %v4178_v53 = vmul.f32 %v4177_v4, %v9128_v56 }
 0x5ff   : > { %v3413_v59 = vpop.f32.mrf.mxu3  ;;  %v9258_v39 = vmul.f32 0.5, %v9134_v55  ;;  %v4139_v20 = vadd.f32 0.05243302, %v4138_v32  ;;  %v9261_v61 = vmul.f32 0.5, %v9150_v45  ;;  %v4022_v42 = vmul.f32 %v4021_v10, %v9167_v18 }
 0x600   : > { %v9220_v54 = vmin.f32 %v4292_v23, 16.0  ;;  %v9232_v27 = vpop.eup %5773  ;;  %v9239_v30 = vadd.f32 %v3413_v59, %v8412_v49  ;;  %v4059_v23 = vadd.f32 0.05243302, %v4058_v1  ;;  %5775 = vrcp.f32 %v9230_v9 }
 0x601   : > { %v4156_v58 = vmul.f32 %v9232_v27, %v9214_v16  ;;  %10454 = vst [vmem:[#allocation23_spill] sm:$0xff] %v9258_v39  ;;  %v3983_v1 = vadd.f32 1.1283791, %v3982_v33  ;;  %v3987_v59 = vmul.f32 %v3986_v35, %v9152_v43  ;;  %v4233_v19 = vmul.f32 %v4232_v3, %v9169_v17 }
 0x602   : > { %v4305_v11 = vmul.f32 3.8918573e-05, %v9220_v54  ;;  %10453 = vst [vmem:[#allocation36_spill] sm:$0xff] %v9239_v30  ;;  %v9249_v36 = vmul.f32 0.70710677, %v9239_v30  ;;  %v4060_v63 = vmul.f32 %v4059_v23, %v9178_v2  ;;  %v4100_v21 = vmul.f32 %v4099_v38, %v9195_v22  ;;  %v3366_v38 = vpop.f32.mrf.mxu1 }
 0x603   : > { %v4179_v12 = vadd.f32 0.05243302, %v4178_v53  ;;  %v4215_v45 = vadd.f32 0.00028619796, %v4214_v6  ;;  %v9276_v23 = vmul.f32 0.5, %v9107_v50  ;;  %v4140_v24 = vmul.f32 %v4139_v20, %v9117_v44 }
 0x604   : > { %v4306_v40 = vadd.f32 0.001143296, %v4305_v11  ;;  %v4157_v11 = vsub.f32 1.0, %v4156_v58  ;;  %v4332_v55 = vmul.f32 %v9249_v36, %v9249_v36  ;;  %v4061_v7 = vadd.f32 0.18741608, %v4060_v63 }
 0x605   : > { %v9281_v32 = vmul.f32 %v3983_v1, %v9131_v29  ;;  %v4270_v33 = vadd.f32 0.112945676, %v4269_v60  ;;  %v3988_v25 = vadd.f32 0.014752088, %v3987_v59  ;;  %v9285_v35 = vadd.f32 1.1283791, %v4022_v42 }
 0x606   : > { %v4307_v8 = vmul.f32 %v4306_v40, %v9220_v54  ;;  %v9265_v13 = vpop.eup %5775  ;;  %v9273_v40 = vmul.f32 0.5, %v9162_v51  ;;  %v4158_v4 = vmul.f32 %v9232_v27, %v4157_v11  ;;  %v9287_v10 = vadd.f32 1.0, %v4233_v19 }
 0x607   : > { %v4196_v58 = vmul.f32 %v9265_v13, %v9230_v9  ;;  %v9290_v50 = vmin.f32 %v4332_v55, 16.0  ;;  %v4062_v3 = vmul.f32 %v4061_v7, %v9178_v2  ;;  %v4180_v63 = vmul.f32 %v4179_v12, %v9128_v56 }
 0x608   : > { %v4308_v46 = vadd.f32 0.014752088, %v4307_v8  ;;  %10455 = vst [vmem:[#allocation28_spill] sm:$0xff] %v9273_v40  ;;  %v4101_v8 = vadd.f32 0.18741608, %v4100_v21  ;;  %v4216_v29 = vmul.f32 %v4215_v45, %v9169_v17  ;;  %v4159_v6 = vadd.f32 %v9232_v27, %v4158_v4 }
 0x609   : > { %v4141_v53 = vadd.f32 0.18741608, %v4140_v24  ;;  %vm4161_vm2 = vweird.f32 %v9232_v27  ;;  %v4166_v20 = vand.u32 2147483648, %v9214_v16  ;;  %v4197_v11 = vsub.f32 1.0, %v4196_v58 }
 0x60a   : > { %v4309_v51 = vmul.f32 %v4308_v46, %v9220_v54  ;;  %v4254_v1 = vmul.f32 2.1237322e-06, %v9209_v15  ;;  %v4271_v60 = vmul.f32 %v4270_v33, %v9209_v15  ;;  %v3989_v59 = vmul.f32 %v3988_v25, %v9152_v43 }
 0x60b   : > { %5777 = vrcp.f32 %v9287_v10  ;;  %v4345_v19 = vmul.f32 3.8918573e-05, %v9290_v50  ;;  %v9304_v46 = vadd.f32 %v3366_v38, %v8399_v0  ;;  %vm4160_vm3 = vweird.f32 %v9214_v16 }
 0x60c   : > { %v4310_v42 = vadd.f32 0.112945676, %v4309_v51  ;;  %v4164_v55 = vand.u32 2147483647, %v9214_v16  ;;  %v4181_v7 = vadd.f32 0.18741608, %v4180_v63  ;;  %v4102_v12 = vmul.f32 %v4101_v8, %v9195_v22  ;;  %vm9312_vm5 = vmor %vm4160_vm3, %vm4161_vm2 }
 0x60d   : > { %v4217_v21 = vadd.f32 0.0036580483, %v4216_v29  ;;  %v4142_v45 = vmul.f32 %v4141_v53, %v9117_v44  ;;  %v4167_v4 = vor.u32 1.1754944e-38, %v4166_v20  ;;  %v4294_v58 = vmul.f32 2.1237322e-06, %v9220_v54 }
 0x60e   : > { %v4163_v33 = vsel %vm9312_vm5, %v9232_v27, %v4159_v6  ;;  %v4255_v16 = vadd.f32 0.00028619796, %v4254_v1  ;;  %v4272_v25 = vadd.f32 0.4994258, %v4271_v60  ;;  %v3990_v51 = vadd.f32 0.112945676, %v3989_v59 }
 0x60f   : > { %v4198_v8 = vmul.f32 %v9265_v13, %v4197_v11  ;;  %v4311_v44 = vmul.f32 %v4310_v42, %v9220_v54  ;;  %v4346_v63 = vadd.f32 0.001143296, %v4345_v19  ;;  %v9323_v29 = vmul.f32 0.70710677, %v9304_v46 }
 0x610   : > { %v4063_v38 = vadd.f32 1.1283791, %v4062_v3  ;;  %vm4165_vm6 = vcmp.eq.f32.partialorder %v4164_v55, 8.507059e+37  ;;  %v4182_v53 = vmul.f32 %v4181_v7, %v9128_v56  ;;  %v4218_v20 = vmul.f32 %v4217_v21, %v9169_v17 }
 0x611   : > { %v9327_v30 = vpop.eup %5777  ;;  %v4103_v27 = vadd.f32 1.1283791, %v4102_v12  ;;  %v4143_v6 = vadd.f32 1.1283791, %v4142_v45  ;;  %v4168_v1 = vsel %vm4165_vm6, %v4167_v4, %v4163_v33  ;;  %v4295_v60 = vadd.f32 0.00028619796, %v4294_v58 }
 0x612   : > { %vm4201_vm4 = vweird.f32 %v9265_v13  ;;  %v4256_v11 = vmul.f32 %v4255_v16, %v9209_v15  ;;  %v4273_v59 = vmul.f32 %v4272_v25, %v9209_v15  ;;  %v3991_v42 = vmul.f32 %v3990_v51, %v9152_v43 }
 0x613   : > { %v4199_v3 = vadd.f32 %v9265_v13, %v4198_v8  ;;  %v4312_v19 = vadd.f32 0.4994258, %v4311_v44  ;;  %v4347_v56 = vmul.f32 %v4346_v63, %v9290_v50  ;;  %v4372_v55 = vmul.f32 %v9323_v29, %v9323_v29 }
 0x614   : > { %v4183_v7 = vadd.f32 1.1283791, %v4182_v53  ;;  %v4206_v21 = vand.u32 2147483648, %v9230_v9  ;;  %v4219_v12 = vadd.f32 0.05243302, %v4218_v20  ;;  %v4236_v45 = vmul.f32 %v9327_v30, %v9287_v10 }
 0x615   : > { %vm4200_vm7 = vweird.f32 %v9230_v9  ;;  %v4204_v24 = vand.u32 2147483647, %v9230_v9  ;;  %v4296_v4 = vmul.f32 %v4295_v60, %v9220_v54  ;;  %v4334_v58 = vmul.f32 2.1237322e-06, %v9290_v50 }
 0x616   : > { %v4144_v33 = vmul.f32 %v4143_v6, %v9110_v41  ;;  %vm9347_vm8 = vmor %vm4200_vm7, %vm4201_vm4  ;;  %v4257_v25 = vadd.f32 0.0036580483, %v4256_v11  ;;  %v9351_v51 = vadd.f32 1.0, %v4273_v59  ;;  %v3992_v8 = vadd.f32 0.4994258, %v3991_v42  ;;  %v3415_v41 = vpop.f32.mrf.mxu3 }
 0x617   : > { %v4203_v9 = vsel %vm9347_vm8, %v9265_v13, %v4199_v3  ;;  %v4313_v44 = vmul.f32 %v4312_v19, %v9220_v54  ;;  %v4348_v63 = vadd.f32 0.014752088, %v4347_v56  ;;  %v9357_v53 = vmin.f32 %v4372_v55, 16.0 }
 0x618   : > { %v4169_v20 = vmul.f32 %v4168_v1, %v4144_v33  ;;  %v4207_v6 = vor.u32 1.1754944e-38, %v4206_v21  ;;  %v4220_v60 = vmul.f32 %v4219_v12, %v9169_v17  ;;  %v4237_v40 = vsub.f32 1.0, %v4236_v45 }
 0x619   : > { %v4184_v11 = vmul.f32 %v4183_v7, %v9120_v47  ;;  %vm4205_vm9 = vcmp.eq.f32.partialorder %v4204_v24, 8.507059e+37  ;;  %v4297_v59 = vadd.f32 0.0036580483, %v4296_v4  ;;  %v4335_v42 = vadd.f32 0.00028619796, %v4334_v58 }
 0x61a   : > { %v4208_v39 = vsel %vm4205_vm9, %v4207_v6, %v4203_v9  ;;  %v4258_v16 = vmul.f32 %v4257_v25, %v9209_v15  ;;  %5779 = vrcp.f32 %v9351_v51  ;;  %v9364_v13 = vadd.f32 %v3415_v41, %v8412_v49 }
 0x61b   : > { %v9366_v3 = vadd.f32 1.0, %v4313_v44  ;;  %v4349_v1 = vmul.f32 %v4348_v63, %v9290_v50  ;;  %v4374_v19 = vmul.f32 2.1237322e-06, %v9357_v53  ;;  %v3993_v56 = vmul.f32 %v3992_v8, %v9152_v43 }
 0x61c   : > { %v9373_v47 = vmul.f32 %v9285_v35, %v9144_v57  ;;  %v9376_v55 = vmul.f32 %v4063_v38, %v9159_v26  ;;  %v4221_v7 = vadd.f32 0.18741608, %v4220_v60  ;;  %v4238_v21 = vmul.f32 %v9327_v30, %v4237_v40 }
 0x61d   : > { %v9380_v12 = vmul.f32 %v4103_v27, %v9174_v34  ;;  %v4209_v45 = vmul.f32 %v4208_v39, %v4184_v11  ;;  %v4298_v24 = vmul.f32 %v4297_v59, %v9220_v54  ;;  %v4336_v4 = vmul.f32 %v4335_v42, %v9290_v50  ;;  %v3369_v11 = vpop.f32.mrf.mxu1 }
 0x61e   : > { %v5388_v58 = vclamps-f32 %v4169_v20, 1.0  ;;  %v3445_v43 = vmul.f32 0.5, %v9115_v31  ;;  %v4259_v33 = vadd.f32 0.05243302, %v4258_v16  ;;  %v9386_v57 = vmul.f32 0.70710677, %v9364_v13 }
 0x61f   : > { %5781 = vrcp.f32 %v9366_v3  ;;  %v4350_v26 = vadd.f32 0.112945676, %v4349_v1  ;;  %v4375_v35 = vadd.f32 0.00028619796, %v4374_v19  ;;  %v9389_v40 = vadd.f32 1.0, %v3993_v56 }
 0x620   : > { %v9391_v34 = vpop.eup %5779  ;;  %v4222_v39 = vmul.f32 %v4221_v7, %v9169_v17  ;;  %v4239_v38 = vadd.f32 %v9327_v30, %v4238_v21  ;;  %vm4241_vm10 = vweird.f32 %v9327_v30  ;;  %v4385_v31 = vmul.f32 3.8918573e-05, %v9357_v53 }
 0x621   : > { %v5389_v27 = vclamps-f32 %v4209_v45, 1.0  ;;  %v4246_v25 = vand.u32 2147483648, %v9287_v10  ;;  %v4299_v8 = vadd.f32 0.05243302, %v4298_v24  ;;  %v4337_v9 = vadd.f32 0.0036580483, %v4336_v4 }
 0x622   : > { %vm4240_vm11 = vweird.f32 %v9287_v10  ;;  %v4244_v44 = vand.u32 2147483647, %v9287_v10  ;;  %v4260_v63 = vmul.f32 %v4259_v33, %v9209_v15  ;;  %v4412_v17 = vmul.f32 %v9386_v57, %v9386_v57 }
 0x623   : > { %vm9403_vm12 = vmor %vm4240_vm11, %vm4241_vm10  ;;  %v4276_v20 = vmul.f32 %v9391_v34, %v9351_v51  ;;  %v4351_v6 = vmul.f32 %v4350_v26, %v9290_v50  ;;  %v4376_v60 = vmul.f32 %v4375_v35, %v9357_v53  ;;  %5783 = vrcp.f32 %v9389_v40 }
 0x624   : > { %v4788_v10 = vadd.f32 1.0, %v5388_v58  ;;  %v4223_v59 = vadd.f32 1.1283791, %v4222_v39  ;;  %v4243_v42 = vsel %vm9403_vm12, %v9327_v30, %v4239_v38  ;;  %v4386_v16 = vadd.f32 0.001143296, %v4385_v31 }
 0x625   : > { %v9415_v1 = vpop.eup %5781  ;;  %v9418_v19 = vmul.f32 0.5, %v9137_v14  ;;  %v4247_v56 = vor.u32 1.1754944e-38, %v4246_v25  ;;  %v4300_v7 = vmul.f32 %v4299_v8, %v9220_v54  ;;  %v4338_v21 = vmul.f32 %v4337_v9, %v9290_v50 }
 0x626   : > { %v4789_v45 = vadd.f32 1.0, %v5389_v27  ;;  %vm4245_vm13 = vcmp.eq.f32.partialorder %v4244_v44, 8.507059e+37  ;;  %v4261_v24 = vadd.f32 0.18741608, %v4260_v63  ;;  %v9422_v4 = vmin.f32 %v4412_v17, 16.0 }
 0x627   : > { %v4248_v58 = vsel %vm4245_vm13, %v4247_v56, %v4243_v42  ;;  %v4277_v33 = vsub.f32 1.0, %v4276_v20  ;;  %v4352_v26 = vadd.f32 0.4994258, %v4351_v6  ;;  %v4377_v30 = vadd.f32 0.0036580483, %v4376_v60  ;;  %v3371_v42 = vpop.f32.mrf.mxu1 }
 0x628   : > { %v9425_v35 = vmul.f32 %v4788_v10, %v9276_v23  ;;  %v4224_v14 = vmul.f32 %v4223_v59, %v9147_v52  ;;  %v4316_v39 = vmul.f32 %v9415_v1, %v9366_v3  ;;  %v4387_v38 = vmul.f32 %v4386_v16, %v9357_v53 }
 0x629   : > { %v9431_v31 = vpop.eup %5783  ;;  %v9434_v27 = vmul.f32 0.5, %v9184_v62  ;;  %v4301_v25 = vadd.f32 0.18741608, %v4300_v7  ;;  %v4339_v8 = vadd.f32 0.05243302, %v4338_v21  ;;  %v9437_v9 = vadd.f32 %v3369_v11, %v8399_v0 }
 0x62a   : > { %v4249_v44 = vmul.f32 %v4248_v58, %v4224_v14  ;;  %v4262_v23 = vmul.f32 %v4261_v24, %v9209_v15  ;;  %v9441_v52 = vmul.f32 0.5, %v9192_v48  ;;  %v4425_v63 = vmul.f32 3.8918573e-05, %v9422_v4  ;;  %v3418_v58 = vpop.f32.mrf.mxu3 }
 0x62b   : > { %10462 = vst [vmem:[#allocation18_spill] sm:$0xff] %v9437_v9  ;;  %v9444_v17 = vmul.f32 %v4789_v45, %v3445_v43  ;;  %v4278_v41 = vmul.f32 %v9391_v34, %v4277_v33  ;;  %v4353_v62 = vmul.f32 %v4352_v26, %v9290_v50  ;;  %v4378_v20 = vmul.f32 %v4377_v30, %v9357_v53 }
 0x62c   : > { %v4317_v6 = vsub.f32 1.0, %v4316_v39  ;;  %v9450_v60 = vmul.f32 0.5, %v9304_v46  ;;  %v4388_v11 = vadd.f32 0.014752088, %v4387_v38  ;;  %v9454_v15 = vmul.f32 %v9431_v31, %v9389_v40 }
 0x62d   : > { %v4284_v48 = vand.u32 2147483647, %v9351_v51  ;;  %v4302_v43 = vmul.f32 %v4301_v25, %v9220_v54  ;;  %v4340_v10 = vmul.f32 %v4339_v8, %v9290_v50  ;;  %v9460_v59 = vmul.f32 0.70710677, %v9437_v9 }
 0x62e   : > { %v5390_v16 = vclamps-f32 %v4249_v44, 1.0  ;;  %v4263_v56 = vadd.f32 1.1283791, %v4262_v23  ;;  %v4286_v46 = vand.u32 2147483648, %v9351_v51  ;;  %v4426_v7 = vadd.f32 0.001143296, %v4425_v63 }
 0x62f   : > { %v4279_v21 = vadd.f32 %v9391_v34, %v4278_v41  ;;  %vm4281_vm14 = vweird.f32 %v9391_v34  ;;  %v9465_v45 = vadd.f32 1.0, %v4353_v62  ;;  %v4379_v24 = vadd.f32 0.05243302, %v4378_v20 }
 0x630   : > { %vm4280_vm15 = vweird.f32 %v9351_v51  ;;  %v4318_v54 = vmul.f32 %v9415_v1, %v4317_v6  ;;  %v4389_v33 = vmul.f32 %v4388_v11, %v9357_v53  ;;  %v9471_v26 = vadd.f32 %v3371_v42, %v8399_v0 }
 0x631   : > { %vm9473_vm0 = vcmp.eq.f32.partialorder %v4284_v48, 8.507059e+37  ;;  %v4303_v14 = vadd.f32 1.1283791, %v4302_v43  ;;  %v4341_v39 = vadd.f32 0.18741608, %v4340_v10  ;;  %v4452_v38 = vmul.f32 %v9460_v59, %v9460_v59  ;;  %vm9479_vm1 = vmor %vm4280_vm15, %vm4281_vm14 }
 0x632   : > { %v4287_v51 = vor.u32 1.1754944e-38, %v4286_v46  ;;  %v4414_v8 = vmul.f32 2.1237322e-06, %v9422_v4  ;;  %v4427_v44 = vmul.f32 %v4426_v7, %v9422_v4  ;;  %v9486_v23 = vadd.f32 %v3418_v58, %v8412_v49 }
 0x633   : > { %v4283_v63 = vsel %vm9479_vm1, %v9391_v34, %v4279_v21  ;;  %v4324_v41 = vand.u32 2147483647, %v9366_v3  ;;  %5785 = vrcp.f32 %v9465_v45  ;;  %v4380_v62 = vmul.f32 %v4379_v24, %v9357_v53 }
 0x634   : > { %10467 = vst [vmem:[#allocation20_spill] sm:$0xff] %v9486_v23  ;;  %v4319_v20 = vadd.f32 %v9415_v1, %v4318_v54  ;;  %vm4321_vm2 = vweird.f32 %v9415_v1  ;;  %v4390_v6 = vadd.f32 0.112945676, %v4389_v33  ;;  %v9497_v11 = vmul.f32 0.70710677, %v9471_v26 }
 0x635   : > { %vm4320_vm3 = vweird.f32 %v9366_v3  ;;  %v4326_v48 = vand.u32 2147483648, %v9366_v3  ;;  %v4342_v34 = vmul.f32 %v4341_v39, %v9290_v50  ;;  %v9502_v43 = vmin.f32 %v4452_v38, 16.0 }
 0x636   : > { %v4288_v10 = vsel %vm9473_vm0, %v4287_v51, %v4283_v63  ;;  %v4415_v42 = vadd.f32 0.00028619796, %v4414_v8  ;;  %v4428_v46 = vadd.f32 0.014752088, %v4427_v44  ;;  %v9507_v7 = vmul.f32 0.70710677, %v9486_v23  ;;  %vm9511_vm5 = vmor %vm4320_vm3, %vm4321_vm2 }
 0x637   : > { %v4790_v21 = vadd.f32 1.0, %v5390_v16  ;;  %v4264_v24 = vmul.f32 %v4263_v56, %v9189_v28  ;;  %v4304_v58 = vmul.f32 %v4303_v14, %v9202_v5  ;;  %v4381_v50 = vadd.f32 0.18741608, %v4380_v62 }
 0x638   : > { %10468 = vst [vmem:[#allocation22_spill] sm:$0xff] %v9507_v7  ;;  %v4323_v3 = vsel %vm9511_vm5, %v9415_v1, %v4319_v20  ;;  %vm4325_vm6 = vcmp.eq.f32.partialorder %v4324_v41, 8.507059e+37  ;;  %v4391_v33 = vmul.f32 %v4390_v6, %v9357_v53  ;;  %v4532_v30 = vmul.f32 %v9497_v11, %v9497_v11 }
 0x639   : > { %v9521_v16 = vpop.eup %5785  ;;  %v4289_v28 = vmul.f32 %v4288_v10, %v4264_v24  ;;  %v4327_v56 = vor.u32 1.1754944e-38, %v4326_v48  ;;  %v4343_v5 = vadd.f32 1.1283791, %v4342_v34  ;;  %v4465_v14 = vmul.f32 3.8918573e-05, %v9502_v43 }
 0x63a   : > { %v4416_v39 = vmul.f32 %v4415_v42, %v9422_v4  ;;  %v4429_v38 = vmul.f32 %v4428_v46, %v9422_v4  ;;  %v4492_v1 = vmul.f32 %v9507_v7, %v9507_v7  ;;  %v4065_v25 = vmul.f32 3.8918573e-05, %v9178_v2  ;;  %v5009_v7 = vpop.f32.mrf.mxu2 }
 0x63b   : > { %v9530_v51 = vmul.f32 %v4790_v21, %v9418_v19  ;;  %v4328_v8 = vsel %vm4325_vm6, %v4327_v56, %v4323_v3  ;;  %v4366_v44 = vand.u32 2147483648, %v9465_v45  ;;  %v4382_v63 = vmul.f32 %v4381_v50, %v9357_v53 }
 0x63c   : > { %v4356_v41 = vmul.f32 %v9521_v16, %v9465_v45  ;;  %v4392_v62 = vadd.f32 0.4994258, %v4391_v33  ;;  %v9536_v20 = vmin.f32 %v4532_v30, 16.0  ;;  %v4066_v6 = vadd.f32 0.001143296, %v4065_v25 }
 0x63d   : > { %v5391_v48 = vclamps-f32 %v4289_v28, 1.0  ;;  %v4364_v34 = vand.u32 2147483647, %v9465_v45  ;;  %v9540_v10 = vmul.f32 0.5, %v9364_v13  ;;  %v4466_v19 = vadd.f32 0.001143296, %v4465_v14 }
 0x63e   : > { %v9543_v42 = vmul.f32 %v4343_v5, %v9249_v36  ;;  %v4417_v46 = vadd.f32 0.0036580483, %v4416_v39  ;;  %v4430_v21 = vadd.f32 0.112945676, %v4429_v38  ;;  %v9545_v24 = vmin.f32 %v4492_v1, 16.0 }
 0x63f   : > { %v9547_v54 = vmul.f32 %v4328_v8, %v4304_v58  ;;  %v9549_v50 = vor.u32 1.1754944e-38, %v4366_v44  ;;  %v4383_v3 = vadd.f32 1.1283791, %v4382_v63  ;;  %v4067_v33 = vmul.f32 %v4066_v6, %v9178_v2 }
 0x640   : > { %v4357_v30 = vsub.f32 1.0, %v4356_v41  ;;  %v4393_v28 = vmul.f32 %v4392_v62, %v9357_v53  ;;  %v4545_v13 = vmul.f32 3.8918573e-05, %v9536_v20  ;;  %v4025_v56 = vmul.f32 3.8918573e-05, %v9167_v18 }
 0x641   : > { %v4791_v36 = vadd.f32 1.0, %v5391_v48  ;;  %v4467_v5 = vmul.f32 %v4466_v19, %v9502_v43  ;;  %v4068_v14 = vadd.f32 0.014752088, %v4067_v33  ;;  %v4105_v39 = vmul.f32 3.8918573e-05, %v9195_v22 }
 0x642   : > { %v4418_v58 = vmul.f32 %v4417_v46, %v9422_v4  ;;  %v4431_v38 = vmul.f32 %v4430_v21, %v9422_v4  ;;  %v4505_v1 = vmul.f32 3.8918573e-05, %v9545_v24  ;;  %v4026_v25 = vadd.f32 0.001143296, %v4025_v56 }
 0x643   : > { %v4454_v8 = vmul.f32 2.1237322e-06, %v9502_v43  ;;  %v3997_v53 = vsub.f32 1.0, %v9454_v15  ;;  %v4069_v44 = vmul.f32 %v4068_v14, %v9178_v2  ;;  %v4106_v63 = vadd.f32 0.001143296, %v4105_v39 }
 0x644   : > { %v4358_v41 = vmul.f32 %v9521_v16, %v4357_v30  ;;  %vm4360_vm4 = vweird.f32 %v9465_v45  ;;  %v9566_v62 = vmul.f32 %v4383_v3, %v9323_v29  ;;  %v9568_v6 = vadd.f32 1.0, %v4393_v28 }
 0x645   : > { %v4546_v48 = vadd.f32 0.001143296, %v4545_v13  ;;  %v4468_v19 = vadd.f32 0.014752088, %v4467_v5  ;;  %v4070_v46 = vadd.f32 0.112945676, %v4069_v44  ;;  %v4027_v21 = vmul.f32 %v4026_v25, %v9167_v18 }
 0x646   : > { %v4107_v33 = vmul.f32 %v4106_v63, %v9195_v22  ;;  %vm4361_vm7 = vweird.f32 %v9521_v16  ;;  %v4432_v56 = vadd.f32 0.4994258, %v4431_v38  ;;  %v4506_v30 = vadd.f32 0.001143296, %v4505_v1 }
 0x647   : > { %v9575_v14 = vmul.f32 %v4791_v36, %v9434_v27  ;;  %v4419_v29 = vadd.f32 0.05243302, %v4418_v58  ;;  %v4455_v3 = vadd.f32 0.00028619796, %v4454_v8  ;;  %v3998_v28 = vmul.f32 %v9431_v31, %v3997_v53  ;;  %vm9601_vm9 = vmor %vm4360_vm4, %vm4361_vm7 }
 0x648   : > { %v9579_v13 = vadd.f32 %v9521_v16, %v4358_v41  ;;  %v4547_v5 = vmul.f32 %v4546_v48, %v9536_v20  ;;  %v4071_v39 = vmul.f32 %v4070_v46, %v9178_v2  ;;  %v4028_v25 = vadd.f32 0.014752088, %v4027_v21  ;;  %v3420_v41 = vpop.f32.mrf.mxu3 }
 0x649   : > { %5787 = vrcp.f32 %v9568_v6  ;;  %v4469_v1 = vmul.f32 %v4468_v19, %v9502_v43  ;;  %v4108_v27 = vadd.f32 0.014752088, %v4107_v33  ;;  %v4433_v36 = vmul.f32 %v4432_v56, %v9422_v4 }
 0x64a   : > { %v4507_v58 = vmul.f32 %v4506_v30, %v9545_v24  ;;  %v4072_v8 = vadd.f32 0.4994258, %v4071_v39  ;;  %v4029_v53 = vmul.f32 %v4028_v25, %v9167_v18  ;;  %v3999_v44 = vadd.f32 %v9431_v31, %v3998_v28 }
 0x64b   : > { %vm4001_vm8 = vweird.f32 %v9431_v31  ;;  %v4006_v63 = vand.u32 2147483648, %v9389_v40  ;;  %v4109_v48 = vmul.f32 %v4108_v27, %v9195_v22  ;;  %v4548_v46 = vadd.f32 0.014752088, %v4547_v5 }
 0x64c   : > { %v4073_v19 = vmul.f32 %v4072_v8, %v9178_v2  ;;  %v9595_v21 = vadd.f32 %v3420_v41, %v8412_v49  ;;  %v4030_v33 = vadd.f32 0.112945676, %v4029_v53  ;;  %vm9607_vm10 = vcmp.eq.f32.partialorder %v4364_v34, 8.507059e+37 }
 0x64d   : > { %v4470_v28 = vadd.f32 0.112945676, %v4469_v1  ;;  %vm4000_vm11 = vweird.f32 %v9389_v40  ;;  %v4004_v2 = vand.u32 2147483647, %v9389_v40  ;;  %v4110_v5 = vadd.f32 0.112945676, %v4109_v48 }
 0x64e   : > { %10471 = vst [vmem:[#allocation21_spill] sm:$0xff] %v9595_v21  ;;  %v4363_v39 = vsel %vm9601_vm9, %v9521_v16, %v9579_v13  ;;  %v4420_v25 = vmul.f32 %v4419_v29, %v9422_v4  ;;  %v4508_v27 = vadd.f32 0.014752088, %v4507_v58  ;;  %vm9620_vm12 = vmor %vm4000_vm11, %vm4001_vm8  ;;  %v9624_v34 = vadd.f32 1.0, %v4073_v19 }
 0x64f   : > { %v9626_v1 = vpop.eup %5787  ;;  %v4003_v40 = vsel %vm9620_vm12, %v9431_v31, %v3999_v44  ;;  %v9632_v8 = vmul.f32 0.70710677, %v9595_v21  ;;  %v4031_v16 = vmul.f32 %v4030_v33, %v9167_v18  ;;  %v4111_v29 = vmul.f32 %v4110_v5, %v9195_v22 }
 0x650   : > { %v9636_v13 = vadd.f32 1.0, %v4433_v36  ;;  %v4549_v58 = vmul.f32 %v4548_v46, %v9536_v20  ;;  %v4007_v53 = vor.u32 1.1754944e-38, %v4006_v63  ;;  %5789 = vrcp.f32 %v9624_v34 }
 0x651   : > { %v4471_v41 = vmul.f32 %v4470_v28, %v9502_v43  ;;  %vm4005_vm13 = vcmp.eq.f32.partialorder %v4004_v2, 8.507059e+37  ;;  %v4572_v31 = vmul.f32 %v9632_v8, %v9632_v8  ;;  %v4032_v44 = vadd.f32 0.4994258, %v4031_v16 }
 0x652   : > { %v4456_v48 = vmul.f32 %v4455_v3, %v9502_v43  ;;  %v4509_v19 = vmul.f32 %v4508_v27, %v9545_v24  ;;  %v4008_v33 = vsel %vm4005_vm13, %v4007_v53, %v4003_v40  ;;  %v4112_v56 = vadd.f32 0.4994258, %v4111_v29 }
 0x653   : > { %v4494_v36 = vmul.f32 2.1237322e-06, %v9545_v24  ;;  %v4534_v46 = vmul.f32 2.1237322e-06, %v9536_v20  ;;  %v9647_v63 = vmin.f32 %v4572_v31, 16.0  ;;  %v4033_v5 = vmul.f32 %v4032_v44, %v9167_v18 }
 0x654   : > { %v4396_v28 = vmul.f32 %v9626_v1, %v9568_v6  ;;  %5791 = vrcp.f32 %v9636_v13  ;;  %v4550_v2 = vadd.f32 0.112945676, %v4549_v58  ;;  %v4113_v3 = vmul.f32 %v4112_v56, %v9195_v22 }
 0x655   : > { %v4472_v45 = vadd.f32 0.4994258, %v4471_v41  ;;  %v4009_v27 = vmul.f32 %v4008_v33, %v9281_v32  ;;  %v4585_v40 = vmul.f32 3.8918573e-05, %v9647_v63  ;;  %v9656_v16 = vadd.f32 1.0, %v4033_v5  ;;  %v4960_v33 = vpop.f32.mrf.mxu0 }
 0x656   : > { %v5790_v29 = vpop.eup %5789  ;;  %v9661_v18 = vsel %vm9607_vm10, %v9549_v50, %v4363_v39  ;;  %v4510_v31 = vadd.f32 0.112945676, %v4509_v19  ;;  %v9664_v44 = vadd.f32 1.0, %v4113_v3  ;;  %v9666_v58 = vadd.f32 0.18741608, %v4420_v25 }
 0x657   : > { %v4457_v22 = vadd.f32 0.0036580483, %v4456_v48  ;;  %v4535_v41 = vadd.f32 0.00028619796, %v4534_v46  ;;  %v4076_v32 = vmul.f32 %v5790_v29, %v9624_v34  ;;  %v4397_v56 = vsub.f32 1.0, %v4396_v28 }
 0x658   : > { %v4551_v5 = vmul.f32 %v4550_v2, %v9536_v20  ;;  %v4586_v15 = vadd.f32 0.001143296, %v4585_v40  ;;  %5793 = vrcp.f32 %v9656_v16  ;;  %v4473_v50 = vmul.f32 %v4472_v45, %v9502_v43 }
 0x659   : > { %v9672_v30 = vadd.f32 0.00028619796, %v4494_v36  ;;  %v5384_v39 = vclamps-f32 %v4009_v27, 1.0  ;;  %v4077_v19 = vsub.f32 1.0, %v4076_v32  ;;  %v4511_v25 = vmul.f32 %v4510_v31, %v9545_v24  ;;  %v9691_v31 = vld [vmem:[%s10478_s21] ss:$0 sm:$0xff] }
 0x65a   : > { %v9674_v3 = vpop.eup %5791  ;;  %v4086_v48 = vand.u32 2147483648, %v9624_v34  ;;  %v4587_v46 = vmul.f32 %v4586_v15, %v9647_v63  ;;  %5795 = vrcp.f32 %v9664_v44  ;;  %v4536_v28 = vmul.f32 %v4535_v41, %v9536_v20 }
 0x65b   : > { %v4078_v2 = vmul.f32 %v5790_v29, %v4077_v19  ;;  %vm4081_vm14 = vweird.f32 %v5790_v29  ;;  %v4084_v45 = vand.u32 2147483647, %v9624_v34  ;;  %v9683_v36 = vmul.f32 %v9626_v1, %v4397_v56 }
 0x65c   : > { %v9686_v27 = vmul.f32 %v4457_v22, %v9502_v43  ;;  %v4552_v40 = vadd.f32 0.4994258, %v4551_v5  ;;  %v4588_v15 = vadd.f32 0.014752088, %v4587_v46  ;;  %v9695_v41 = vmul.f32 %v9674_v3, %v9636_v13 }
 0x65d   : > { %v4079_v32 = vadd.f32 %v5790_v29, %v4078_v2  ;;  %vm4080_vm15 = vweird.f32 %v9624_v34  ;;  %v4784_v19 = vadd.f32 1.0, %v5384_v39  ;;  %v9698_v53 = vadd.f32 1.0, %v4473_v50 }
 0x65e   : > { %v5794_v56 = vpop.eup %5793  ;;  %v9700_v22 = vadd.f32 0.4994258, %v4511_v25  ;;  %vm4082_vm0 = vmor %vm4080_vm15, %vm4081_vm14  ;;  %v4087_v5 = vor.u32 1.1754944e-38, %v4086_v48  ;;  %v4589_v38 = vmul.f32 %v4588_v15, %v9647_v63  ;;  %v9703_v23 = vadd.f32 0.0036580483, %v4536_v28  ;;  %v4962_v28 = vpop.f32.mrf.mxu0 }
 0x65f   : > { %v4083_v46 = vsel %vm4082_vm0, %v5790_v29, %v4079_v32  ;;  %vm4085_vm1 = vcmp.eq.f32.partialorder %v4084_v45, 8.507059e+37  ;;  %v4036_v21 = vmul.f32 %v5794_v56, %v9656_v16  ;;  %v4553_v2 = vmul.f32 %v4552_v40, %v9536_v20 }
 0x660   : > { %v5796_v49 = vpop.eup %5795  ;;  %v4088_v34 = vsel %vm4085_vm1, %v4087_v5, %v4083_v46  ;;  %v4961_v39 = vadd.f32 %v9691_v31, %v4960_v33  ;;  %v4590_v50 = vadd.f32 0.112945676, %v4589_v38  ;;  %v4816_v9 = vmul.f32 %v4784_v19, %v9255_v37  ;;  %v10479_v19 = vld [vmem:[#allocation58_spill] sm:$0xff] }
 0x661   : > { %v4089_v25 = vmul.f32 %v4088_v34, %v9376_v55  ;;  %v4037_v48 = vsub.f32 1.0, %v4036_v21  ;;  %v4116_v15 = vmul.f32 %v5796_v49, %v9664_v44  ;;  %vm4041_vm2 = vweird.f32 %v5794_v56 }
 0x662   : > { %v4044_v29 = vand.u32 2147483647, %v9656_v16  ;;  %v4046_v45 = vand.u32 2147483648, %v9656_v16  ;;  %v5010_v32 = vadd.f32 %v5009_v7, %v4961_v39  ;;  %vm4401_vm3 = vweird.f32 %v9626_v1 }
 0x663   : > { %v5386_v40 = vclamps-f32 %v4089_v25, 1.0  ;;  %v4591_v38 = vmul.f32 %v4590_v50, %v9647_v63  ;;  %v4038_v33 = vmul.f32 %v5794_v56, %v4037_v48  ;;  %v4117_v55 = vsub.f32 1.0, %v4116_v15 }
 0x664   : > { %v9715_v37 = vadd.f32 1.0, %v4553_v2  ;;  %vm4040_vm5 = vweird.f32 %v9656_v16  ;;  %v4126_v21 = vand.u32 2147483648, %v9664_v44  ;;  %v5049_v5 = vadd.f32 %v5010_v32, %v10479_v19 }
 0x665   : > { %vm4400_vm6 = vweird.f32 %v9568_v6  ;;  %v4786_v46 = vadd.f32 1.0, %v5386_v40  ;;  %v4039_v7 = vadd.f32 %v5794_v56, %v4038_v33  ;;  %v4118_v34 = vmul.f32 %v5796_v49, %v4117_v55  ;;  %vm4042_vm7 = vmor %vm4040_vm5, %vm4041_vm2  ;;  %v5011_v33 = vpop.f32.mrf.mxu2 }
 0x666   : > { %vm4121_vm4 = vweird.f32 %v5796_v49  ;;  %vm4045_vm8 = vcmp.eq.f32.partialorder %v4044_v29, 8.507059e+37  ;;  %v4047_v39 = vor.u32 1.1754944e-38, %v4046_v45  ;;  %vm4120_vm9 = vweird.f32 %v9664_v44  ;;  %5065 = vst [vmem:[%s9726_s24] sm:$0xff] %v5049_v5  ;;  %vm9773_vm13 = vmor %vm4400_vm6, %vm4401_vm3 }
 0x667   : > { %v4124_v2 = vand.u32 2147483647, %v9664_v44  ;;  %v4818_v16 = vmul.f32 %v4786_v46, %v9261_v61  ;;  %v4592_v50 = vadd.f32 0.4994258, %v4591_v38  ;;  %v4043_v25 = vsel %vm4042_vm7, %v5794_v56, %v4039_v7  ;;  %vm9733_vm10 = vmor %vm4120_vm9, %vm4121_vm4  ;;  %v4965_v38 = vpop.f32.mrf.mxu0 }
 0x668   : > { %v4119_v48 = vadd.f32 %v5796_v49, %v4118_v34  ;;  %5797 = vrcp.f32 %v9715_v37  ;;  %v4574_v15 = vmul.f32 2.1237322e-06, %v9647_v63  ;;  %v4048_v29 = vsel %vm4045_vm8, %v4047_v39, %v4043_v25 }
 0x669   : > { %v4127_v44 = vor.u32 1.1754944e-38, %v4126_v21  ;;  %v4842_v32 = vpack.c.bf16 %v4818_v16, %v4816_v9  ;;  %v4049_v40 = vmul.f32 %v4048_v29, %v9373_v47  ;;  %v4963_v56 = vadd.f32 %v9691_v31, %v4962_v28 }
 0x66a   : > { %v4123_v61 = vsel %vm9733_vm10, %v5796_v49, %v4119_v48  ;;  %v4399_v55 = vadd.f32 %v9626_v1, %v9683_v36  ;;  %v10482_v19 = vand.u32 2147483647, %v9568_v6  ;;  %v4459_v9 = vadd.f32 0.05243302, %v9686_v27 }
 0x66b   : > { %5799 = vrcp.f32 %v9698_v53  ;;  %vm4125_vm12 = vcmp.eq.f32.partialorder %v4124_v2, 8.507059e+37  ;;  %4974 = vmatmul.bf16.gmra.mxu0 %v4842_v32  ;;  %v4593_v49 = vmul.f32 %v4592_v50, %v9647_v63  ;;  %v5385_v47 = vclamps-f32 %v4049_v40, 1.0  ;;  %v10486_v50 = vld [vmem:[#allocation42_spill] sm:$0xff] }
 0x66c   : > { %vm9745_vm11 = vcmp.eq.f32.partialorder %v10482_v19, 8.507059e+37  ;;  %v4128_v28 = vsel %vm4125_vm12, %v4127_v44, %v4123_v61  ;;  %v5012_v21 = vadd.f32 %v5011_v33, %v4963_v56  ;;  %v10485_v46 = vand.u32 2147483648, %v9568_v6  ;;  %v10489_v19 = vld [vmem:[#allocation23_spill] sm:$0xff] }
 0x66d   : > { %v4437_v7 = vsub.f32 1.0, %v9695_v41  ;;  %v4575_v34 = vadd.f32 0.00028619796, %v4574_v15  ;;  %v4129_v39 = vmul.f32 %v4128_v28, %v9380_v12  ;;  %v4496_v27 = vmul.f32 %v9672_v30, %v9545_v24  ;;  %v5014_v33 = vpop.f32.mrf.mxu2 }
 0x66e   : > { %v4407_v36 = vor.u32 1.1754944e-38, %v10485_v46  ;;  %v4513_v2 = vmul.f32 %v9700_v22, %v9545_v24  ;;  %v4538_v16 = vmul.f32 %v9703_v23, %v9536_v20  ;;  %v5050_v25 = vadd.f32 %v5012_v21, %v10486_v50  ;;  %v9763_v48 = vpop.eup %5797 }
 0x66f   : > { %v9767_v41 = vmul.f32 %v9661_v18, %v9543_v42  ;;  %v4460_v30 = vmul.f32 %v4459_v9, %v9502_v43  ;;  %v5387_v22 = vclamps-f32 %v4129_v39, 1.0  ;;  %v4785_v23 = vadd.f32 1.0, %v5385_v47  ;;  %v10491_v39 = vld [vmem:[#allocation56_spill] sm:$0xff] }
 0x670   : > { %v4403_v15 = vsel %vm9773_vm13, %v9626_v1, %v4399_v55  ;;  %v4422_v42 = vmul.f32 %v9666_v58, %v9422_v4  ;;  %v4446_v18 = vand.u32 2147483648, %v9636_v13  ;;  %v9784_v29 = vadd.f32 1.0, %v4593_v49  ;;  %5066 = vst [vmem:[%s9726_s24 + $0x8] sm:$0xff] %v5050_v25  ;;  %v4967_v58 = vpop.f32.mrf.mxu0  ;;  %v10490_v49 = vld [vmem:[#allocation28_spill] sm:$0xff] }
 0x671   : > { %v9787_v6 = vpop.eup %5799  ;;  %v4438_v45 = vmul.f32 %v9674_v3, %v4437_v7  ;;  %v4576_v44 = vmul.f32 %v4575_v34, %v9647_v63  ;;  %v4787_v32 = vadd.f32 1.0, %v5387_v22  ;;  %v4966_v40 = vadd.f32 %v9691_v31, %v4965_v38 }
 0x672   : > { %v4497_v61 = vadd.f32 0.0036580483, %v4496_v27  ;;  %v9792_v56 = vadd.f32 1.0, %v4513_v2  ;;  %v4539_v1 = vadd.f32 0.05243302, %v4538_v16  ;;  %v4556_v4 = vmul.f32 %v9763_v48, %v9715_v37 }
 0x673   : > { %v4461_v55 = vadd.f32 0.18741608, %v4460_v30  ;;  %v4817_v9 = vmul.f32 %v4785_v23, %v10489_v19  ;;  %v4819_v47 = vmul.f32 %v4787_v32, %v10490_v49  ;;  %v5015_v28 = vadd.f32 %v5014_v33, %v4966_v40 }
 0x674   : > { %v4408_v21 = vsel %vm9745_vm11, %v4407_v36, %v4403_v15  ;;  %vm4441_vm14 = vweird.f32 %v9674_v3  ;;  %v4476_v38 = vmul.f32 %v9787_v6, %v9698_v53  ;;  %5801 = vrcp.f32 %v9784_v29 }
 0x675   : > { %v4439_v46 = vadd.f32 %v9674_v3, %v4438_v45  ;;  %v4577_v7 = vadd.f32 0.0036580483, %v4576_v44  ;;  %v4843_v34 = vpack.c.bf16 %v4819_v47, %v4817_v9  ;;  %v5051_v27 = vadd.f32 %v5015_v28, %v10491_v39 }
 0x676   : > { %v4498_v2 = vmul.f32 %v4497_v61, %v9545_v24  ;;  %5803 = vrcp.f32 %v9792_v56  ;;  %v4540_v5 = vmul.f32 %v4539_v1, %v9536_v20  ;;  %v4557_v36 = vsub.f32 1.0, %v4556_v4  ;;  %v5016_v1 = vpop.f32.mrf.mxu2 }
 0x677   : > { %v4409_v16 = vmul.f32 %v4408_v21, %v9566_v62  ;;  %v4423_v50 = vadd.f32 1.1283791, %v4422_v42  ;;  %vm4440_vm15 = vweird.f32 %v9636_v13  ;;  %v4444_v25 = vand.u32 2147483647, %v9636_v13  ;;  %5023 = vmatmul.bf16.gmra.mxu2 %v4843_v34  ;;  %5067 = vst [vmem:[%s9726_s24 + $0x10] sm:$0xff] %v5051_v27 }
 0x678   : > { %v10492_v12 = vclamps-f32 %v9547_v54, 1.0  ;;  %vm9819_vm0 = vmor %vm4440_vm15, %vm4441_vm14  ;;  %v4462_v23 = vmul.f32 %v4461_v55, %v9502_v43  ;;  %v4477_v62 = vsub.f32 1.0, %v4476_v38  ;;  %v4844_v15 = vpack.c.bf16 %v9530_v51, %v9425_v35 }
 0x679   : > { %v5393_v13 = vclamps-f32 %v9767_v41, 1.0  ;;  %v4443_v54 = vsel %vm9819_vm0, %v9674_v3, %v4439_v46  ;;  %v4578_v42 = vmul.f32 %v4577_v7, %v9647_v63  ;;  %v4968_v45 = vadd.f32 %v9691_v31, %v4967_v58 }
 0x67a   : > { %v9815_v30 = vadd.f32 1.0, %v10492_v12  ;;  %v9832_v44 = vpop.eup %5801  ;;  %v4447_v32 = vor.u32 1.1754944e-38, %v4446_v18  ;;  %v4499_v40 = vadd.f32 0.05243302, %v4498_v2  ;;  %v4541_v61 = vadd.f32 0.18741608, %v4540_v5  ;;  %v4970_v18 = vpop.f32.mrf.mxu0 }
 0x67b   : > { %v4558_v43 = vmul.f32 %v9763_v48, %v4557_v36  ;;  %v5394_v4 = vclamps-f32 %v4409_v16, 1.0  ;;  %v4424_v35 = vmul.f32 %v4423_v50, %v9386_v57  ;;  %vm4445_vm1 = vcmp.eq.f32.partialorder %v4444_v25, 8.507059e+37  ;;  %4979 = vmatmul.bf16.gmra.mxu0 %v4844_v15  ;;  %v10495_v57 = vld [vmem:[#allocation34_spill] sm:$0xff] }
 0x67c   : > { %v5017_v51 = vadd.f32 %v5016_v1, %v4968_v45  ;;  %v9836_v33 = vpop.eup %5803  ;;  %v4448_v3 = vsel %vm4445_vm1, %v4447_v32, %v4443_v54  ;;  %v4463_v55 = vadd.f32 1.1283791, %v4462_v23  ;;  %v4478_v19 = vmul.f32 %v9787_v6, %v4477_v62  ;;  %v10500_v1 = vld [vmem:[#allocation47_spill] sm:$0xff] }
 0x67d   : > { %vm4480_vm2 = vweird.f32 %v9698_v53  ;;  %v4486_v58 = vand.u32 2147483648, %v9698_v53  ;;  %v4579_v9 = vadd.f32 0.05243302, %v4578_v42  ;;  %v4596_v49 = vmul.f32 %v9832_v44, %v9784_v29 }
 0x67e   : > { %v5052_v47 = vadd.f32 %v5017_v51, %v10495_v57  ;;  %v4500_v28 = vmul.f32 %v4499_v40, %v9545_v24  ;;  %v4542_v21 = vmul.f32 %v4541_v61, %v9536_v20  ;;  %v4559_v38 = vadd.f32 %v9763_v48, %v4558_v43  ;;  %v5019_v62 = vpop.f32.mrf.mxu2 }
 0x67f   : > { %vm4561_vm3 = vweird.f32 %v9763_v48  ;;  %v4794_v46 = vadd.f32 1.0, %v5394_v4  ;;  %v4449_v7 = vmul.f32 %v4448_v3, %v4424_v35  ;;  %v4516_v34 = vmul.f32 %v9836_v33, %v9792_v56 }
 0x680   : > { %v4566_v39 = vand.u32 2147483648, %v9715_v37  ;;  %5068 = vst [vmem:[%s9726_s24 + $0x18] sm:$0xff] %v5052_v47  ;;  %v4479_v27 = vadd.f32 %v9787_v6, %v4478_v19  ;;  %vm4481_vm5 = vweird.f32 %v9787_v6  ;;  %vm4560_vm6 = vweird.f32 %v9715_v37 }
 0x681   : > { %v4564_v20 = vand.u32 2147483647, %v9715_v37  ;;  %v4484_v2 = vand.u32 2147483647, %v9698_v53  ;;  %vm9857_vm4 = vmor %vm4560_vm6, %vm4561_vm3  ;;  %v4580_v36 = vmul.f32 %v4579_v9, %v9647_v63  ;;  %v4597_v16 = vsub.f32 1.0, %v4596_v49 }
 0x682   : > { %v4971_v50 = vadd.f32 %v9691_v31, %v4970_v18  ;;  %v4487_v25 = vor.u32 1.1754944e-38, %v4486_v58  ;;  %v4501_v12 = vadd.f32 0.18741608, %v4500_v28  ;;  %v4543_v22 = vadd.f32 1.1283791, %v4542_v21  ;;  %vm9868_vm7 = vmor %vm4480_vm2, %vm4481_vm5  ;;  %v3374_v18 = vpop.f32.mrf.mxu1 }
 0x683   : > { %v4563_v23 = vsel %vm9857_vm4, %v9763_v48, %v4559_v38  ;;  %v4517_v15 = vsub.f32 1.0, %v4516_v34  ;;  %v4567_v54 = vor.u32 1.1754944e-38, %v4566_v39  ;;  %v4845_v42 = vpack.c.bf16 %v9575_v14, %v9444_v17  ;;  %v4972_v14 = vpop.f32.mrf.mxu0  ;;  %v10503_v39 = vld [vmem:[#allocation31_spill] sm:$0xff] }
 0x684   : > { %v5020_v45 = vadd.f32 %v5019_v62, %v4971_v50  ;;  %v4826_v32 = vmul.f32 %v4794_v46, %v9450_v60  ;;  %v5395_v40 = vclamps-f32 %v4449_v7, 1.0  ;;  %v4483_v48 = vsel %vm9868_vm7, %v9787_v6, %v4479_v27 }
 0x685   : > { %vm4565_vm8 = vcmp.eq.f32.partialorder %v4564_v20, 8.507059e+37  ;;  %v4581_v61 = vadd.f32 0.18741608, %v4580_v36  ;;  %v4598_v43 = vmul.f32 %v9832_v44, %v4597_v16  ;;  %v4824_v35 = vmul.f32 %v9815_v30, %v9441_v52  ;;  %v10504_v20 = vld [vmem:[#allocation36_spill] sm:$0xff] }
 0x686   : > { %v4568_v53 = vsel %vm4565_vm8, %v4567_v54, %v4563_v23  ;;  %v5053_v4 = vadd.f32 %v5020_v45, %v10500_v1  ;;  %v4464_v17 = vmul.f32 %v4463_v55, %v9460_v59  ;;  %vm4485_vm9 = vcmp.eq.f32.partialorder %v4484_v2, 8.507059e+37  ;;  %v5021_v55 = vpop.f32.mrf.mxu2  ;;  %v10507_v45 = vld [vmem:[#allocation22_spill] sm:$0xff] }
 0x687   : > { %v4544_v60 = vmul.f32 %v4543_v22, %v9497_v11  ;;  %v4793_v6 = vadd.f32 1.0, %v5393_v13  ;;  %v4488_v51 = vsel %vm4485_vm9, %v4487_v25, %v4483_v48  ;;  %v4502_v3 = vmul.f32 %v4501_v12, %v9545_v24  ;;  %5028 = vmatmul.bf16.gmra.mxu2 %v4845_v42 }
 0x688   : > { %v4518_v19 = vmul.f32 %v9836_v33, %v4517_v15  ;;  %5069 = vst [vmem:[%s9726_s24 + $0x20] sm:$0xff] %v5053_v4  ;;  %v4795_v58 = vadd.f32 1.0, %v5395_v40  ;;  %v4846_v52 = vpack.c.bf16 %v4826_v32, %v4824_v35  ;;  %v9890_v59 = vadd.f32 %v3374_v18, %v8399_v0  ;;  %v10510_v18 = vld [vmem:[#allocation21_spill] sm:$0xff] }
 0x689   : > { %v4569_v9 = vmul.f32 %v4568_v53, %v4544_v60  ;;  %v4582_v11 = vmul.f32 %v4581_v61, %v9647_v63  ;;  %v4599_v30 = vadd.f32 %v9832_v44, %v4598_v43  ;;  %vm4601_vm10 = vweird.f32 %v9832_v44  ;;  %v10508_v53 = vld [vmem:[#allocation18_spill] sm:$0xff] }
 0x68a   : > { %v4973_v41 = vadd.f32 %v9691_v31, %v4972_v14  ;;  %v4489_v24 = vmul.f32 %v4488_v51, %v4464_v17  ;;  %vm4521_vm11 = vweird.f32 %v9836_v33  ;;  %v4606_v13 = vand.u32 2147483648, %v9784_v29  ;;  %v3423_v51 = vpop.f32.mrf.mxu3 }
 0x68b   : > { %v9899_v49 = vmul.f32 0.70710677, %v9890_v59  ;;  %v4519_v57 = vadd.f32 %v9836_v33, %v4518_v19  ;;  %vm4600_vm12 = vweird.f32 %v9784_v29  ;;  %v4604_v63 = vand.u32 2147483647, %v9784_v29  ;;  %4984 = vmatmul.bf16.gmra.mxu0 %v4846_v52 }
 0x68c   : > { %v5022_v47 = vadd.f32 %v5021_v55, %v4973_v41  ;;  %vm4520_vm13 = vweird.f32 %v9792_v56  ;;  %v4526_v28 = vand.u32 2147483648, %v9792_v56  ;;  %v5398_v21 = vclamps-f32 %v4569_v9, 1.0  ;;  %vm9906_vm14 = vmor %vm4600_vm12, %vm4601_vm10  ;;  %v10511_v9 = vld [vmem:[#allocation20_spill] sm:$0xff] }
 0x68d   : > { %v4612_v46 = vmul.f32 %v9899_v49, %v9899_v49  ;;  %v4524_v7 = vand.u32 2147483647, %v9792_v56  ;;  %v4583_v34 = vadd.f32 1.1283791, %v4582_v11  ;;  %v4603_v29 = vsel %vm9906_vm14, %v9832_v44, %v4599_v30  ;;  %vm9920_vm15 = vmor %vm4520_vm13, %vm4521_vm11 }
 0x68e   : > { %v5054_v27 = vadd.f32 %v5022_v47, %v10503_v39  ;;  %v3449_v2 = vmul.f32 0.5, %v10504_v20  ;;  %v5396_v5 = vclamps-f32 %v4489_v24, 1.0  ;;  %v4607_v16 = vor.u32 1.1754944e-38, %v4606_v13  ;;  %v3376_v20 = vpop.f32.mrf.mxu1 }
 0x68f   : > { %v9924_v50 = vmin.f32 %v4612_v46, 16.0  ;;  %v4827_v56 = vmul.f32 %v4795_v58, %v9540_v10  ;;  %v4503_v25 = vadd.f32 1.1283791, %v4502_v3  ;;  %v4523_v44 = vsel %vm9920_vm15, %v9836_v33, %v4519_v57 }
 0x690   : > { %vm4605_vm0 = vcmp.eq.f32.partialorder %v4604_v63, 8.507059e+37  ;;  %5070 = vst [vmem:[%s9726_s24 + $0x28] sm:$0xff] %v5054_v27  ;;  %v4527_v12 = vor.u32 1.1754944e-38, %v4526_v28  ;;  %v4798_v22 = vadd.f32 1.0, %v5398_v21  ;;  %v4825_v37 = vmul.f32 %v4793_v6, %v3449_v2 }
 0x691   : > { %v4608_v23 = vsel %vm4605_vm0, %v4607_v16, %v4603_v29  ;;  %v4625_v62 = vmul.f32 3.8918573e-05, %v9924_v50  ;;  %vm4525_vm1 = vcmp.eq.f32.partialorder %v4524_v7, 8.507059e+37  ;;  %v4584_v15 = vmul.f32 %v4583_v34, %v9632_v8 }
 0x692   : > { %v4796_v54 = vadd.f32 1.0, %v5396_v5  ;;  %v4528_v42 = vsel %vm4525_vm1, %v4527_v12, %v4523_v44  ;;  %v3454_v10 = vmul.f32 0.5, %v9471_v26  ;;  %v4504_v32 = vmul.f32 %v4503_v25, %v10507_v45  ;;  %v10509_v26 = vld [vmem:[#allocation26_spill] sm:$0xff] }
 0x693   : > { %v4609_v40 = vmul.f32 %v4608_v23, %v4584_v15  ;;  %v4847_v48 = vpack.c.bf16 %v4827_v56, %v4825_v37  ;;  %v4626_v33 = vadd.f32 0.001143296, %v4625_v62  ;;  %v3452_v61 = vmul.f32 0.5, %v10508_v53  ;;  %v3425_v23 = vpop.f32.mrf.mxu3 }
 0x694   : > { %v4830_v43 = vmul.f32 %v4798_v22, %v3454_v10  ;;  %v4529_v1 = vmul.f32 %v4528_v42, %v4504_v32  ;;  %v9938_v3 = vadd.f32 %v3423_v51, %v10509_v26  ;;  %v3455_v58 = vmul.f32 0.5, %v10510_v18 }
 0x695   : > { %v4828_v4 = vmul.f32 %v4796_v54, %v3452_v61  ;;  %v5399_v35 = vclamps-f32 %v4609_v40, 1.0  ;;  %v4627_v17 = vmul.f32 %v4626_v33, %v9924_v50  ;;  %v3453_v52 = vmul.f32 0.5, %v10511_v9 }
 0x696   : > { %v5397_v8 = vclamps-f32 %v4529_v1, 1.0  ;;  %v9944_v41 = vmul.f32 0.70710677, %v9938_v3  ;;  %v4614_v29 = vmul.f32 2.1237322e-06, %v9924_v50  ;;  %v9958_v5 = vadd.f32 %v3376_v20, %v8399_v0 }
 0x697   : > { %5033 = vmatmul.bf16.gmra.mxu2 %v4847_v48  ;;  %v4848_v60 = vpack.c.bf16 %v4830_v43, %v4828_v4  ;;  %v4799_v14 = vadd.f32 1.0, %v5399_v35  ;;  %v4628_v6 = vadd.f32 0.014752088, %v4627_v17  ;;  %v9974_v15 = vadd.f32 %v3425_v23, %v10509_v26 }
 0x698   : > { %v4797_v19 = vadd.f32 1.0, %v5397_v8  ;;  %v4652_v13 = vmul.f32 %v9944_v41, %v9944_v41  ;;  %v4615_v36 = vadd.f32 0.00028619796, %v4614_v29  ;;  %v9964_v44 = vmul.f32 0.70710677, %v9958_v5 }
 0x699   : > { %v4831_v11 = vmul.f32 %v4799_v14, %v3455_v58  ;;  %v4629_v30 = vmul.f32 %v4628_v6, %v9924_v50  ;;  %v9979_v45 = vmul.f32 0.70710677, %v9974_v15 }
 0x69a   : > { %v4829_v24 = vmul.f32 %v4797_v19, %v3453_v52  ;;  %v9948_v63 = vmin.f32 %v4652_v13, 16.0  ;;  %v4616_v12 = vmul.f32 %v4615_v36, %v9924_v50  ;;  %v4692_v22 = vmul.f32 %v9964_v44, %v9964_v44 }
 0x69b   : > { %4989 = vmatmul.bf16.gmra.mxu0 %v4848_v60  ;;  %v4630_v57 = vadd.f32 0.112945676, %v4629_v30  ;;  %v4732_v61 = vmul.f32 %v9979_v45, %v9979_v45 }
 0x69c   : > { %v4849_v55 = vpack.c.bf16 %v4831_v11, %v4829_v24  ;;  %v4665_v47 = vmul.f32 3.8918573e-05, %v9948_v63  ;;  %v4654_v56 = vmul.f32 2.1237322e-06, %v9948_v63  ;;  %v9971_v37 = vmin.f32 %v4692_v22, 16.0 }
 0x69d   : > { %v4631_v28 = vmul.f32 %v4630_v57, %v9924_v50  ;;  %v4617_v54 = vadd.f32 0.0036580483, %v4616_v12  ;;  %v9991_v35 = vmin.f32 %v4732_v61, 16.0 }
 0x69e   : > { %v4666_v21 = vadd.f32 0.001143296, %v4665_v47  ;;  %v4655_v62 = vadd.f32 0.00028619796, %v4654_v56  ;;  %v4694_v42 = vmul.f32 2.1237322e-06, %v9971_v37 }
 0x69f   : > { %v4632_v46 = vadd.f32 0.4994258, %v4631_v28  ;;  %v4705_v10 = vmul.f32 3.8918573e-05, %v9971_v37  ;;  %v4618_v43 = vmul.f32 %v4617_v54, %v9924_v50  ;;  %v4734_v14 = vmul.f32 2.1237322e-06, %v9991_v35 }
 0x6a0   : > { %v4667_v38 = vmul.f32 %v4666_v21, %v9948_v63  ;;  %v4656_v32 = vmul.f32 %v4655_v62, %v9948_v63  ;;  %v4695_v48 = vadd.f32 0.00028619796, %v4694_v42  ;;  %v4745_v6 = vmul.f32 3.8918573e-05, %v9991_v35 }
 0x6a1   : > { %v4633_v39 = vmul.f32 %v4632_v46, %v9924_v50  ;;  %v4706_v53 = vadd.f32 0.001143296, %v4705_v10  ;;  %v4619_v51 = vadd.f32 0.05243302, %v4618_v43  ;;  %v4735_v18 = vadd.f32 0.00028619796, %v4734_v14 }
 0x6a2   : > { %v4668_v7 = vadd.f32 0.014752088, %v4667_v38  ;;  %v4696_v1 = vmul.f32 %v4695_v48, %v9971_v37  ;;  %v4657_v60 = vadd.f32 0.0036580483, %v4656_v32  ;;  %v4746_v58 = vadd.f32 0.001143296, %v4745_v6 }
 0x6a3   : > { %v9960_v16 = vadd.f32 1.0, %v4633_v39  ;;  %v4707_v4 = vmul.f32 %v4706_v53, %v9971_v37  ;;  %v4736_v30 = vmul.f32 %v4735_v18, %v9991_v35 }
 0x6a4   : > { %v4669_v34 = vmul.f32 %v4668_v7, %v9948_v63  ;;  %v4697_v26 = vadd.f32 0.0036580483, %v4696_v1  ;;  %v4658_v52 = vmul.f32 %v4657_v60, %v9948_v63  ;;  %v4747_v24 = vmul.f32 %v4746_v58, %v9991_v35  ;;  %v10515_v58 = vld [vmem:[#allocation29_spill] sm:$0xff] }
 0x6a5   : > { %5805 = vrcp.f32 %v9960_v16  ;;  %v4708_v8 = vadd.f32 0.014752088, %v4707_v4  ;;  %vm4640_vm3 = vweird.f32 %v9960_v16  ;;  %v4644_v42 = vand.u32 2147483647, %v9960_v16 }
 0x6a6   : > { %v4670_v27 = vadd.f32 0.112945676, %v4669_v34  ;;  %v4698_v57 = vmul.f32 %v4697_v26, %v9971_v37  ;;  %v4748_v28 = vadd.f32 0.014752088, %v4747_v24  ;;  %v4659_v38 = vadd.f32 0.05243302, %v4658_v52 }
 0x6a7   : > { %5038 = vmatmul.bf16.gmra.mxu2 %v4849_v55  ;;  %v4709_v19 = vmul.f32 %v4708_v8, %v9971_v37  ;;  %v4620_v55 = vmul.f32 %v4619_v51, %v9924_v50  ;;  %v4737_v34 = vadd.f32 0.0036580483, %v4736_v30  ;;  %vm4645_vm6 = vcmp.eq.f32.partialorder %v4644_v42, 8.507059e+37 }
 0x6a8   : > { %v4671_v2 = vmul.f32 %v4670_v27, %v9948_v63  ;;  %v4749_v29 = vmul.f32 %v4748_v28, %v9991_v35  ;;  %v4699_v27 = vadd.f32 0.05243302, %v4698_v57  ;;  %v4660_v56 = vmul.f32 %v4659_v38, %v9948_v63 }
 0x6a9   : > { %v4710_v11 = vadd.f32 0.112945676, %v4709_v19  ;;  %v4621_v39 = vadd.f32 0.18741608, %v4620_v55  ;;  %v4738_v22 = vmul.f32 %v4737_v34, %v9991_v35 }
 0x6aa   : > { %v4672_v25 = vadd.f32 0.4994258, %v4671_v2  ;;  %v4750_v2 = vadd.f32 0.112945676, %v4749_v29  ;;  %v4700_v54 = vmul.f32 %v4699_v27, %v9971_v37  ;;  %v4661_v48 = vadd.f32 0.18741608, %v4660_v56 }
 0x6ab   : > { %v9984_v33 = vpop.eup %5805  ;;  %v4711_v47 = vmul.f32 %v4710_v11, %v9971_v37  ;;  %v4622_v62 = vmul.f32 %v4621_v39, %v9924_v50  ;;  %v4739_v61 = vadd.f32 0.05243302, %v4738_v22 }
 0x6ac   : > { %v4673_v0 = vmul.f32 %v4672_v25, %v9948_v63  ;;  %v4636_v17 = vmul.f32 %v9984_v33, %v9960_v16  ;;  %vm4641_vm2 = vweird.f32 %v9984_v33  ;;  %v4751_v23 = vmul.f32 %v4750_v2, %v9991_v35 }
 0x6ad   : > { %v4712_v7 = vadd.f32 0.4994258, %v4711_v47  ;;  %vm4642_vm5 = vmor %vm4640_vm3, %vm4641_vm2  ;;  %v4623_v43 = vadd.f32 1.1283791, %v4622_v62  ;;  %v4701_v50 = vadd.f32 0.18741608, %v4700_v54 }
 0x6ae   : > { %v9982_v40 = vadd.f32 1.0, %v4673_v0  ;;  %v4637_v9 = vsub.f32 1.0, %v4636_v17  ;;  %v4646_v0 = vand.u32 2147483648, %v9960_v16  ;;  %v4752_v10 = vadd.f32 0.4994258, %v4751_v23 }
 0x6af   : > { %v4713_v20 = vmul.f32 %v4712_v7, %v9971_v37  ;;  %v4662_v16 = vmul.f32 %v4661_v48, %v9948_v63  ;;  %v4624_v6 = vmul.f32 %v4623_v43, %v9899_v49  ;;  %v4702_v51 = vmul.f32 %v4701_v50, %v9971_v37 }
 0x6b0   : > { %5807 = vrcp.f32 %v9982_v40  ;;  %v4638_v21 = vmul.f32 %v9984_v33, %v4637_v9  ;;  %v4647_v1 = vor.u32 1.1754944e-38, %v4646_v0  ;;  %v4753_v4 = vmul.f32 %v4752_v10, %v9991_v35 }
 0x6b1   : > { %v4714_v12 = vadd.f32 1.0, %v4713_v20  ;;  %vm4680_vm7 = vweird.f32 %v9982_v40  ;;  %v4686_v19 = vand.u32 2147483648, %v9982_v40  ;;  %v4684_v63 = vand.u32 2147483647, %v9982_v40 }
 0x6b2   : > { %v4639_v36 = vadd.f32 %v9984_v33, %v4638_v21  ;;  %v4754_v60 = vadd.f32 1.0, %v4753_v4  ;;  %v4663_v52 = vadd.f32 1.1283791, %v4662_v16  ;;  %v4703_v30 = vadd.f32 1.1283791, %v4702_v51 }
 0x6b3   : > { %5809 = vrcp.f32 %v4714_v12  ;;  %v4726_v37 = vand.u32 2147483648, %v4714_v12  ;;  %v4724_v55 = vand.u32 2147483647, %v4714_v12  ;;  %v4687_v57 = vor.u32 1.1754944e-38, %v4686_v19 }
 0x6b4   : > { %v4643_v32 = vsel %vm4642_vm5, %v9984_v33, %v4639_v36  ;;  %v4740_v33 = vmul.f32 %v4739_v61, %v9991_v35  ;;  %5811 = vrcp.f32 %v4754_v60  ;;  %vm4685_vm10 = vcmp.eq.f32.partialorder %v4684_v63, 8.507059e+37 }
 0x6b5   : > { %v4648_v17 = vsel %vm4645_vm6, %v4647_v1, %v4643_v32  ;;  %vm4720_vm11 = vweird.f32 %v4714_v12  ;;  %v4704_v34 = vmul.f32 %v4703_v30, %v9964_v44  ;;  %vm4725_vm13 = vcmp.eq.f32.partialorder %v4724_v55, 8.507059e+37 }
 0x6b6   : > { %v10002_v13 = vpop.eup %5807  ;;  %v4649_v18 = vmul.f32 %v4648_v17, %v4624_v6  ;;  %v4741_v11 = vadd.f32 0.18741608, %v4740_v33  ;;  %v4766_v36 = vand.u32 2147483648, %v4754_v60  ;;  %vm4760_vm15 = vweird.f32 %v4754_v60 }
 0x6b7   : > { %v4676_v46 = vmul.f32 %v10002_v13, %v9982_v40  ;;  %vm4681_vm4 = vweird.f32 %v10002_v13  ;;  %v4727_v40 = vor.u32 1.1754944e-38, %v4726_v37 }
 0x6b8   : > { %vm10033_vm8 = vmor %vm4680_vm7, %vm4681_vm4  ;;  %v5400_v28 = vclamps-f32 %v4649_v18, 1.0  ;;  %v4767_v0 = vor.u32 1.1754944e-38, %v4766_v36 }
 0x6b9   : > { %v4677_v25 = vsub.f32 1.0, %v4676_v46  ;;  %v5810_v8 = vpop.eup %5809  ;;  %v4742_v46 = vmul.f32 %v4741_v11, %v9991_v35  ;;  %v3456_v35 = vmul.f32 0.5, %v9890_v59  ;;  %v3457_v59 = vmul.f32 0.5, %v9938_v3  ;;  %v10516_v11 = vld [vmem:[#allocation35_spill] sm:$0xff] }
 0x6ba   : > { %v4716_v26 = vmul.f32 %v5810_v8, %v4714_v12  ;;  %vm4721_vm9 = vweird.f32 %v5810_v8  ;;  %v5812_v47 = vpop.eup %5811  ;;  %v4764_v12 = vand.u32 2147483647, %v4754_v60  ;;  %v4800_v22 = vadd.f32 1.0, %v5400_v28  ;;  %v10517_v28 = vld [vmem:[#allocation30_spill] sm:$0xff] }
 0x6bb   : > { %v4678_v53 = vmul.f32 %v10002_v13, %v4677_v25  ;;  %vm4722_vm12 = vmor %vm4720_vm11, %vm4721_vm9  ;;  %v4756_v7 = vmul.f32 %v5812_v47, %v4754_v60  ;;  %v4743_v56 = vadd.f32 1.1283791, %v4742_v46  ;;  %vm4761_vm14 = vweird.f32 %v5812_v47 }
 0x6bc   : > { %v4717_v9 = vsub.f32 1.0, %v4716_v26  ;;  %vm4762_vm0 = vmor %vm4760_vm15, %vm4761_vm14  ;;  %vm4765_vm1 = vcmp.eq.f32.partialorder %v4764_v12, 8.507059e+37  ;;  %v4832_v32 = vmul.f32 %v4800_v22, %v3456_v35  ;;  %v10514_v26 = vld [vmem:[#allocation43_spill] sm:$0xff]  ;;  %v10520_v22 = vld [vmem:[#allocation41_spill] sm:$0xff] }
 0x6bd   : > { %v4679_v14 = vadd.f32 %v10002_v13, %v4678_v53  ;;  %v4757_v27 = vsub.f32 1.0, %v4756_v7  ;;  %v4744_v42 = vmul.f32 %v4743_v56, %v9979_v45 }
 0x6be   : > { %v4718_v24 = vmul.f32 %v5810_v8, %v4717_v9 }
 0x6bf   : > { %v4683_v49 = vsel %vm10033_vm8, %v10002_v13, %v4679_v14  ;;  %v4664_v13 = vmul.f32 %v4663_v52, %v9944_v41  ;;  %v4758_v25 = vmul.f32 %v5812_v47, %v4757_v27  ;;  %v3458_v41 = vmul.f32 0.5, %v9958_v5 }
 0x6c0   : > { %v4719_v21 = vadd.f32 %v5810_v8, %v4718_v24  ;;  %v4688_v38 = vsel %vm4685_vm10, %v4687_v57, %v4683_v49  ;;  %v3459_v5 = vmul.f32 0.5, %v9974_v15 }
 0x6c1   : > { %v4689_v20 = vmul.f32 %v4688_v38, %v4664_v13  ;;  %v4759_v62 = vadd.f32 %v5812_v47, %v4758_v25  ;;  %v10518_v13 = vld [vmem:[#allocation39_spill] sm:$0xff] }
 0x6c2   : > { %v4723_v29 = vsel %vm4722_vm12, %v5810_v8, %v4719_v21 }
 0x6c3   : > { %v4728_v39 = vsel %vm4725_vm13, %v4727_v40, %v4723_v29  ;;  %v5401_v54 = vclamps-f32 %v4689_v20, 1.0  ;;  %v4763_v10 = vsel %vm4762_vm0, %v5812_v47, %v4759_v62 }
 0x6c4   : > { %v4729_v2 = vmul.f32 %v4728_v39, %v4704_v34  ;;  %v4768_v53 = vsel %vm4765_vm1, %v4767_v0, %v4763_v10  ;;  %v10521_v0 = vld [vmem:[#allocation27_spill] sm:$0xff] }
 0x6c5   : > { %v4769_v61 = vmul.f32 %v4768_v53, %v4744_v42  ;;  %v4801_v1 = vadd.f32 1.0, %v5401_v54  ;;  %v10522_v53 = vld [vmem:[#allocation24_spill] sm:$0xff] }
 0x6c6   : > { %v5402_v23 = vclamps-f32 %v4729_v2, 1.0  ;;  %v10519_v2 = vld [vmem:[#allocation33_spill] sm:$0xff] }
 0x6c7   : > { %v5403_v50 = vclamps-f32 %v4769_v61, 1.0  ;;  %v4833_v60 = vmul.f32 %v4801_v1, %v3457_v59  ;;  %v5835_v1 = vld [vmem:[%s10478_s21] ss:$0 sm:$0xff] }
 0x6c8   : > { %v4802_v44 = vadd.f32 1.0, %v5402_v23  ;;  %v10526_v59 = vld [vmem:[#allocation32_spill] sm:$0xff] }
 0x6c9   : > { %v4803_v17 = vadd.f32 1.0, %v5403_v50 }
 0x6ca   : > { %v4834_v48 = vmul.f32 %v4802_v44, %v3458_v41 }
 0x6cb   : > { %v4835_v45 = vmul.f32 %v4803_v17, %v3459_v5 }
 0x6cc   : > { %v4850_v43 = vpack.c.bf16 %v4834_v48, %v4832_v32 }
 0x6cd   : > { %v4851_v8 = vpack.c.bf16 %v4835_v45, %v4833_v60 }
 0x6ce   : > { %4994 = vmatmul.bf16.vlgmr.msra.gmra.mxu1 %v4850_v43 }
 0x6cf   : > { %5043 = vmatmul.bf16.vlgmr.msra.gmra.mxu3 %v4851_v8 }
 0x6e8   : > { %v4975_v4 = vpop.f32.mrf.mxu0 }
 0x6e9   : > { %v4976_v14 = vadd.f32 %v9691_v31, %v4975_v4 }
 0x6f0   : > { %v4977_v16 = vpop.f32.mrf.mxu0 }
 0x6f1   : > { %v4978_v3 = vadd.f32 %v9691_v31, %v4977_v16 }
 0x6f8   : > { %v4980_v51 = vpop.f32.mrf.mxu0 }
 0x6f9   : > { %v4981_v52 = vadd.f32 %v9691_v31, %v4980_v51 }
 0x6fa   : > { %v5024_v33 = vpop.f32.mrf.mxu2 }
 0x6fb   : > { %v5025_v6 = vadd.f32 %v5024_v33, %v4976_v14 }
 0x6fd   : > { %v5055_v19 = vadd.f32 %v5025_v6, %v10514_v26 }
 0x6ff   : > { %5071 = vst [vmem:[%s9726_s24 + $0x30] sm:$0xff] %v5055_v19 }
 0x700   : > { %v4982_v9 = vpop.f32.mrf.mxu0 }
 0x701   : > { %v4983_v55 = vadd.f32 %v9691_v31, %v4982_v9 }
 0x702   : > { %v5026_v15 = vpop.f32.mrf.mxu2 }
 0x703   : > { %v5027_v18 = vadd.f32 %v5026_v15, %v4978_v3 }
 0x705   : > { %v5056_v63 = vadd.f32 %v5027_v18, %v10515_v58 }
 0x707   : > { %5072 = vst [vmem:[%s9726_s24 + $0x38] sm:$0xff] %v5056_v63 }
 0x708   : > { %v4985_v24 = vpop.f32.mrf.mxu0 }
 0x709   : > { %v4986_v38 = vadd.f32 %v9691_v31, %v4985_v24 }
 0x70a   : > { %v5029_v49 = vpop.f32.mrf.mxu2 }
 0x70b   : > { %v5030_v37 = vadd.f32 %v5029_v49, %v4981_v52 }
 0x70d   : > { %v5057_v30 = vadd.f32 %v5030_v37, %v10516_v11 }
 0x70f   : > { %5073 = vst [vmem:[%s9726_s24 + $0x40] sm:$0xff] %v5057_v30 }
 0x710   : > { %v4987_v40 = vpop.f32.mrf.mxu0 }
 0x711   : > { %v4988_v29 = vadd.f32 %v9691_v31, %v4987_v40 }
 0x712   : > { %v5031_v57 = vpop.f32.mrf.mxu2 }
 0x713   : > { %v5032_v47 = vadd.f32 %v5031_v57, %v4983_v55 }
 0x715   : > { %v5058_v21 = vadd.f32 %v5032_v47, %v10517_v28 }
 0x717   : > { %5074 = vst [vmem:[%s9726_s24 + $0x48] sm:$0xff] %v5058_v21 }
 0x718   : > { %v4990_v20 = vpop.f32.mrf.mxu0 }
 0x719   : > { %v4991_v56 = vadd.f32 %v9691_v31, %v4990_v20 }
 0x71a   : > { %v5034_v46 = vpop.f32.mrf.mxu2 }
 0x71b   : > { %v5035_v7 = vadd.f32 %v5034_v46, %v4986_v38 }
 0x71d   : > { %v5059_v34 = vadd.f32 %v5035_v7, %v10518_v13 }
 0x71f   : > { %5075 = vst [vmem:[%s9726_s24 + $0x50] sm:$0xff] %v5059_v34 }
 0x720   : > { %v4992_v62 = vpop.f32.mrf.mxu0 }
 0x721   : > { %v4993_v35 = vadd.f32 %v9691_v31, %v4992_v62 }
 0x722   : > { %v5036_v39 = vpop.f32.mrf.mxu2 }
 0x723   : > { %v5037_v27 = vadd.f32 %v5036_v39, %v4988_v29 }
 0x725   : > { %v5060_v36 = vadd.f32 %v5037_v27, %v10519_v2 }
 0x727   : > { %5076 = vst [vmem:[%s9726_s24 + $0x58] sm:$0xff] %v5060_v36 }
 0x72a   : > { %v5039_v25 = vpop.f32.mrf.mxu2 }
 0x72b   : > { %v5040_v12 = vadd.f32 %v5039_v25, %v4991_v56 }
 0x72d   : > { %v5061_v23 = vadd.f32 %v5040_v12, %v10520_v22 }
 0x72f   : > { %5077 = vst [vmem:[%s9726_s24 + $0x60] sm:$0xff] %v5061_v23 }
 0x732   : > { %v5041_v41 = vpop.f32.mrf.mxu2 }
 0x733   : > { %v5042_v44 = vadd.f32 %v5041_v41, %v4993_v35 }
 0x735   : > { %v5062_v54 = vadd.f32 %v5042_v44, %v10521_v0 }
 0x737   : > { %5078 = vst [vmem:[%s9726_s24 + $0x68] sm:$0xff] %v5062_v54 }
 0x74b   : > { %v4995_v42 = vpop.f32.mrf.mxu1 }
 0x74c   : > { %v4996_v10 = vadd.f32 %v9691_v31, %v4995_v42 }
 0x752   : > { %v5044_v32 = vpop.f32.mrf.mxu3 }
 0x753   : > { %v5045_v48 = vadd.f32 %v5044_v32, %v4996_v10  ;;  %v4997_v43 = vpop.f32.mrf.mxu1 }
 0x754   : > { %v4998_v50 = vadd.f32 %v5835_v1, %v4997_v43 }
 0x755   : > { %v5063_v61 = vadd.f32 %v5045_v48, %v10522_v53 }
 0x757   : > { %5079 = vst [vmem:[%s9726_s24 + $0x70] sm:$0xff] %v5063_v61 }
 0x75a   : > { %v5046_v31 = vpop.f32.mrf.mxu3 }
 0x75b   : > { %v5047_v4 = vadd.f32 %v5046_v31, %v4998_v50 }
 0x75d   : > { %v5064_v5 = vadd.f32 %v5047_v4, %v10526_v59 }
 0x75f   : > { %5080 = vst [vmem:[%s9726_s24 + $0x78] sm:$0xff] %v5064_v5 }
 0x760   : > { %5953 = shalt.err (!%p5950_p8)
}
 0x761   : > { %s6004_s15 = smov 128   ;;  %s6005_s24 = smov 8  }
 0x762   : > { %5548 = dma.vmem_to_hbm [thread:$0]  (%p6128_p11), %s5096_s23, 2048, %s5098_s30, %s5082_s29, %s6004_s15, %s6004_s15, %s6005_s24  }
 0x763 PF: > { %s10527_s20 = sld [smem:[#allocation12_spill]]  ;;  %p10529_p9 = scmp.ge.s32.totalorder %s5996_s28, 2 }
 0x765   : > { %p5562_p10 = pnand %p10529_p9, %p6132_p12 }
 0x767   : > { %p5563_p1 = pneg %p5562_p10 }
 0x769   : > { %s5112_s2 = sand.u32 1, %s10527_s20  }
 0x76a   : > { %s5113_s1 = scalar_lea.sflag [#allocation4], %s5112_s2 }
 0x76b   : > { %5979 = dma.done.wait (%p5563_p1), %s5113_s1, 2048  }
 0x76c   : > { %5981 = vsyncadd (%p5563_p1), %s5113_s1, 4294965248  ;;  %s10530_s28 = sld [smem:[#allocation13_spill]]  ;;  %s10532_s25 = smov %s5988_s26 }
 0x76d   : > { %s10531_s18 = sld [smem:[#allocation14_spill]]  ;;  %s10533_s26 = smov %s5992_s27 }
 0x772   : > { %p27_p2 = scmp.ge.s32.totalorder %s10530_s28, 4  }
 0x773   : > { %s10534_s27 = smov %s10531_s18 }
 0x774   :  { %29 = sbr.rel (!%p27_p2) target bundleno = 12 (0xc), region = 126 }
 0x779   :  { %5119 = vsyncpa [#allocation3], 1 }
 0x77a   :  { %5121 = vsyncpa [#allocation3 + $0x1], 1 }
 0x77b   :  { %5122 = vsyncpa [#allocation6], 1 }
 0x77c   :  { %5123 = vsyncpa [#allocation4], 1 }
 0x77d   :  { %5125 = vsyncpa [#allocation4 + $0x1], 1 }

</bundles_post_ra>
